<compile_context>
chip_gen: v6e
topology: v6e:2x2x1
jax: 0.10.0
libtpu: 0.0.40
codegen_flags: <defaults>
</compile_context>

<pallas_src>
import functools

import jax
import jax.numpy as jnp
import numpy as np
from jax import lax
from jax.experimental import pallas as pl
from jax.experimental.pallas import tpu as pltpu


def _round_up(v: int, m: int) -> int:
    return -(-v // m) * m


def _batchnorm(x, gamma, beta, eps=1e-5):
    # Training-mode BatchNorm2d on a (N*H*W, C) activation: per-channel stats
    # over all rows (= over N, H, W), biased variance, eps = 1e-5.  All f32.
    mean = jnp.mean(x, axis=0, keepdims=True)
    var = jnp.mean(jnp.square(x - mean), axis=0, keepdims=True)
    return (x - mean) * lax.rsqrt(var + eps) * gamma + beta


def _selection_matrix(n, h, w):
    """Constant one-hot gather matrix for a 3x3 / stride-2 / pad-1 conv.

    Shape (9*mo_blk, n*h*w), tap-major row blocks: row k*mo_blk + o selects the
    input row of tap k = 3*kh + kw for output pixel o = (b, oh, ow); taps that
    fall into the zero padding are all-zero rows.  mo_blk rounds the per-tap
    block up to a multiple of 8 so the in-kernel sublane slices stay aligned.
    Values are 0/1 -> exactly representable in bf16.  Built on the host at
    trace time (shapes are static), so nothing is rebuilt in-register per call.
    """
    ho, wo = h // 2, w // 2
    mo, mi = n * ho * wo, n * h * w
    mo_blk = _round_up(mo, 8)
    e = np.zeros((9 * mo_blk, mi), np.float32)
    for k in range(9):
        kh, kw = divmod(k, 3)
        for o in range(mo):
            b, rem = divmod(o, ho * wo)
            oh, ow = divmod(rem, wo)
            ih, iw = 2 * oh + kh - 1, 2 * ow + kw - 1
            if 0 <= ih < h and 0 <= iw < w:
                e[k * mo_blk + o, (b * h + ih) * w + iw] = 1.0
    return jnp.asarray(e, jnp.bfloat16)


def _conv3x3_s2_relu(x, e, wmat, bias, *, n, h, w):
    """Conv3x3/s2/p1 + bias + ReLU on a VMEM-resident (n*h*w, c_in) activation.

    e:    (9*mo_blk, n*h*w) bf16 constant selection matrix (tap-major blocks)
    wmat: (9*c_in, c_out)   f32, contraction dim ordered (kh, kw, c_in)
    bias: (1, c_out)        f32
    ->    (n*(h//2)*(w//2), c_out) f32

    The strided/padded patch gather is ONE stacked matmul.  x is split into
    exact bf16 hi/lo halves so both selection matmuls are native single-pass
    bf16 MXU ops while the gathered values remain exact f32 (E is 0/1 and the
    accumulation is f32): error <= ~1.5e-5 relative, far inside 5e-3.
    """
    ho, wo = h // 2, w // 2
    mo = n * ho * wo
    mo_blk = e.shape[0] // 9
    c_in = x.shape[1]

    x_hi = x.astype(jnp.bfloat16)
    x_lo = (x - x_hi.astype(jnp.float32)).astype(jnp.bfloat16)
    t = (jnp.dot(e, x_hi, preferred_element_type=jnp.float32)
         + jnp.dot(e, x_lo, preferred_element_type=jnp.float32))
    # (9*mo_blk, c_in) tap-major row blocks -> (mo_blk, 9*c_in) patch matrix;
    # slices are sublane-aligned (mo_blk is a multiple of 8).
    patches = jnp.concatenate(
        [t[k * mo_blk:(k + 1) * mo_blk, :] for k in range(9)], axis=1)
    # Real conv matmul: small FLOPs, kept in f32 for exactness.
    y = jnp.dot(patches, wmat, preferred_element_type=jnp.float32) + bias
    return jnp.maximum(y, 0.0)[:mo]
    assert c_in == wmat.shape[0] // 9  # (never reached; shape documentation)


def _encoder_kernel(a1_ref, w1_ref, b1_ref, gamma_ref, beta_ref,
                    e2_ref, w2_ref, b2_ref, e3_ref, w3_ref, b3_ref,
                    e4_ref, w4_ref, b4_ref, e5_ref, w5_ref, b5_ref,
                    out_ref, *, n, h0, w0):
    # Layer 1: Conv(3->32, s2) on pre-built im2col patches, fused bias + ReLU.
    x = jnp.dot(a1_ref[...], w1_ref[...], preferred_element_type=jnp.float32)
    x = jnp.maximum(x + b1_ref[...], 0.0)
    # BatchNorm2d(32) fused into the same kernel (training-mode batch stats).
    x = _batchnorm(x, gamma_ref[...], beta_ref[...])
    # Layers 2..5: Conv(s2) + ReLU; every activation stays in VMEM/vregs.
    h, w = h0, w0
    for e_ref, w_ref, b_ref in ((e2_ref, w2_ref, b2_ref),
                                (e3_ref, w3_ref, b3_ref),
                                (e4_ref, w4_ref, b4_ref),
                                (e5_ref, w5_ref, b5_ref)):
        x = _conv3x3_s2_relu(x, e_ref[...], w_ref[...], b_ref[...],
                             n=n, h=h, w=w)
        h, w = h // 2, w // 2
    out_ref[...] = x.astype(out_ref.dtype)      # only HBM store of the kernel


def _weight_matrix(wt):
    # PyTorch (Cout, Cin, 3, 3) -> (9*Cin, Cout), K ordered (kh, kw, cin).
    cout, cin = wt.shape[0], wt.shape[1]
    return jnp.transpose(wt, (2, 3, 1, 0)).reshape(9 * cin, cout)


@jax.jit
def encoder_forward(images_nchw, params):
    x = jnp.transpose(images_nchw, (0, 2, 3, 1)).astype(jnp.float32)  # -> NHWC
    n, h, w, cin = x.shape
    ho, wo = h // 2, w // 2

    # Layer-1 im2col stays in the wrapper (~55 KB): with c_in=3 an in-kernel
    # selection-matrix gather would cost far more DMA + MXU time than it saves.
    xp = jnp.pad(x, ((0, 0), (1, 1), (1, 1), (0, 0)))
    patches = jnp.stack(
        [xp[:, kh:kh + 2 * ho:2, kw:kw + 2 * wo:2, :]
         for kh in range(3) for kw in range(3)],
        axis=3)                                            # (N, Ho, Wo, 9, Cin)
    a1 = patches.reshape(n * ho * wo, 9 * cin)

    # Constant (shape-only) bf16 selection matrices for layers 2..5.
    sel = []
    hh, ww = ho, wo
    for _ in range(4):
        sel.append(_selection_matrix(n, hh, ww))
        hh, ww = hh // 2, ww // 2

    cout = params["w5"].shape[0]
    operands = (
        a1,
        _weight_matrix(params["w1"]), params["b1"].reshape(1, -1),
        params["gamma"].reshape(1, -1), params["beta"].reshape(1, -1),
        sel[0], _weight_matrix(params["w2"]), params["b2"].reshape(1, -1),
        sel[1], _weight_matrix(params["w3"]), params["b3"].reshape(1, -1),
        sel[2], _weight_matrix(params["w4"]), params["b4"].reshape(1, -1),
        sel[3], _weight_matrix(params["w5"]), params["b5"].reshape(1, -1),
    )

    # Advisory cost estimate for XLA's scheduler around the custom call.
    flops = 2 * a1.shape[0] * a1.shape[1] * 32              # layer-1 conv
    c_prev = 32
    for e in sel:
        rows, mi = e.shape
        flops += 2 * 2 * rows * mi * c_prev                 # hi/lo selection
        flops += 2 * (rows // 9) * 9 * c_prev * 64          # conv matmul
        c_prev = 64
    bytes_accessed = sum(int(np.prod(t.shape)) * t.dtype.itemsize
                         for t in operands) + n * cout * 4

    vmem = pl.BlockSpec(memory_space=pltpu.MemorySpace.VMEM)
    out = pl.pallas_call(
        functools.partial(_encoder_kernel, n=n, h0=ho, w0=wo),
        out_shape=jax.ShapeDtypeStruct((n, cout), jnp.float32),
        in_specs=[vmem] * len(operands),
        out_specs=vmem,
        cost_estimate=pl.CostEstimate(flops=int(flops), transcendentals=0,
                                      bytes_accessed=int(bytes_accessed)),
    )(*operands)
    return out.reshape(n, cout, 1, 1)                       # NCHW (N, 64, 1, 1)


def init_params(key):
    ks = jax.random.split(key, 10)
    p = {}
    shapes = [(32, 3, 3, 3), (64, 32, 3, 3), (64, 64, 3, 3),
              (64, 64, 3, 3), (64, 64, 3, 3)]
    for i, shp in enumerate(shapes, start=1):
        p[f"w{i}"] = 0.1 * jax.random.normal(ks[2 * (i - 1)], shp, jnp.float32)
        p[f"b{i}"] = 0.01 * jax.random.normal(ks[2 * (i - 1) + 1], (shp[0],),
                                              jnp.float32)
    p["gamma"] = jnp.ones((32,), jnp.float32)   # BatchNorm2d default init
    p["beta"] = jnp.zeros((32,), jnp.float32)
    return p


def _reference_forward(images_nchw, params):
    # Pure-JAX/XLA reference of the PyTorch module (training-mode BatchNorm).
    # TODO(synk): running_mean / running_var buffer updates are not modeled
    # (they do not affect the training-mode forward output).
    def conv_relu(z, wt, b):
        y = lax.conv_general_dilated(
            z, wt, window_strides=(2, 2), padding=((1, 1), (1, 1)),
            dimension_numbers=("NCHW", "OIHW", "NCHW"),
            precision=lax.Precision.HIGHEST)
        return jax.nn.relu(y + b[None, :, None, None])

    x = conv_relu(images_nchw, params["w1"], params["b1"])
    mean = jnp.mean(x, axis=(0, 2, 3), keepdims=True)
    var = jnp.mean(jnp.square(x - mean), axis=(0, 2, 3), keepdims=True)
    x = (x - mean) * lax.rsqrt(var + 1e-5)
    x = x * params["gamma"][None, :, None, None] \
          + params["beta"][None, :, None, None]
    for i in (2, 3, 4, 5):
        x = conv_relu(x, params[f"w{i}"], params[f"b{i}"])
    return x


if __name__ == "__main__":
    key = jax.random.PRNGKey(0)
    k_img, k_par = jax.random.split(key)
    images = jax.random.normal(k_img, (2, 3, 32, 32), jnp.float32)   # NCHW
    params = init_params(k_par)

    feats = encoder_forward(images, params)
    feats = jax.block_until_ready(feats)

    assert feats.shape == (2, 64, 1, 1), feats.shape   # 32->16->8->4->2->1
    assert feats.dtype == jnp.float32

    ref = jax.block_until_ready(_reference_forward(images, params))
    np.testing.assert_allclose(np.asarray(feats), np.asarray(ref),
                               rtol=5e-3, atol=5e-3)
    print("KERNEL_OK")
</pallas_src>

<mosaic_0001>
module attributes {stable_mosaic.version = 11 : i64} {
  func.func @_encoder_kernel(%arg0: memref<512x27xf32, #tpu.memory_space<vmem>>, %arg1: memref<27x32xf32, #tpu.memory_space<vmem>>, %arg2: memref<1x32xf32, #tpu.memory_space<vmem>>, %arg3: memref<1x32xf32, #tpu.memory_space<vmem>>, %arg4: memref<1x32xf32, #tpu.memory_space<vmem>>, %arg5: memref<1152x512xbf16, #tpu.memory_space<vmem>>, %arg6: memref<288x64xf32, #tpu.memory_space<vmem>>, %arg7: memref<1x64xf32, #tpu.memory_space<vmem>>, %arg8: memref<288x128xbf16, #tpu.memory_space<vmem>>, %arg9: memref<576x64xf32, #tpu.memory_space<vmem>>, %arg10: memref<1x64xf32, #tpu.memory_space<vmem>>, %arg11: memref<72x32xbf16, #tpu.memory_space<vmem>>, %arg12: memref<576x64xf32, #tpu.memory_space<vmem>>, %arg13: memref<1x64xf32, #tpu.memory_space<vmem>>, %arg14: memref<72x8xbf16, #tpu.memory_space<vmem>>, %arg15: memref<576x64xf32, #tpu.memory_space<vmem>>, %arg16: memref<1x64xf32, #tpu.memory_space<vmem>>, %arg17: memref<2x64xf32, #tpu.memory_space<vmem>>) attributes {dimension_semantics = [], scalar_prefetch = 0 : i64, scratch_operands = 0 : i64, tpu.core_type = #tpu.core_type<tc>} {
    %c0 = arith.constant 0 : index
    %c0_0 = arith.constant 0 : index
    %0 = vector.load %arg0[%c0, %c0_0] : memref<512x27xf32, #tpu.memory_space<vmem>>, vector<512x27xf32>
    %c0_1 = arith.constant 0 : index
    %c0_2 = arith.constant 0 : index
    %1 = vector.load %arg1[%c0_1, %c0_2] : memref<27x32xf32, #tpu.memory_space<vmem>>, vector<27x32xf32>
    %cst = arith.constant dense<0.000000e+00> : vector<512x32xf32>
    %2 = tpu.matmul %0, %1, %cst {dimension_numbers = #tpu.dot_dimension_numbers<[1], [0], [0], [1], [0, 0, 1, 1], [], []>} : vector<512x27xf32>, vector<27x32xf32>, vector<512x32xf32> -> vector<512x32xf32>
    %c0_3 = arith.constant 0 : index
    %c0_4 = arith.constant 0 : index
    %3 = vector.load %arg2[%c0_3, %c0_4] : memref<1x32xf32, #tpu.memory_space<vmem>>, vector<1x32xf32>
    %4 = vector.broadcast %3 : vector<1x32xf32> to vector<512x32xf32>
    %5 = arith.addf %2, %4 : vector<512x32xf32>
    %cst_5 = arith.constant 0.000000e+00 : f32
    %6 = vector.broadcast %cst_5 : f32 to vector<512x32xf32>
    %7 = arith.maximumf %5, %6 : vector<512x32xf32>
    %c0_6 = arith.constant 0 : index
    %c0_7 = arith.constant 0 : index
    %8 = vector.load %arg3[%c0_6, %c0_7] : memref<1x32xf32, #tpu.memory_space<vmem>>, vector<1x32xf32>
    %c0_8 = arith.constant 0 : index
    %c0_9 = arith.constant 0 : index
    %9 = vector.load %arg4[%c0_8, %c0_9] : memref<1x32xf32, #tpu.memory_space<vmem>>, vector<1x32xf32>
    %cst_10 = arith.constant dense<0.000000e+00> : vector<32xf32>
    %10 = vector.multi_reduction <add>, %7, %cst_10 [0] : vector<512x32xf32> to vector<32xf32>
    %11 = vector.shape_cast %10 : vector<32xf32> to vector<1x32xf32>
    %cst_11 = arith.constant 5.120000e+02 : f32
    %12 = vector.broadcast %cst_11 : f32 to vector<1x32xf32>
    %13 = arith.divf %11, %12 : vector<1x32xf32>
    %14 = vector.broadcast %13 : vector<1x32xf32> to vector<512x32xf32>
    %15 = arith.subf %7, %14 : vector<512x32xf32>
    %16 = arith.mulf %15, %15 : vector<512x32xf32>
    %cst_12 = arith.constant dense<0.000000e+00> : vector<32xf32>
    %17 = vector.multi_reduction <add>, %16, %cst_12 [0] : vector<512x32xf32> to vector<32xf32>
    %18 = vector.shape_cast %17 : vector<32xf32> to vector<1x32xf32>
    %cst_13 = arith.constant 5.120000e+02 : f32
    %19 = vector.broadcast %cst_13 : f32 to vector<1x32xf32>
    %20 = arith.divf %18, %19 : vector<1x32xf32>
    %21 = vector.broadcast %13 : vector<1x32xf32> to vector<512x32xf32>
    %22 = arith.subf %7, %21 : vector<512x32xf32>
    %cst_14 = arith.constant 9.99999974E-6 : f32
    %23 = vector.broadcast %cst_14 : f32 to vector<1x32xf32>
    %24 = arith.addf %20, %23 : vector<1x32xf32>
    %25 = math.rsqrt %24 : vector<1x32xf32>
    %26 = vector.broadcast %25 : vector<1x32xf32> to vector<512x32xf32>
    %27 = arith.mulf %22, %26 : vector<512x32xf32>
    %28 = vector.broadcast %8 : vector<1x32xf32> to vector<512x32xf32>
    %29 = arith.mulf %27, %28 : vector<512x32xf32>
    %30 = vector.broadcast %9 : vector<1x32xf32> to vector<512x32xf32>
    %31 = arith.addf %29, %30 : vector<512x32xf32>
    %c0_15 = arith.constant 0 : index
    %c0_16 = arith.constant 0 : index
    %32 = vector.load %arg5[%c0_15, %c0_16] : memref<1152x512xbf16, #tpu.memory_space<vmem>>, vector<1152x512xbf16>
    %c0_17 = arith.constant 0 : index
    %c0_18 = arith.constant 0 : index
    %33 = vector.load %arg6[%c0_17, %c0_18] : memref<288x64xf32, #tpu.memory_space<vmem>>, vector<288x64xf32>
    %c0_19 = arith.constant 0 : index
    %c0_20 = arith.constant 0 : index
    %34 = vector.load %arg7[%c0_19, %c0_20] : memref<1x64xf32, #tpu.memory_space<vmem>>, vector<1x64xf32>
    %35 = arith.truncf %31 : vector<512x32xf32> to vector<512x32xbf16>
    %36 = arith.extf %35 : vector<512x32xbf16> to vector<512x32xf32>
    %37 = arith.subf %31, %36 : vector<512x32xf32>
    %38 = arith.truncf %37 : vector<512x32xf32> to vector<512x32xbf16>
    %cst_21 = arith.constant dense<0.000000e+00> : vector<1152x32xf32>
    %39 = tpu.matmul %32, %35, %cst_21 {dimension_numbers = #tpu.dot_dimension_numbers<[1], [0], [0], [1], [0, 0, 1, 1], [], []>} : vector<1152x512xbf16>, vector<512x32xbf16>, vector<1152x32xf32> -> vector<1152x32xf32>
    %cst_22 = arith.constant dense<0.000000e+00> : vector<1152x32xf32>
    %40 = tpu.matmul %32, %38, %cst_22 {dimension_numbers = #tpu.dot_dimension_numbers<[1], [0], [0], [1], [0, 0, 1, 1], [], []>} : vector<1152x512xbf16>, vector<512x32xbf16>, vector<1152x32xf32> -> vector<1152x32xf32>
    %41 = arith.addf %39, %40 : vector<1152x32xf32>
    %42 = vector.extract_strided_slice %41 {offsets = [0, 0], sizes = [128, 32], strides = [1, 1]} : vector<1152x32xf32> to vector<128x32xf32>
    %43 = vector.extract_strided_slice %41 {offsets = [128, 0], sizes = [128, 32], strides = [1, 1]} : vector<1152x32xf32> to vector<128x32xf32>
    %44 = vector.extract_strided_slice %41 {offsets = [256, 0], sizes = [128, 32], strides = [1, 1]} : vector<1152x32xf32> to vector<128x32xf32>
    %45 = vector.extract_strided_slice %41 {offsets = [384, 0], sizes = [128, 32], strides = [1, 1]} : vector<1152x32xf32> to vector<128x32xf32>
    %46 = vector.extract_strided_slice %41 {offsets = [512, 0], sizes = [128, 32], strides = [1, 1]} : vector<1152x32xf32> to vector<128x32xf32>
    %47 = vector.extract_strided_slice %41 {offsets = [640, 0], sizes = [128, 32], strides = [1, 1]} : vector<1152x32xf32> to vector<128x32xf32>
    %48 = vector.extract_strided_slice %41 {offsets = [768, 0], sizes = [128, 32], strides = [1, 1]} : vector<1152x32xf32> to vector<128x32xf32>
    %49 = vector.extract_strided_slice %41 {offsets = [896, 0], sizes = [128, 32], strides = [1, 1]} : vector<1152x32xf32> to vector<128x32xf32>
    %50 = vector.extract_strided_slice %41 {offsets = [1024, 0], sizes = [128, 32], strides = [1, 1]} : vector<1152x32xf32> to vector<128x32xf32>
    %51 = tpu.concatenate %42, %43, %44, %45, %46, %47, %48, %49, %50 in 1 : vector<128x32xf32>, vector<128x32xf32>, vector<128x32xf32>, vector<128x32xf32>, vector<128x32xf32>, vector<128x32xf32>, vector<128x32xf32>, vector<128x32xf32>, vector<128x32xf32> -> vector<128x288xf32>
    %cst_23 = arith.constant dense<0.000000e+00> : vector<128x64xf32>
    %52 = tpu.matmul %51, %33, %cst_23 {dimension_numbers = #tpu.dot_dimension_numbers<[1], [0], [0], [1], [0, 0, 1, 1], [], []>} : vector<128x288xf32>, vector<288x64xf32>, vector<128x64xf32> -> vector<128x64xf32>
    %53 = vector.broadcast %34 : vector<1x64xf32> to vector<128x64xf32>
    %54 = arith.addf %52, %53 : vector<128x64xf32>
    %cst_24 = arith.constant 0.000000e+00 : f32
    %55 = vector.broadcast %cst_24 : f32 to vector<128x64xf32>
    %56 = arith.maximumf %54, %55 : vector<128x64xf32>
    %c0_25 = arith.constant 0 : index
    %c0_26 = arith.constant 0 : index
    %57 = vector.load %arg8[%c0_25, %c0_26] : memref<288x128xbf16, #tpu.memory_space<vmem>>, vector<288x128xbf16>
    %c0_27 = arith.constant 0 : index
    %c0_28 = arith.constant 0 : index
    %58 = vector.load %arg9[%c0_27, %c0_28] : memref<576x64xf32, #tpu.memory_space<vmem>>, vector<576x64xf32>
    %c0_29 = arith.constant 0 : index
    %c0_30 = arith.constant 0 : index
    %59 = vector.load %arg10[%c0_29, %c0_30] : memref<1x64xf32, #tpu.memory_space<vmem>>, vector<1x64xf32>
    %60 = arith.truncf %56 : vector<128x64xf32> to vector<128x64xbf16>
    %61 = arith.extf %60 : vector<128x64xbf16> to vector<128x64xf32>
    %62 = arith.subf %56, %61 : vector<128x64xf32>
    %63 = arith.truncf %62 : vector<128x64xf32> to vector<128x64xbf16>
    %cst_31 = arith.constant dense<0.000000e+00> : vector<288x64xf32>
    %64 = tpu.matmul %57, %60, %cst_31 {dimension_numbers = #tpu.dot_dimension_numbers<[1], [0], [0], [1], [0, 0, 1, 1], [], []>} : vector<288x128xbf16>, vector<128x64xbf16>, vector<288x64xf32> -> vector<288x64xf32>
    %cst_32 = arith.constant dense<0.000000e+00> : vector<288x64xf32>
    %65 = tpu.matmul %57, %63, %cst_32 {dimension_numbers = #tpu.dot_dimension_numbers<[1], [0], [0], [1], [0, 0, 1, 1], [], []>} : vector<288x128xbf16>, vector<128x64xbf16>, vector<288x64xf32> -> vector<288x64xf32>
    %66 = arith.addf %64, %65 : vector<288x64xf32>
    %67 = vector.extract_strided_slice %66 {offsets = [0, 0], sizes = [32, 64], strides = [1, 1]} : vector<288x64xf32> to vector<32x64xf32>
    %68 = vector.extract_strided_slice %66 {offsets = [32, 0], sizes = [32, 64], strides = [1, 1]} : vector<288x64xf32> to vector<32x64xf32>
    %69 = vector.extract_strided_slice %66 {offsets = [64, 0], sizes = [32, 64], strides = [1, 1]} : vector<288x64xf32> to vector<32x64xf32>
    %70 = vector.extract_strided_slice %66 {offsets = [96, 0], sizes = [32, 64], strides = [1, 1]} : vector<288x64xf32> to vector<32x64xf32>
    %71 = vector.extract_strided_slice %66 {offsets = [128, 0], sizes = [32, 64], strides = [1, 1]} : vector<288x64xf32> to vector<32x64xf32>
    %72 = vector.extract_strided_slice %66 {offsets = [160, 0], sizes = [32, 64], strides = [1, 1]} : vector<288x64xf32> to vector<32x64xf32>
    %73 = vector.extract_strided_slice %66 {offsets = [192, 0], sizes = [32, 64], strides = [1, 1]} : vector<288x64xf32> to vector<32x64xf32>
    %74 = vector.extract_strided_slice %66 {offsets = [224, 0], sizes = [32, 64], strides = [1, 1]} : vector<288x64xf32> to vector<32x64xf32>
    %75 = vector.extract_strided_slice %66 {offsets = [256, 0], sizes = [32, 64], strides = [1, 1]} : vector<288x64xf32> to vector<32x64xf32>
    %76 = tpu.concatenate %67, %68, %69, %70, %71, %72, %73, %74, %75 in 1 : vector<32x64xf32>, vector<32x64xf32>, vector<32x64xf32>, vector<32x64xf32>, vector<32x64xf32>, vector<32x64xf32>, vector<32x64xf32>, vector<32x64xf32>, vector<32x64xf32> -> vector<32x576xf32>
    %cst_33 = arith.constant dense<0.000000e+00> : vector<32x64xf32>
    %77 = tpu.matmul %76, %58, %cst_33 {dimension_numbers = #tpu.dot_dimension_numbers<[1], [0], [0], [1], [0, 0, 1, 1], [], []>} : vector<32x576xf32>, vector<576x64xf32>, vector<32x64xf32> -> vector<32x64xf32>
    %78 = vector.broadcast %59 : vector<1x64xf32> to vector<32x64xf32>
    %79 = arith.addf %77, %78 : vector<32x64xf32>
    %cst_34 = arith.constant 0.000000e+00 : f32
    %80 = vector.broadcast %cst_34 : f32 to vector<32x64xf32>
    %81 = arith.maximumf %79, %80 : vector<32x64xf32>
    %c0_35 = arith.constant 0 : index
    %c0_36 = arith.constant 0 : index
    %82 = vector.load %arg11[%c0_35, %c0_36] : memref<72x32xbf16, #tpu.memory_space<vmem>>, vector<72x32xbf16>
    %c0_37 = arith.constant 0 : index
    %c0_38 = arith.constant 0 : index
    %83 = vector.load %arg12[%c0_37, %c0_38] : memref<576x64xf32, #tpu.memory_space<vmem>>, vector<576x64xf32>
    %c0_39 = arith.constant 0 : index
    %c0_40 = arith.constant 0 : index
    %84 = vector.load %arg13[%c0_39, %c0_40] : memref<1x64xf32, #tpu.memory_space<vmem>>, vector<1x64xf32>
    %85 = arith.truncf %81 : vector<32x64xf32> to vector<32x64xbf16>
    %86 = arith.extf %85 : vector<32x64xbf16> to vector<32x64xf32>
    %87 = arith.subf %81, %86 : vector<32x64xf32>
    %88 = arith.truncf %87 : vector<32x64xf32> to vector<32x64xbf16>
    %cst_41 = arith.constant dense<0.000000e+00> : vector<72x64xf32>
    %89 = tpu.matmul %82, %85, %cst_41 {dimension_numbers = #tpu.dot_dimension_numbers<[1], [0], [0], [1], [0, 0, 1, 1], [], []>} : vector<72x32xbf16>, vector<32x64xbf16>, vector<72x64xf32> -> vector<72x64xf32>
    %cst_42 = arith.constant dense<0.000000e+00> : vector<72x64xf32>
    %90 = tpu.matmul %82, %88, %cst_42 {dimension_numbers = #tpu.dot_dimension_numbers<[1], [0], [0], [1], [0, 0, 1, 1], [], []>} : vector<72x32xbf16>, vector<32x64xbf16>, vector<72x64xf32> -> vector<72x64xf32>
    %91 = arith.addf %89, %90 : vector<72x64xf32>
    %92 = vector.extract_strided_slice %91 {offsets = [0, 0], sizes = [8, 64], strides = [1, 1]} : vector<72x64xf32> to vector<8x64xf32>
    %93 = vector.extract_strided_slice %91 {offsets = [8, 0], sizes = [8, 64], strides = [1, 1]} : vector<72x64xf32> to vector<8x64xf32>
    %94 = vector.extract_strided_slice %91 {offsets = [16, 0], sizes = [8, 64], strides = [1, 1]} : vector<72x64xf32> to vector<8x64xf32>
    %95 = vector.extract_strided_slice %91 {offsets = [24, 0], sizes = [8, 64], strides = [1, 1]} : vector<72x64xf32> to vector<8x64xf32>
    %96 = vector.extract_strided_slice %91 {offsets = [32, 0], sizes = [8, 64], strides = [1, 1]} : vector<72x64xf32> to vector<8x64xf32>
    %97 = vector.extract_strided_slice %91 {offsets = [40, 0], sizes = [8, 64], strides = [1, 1]} : vector<72x64xf32> to vector<8x64xf32>
    %98 = vector.extract_strided_slice %91 {offsets = [48, 0], sizes = [8, 64], strides = [1, 1]} : vector<72x64xf32> to vector<8x64xf32>
    %99 = vector.extract_strided_slice %91 {offsets = [56, 0], sizes = [8, 64], strides = [1, 1]} : vector<72x64xf32> to vector<8x64xf32>
    %100 = vector.extract_strided_slice %91 {offsets = [64, 0], sizes = [8, 64], strides = [1, 1]} : vector<72x64xf32> to vector<8x64xf32>
    %101 = tpu.concatenate %92, %93, %94, %95, %96, %97, %98, %99, %100 in 1 : vector<8x64xf32>, vector<8x64xf32>, vector<8x64xf32>, vector<8x64xf32>, vector<8x64xf32>, vector<8x64xf32>, vector<8x64xf32>, vector<8x64xf32>, vector<8x64xf32> -> vector<8x576xf32>
    %cst_43 = arith.constant dense<0.000000e+00> : vector<8x64xf32>
    %102 = tpu.matmul %101, %83, %cst_43 {dimension_numbers = #tpu.dot_dimension_numbers<[1], [0], [0], [1], [0, 0, 1, 1], [], []>} : vector<8x576xf32>, vector<576x64xf32>, vector<8x64xf32> -> vector<8x64xf32>
    %103 = vector.broadcast %84 : vector<1x64xf32> to vector<8x64xf32>
    %104 = arith.addf %102, %103 : vector<8x64xf32>
    %cst_44 = arith.constant 0.000000e+00 : f32
    %105 = vector.broadcast %cst_44 : f32 to vector<8x64xf32>
    %106 = arith.maximumf %104, %105 : vector<8x64xf32>
    %c0_45 = arith.constant 0 : index
    %c0_46 = arith.constant 0 : index
    %107 = vector.load %arg14[%c0_45, %c0_46] : memref<72x8xbf16, #tpu.memory_space<vmem>>, vector<72x8xbf16>
    %c0_47 = arith.constant 0 : index
    %c0_48 = arith.constant 0 : index
    %108 = vector.load %arg15[%c0_47, %c0_48] : memref<576x64xf32, #tpu.memory_space<vmem>>, vector<576x64xf32>
    %c0_49 = arith.constant 0 : index
    %c0_50 = arith.constant 0 : index
    %109 = vector.load %arg16[%c0_49, %c0_50] : memref<1x64xf32, #tpu.memory_space<vmem>>, vector<1x64xf32>
    %110 = arith.truncf %106 : vector<8x64xf32> to vector<8x64xbf16>
    %111 = arith.extf %110 : vector<8x64xbf16> to vector<8x64xf32>
    %112 = arith.subf %106, %111 : vector<8x64xf32>
    %113 = arith.truncf %112 : vector<8x64xf32> to vector<8x64xbf16>
    %cst_51 = arith.constant dense<0.000000e+00> : vector<72x64xf32>
    %114 = tpu.matmul %107, %110, %cst_51 {dimension_numbers = #tpu.dot_dimension_numbers<[1], [0], [0], [1], [0, 0, 1, 1], [], []>} : vector<72x8xbf16>, vector<8x64xbf16>, vector<72x64xf32> -> vector<72x64xf32>
    %cst_52 = arith.constant dense<0.000000e+00> : vector<72x64xf32>
    %115 = tpu.matmul %107, %113, %cst_52 {dimension_numbers = #tpu.dot_dimension_numbers<[1], [0], [0], [1], [0, 0, 1, 1], [], []>} : vector<72x8xbf16>, vector<8x64xbf16>, vector<72x64xf32> -> vector<72x64xf32>
    %116 = arith.addf %114, %115 : vector<72x64xf32>
    %117 = vector.extract_strided_slice %116 {offsets = [0, 0], sizes = [8, 64], strides = [1, 1]} : vector<72x64xf32> to vector<8x64xf32>
    %118 = vector.extract_strided_slice %116 {offsets = [8, 0], sizes = [8, 64], strides = [1, 1]} : vector<72x64xf32> to vector<8x64xf32>
    %119 = vector.extract_strided_slice %116 {offsets = [16, 0], sizes = [8, 64], strides = [1, 1]} : vector<72x64xf32> to vector<8x64xf32>
    %120 = vector.extract_strided_slice %116 {offsets = [24, 0], sizes = [8, 64], strides = [1, 1]} : vector<72x64xf32> to vector<8x64xf32>
    %121 = vector.extract_strided_slice %116 {offsets = [32, 0], sizes = [8, 64], strides = [1, 1]} : vector<72x64xf32> to vector<8x64xf32>
    %122 = vector.extract_strided_slice %116 {offsets = [40, 0], sizes = [8, 64], strides = [1, 1]} : vector<72x64xf32> to vector<8x64xf32>
    %123 = vector.extract_strided_slice %116 {offsets = [48, 0], sizes = [8, 64], strides = [1, 1]} : vector<72x64xf32> to vector<8x64xf32>
    %124 = vector.extract_strided_slice %116 {offsets = [56, 0], sizes = [8, 64], strides = [1, 1]} : vector<72x64xf32> to vector<8x64xf32>
    %125 = vector.extract_strided_slice %116 {offsets = [64, 0], sizes = [8, 64], strides = [1, 1]} : vector<72x64xf32> to vector<8x64xf32>
    %126 = tpu.concatenate %117, %118, %119, %120, %121, %122, %123, %124, %125 in 1 : vector<8x64xf32>, vector<8x64xf32>, vector<8x64xf32>, vector<8x64xf32>, vector<8x64xf32>, vector<8x64xf32>, vector<8x64xf32>, vector<8x64xf32>, vector<8x64xf32> -> vector<8x576xf32>
    %cst_53 = arith.constant dense<0.000000e+00> : vector<8x64xf32>
    %127 = tpu.matmul %126, %108, %cst_53 {dimension_numbers = #tpu.dot_dimension_numbers<[1], [0], [0], [1], [0, 0, 1, 1], [], []>} : vector<8x576xf32>, vector<576x64xf32>, vector<8x64xf32> -> vector<8x64xf32>
    %128 = vector.broadcast %109 : vector<1x64xf32> to vector<8x64xf32>
    %129 = arith.addf %127, %128 : vector<8x64xf32>
    %cst_54 = arith.constant 0.000000e+00 : f32
    %130 = vector.broadcast %cst_54 : f32 to vector<8x64xf32>
    %131 = arith.maximumf %129, %130 : vector<8x64xf32>
    %132 = vector.extract_strided_slice %131 {offsets = [0, 0], sizes = [2, 64], strides = [1, 1]} : vector<8x64xf32> to vector<2x64xf32>
    %c0_55 = arith.constant 0 : index
    %c0_56 = arith.constant 0 : index
    %133 = vector.load %arg17[%c0_55, %c0_56] : memref<2x64xf32, #tpu.memory_space<vmem>>, vector<2x64xf32>
    tpu.vector_store %arg17[%c0_55, %c0_56], %132 {strides = array<i32>} : memref<2x64xf32, #tpu.memory_space<vmem>>, vector<2x64xf32>,
    return
  }
}

</mosaic_0001>

<bundles_post_ra>
// kernel: encoder_forward.1
= control target key start
LH: loop header
LB: loop body
LE: loop exit
PB: predicated region body
PF: predicated region fallthrough
CT: control target
= control target key end

     0   :  { %s17169_s0 = inlined_call_operand.vmem [shape: f32[512,27], index: 0, kind: input, shape index: {}]   ;;  %s17170_s1 = inlined_call_operand.vmem [shape: f32[27,32], index: 1, kind: input, shape index: {}]   ;;  %s17171_s2 = inlined_call_operand.vmem [shape: f32[1,32], index: 2, kind: input, shape index: {}]   ;;  %s17172_s3 = inlined_call_operand.vmem [shape: f32[1,32], index: 3, kind: input, shape index: {}]   ;;  %s17173_s4 = inlined_call_operand.vmem [shape: f32[1,32], index: 4, kind: input, shape index: {}]   ;;  %s17174_s5 = inlined_call_operand.vmem [shape: bf16[1152,512], index: 5, kind: input, shape index: {}]   ;;  %s17175_s6 = inlined_call_operand.vmem [shape: f32[288,64], index: 6, kind: input, shape index: {}]   ;;  %s17176_s7 = inlined_call_operand.vmem [shape: f32[1,64], index: 7, kind: input, shape index: {}]   ;;  %s17177_s8 = inlined_call_operand.vmem [shape: bf16[288,128], index: 8, kind: input, shape index: {}]   ;;  %s17178_s9 = inlined_call_operand.vmem [shape: f32[576,64], index: 9, kind: input, shape index: {}]   ;;  %s17179_s10 = inlined_call_operand.vmem [shape: f32[1,64], index: 10, kind: input, shape index: {}]   ;;  %s17180_s11 = inlined_call_operand.vmem [shape: bf16[72,32], index: 11, kind: input, shape index: {}]   ;;  %s17181_s12 = inlined_call_operand.vmem [shape: f32[576,64], index: 12, kind: input, shape index: {}]   ;;  %s17182_s13 = inlined_call_operand.vmem [shape: f32[1,64], index: 13, kind: input, shape index: {}]   ;;  %s17183_s14 = inlined_call_operand.vmem [shape: bf16[72,8], index: 14, kind: input, shape index: {}]   ;;  %s17184_s15 = inlined_call_operand.vmem [shape: f32[576,64], index: 15, kind: input, shape index: {}]   ;;  %s17185_s16 = inlined_call_operand.vmem [shape: f32[1,64], index: 16, kind: input, shape index: {}]   ;;  %s17186_s17 = inlined_call_operand.hbm [shape: f32[2,64], index: 17, kind: output, shape index: {}]  }
   0x1   :  { %17301 = sst [smem:[#allocation115_spill]] %s17169_s0 }
   0x2   :  { %17302 = sst [smem:[#allocation116_spill]] %s17170_s1 }
   0x3   :  { %s17303_s26 = sld [smem:[#allocation116_spill]]  ;;  %vm326_vm0 = vcmask 1042432   ;;  %vm133_vm1 = vcmask 220160  }
   0x4   :  { %s17304_s30 = sld [smem:[#allocation115_spill]] }
   0x9   :  { %v125_v0 = vld [vmem:[%s17303_s26 + $0x18] sm:$0x7]  ;;  %v124_v1 = vld [vmem:[%s17303_s26 + $0x10] sm:$0xff]  ;;  %v123_v3 = vld [vmem:[%s17303_s26 + $0x8] sm:$0xff] }
   0xa   :  { %9578 = vmatprep.subr.msk.mxu0 %vm326_vm0, %v125_v0  ;;  %v58_v2 = vld [vmem:[%s17304_s30] sm:$0xff]  ;;  %9970 = vmatprep.subr.msk.mxu1 %vm326_vm0, %v125_v0  ;;  %v59_v5 = vld [vmem:[%s17304_s30 + $0x8] sm:$0xff]  ;;  %v60_v6 = vld [vmem:[%s17304_s30 + $0x10] sm:$0xff] }
   0xb   :  { %9579 = vmatpush3.msk.msra.mxu0 %vm326_vm0, %v125_v0  ;;  %9586 = vmatprep.mubr.msk.f32.mxu0 %vm133_vm1, %v58_v2  ;;  %v122_v4 = vld [vmem:[%s17303_s26] sm:$0xff]  ;;  %v61_v7 = vld [vmem:[%s17304_s30 + $0x18] sm:$0xff]  ;;  %v91_v10 = vld [vmem:[%s17304_s30 + $0x108] sm:$0xff] }
   0xc   :  { %9580 = vmatprep.subr.mxu0 %v124_v1  ;;  %9974 = vmatpush3.msk.msra.mxu1 %vm326_vm0, %v125_v0  ;;  %v62_v8 = vld [vmem:[%s17304_s30 + $0x20] sm:$0xff]  ;;  %v92_v11 = vld [vmem:[%s17304_s30 + $0x110] sm:$0xff]  ;;  %v63_v12 = vld [vmem:[%s17304_s30 + $0x28] sm:$0xff] }
   0xd   :  { %9581 = vmatpush3.msra.mxu0 %v124_v1  ;;  %9971 = vmatprep.subr.mxu1 %v124_v1  ;;  %v90_v9 = vld [vmem:[%s17304_s30 + $0x100] sm:$0xff]  ;;  %v64_v13 = vld [vmem:[%s17304_s30 + $0x30] sm:$0xff]  ;;  %v93_v14 = vld [vmem:[%s17304_s30 + $0x118] sm:$0xff] }
   0xe   :  { %9582 = vmatprep.subr.mxu0 %v123_v3  ;;  %9975 = vmatpush3.msra.mxu1 %v124_v1  ;;  %v94_v15 = vld [vmem:[%s17304_s30 + $0x120] sm:$0xff]  ;;  %v65_v16 = vld [vmem:[%s17304_s30 + $0x38] sm:$0xff]  ;;  %v95_v18 = vld [vmem:[%s17304_s30 + $0x128] sm:$0xff] }
   0xf   :  { %9583 = vmatpush3.msra.mxu0 %v123_v3  ;;  %9972 = vmatprep.subr.mxu1 %v123_v3  ;;  %v66_v17 = vld [vmem:[%s17304_s30 + $0x40] sm:$0xff]  ;;  %v96_v19 = vld [vmem:[%s17304_s30 + $0x130] sm:$0xff]  ;;  %v67_v20 = vld [vmem:[%s17304_s30 + $0x48] sm:$0xff] }
  0x10   :  { %9584 = vmatprep.subr.mxu0 %v122_v4  ;;  %9976 = vmatpush3.msra.mxu1 %v123_v3  ;;  %v68_v21 = vld [vmem:[%s17304_s30 + $0x50] sm:$0xff]  ;;  %v97_v22 = vld [vmem:[%s17304_s30 + $0x138] sm:$0xff]  ;;  %v98_v23 = vld [vmem:[%s17304_s30 + $0x140] sm:$0xff] }
  0x11   :  { %9585 = vmatpush3.msra.mxu0 %v122_v4  ;;  %9973 = vmatprep.subr.mxu1 %v122_v4  ;;  %v69_v24 = vld [vmem:[%s17304_s30 + $0x58] sm:$0xff]  ;;  %v70_v25 = vld [vmem:[%s17304_s30 + $0x60] sm:$0xff]  ;;  %v99_v26 = vld [vmem:[%s17304_s30 + $0x148] sm:$0xff] }
  0x12   :  { %9587 = vmatmul.mubr.msk.f32.vlgmr.msra.gmra.mxu0 %vm133_vm1, %v59_v5  ;;  %9977 = vmatpush3.msra.mxu1 %v122_v4  ;;  %v100_v27 = vld [vmem:[%s17304_s30 + $0x150] sm:$0xff]  ;;  %v71_v28 = vld [vmem:[%s17304_s30 + $0x68] sm:$0xff]  ;;  %v101_v30 = vld [vmem:[%s17304_s30 + $0x158] sm:$0xff] }
  0x13   :  { %9589 = vmatprep.mubr.msk.f32.mxu0 %vm133_vm1, %v60_v6  ;;  %9634 = vmatprep.mubr.msk.f32.mxu1 %vm133_vm1, %v90_v9  ;;  %v72_v29 = vld [vmem:[%s17304_s30 + $0x70] sm:$0xff]  ;;  %v102_v31 = vld [vmem:[%s17304_s30 + $0x160] sm:$0xff]  ;;  %v73_v32 = vld [vmem:[%s17304_s30 + $0x78] sm:$0xff] }
  0x14   :  { %9635 = vmatmul.mubr.msk.f32.vlgmr.msra.gmra.mxu1 %vm133_vm1, %v91_v10  ;;  %v74_v33 = vld [vmem:[%s17304_s30 + $0x80] sm:$0xff]  ;;  %v103_v34 = vld [vmem:[%s17304_s30 + $0x168] sm:$0xff]  ;;  %v104_v35 = vld [vmem:[%s17304_s30 + $0x170] sm:$0xff] }
  0x15   :  { %9637 = vmatprep.mubr.msk.f32.mxu1 %vm133_vm1, %v92_v11  ;;  %v75_v36 = vld [vmem:[%s17304_s30 + $0x88] sm:$0xff]  ;;  %v76_v37 = vld [vmem:[%s17304_s30 + $0x90] sm:$0xff]  ;;  %v105_v38 = vld [vmem:[%s17304_s30 + $0x178] sm:$0xff] }
  0x16   :  { %9590 = vmatmul.mubr.msk.f32.gmra.mxu0 %vm133_vm1, %v61_v7  ;;  %v106_v39 = vld [vmem:[%s17304_s30 + $0x180] sm:$0xff]  ;;  %v77_v40 = vld [vmem:[%s17304_s30 + $0x98] sm:$0xff]  ;;  %v107_v42 = vld [vmem:[%s17304_s30 + $0x188] sm:$0xff] }
  0x17   :  { %9592 = vmatprep.mubr.msk.f32.mxu0 %vm133_vm1, %v62_v8  ;;  %v78_v41 = vld [vmem:[%s17304_s30 + $0xa0] sm:$0xff]  ;;  %v108_v43 = vld [vmem:[%s17304_s30 + $0x190] sm:$0xff]  ;;  %v79_v44 = vld [vmem:[%s17304_s30 + $0xa8] sm:$0xff] }
  0x18   :  { %9638 = vmatmul.mubr.msk.f32.gmra.mxu1 %vm133_vm1, %v93_v14  ;;  %v80_v45 = vld [vmem:[%s17304_s30 + $0xb0] sm:$0xff]  ;;  %v109_v46 = vld [vmem:[%s17304_s30 + $0x198] sm:$0xff]  ;;  %v110_v47 = vld [vmem:[%s17304_s30 + $0x1a0] sm:$0xff] }
  0x19   :  { %9640 = vmatprep.mubr.msk.f32.mxu1 %vm133_vm1, %v94_v15  ;;  %v81_v48 = vld [vmem:[%s17304_s30 + $0xb8] sm:$0xff]  ;;  %v82_v49 = vld [vmem:[%s17304_s30 + $0xc0] sm:$0xff]  ;;  %v111_v50 = vld [vmem:[%s17304_s30 + $0x1a8] sm:$0xff] }
  0x1a   :  { %9593 = vmatmul.mubr.msk.f32.gmra.mxu0 %vm133_vm1, %v63_v12  ;;  %v112_v51 = vld [vmem:[%s17304_s30 + $0x1b0] sm:$0xff]  ;;  %v83_v52 = vld [vmem:[%s17304_s30 + $0xc8] sm:$0xff]  ;;  %v113_v54 = vld [vmem:[%s17304_s30 + $0x1b8] sm:$0xff] }
  0x1b   :  { %9595 = vmatprep.mubr.msk.f32.mxu0 %vm133_vm1, %v64_v13  ;;  %v84_v53 = vld [vmem:[%s17304_s30 + $0xd0] sm:$0xff]  ;;  %v114_v55 = vld [vmem:[%s17304_s30 + $0x1c0] sm:$0xff]  ;;  %v85_v56 = vld [vmem:[%s17304_s30 + $0xd8] sm:$0xff] }
  0x1c   :  { %9641 = vmatmul.mubr.msk.f32.gmra.mxu1 %vm133_vm1, %v95_v18  ;;  %v86_v57 = vld [vmem:[%s17304_s30 + $0xe0] sm:$0xff]  ;;  %v115_v58 = vld [vmem:[%s17304_s30 + $0x1c8] sm:$0xff]  ;;  %v116_v59 = vld [vmem:[%s17304_s30 + $0x1d0] sm:$0xff] }
  0x1d   :  { %9643 = vmatprep.mubr.msk.f32.mxu1 %vm133_vm1, %v96_v19  ;;  %v87_v60 = vld [vmem:[%s17304_s30 + $0xe8] sm:$0xff]  ;;  %v88_v61 = vld [vmem:[%s17304_s30 + $0xf0] sm:$0xff]  ;;  %v117_v62 = vld [vmem:[%s17304_s30 + $0x1d8] sm:$0xff] }
  0x1e   :  { %9596 = vmatmul.mubr.msk.f32.gmra.mxu0 %vm133_vm1, %v65_v16  ;;  %v118_v63 = vld [vmem:[%s17304_s30 + $0x1e0] sm:$0xff]  ;;  %v89_v0 = vld [vmem:[%s17304_s30 + $0xf8] sm:$0xff]  ;;  %v119_v1 = vld [vmem:[%s17304_s30 + $0x1e8] sm:$0xff] }
  0x1f   :  { %9598 = vmatprep.mubr.msk.f32.mxu0 %vm133_vm1, %v66_v17  ;;  %v120_v2 = vld [vmem:[%s17304_s30 + $0x1f0] sm:$0xff]  ;;  %v121_v3 = vld [vmem:[%s17304_s30 + $0x1f8] sm:$0xff] }
  0x20   :  { %9644 = vmatmul.mubr.msk.f32.gmra.mxu1 %vm133_vm1, %v97_v22 }
  0x21   :  { %9646 = vmatprep.mubr.msk.f32.mxu1 %vm133_vm1, %v98_v23 }
  0x22   :  { %9599 = vmatmul.mubr.msk.f32.gmra.mxu0 %vm133_vm1, %v67_v20 }
  0x23   :  { %9601 = vmatprep.mubr.msk.f32.mxu0 %vm133_vm1, %v68_v21 }
  0x24   :  { %9647 = vmatmul.mubr.msk.f32.gmra.mxu1 %vm133_vm1, %v99_v26 }
  0x25   :  { %9649 = vmatprep.mubr.msk.f32.mxu1 %vm133_vm1, %v100_v27 }
  0x26   :  { %9602 = vmatmul.mubr.msk.f32.gmra.mxu0 %vm133_vm1, %v69_v24 }
  0x27   :  { %9604 = vmatprep.mubr.msk.f32.mxu0 %vm133_vm1, %v70_v25 }
  0x28   :  { %9650 = vmatmul.mubr.msk.f32.gmra.mxu1 %vm133_vm1, %v101_v30 }
  0x29   :  { %9652 = vmatprep.mubr.msk.f32.mxu1 %vm133_vm1, %v102_v31 }
  0x2a   :  { %9605 = vmatmul.mubr.msk.f32.gmra.mxu0 %vm133_vm1, %v71_v28 }
  0x2b   :  { %9607 = vmatprep.mubr.msk.f32.mxu0 %vm133_vm1, %v72_v29 }
  0x2c   :  { %9653 = vmatmul.mubr.msk.f32.gmra.mxu1 %vm133_vm1, %v103_v34 }
  0x2d   :  { %9655 = vmatprep.mubr.msk.f32.mxu1 %vm133_vm1, %v104_v35 }
  0x2e   :  { %9608 = vmatmul.mubr.msk.f32.gmra.mxu0 %vm133_vm1, %v73_v32 }
  0x2f   :  { %9610 = vmatprep.mubr.msk.f32.mxu0 %vm133_vm1, %v74_v33 }
  0x30   :  { %9656 = vmatmul.mubr.msk.f32.gmra.mxu1 %vm133_vm1, %v105_v38 }
  0x31   :  { %9658 = vmatprep.mubr.msk.f32.mxu1 %vm133_vm1, %v106_v39 }
  0x32   :  { %9611 = vmatmul.mubr.msk.f32.gmra.mxu0 %vm133_vm1, %v75_v36 }
  0x33   :  { %9613 = vmatprep.mubr.msk.f32.mxu0 %vm133_vm1, %v76_v37 }
  0x34   :  { %9659 = vmatmul.mubr.msk.f32.gmra.mxu1 %vm133_vm1, %v107_v42 }
  0x35   :  { %9661 = vmatprep.mubr.msk.f32.mxu1 %vm133_vm1, %v108_v43 }
  0x36   :  { %9614 = vmatmul.mubr.msk.f32.gmra.mxu0 %vm133_vm1, %v77_v40 }
  0x37   :  { %9616 = vmatprep.mubr.msk.f32.mxu0 %vm133_vm1, %v78_v41 }
  0x38   :  { %9662 = vmatmul.mubr.msk.f32.gmra.mxu1 %vm133_vm1, %v109_v46 }
  0x39   :  { %9664 = vmatprep.mubr.msk.f32.mxu1 %vm133_vm1, %v110_v47 }
  0x3a   :  { %9617 = vmatmul.mubr.msk.f32.gmra.mxu0 %vm133_vm1, %v79_v44 }
  0x3b   :  { %9619 = vmatprep.mubr.msk.f32.mxu0 %vm133_vm1, %v80_v45 }
  0x3c   :  { %9665 = vmatmul.mubr.msk.f32.gmra.mxu1 %vm133_vm1, %v111_v50 }
  0x3d   :  { %9667 = vmatprep.mubr.msk.f32.mxu1 %vm133_vm1, %v112_v51 }
  0x3e   :  { %9620 = vmatmul.mubr.msk.f32.gmra.mxu0 %vm133_vm1, %v81_v48 }
  0x3f   :  { %9622 = vmatprep.mubr.msk.f32.mxu0 %vm133_vm1, %v82_v49 }
  0x40   :  { %9668 = vmatmul.mubr.msk.f32.gmra.mxu1 %vm133_vm1, %v113_v54 }
  0x41   :  { %9670 = vmatprep.mubr.msk.f32.mxu1 %vm133_vm1, %v114_v55 }
  0x42   :  { %9623 = vmatmul.mubr.msk.f32.gmra.mxu0 %vm133_vm1, %v83_v52 }
  0x43   :  { %9625 = vmatprep.mubr.msk.f32.mxu0 %vm133_vm1, %v84_v53 }
  0x44   :  { %9671 = vmatmul.mubr.msk.f32.gmra.mxu1 %vm133_vm1, %v115_v58 }
  0x45   :  { %9673 = vmatprep.mubr.msk.f32.mxu1 %vm133_vm1, %v116_v59 }
  0x46   :  { %9626 = vmatmul.mubr.msk.f32.gmra.mxu0 %vm133_vm1, %v85_v56 }
  0x47   :  { %9628 = vmatprep.mubr.msk.f32.mxu0 %vm133_vm1, %v86_v57 }
  0x48   :  { %9674 = vmatmul.mubr.msk.f32.gmra.mxu1 %vm133_vm1, %v117_v62 }
  0x49   :  { %9676 = vmatprep.mubr.msk.f32.mxu1 %vm133_vm1, %v118_v63 }
  0x4a   :  { %9629 = vmatmul.mubr.msk.f32.gmra.mxu0 %vm133_vm1, %v87_v60 }
  0x4b   :  { %9631 = vmatprep.mubr.msk.f32.mxu0 %vm133_vm1, %v88_v61 }
  0x4c   :  { %9677 = vmatmul.mubr.msk.f32.gmra.mxu1 %vm133_vm1, %v119_v1 }
  0x4d   :  { %9679 = vmatprep.mubr.msk.f32.mxu1 %vm133_vm1, %v120_v2 }
  0x4e   :  { %9632 = vmatmul.mubr.msk.f32.gmra.mxu0 %vm133_vm1, %v89_v0 }
  0x50   :  { %9680 = vmatmul.mubr.msk.f32.gmra.mxu1 %vm133_vm1, %v121_v3 }
  0x51   :  { %22 = vsyncpa [#allocation3], 0  ;;  %v11425_v4 = vld [vmem:[%s17171_s2] ss:$0 sm:$0xff]  ;;  %vm781_vm2 = vcmask 261120   ;;  %s11058_s27 = smov 32  }
  0x52   :  { %vm6178_vm3 = vcmask 523264   ;;  %vm6195_vm4 = vcmask 785408   ;;  %vm11062_vm5 = vmmov 0   ;;  %vm8237_vm6 = vcmask 1043456  }
  0x53   :  { %vm8221_vm7 = vcmask 64512   ;;  %vm8628_vm8 = vcmask 517120  }
  0xd2   :  { %v9588_v5 = vpop.f32.mrf.mxu0 }
  0xd3   :  { %v11428_v6 = vadd.f32 %v9588_v5, %v11425_v4 }
  0xd4   :  { %v396_v7 = vpop.f32.mrf.mxu0  ;;  %v11438_v13 = vpop.f32.mrf.mxu1 }
  0xd5   :  { %v11431_v8 = vadd.f32 %v11425_v4, %v396_v7  ;;  %v17219_v10 = vmax.f32 %v11428_v6, 0.0 }
  0xd6   :  { %v9591_v9 = vpop.f32.mrf.mxu0  ;;  %v11446_v17 = vpop.f32.mrf.mxu1 }
  0xd7   :  { %v17222_v11 = vmax.f32 %v11431_v8, 0.0  ;;  %v11436_v12 = vadd.f32 %v9591_v9, %v11425_v4  ;;  %v783_v19 = vsel %vm781_vm2, %v17219_v10, 0.0 }
  0xd8   :  { %v406_v14 = vpop.f32.mrf.mxu0  ;;  %v11456_v25 = vpop.f32.mrf.mxu1 }
  0xd9   :  { %v782_v15 = vsel %vm781_vm2, %v17222_v11, 0.0  ;;  %v11444_v16 = vadd.f32 %v11425_v4, %v406_v14  ;;  %v17215_v20 = vmax.f32 %v11436_v12, 0.0 }
  0xda   :  { %v9594_v18 = vpop.f32.mrf.mxu0  ;;  %v784_v23 = vadd.f32 %v783_v19, %v782_v15  ;;  %v11472_v36 = vpop.f32.mrf.mxu1 }
  0xdb   :  { %v17216_v21 = vmax.f32 %v11444_v16, 0.0  ;;  %v11454_v22 = vadd.f32 %v9594_v18, %v11425_v4  ;;  %v787_v30 = vsel %vm781_vm2, %v17215_v20, 0.0 }
  0xdc   :  { %v416_v24 = vpop.f32.mrf.mxu0  ;;  %v11488_v47 = vpop.f32.mrf.mxu1 }
  0xdd   :  { %v785_v26 = vsel %vm781_vm2, %v17216_v21, 0.0  ;;  %v11462_v27 = vadd.f32 %v11425_v4, %v416_v24  ;;  %v17209_v31 = vmax.f32 %v11454_v22, 0.0 }
  0xde   :  { %v786_v28 = vadd.f32 %v785_v26, %v784_v23  ;;  %v9597_v29 = vpop.f32.mrf.mxu0  ;;  %v11504_v58 = vpop.f32.mrf.mxu1 }
  0xdf   :  { %v17210_v32 = vmax.f32 %v11462_v27, 0.0  ;;  %v11470_v33 = vadd.f32 %v9597_v29, %v11425_v4  ;;  %v791_v41 = vsel %vm781_vm2, %v17209_v31, 0.0 }
  0xe0   :  { %v788_v34 = vadd.f32 %v787_v30, %v786_v28  ;;  %v426_v35 = vpop.f32.mrf.mxu0  ;;  %v11520_v7 = vpop.f32.mrf.mxu1 }
  0xe1   :  { %v789_v37 = vsel %vm781_vm2, %v17210_v32, 0.0  ;;  %v11478_v38 = vadd.f32 %v11425_v4, %v426_v35  ;;  %v17205_v42 = vmax.f32 %v11470_v33, 0.0 }
  0xe2   :  { %v790_v39 = vadd.f32 %v789_v37, %v788_v34  ;;  %v9600_v40 = vpop.f32.mrf.mxu0  ;;  %v11536_v30 = vpop.f32.mrf.mxu1 }
  0xe3   :  { %v17208_v43 = vmax.f32 %v11478_v38, 0.0  ;;  %v11486_v44 = vadd.f32 %v9600_v40, %v11425_v4  ;;  %v795_v52 = vsel %vm781_vm2, %v17205_v42, 0.0 }
  0xe4   :  { %v792_v45 = vadd.f32 %v791_v41, %v790_v39  ;;  %v436_v46 = vpop.f32.mrf.mxu0 }
  0xe5   :  { %v793_v48 = vsel %vm781_vm2, %v17208_v43, 0.0  ;;  %v11494_v49 = vadd.f32 %v11425_v4, %v436_v46  ;;  %v17203_v53 = vmax.f32 %v11486_v44, 0.0 }
  0xe6   :  { %v794_v50 = vadd.f32 %v793_v48, %v792_v45  ;;  %v9603_v51 = vpop.f32.mrf.mxu0 }
  0xe7   :  { %v17204_v54 = vmax.f32 %v11494_v49, 0.0  ;;  %v11502_v55 = vadd.f32 %v9603_v51, %v11425_v4  ;;  %v799_v63 = vsel %vm781_vm2, %v17203_v53, 0.0  ;;  %v11552_v51 = vpop.f32.mrf.mxu1 }
  0xe8   :  { %v796_v56 = vadd.f32 %v795_v52, %v794_v50  ;;  %v446_v57 = vpop.f32.mrf.mxu0 }
  0xe9   :  { %v797_v59 = vsel %vm781_vm2, %v17204_v54, 0.0  ;;  %v11510_v60 = vadd.f32 %v11425_v4, %v446_v57  ;;  %v17199_v0 = vmax.f32 %v11502_v55, 0.0 }
  0xea   :  { %v798_v61 = vadd.f32 %v797_v59, %v796_v56  ;;  %v9606_v62 = vpop.f32.mrf.mxu0 }
  0xeb   :  { %v17200_v1 = vmax.f32 %v11510_v60, 0.0  ;;  %v11518_v2 = vadd.f32 %v9606_v62, %v11425_v4  ;;  %v803_v19 = vsel %vm781_vm2, %v17199_v0, 0.0 }
  0xec   :  { %v800_v3 = vadd.f32 %v799_v63, %v798_v61  ;;  %v456_v5 = vpop.f32.mrf.mxu0 }
  0xed   :  { %v801_v9 = vsel %vm781_vm2, %v17200_v1, 0.0  ;;  %v11526_v14 = vadd.f32 %v11425_v4, %v456_v5  ;;  %v17195_v23 = vmax.f32 %v11518_v2, 0.0 }
  0xee   :  { %v802_v15 = vadd.f32 %v801_v9, %v800_v3  ;;  %v9609_v18 = vpop.f32.mrf.mxu0 }
  0xef   :  { %v17198_v24 = vmax.f32 %v11526_v14, 0.0  ;;  %v11534_v26 = vadd.f32 %v9609_v18, %v11425_v4  ;;  %v807_v40 = vsel %vm781_vm2, %v17195_v23, 0.0 }
  0xf0   :  { %v804_v28 = vadd.f32 %v803_v19, %v802_v15  ;;  %v466_v29 = vpop.f32.mrf.mxu0  ;;  %v11568_v15 = vpop.f32.mrf.mxu1 }
  0xf1   :  { %v805_v34 = vsel %vm781_vm2, %v17198_v24, 0.0  ;;  %v11542_v35 = vadd.f32 %v11425_v4, %v466_v29  ;;  %v17193_v41 = vmax.f32 %v11534_v26, 0.0 }
  0xf2   :  { %v806_v37 = vadd.f32 %v805_v34, %v804_v28  ;;  %v9612_v39 = vpop.f32.mrf.mxu0 }
  0xf3   :  { %v17194_v45 = vmax.f32 %v11542_v35, 0.0  ;;  %v11550_v46 = vadd.f32 %v9612_v39, %v11425_v4  ;;  %v811_v61 = vsel %vm781_vm2, %v17193_v41, 0.0 }
  0xf4   :  { %v808_v48 = vadd.f32 %v807_v40, %v806_v37  ;;  %v476_v50 = vpop.f32.mrf.mxu0 }
  0xf5   :  { %v809_v52 = vsel %vm781_vm2, %v17194_v45, 0.0  ;;  %v11558_v56 = vadd.f32 %v11425_v4, %v476_v50  ;;  %v17189_v62 = vmax.f32 %v11550_v46, 0.0 }
  0xf6   :  { %v810_v57 = vadd.f32 %v809_v52, %v808_v48  ;;  %v9615_v59 = vpop.f32.mrf.mxu0  ;;  %v11584_v52 = vpop.f32.mrf.mxu1 }
  0xf7   :  { %v17190_v63 = vmax.f32 %v11558_v56, 0.0  ;;  %v11566_v3 = vadd.f32 %v9615_v59, %v11425_v4  ;;  %v815_v34 = vsel %vm781_vm2, %v17189_v62, 0.0 }
  0xf8   :  { %v812_v5 = vadd.f32 %v811_v61, %v810_v57  ;;  %v486_v9 = vpop.f32.mrf.mxu0 }
  0xf9   :  { %v813_v18 = vsel %vm781_vm2, %v17190_v63, 0.0  ;;  %v11574_v19 = vadd.f32 %v11425_v4, %v486_v9  ;;  %v17191_v37 = vmax.f32 %v11566_v3, 0.0  ;;  %v11600_v63 = vpop.f32.mrf.mxu1 }
  0xfa   :  { %v814_v28 = vadd.f32 %v813_v18, %v812_v5  ;;  %v9618_v29 = vpop.f32.mrf.mxu0 }
  0xfb   :  { %v17192_v39 = vmax.f32 %v11574_v19, 0.0  ;;  %v11582_v40 = vadd.f32 %v9618_v29, %v11425_v4  ;;  %v819_v9 = vsel %vm781_vm2, %v17191_v37, 0.0  ;;  %v11616_v23 = vpop.f32.mrf.mxu1 }
  0xfc   :  { %v816_v48 = vadd.f32 %v815_v34, %v814_v28  ;;  %v496_v50 = vpop.f32.mrf.mxu0 }
  0xfd   :  { %v817_v57 = vsel %vm781_vm2, %v17192_v39, 0.0  ;;  %v11590_v59 = vadd.f32 %v11425_v4, %v496_v50  ;;  %v17196_v18 = vmax.f32 %v11582_v40, 0.0  ;;  %v11632_v1 = vpop.f32.mrf.mxu1 }
  0xfe   :  { %v818_v61 = vadd.f32 %v817_v57, %v816_v48  ;;  %v9621_v5 = vpop.f32.mrf.mxu0 }
  0xff   :  { %v17197_v28 = vmax.f32 %v11590_v59, 0.0  ;;  %v11598_v29 = vadd.f32 %v9621_v5, %v11425_v4  ;;  %v823_v39 = vsel %vm781_vm2, %v17196_v18, 0.0  ;;  %v11648_v42 = vpop.f32.mrf.mxu1 }
 0x100   :  { %v820_v34 = vadd.f32 %v819_v9, %v818_v61  ;;  %v506_v62 = vpop.f32.mrf.mxu0 }
 0x101   :  { %v821_v48 = vsel %vm781_vm2, %v17197_v28, 0.0  ;;  %v11606_v50 = vadd.f32 %v11425_v4, %v506_v62  ;;  %v17201_v5 = vmax.f32 %v11598_v29, 0.0  ;;  %v11664_v32 = vpop.f32.mrf.mxu1 }
 0x102   :  { %v822_v57 = vadd.f32 %v821_v48, %v820_v34  ;;  %v9624_v37 = vpop.f32.mrf.mxu0 }
 0x103   :  { %v17202_v61 = vmax.f32 %v11606_v50, 0.0  ;;  %v11614_v9 = vadd.f32 %v9624_v37, %v11425_v4  ;;  %v827_v28 = vsel %vm781_vm2, %v17201_v5, 0.0 }
 0x104   :  { %v824_v41 = vadd.f32 %v823_v39, %v822_v57  ;;  %v516_v45 = vpop.f32.mrf.mxu0 }
 0x105   :  { %v825_v62 = vsel %vm781_vm2, %v17202_v61, 0.0  ;;  %v11622_v34 = vadd.f32 %v11425_v4, %v516_v45  ;;  %v17206_v37 = vmax.f32 %v11614_v9, 0.0 }
 0x106   :  { %v826_v48 = vadd.f32 %v825_v62, %v824_v41  ;;  %v9627_v18 = vpop.f32.mrf.mxu0 }
 0x107   :  { %v17207_v39 = vmax.f32 %v11622_v34, 0.0  ;;  %v11630_v57 = vadd.f32 %v9627_v18, %v11425_v4  ;;  %v831_v61 = vsel %vm781_vm2, %v17206_v37, 0.0 }
 0x108   :  { %v828_v24 = vadd.f32 %v827_v28, %v826_v48  ;;  %v526_v0 = vpop.f32.mrf.mxu0 }
 0x109   :  { %v829_v41 = vsel %vm781_vm2, %v17207_v39, 0.0  ;;  %v11638_v45 = vadd.f32 %v11425_v4, %v526_v0  ;;  %v17211_v18 = vmax.f32 %v11630_v57, 0.0 }
 0x10a   :  { %v830_v62 = vadd.f32 %v829_v41, %v828_v24  ;;  %v9630_v5 = vpop.f32.mrf.mxu0 }
 0x10b   :  { %v17212_v28 = vmax.f32 %v11638_v45, 0.0  ;;  %v11646_v48 = vadd.f32 %v9630_v5, %v11425_v4  ;;  %v835_v39 = vsel %vm781_vm2, %v17211_v18, 0.0 }
 0x10c   :  { %v832_v53 = vadd.f32 %v831_v61, %v830_v62  ;;  %v536_v54 = vpop.f32.mrf.mxu0 }
 0x10d   :  { %v833_v0 = vsel %vm781_vm2, %v17212_v28, 0.0  ;;  %v11654_v24 = vadd.f32 %v11425_v4, %v536_v54  ;;  %v17214_v5 = vmax.f32 %v11646_v48, 0.0  ;;  %v11683_v28 = vadd.f32 %v11438_v13, %v11425_v4 }
 0x10e   :  { %v834_v41 = vadd.f32 %v833_v0, %v832_v53  ;;  %v9633_v37 = vpop.f32.mrf.mxu0  ;;  %v11674_v0 = vadd.f32 %v11425_v4, %v11446_v17 }
 0x10f   :  { %v17213_v61 = vmax.f32 %v11654_v24, 0.0  ;;  %v11662_v62 = vadd.f32 %v9633_v37, %v11425_v4  ;;  %v839_v37 = vsel %vm781_vm2, %v17214_v5, 0.0  ;;  %v17221_v13 = vmax.f32 %v11683_v28, 0.0 }
 0x110   :  { %v836_v43 = vadd.f32 %v835_v39, %v834_v41  ;;  %v546_v31 = vpop.f32.mrf.mxu0 }
 0x111   :  { %v837_v53 = vsel %vm781_vm2, %v17213_v61, 0.0  ;;  %v11670_v54 = vadd.f32 %v11425_v4, %v546_v31  ;;  %v17218_v39 = vmax.f32 %v11662_v62, 0.0  ;;  %v11685_v31 = vpop.f32.mrf.mxu1 }
 0x112   :  { %v838_v18 = vadd.f32 %v837_v53, %v836_v43  ;;  %v17220_v43 = vmax.f32 %v11674_v0, 0.0  ;;  %v11693_v53 = vadd.f32 %v11425_v4, %v11472_v36 }
 0x113   :  { %v17217_v41 = vmax.f32 %v11670_v54, 0.0  ;;  %v843_v20 = vsel %vm781_vm2, %v17218_v39, 0.0  ;;  %v636_v21 = vpop.f32.mrf.mxu1  ;;  %v847_v39 = vsel %vm781_vm2, %v17221_v13, 0.0 }
 0x114   :  { %v840_v61 = vadd.f32 %v839_v37, %v838_v18  ;;  %v11701_v18 = vadd.f32 %v11456_v25, %v11425_v4  ;;  %v17223_v36 = vmax.f32 %v11693_v53, 0.0 }
 0x115   :  { %v841_v17 = vsel %vm781_vm2, %v17217_v41, 0.0  ;;  %v845_v41 = vsel %vm781_vm2, %v17220_v43, 0.0  ;;  %v9663_v10 = vpop.f32.mrf.mxu1 }
 0x116   :  { %v842_v5 = vadd.f32 %v841_v17, %v840_v61  ;;  %v11709_v61 = vadd.f32 %v11425_v4, %v11504_v58  ;;  %v17224_v25 = vmax.f32 %v11701_v18, 0.0  ;;  %v849_v43 = vsel %vm781_vm2, %v17223_v36, 0.0 }
 0x117   :  { %v646_v11 = vpop.f32.mrf.mxu1 }
 0x118   :  { %v844_v37 = vadd.f32 %v843_v20, %v842_v5  ;;  %17305 = vst [vmem:[#allocation5_spill] sm:$0xff] %v11709_v61  ;;  %v11717_v20 = vadd.f32 %v11488_v47, %v11425_v4  ;;  %v17226_v58 = vmax.f32 %v11709_v61, 0.0  ;;  %v851_v13 = vsel %vm781_vm2, %v17224_v25, 0.0 }
 0x119   :  { %v9666_v61 = vpop.f32.mrf.mxu1 }
 0x11a   :  { %v846_v17 = vadd.f32 %v845_v41, %v844_v37  ;;  %v11725_v41 = vadd.f32 %v11425_v4, %v11536_v30  ;;  %v17227_v47 = vmax.f32 %v11717_v20, 0.0  ;;  %v853_v36 = vsel %vm781_vm2, %v17226_v58, 0.0 }
 0x11c   :  { %v848_v5 = vadd.f32 %v847_v39, %v846_v17  ;;  %17306 = vst [vmem:[#allocation6_spill] sm:$0xff] %v11725_v41  ;;  %v11733_v39 = vadd.f32 %v11520_v7, %v11425_v4  ;;  %v17229_v30 = vmax.f32 %v11725_v41, 0.0  ;;  %v855_v25 = vsel %vm781_vm2, %v17227_v47, 0.0  ;;  %v656_v41 = vpop.f32.mrf.mxu1 }
 0x11e   :  { %v850_v37 = vadd.f32 %v849_v43, %v848_v5  ;;  %v11741_v43 = vadd.f32 %v11425_v4, %v11568_v15  ;;  %v17230_v7 = vmax.f32 %v11733_v39, 0.0  ;;  %v857_v58 = vsel %vm781_vm2, %v17229_v30, 0.0 }
 0x120   :  { %v852_v17 = vadd.f32 %v851_v13, %v850_v37  ;;  %17307 = vst [vmem:[#allocation7_spill] sm:$0xff] %v11741_v43  ;;  %v11749_v13 = vadd.f32 %v11552_v51, %v11425_v4  ;;  %v17232_v15 = vmax.f32 %v11741_v43, 0.0  ;;  %v859_v47 = vsel %vm781_vm2, %v17230_v7, 0.0  ;;  %v9669_v43 = vpop.f32.mrf.mxu1 }
 0x122   :  { %v854_v5 = vadd.f32 %v853_v36, %v852_v17  ;;  %v11757_v36 = vadd.f32 %v11425_v4, %v11600_v63  ;;  %v17233_v51 = vmax.f32 %v11749_v13, 0.0  ;;  %v861_v30 = vsel %vm781_vm2, %v17232_v15, 0.0 }
 0x124   :  { %v856_v37 = vadd.f32 %v855_v25, %v854_v5  ;;  %17308 = vst [vmem:[#allocation8_spill] sm:$0xff] %v11757_v36  ;;  %v11765_v25 = vadd.f32 %v11584_v52, %v11425_v4  ;;  %v17235_v63 = vmax.f32 %v11757_v36, 0.0  ;;  %v863_v7 = vsel %vm781_vm2, %v17233_v51, 0.0  ;;  %v666_v36 = vpop.f32.mrf.mxu1 }
 0x126   :  { %v858_v17 = vadd.f32 %v857_v58, %v856_v37  ;;  %17309 = vst [vmem:[#allocation9_spill] sm:$0xff] %v11765_v25  ;;  %v11773_v58 = vadd.f32 %v11425_v4, %v11632_v1  ;;  %v17236_v52 = vmax.f32 %v11765_v25, 0.0  ;;  %v865_v15 = vsel %vm781_vm2, %v17235_v63, 0.0 }
 0x128   :  { %v860_v5 = vadd.f32 %v859_v47, %v858_v17  ;;  %v11781_v47 = vadd.f32 %v11616_v23, %v11425_v4  ;;  %v17238_v1 = vmax.f32 %v11773_v58, 0.0  ;;  %v867_v51 = vsel %vm781_vm2, %v17236_v52, 0.0 }
 0x12a   :  { %v862_v37 = vadd.f32 %v861_v30, %v860_v5  ;;  %17310 = vst [vmem:[#allocation10_spill] sm:$0xff] %v11781_v47  ;;  %v11789_v30 = vadd.f32 %v11425_v4, %v11664_v32  ;;  %v17239_v23 = vmax.f32 %v11781_v47, 0.0  ;;  %v869_v63 = vsel %vm781_vm2, %v17238_v1, 0.0 }
 0x12c   :  { %v864_v17 = vadd.f32 %v863_v7, %v862_v37  ;;  %17311 = vst [vmem:[#allocation11_spill] sm:$0xff] %v11789_v30  ;;  %v11797_v7 = vadd.f32 %v11648_v42, %v11425_v4  ;;  %v17241_v32 = vmax.f32 %v11789_v30, 0.0  ;;  %v871_v52 = vsel %vm781_vm2, %v17239_v23, 0.0 }
 0x12d   :  { %v11812_v42 = vadd.f32 %v11685_v31, %v11425_v4  ;;  %v11826_v31 = vadd.f32 %v9663_v10, %v11425_v4  ;;  %v11840_v10 = vadd.f32 %v9666_v61, %v11425_v4  ;;  %v11854_v61 = vadd.f32 %v9669_v43, %v11425_v4 }
 0x12e   :  { %v866_v5 = vadd.f32 %v865_v15, %v864_v17  ;;  %v11804_v15 = vadd.f32 %v11425_v4, %v636_v21  ;;  %v17243_v25 = vmax.f32 %v11797_v7, 0.0  ;;  %v873_v1 = vsel %vm781_vm2, %v17241_v32, 0.0 }
 0x12f   :  { %v17246_v47 = vmax.f32 %v11812_v42, 0.0  ;;  %17316 = vst [vmem:[#allocation16_spill] sm:$0xff] %v11854_v61 }
 0x130   :  { %v868_v37 = vadd.f32 %v867_v51, %v866_v5  ;;  %17312 = vst [vmem:[#allocation12_spill] sm:$0xff] %v11804_v15  ;;  %v9672_v5 = vpop.f32.mrf.mxu1  ;;  %v17244_v21 = vmax.f32 %v11804_v15, 0.0  ;;  %v875_v23 = vsel %vm781_vm2, %v17243_v25, 0.0  ;;  %v17249_v25 = vmax.f32 %v11826_v31, 0.0 }
 0x131   :  { %v11868_v43 = vadd.f32 %v9672_v5, %v11425_v4 }
 0x132   :  { %v870_v17 = vadd.f32 %v869_v63, %v868_v37  ;;  %v11819_v63 = vadd.f32 %v11425_v4, %v646_v11  ;;  %v877_v32 = vsel %vm781_vm2, %v17244_v21, 0.0  ;;  %v11833_v11 = vadd.f32 %v11425_v4, %v656_v41 }
 0x133   :  { %v11847_v41 = vadd.f32 %v11425_v4, %v666_v36  ;;  %17317 = vst [vmem:[#allocation17_spill] sm:$0xff] %v11868_v43 }
 0x134   :  { %v872_v51 = vadd.f32 %v871_v52, %v870_v17  ;;  %17313 = vst [vmem:[#allocation13_spill] sm:$0xff] %v11819_v63  ;;  %v676_v17 = vpop.f32.mrf.mxu1  ;;  %v17247_v30 = vmax.f32 %v11819_v63, 0.0  ;;  %17314 = vst [vmem:[#allocation14_spill] sm:$0xff] %v11833_v11  ;;  %v17250_v15 = vmax.f32 %v11833_v11, 0.0 }
 0x135   :  { %17315 = vst [vmem:[#allocation15_spill] sm:$0xff] %v11847_v41  ;;  %v17253_v63 = vmax.f32 %v11847_v41, 0.0  ;;  %v11861_v36 = vadd.f32 %v11425_v4, %v676_v17 }
 0x136   :  { %v874_v37 = vadd.f32 %v873_v1, %v872_v51  ;;  %v879_v51 = vsel %vm781_vm2, %v17246_v47, 0.0  ;;  %v881_v21 = vsel %vm781_vm2, %v17247_v30, 0.0  ;;  %v17252_v47 = vmax.f32 %v11840_v10, 0.0 }
 0x137   :  { %v885_v30 = vsel %vm781_vm2, %v17250_v15, 0.0  ;;  %v889_v15 = vsel %vm781_vm2, %v17253_v63, 0.0  ;;  %v17258_v11 = vmax.f32 %v11861_v36, 0.0 }
 0x138   :  { %v876_v52 = vadd.f32 %v875_v23, %v874_v37  ;;  %v9675_v37 = vpop.f32.mrf.mxu1 }
 0x139   :  { %v11882_v5 = vadd.f32 %v9675_v37, %v11425_v4  ;;  %v893_v63 = vsel %vm781_vm2, %v17258_v11, 0.0 }
 0x13a   :  { %v878_v1 = vadd.f32 %v877_v32, %v876_v52  ;;  %v883_v52 = vsel %vm781_vm2, %v17249_v25, 0.0  ;;  %v17255_v25 = vmax.f32 %v11854_v61, 0.0 }
 0x13b   :  { %17318 = vst [vmem:[#allocation18_spill] sm:$0xff] %v11882_v5 }
 0x13c   :  { %v880_v23 = vadd.f32 %v879_v51, %v878_v1  ;;  %v686_v51 = vpop.f32.mrf.mxu1 }
 0x13d   :  { %v11875_v17 = vadd.f32 %v11425_v4, %v686_v51 }
 0x13e   :  { %v882_v32 = vadd.f32 %v881_v21, %v880_v23  ;;  %v887_v23 = vsel %vm781_vm2, %v17252_v47, 0.0  ;;  %v17257_v47 = vmax.f32 %v11868_v43, 0.0 }
 0x13f   :  { %v17262_v41 = vmax.f32 %v11875_v17, 0.0 }
 0x140   :  { %v884_v1 = vadd.f32 %v883_v52, %v882_v32  ;;  %v9678_v52 = vpop.f32.mrf.mxu1 }
 0x142   :  { %v886_v21 = vadd.f32 %v885_v30, %v884_v1  ;;  %v891_v1 = vsel %vm781_vm2, %v17255_v25, 0.0 }
 0x144   :  { %v888_v32 = vadd.f32 %v887_v23, %v886_v21  ;;  %v696_v23 = vpop.f32.mrf.mxu1 }
 0x145   :  { %v11893_v25 = vadd.f32 %v11425_v4, %v696_v23 }
 0x146   :  { %v890_v30 = vadd.f32 %v889_v15, %v888_v32  ;;  %v895_v15 = vsel %vm781_vm2, %v17257_v47, 0.0  ;;  %v17260_v32 = vmax.f32 %v11882_v5, 0.0  ;;  %v9681_v61 = vpop.f32.mrf.mxu1 }
 0x147   :  { %17319 = vst [vmem:[#allocation19_spill] sm:$0xff] %v11893_v25  ;;  %v17261_v47 = vmax.f32 %v11893_v25, 0.0 }
 0x148   :  { %v892_v21 = vadd.f32 %v891_v1, %v890_v30  ;;  %v897_v30 = vsel %vm781_vm2, %v17262_v41, 0.0  ;;  %v706_v43 = vpop.f32.mrf.mxu1 }
 0x14a   :  { %v894_v51 = vadd.f32 %v893_v63, %v892_v21  ;;  %v899_v63 = vsel %vm781_vm2, %v17260_v32, 0.0  ;;  %v11902_v21 = vadd.f32 %v9678_v52, %v11425_v4  ;;  %v11916_v52 = vadd.f32 %v9681_v61, %v11425_v4 }
 0x14c   :  { %v896_v37 = vadd.f32 %v895_v15, %v894_v51  ;;  %17320 = vst [vmem:[#allocation20_spill] sm:$0xff] %v11902_v21  ;;  %v17263_v23 = vmax.f32 %v11902_v21, 0.0  ;;  %v901_v51 = vsel %vm781_vm2, %v17261_v47, 0.0  ;;  %v11910_v15 = vadd.f32 %v11425_v4, %v706_v43 }
 0x14d   :  { %v17267_v32 = vmax.f32 %v11916_v52, 0.0 }
 0x14e   :  { %v898_v1 = vadd.f32 %v897_v30, %v896_v37  ;;  %v903_v30 = vsel %vm781_vm2, %v17263_v23, 0.0 }
 0x150   :  { %v900_v11 = vadd.f32 %v899_v63, %v898_v1  ;;  %v17268_v1 = vmax.f32 %v11910_v15, 0.0 }
 0x152   :  { %v902_v37 = vadd.f32 %v901_v51, %v900_v11  ;;  %v905_v47 = vsel %vm781_vm2, %v17268_v1, 0.0  ;;  %v907_v11 = vsel %vm781_vm2, %v17267_v32, 0.0 }
 0x154   :  { %v904_v63 = vadd.f32 %v903_v30, %v902_v37  ;;  %v17321_v37 = vmax.f32 %v11431_v8, 0.0 }
 0x156   :  { %v906_v41 = vadd.f32 %v905_v47, %v904_v63  ;;  %v17322_v47 = vmax.f32 %v11428_v6, 0.0  ;;  %v17325_v6 = vmax.f32 %v11462_v27, 0.0  ;;  %v17327_v27 = vmax.f32 %v11478_v38, 0.0 }
 0x157   :  { %v17329_v38 = vmax.f32 %v11494_v49, 0.0  ;;  %v17331_v49 = vmax.f32 %v11510_v60, 0.0  ;;  %v17333_v60 = vmax.f32 %v11526_v14, 0.0  ;;  %v17335_v14 = vmax.f32 %v11542_v35, 0.0 }
 0x158   :  { %v908_v43 = vadd.f32 %v907_v11, %v906_v41  ;;  %v17323_v41 = vmax.f32 %v11444_v16, 0.0  ;;  %v17337_v35 = vmax.f32 %v11558_v56, 0.0  ;;  %v17339_v56 = vmax.f32 %v11574_v19, 0.0 }
 0x159   :  { %v17341_v19 = vmax.f32 %v11590_v59, 0.0  ;;  %v17343_v59 = vmax.f32 %v11606_v50, 0.0  ;;  %v17345_v50 = vmax.f32 %v11622_v34, 0.0  ;;  %v17347_v34 = vmax.f32 %v11638_v45, 0.0 }
 0x15a   :  { %v909_v51 = vrot.slane %v908_v43, 4  ;;  %v17349_v45 = vmax.f32 %v11654_v24, 0.0  ;;  %v17351_v24 = vmax.f32 %v11670_v54, 0.0  ;;  %v17353_v54 = vmax.f32 %v11674_v0, 0.0 }
 0x15b   :  { %v17355_v0 = vmax.f32 %v11693_v53, 0.0  ;;  %v17358_v53 = vld [vmem:[#allocation5_spill] sm:$0xff] }
 0x15c   :  { %v910_v23 = vadd.f32 %v909_v51, %v908_v43  ;;  %v17326_v51 = vmax.f32 %v11454_v22, 0.0 }
 0x15e   :  { %v911_v21 = vrot.slane %v910_v23, 2 }
 0x160   :  { %v912_v4 = vadd.f32 %v911_v21, %v910_v23  ;;  %v17324_v21 = vmax.f32 %v11436_v12, 0.0 }
 0x162   :  { %v913_v61 = vrot.slane %v912_v4, 1 }
 0x164   :  { %v914_v25 = vadd.f32 %v913_v61, %v912_v4 }
 0x166   :  { %v11926_v5 = vmul.f32 0.001953125, %v914_v25 }
 0x168   :  { %v11931_v30 = vsub.f32 %v17321_v37, %v11926_v5  ;;  %v11936_v63 = vsub.f32 %v17322_v47, %v11926_v5  ;;  %v11941_v11 = vsub.f32 %v17323_v41, %v11926_v5  ;;  %v11946_v25 = vsub.f32 %v17324_v21, %v11926_v5 }
 0x169   :  { %v11955_v43 = vsub.f32 %v17325_v6, %v11926_v5  ;;  %v11962_v12 = vsub.f32 %v17326_v51, %v11926_v5  ;;  %v11971_v41 = vsub.f32 %v17327_v27, %v11926_v5  ;;  %v17328_v51 = vmax.f32 %v11470_v33, 0.0 }
 0x16a   :  { %v981_v8 = vmul.f32 %v11931_v30, %v11931_v30  ;;  %v982_v23 = vmul.f32 %v11936_v63, %v11936_v63  ;;  %v983_v16 = vmul.f32 %v11941_v11, %v11941_v11  ;;  %v984_v4 = vmul.f32 %v11946_v25, %v11946_v25 }
 0x16b   :  { %v985_v21 = vmul.f32 %v11955_v43, %v11955_v43  ;;  %v11979_v32 = vsub.f32 %v17328_v51, %v11926_v5  ;;  %v17330_v33 = vmax.f32 %v11486_v44, 0.0  ;;  %v17332_v44 = vmax.f32 %v11502_v55, 0.0 }
 0x16c   :  { %v1045_v61 = vsel %vm781_vm2, %v981_v8, 0.0  ;;  %v1046_v37 = vsel %vm781_vm2, %v982_v23, 0.0  ;;  %v1048_v22 = vsel %vm781_vm2, %v983_v16, 0.0  ;;  %v986_v8 = vmul.f32 %v11962_v12, %v11962_v12 }
 0x16d   :  { %v1047_v47 = vadd.f32 %v1046_v37, %v1045_v61  ;;  %v1050_v23 = vsel %vm781_vm2, %v984_v4, 0.0  ;;  %v11987_v37 = vsub.f32 %v17329_v38, %v11926_v5  ;;  %v987_v16 = vmul.f32 %v11971_v41, %v11971_v41 }
 0x16e   :  { %v988_v4 = vmul.f32 %v11979_v32, %v11979_v32  ;;  %v17334_v55 = vmax.f32 %v11518_v2, 0.0  ;;  %v17336_v2 = vmax.f32 %v11534_v26, 0.0  ;;  %v17338_v26 = vmax.f32 %v11550_v46, 0.0 }
 0x16f   :  { %v1049_v6 = vadd.f32 %v1048_v22, %v1047_v47  ;;  %v1052_v47 = vsel %vm781_vm2, %v985_v21, 0.0  ;;  %v11995_v22 = vsub.f32 %v17330_v33, %v11926_v5  ;;  %v989_v21 = vmul.f32 %v11987_v37, %v11987_v37 }
 0x170   :  { %v17340_v46 = vmax.f32 %v11566_v3, 0.0  ;;  %v17342_v3 = vmax.f32 %v11582_v40, 0.0  ;;  %v17344_v40 = vmax.f32 %v11598_v29, 0.0  ;;  %v17346_v29 = vmax.f32 %v11614_v9, 0.0 }
 0x171   :  { %v1051_v61 = vadd.f32 %v1050_v23, %v1049_v6  ;;  %v1054_v6 = vsel %vm781_vm2, %v986_v8, 0.0  ;;  %v12003_v23 = vsub.f32 %v17331_v49, %v11926_v5  ;;  %v990_v8 = vmul.f32 %v11995_v22, %v11995_v22 }
 0x172   :  { %v17348_v9 = vmax.f32 %v11630_v57, 0.0  ;;  %v17350_v57 = vmax.f32 %v11646_v48, 0.0  ;;  %v17352_v48 = vmax.f32 %v11662_v62, 0.0  ;;  %v17354_v62 = vmax.f32 %v11683_v28, 0.0 }
 0x173   :  { %v1053_v27 = vadd.f32 %v1052_v47, %v1051_v61  ;;  %v1056_v61 = vsel %vm781_vm2, %v987_v16, 0.0  ;;  %v12011_v47 = vsub.f32 %v17332_v44, %v11926_v5  ;;  %v991_v16 = vmul.f32 %v12003_v23, %v12003_v23 }
 0x174   :  { %v17356_v28 = vmax.f32 %v11701_v18, 0.0  ;;  %v17360_v18 = vmax.f32 %v11717_v20, 0.0  ;;  %v17365_v20 = vmax.f32 %v11733_v39, 0.0  ;;  %v17369_v39 = vmax.f32 %v11749_v13, 0.0  ;;  %v17373_v13 = vld [vmem:[#allocation9_spill] sm:$0xff] }
 0x175   :  { %v1055_v51 = vadd.f32 %v1054_v6, %v1053_v27  ;;  %v1058_v27 = vsel %vm781_vm2, %v988_v4, 0.0  ;;  %v12019_v6 = vsub.f32 %v17333_v60, %v11926_v5  ;;  %v992_v4 = vmul.f32 %v12011_v47, %v12011_v47 }
 0x177   :  { %v1057_v38 = vadd.f32 %v1056_v61, %v1055_v51  ;;  %v1060_v51 = vsel %vm781_vm2, %v989_v21, 0.0  ;;  %v12027_v61 = vsub.f32 %v17334_v55, %v11926_v5  ;;  %v993_v21 = vmul.f32 %v12019_v6, %v12019_v6 }
 0x179   :  { %v1059_v33 = vadd.f32 %v1058_v27, %v1057_v38  ;;  %v1062_v38 = vsel %vm781_vm2, %v990_v8, 0.0  ;;  %v12035_v27 = vsub.f32 %v17335_v14, %v11926_v5  ;;  %v994_v8 = vmul.f32 %v12027_v61, %v12027_v61 }
 0x17b   :  { %v1061_v49 = vadd.f32 %v1060_v51, %v1059_v33  ;;  %v1064_v33 = vsel %vm781_vm2, %v991_v16, 0.0  ;;  %v12043_v51 = vsub.f32 %v17336_v2, %v11926_v5  ;;  %v995_v16 = vmul.f32 %v12035_v27, %v12035_v27 }
 0x17d   :  { %v1063_v44 = vadd.f32 %v1062_v38, %v1061_v49  ;;  %v1066_v49 = vsel %vm781_vm2, %v992_v4, 0.0  ;;  %v12051_v38 = vsub.f32 %v17337_v35, %v11926_v5  ;;  %v996_v4 = vmul.f32 %v12043_v51, %v12043_v51 }
 0x17f   :  { %v1065_v60 = vadd.f32 %v1064_v33, %v1063_v44  ;;  %v1068_v44 = vsel %vm781_vm2, %v993_v21, 0.0  ;;  %v12059_v33 = vsub.f32 %v17338_v26, %v11926_v5  ;;  %v997_v21 = vmul.f32 %v12051_v38, %v12051_v38 }
 0x181   :  { %v1067_v55 = vadd.f32 %v1066_v49, %v1065_v60  ;;  %v1070_v60 = vsel %vm781_vm2, %v994_v8, 0.0  ;;  %v12067_v49 = vsub.f32 %v17339_v56, %v11926_v5  ;;  %v998_v8 = vmul.f32 %v12059_v33, %v12059_v33 }
 0x183   :  { %v1069_v14 = vadd.f32 %v1068_v44, %v1067_v55  ;;  %v1072_v55 = vsel %vm781_vm2, %v995_v16, 0.0  ;;  %v12075_v44 = vsub.f32 %v17340_v46, %v11926_v5  ;;  %v999_v16 = vmul.f32 %v12067_v49, %v12067_v49 }
 0x185   :  { %v1071_v2 = vadd.f32 %v1070_v60, %v1069_v14  ;;  %v1074_v14 = vsel %vm781_vm2, %v996_v4, 0.0  ;;  %v12083_v60 = vsub.f32 %v17341_v19, %v11926_v5  ;;  %v1000_v4 = vmul.f32 %v12075_v44, %v12075_v44 }
 0x187   :  { %v1073_v35 = vadd.f32 %v1072_v55, %v1071_v2  ;;  %v1076_v2 = vsel %vm781_vm2, %v997_v21, 0.0  ;;  %v12091_v55 = vsub.f32 %v17342_v3, %v11926_v5  ;;  %v1001_v21 = vmul.f32 %v12083_v60, %v12083_v60 }
 0x189   :  { %v1075_v26 = vadd.f32 %v1074_v14, %v1073_v35  ;;  %v1078_v35 = vsel %vm781_vm2, %v998_v8, 0.0  ;;  %v12099_v14 = vsub.f32 %v17343_v59, %v11926_v5  ;;  %v1002_v8 = vmul.f32 %v12091_v55, %v12091_v55 }
 0x18b   :  { %v1077_v56 = vadd.f32 %v1076_v2, %v1075_v26  ;;  %v1080_v26 = vsel %vm781_vm2, %v999_v16, 0.0  ;;  %v12107_v2 = vsub.f32 %v17344_v40, %v11926_v5  ;;  %v1003_v16 = vmul.f32 %v12099_v14, %v12099_v14 }
 0x18d   :  { %v1079_v46 = vadd.f32 %v1078_v35, %v1077_v56  ;;  %v1082_v56 = vsel %vm781_vm2, %v1000_v4, 0.0  ;;  %v12115_v35 = vsub.f32 %v17345_v50, %v11926_v5  ;;  %v1004_v4 = vmul.f32 %v12107_v2, %v12107_v2 }
 0x18f   :  { %v1081_v19 = vadd.f32 %v1080_v26, %v1079_v46  ;;  %v1084_v46 = vsel %vm781_vm2, %v1001_v21, 0.0  ;;  %v12123_v26 = vsub.f32 %v17346_v29, %v11926_v5  ;;  %v1005_v21 = vmul.f32 %v12115_v35, %v12115_v35 }
 0x191   :  { %v1083_v3 = vadd.f32 %v1082_v56, %v1081_v19  ;;  %v1086_v19 = vsel %vm781_vm2, %v1002_v8, 0.0  ;;  %v12131_v56 = vsub.f32 %v17347_v34, %v11926_v5  ;;  %v1006_v8 = vmul.f32 %v12123_v26, %v12123_v26 }
 0x193   :  { %v1085_v59 = vadd.f32 %v1084_v46, %v1083_v3  ;;  %v1088_v3 = vsel %vm781_vm2, %v1003_v16, 0.0  ;;  %v12139_v46 = vsub.f32 %v17348_v9, %v11926_v5  ;;  %v1007_v16 = vmul.f32 %v12131_v56, %v12131_v56 }
 0x195   :  { %v1087_v40 = vadd.f32 %v1086_v19, %v1085_v59  ;;  %v1090_v59 = vsel %vm781_vm2, %v1004_v4, 0.0  ;;  %v12147_v19 = vsub.f32 %v17349_v45, %v11926_v5  ;;  %v1008_v4 = vmul.f32 %v12139_v46, %v12139_v46 }
 0x197   :  { %v1089_v50 = vadd.f32 %v1088_v3, %v1087_v40  ;;  %v1092_v40 = vsel %vm781_vm2, %v1005_v21, 0.0  ;;  %v12155_v3 = vsub.f32 %v17350_v57, %v11926_v5  ;;  %v1009_v21 = vmul.f32 %v12147_v19, %v12147_v19 }
 0x199   :  { %v1091_v29 = vadd.f32 %v1090_v59, %v1089_v50  ;;  %v1094_v50 = vsel %vm781_vm2, %v1006_v8, 0.0  ;;  %v12163_v59 = vsub.f32 %v17351_v24, %v11926_v5  ;;  %v1010_v8 = vmul.f32 %v12155_v3, %v12155_v3 }
 0x19b   :  { %v1093_v34 = vadd.f32 %v1092_v40, %v1091_v29  ;;  %v1096_v29 = vsel %vm781_vm2, %v1007_v16, 0.0  ;;  %v12171_v40 = vsub.f32 %v17352_v48, %v11926_v5  ;;  %v1011_v16 = vmul.f32 %v12163_v59, %v12163_v59 }
 0x19d   :  { %v1095_v9 = vadd.f32 %v1094_v50, %v1093_v34  ;;  %v1098_v34 = vsel %vm781_vm2, %v1008_v4, 0.0  ;;  %v12179_v50 = vsub.f32 %v17353_v54, %v11926_v5  ;;  %v1012_v4 = vmul.f32 %v12171_v40, %v12171_v40 }
 0x19f   :  { %v1097_v45 = vadd.f32 %v1096_v29, %v1095_v9  ;;  %v1100_v9 = vsel %vm781_vm2, %v1009_v21, 0.0  ;;  %v12187_v29 = vsub.f32 %v17354_v62, %v11926_v5  ;;  %v1013_v21 = vmul.f32 %v12179_v50, %v12179_v50 }
 0x1a1   :  { %v1099_v57 = vadd.f32 %v1098_v34, %v1097_v45  ;;  %v1102_v45 = vsel %vm781_vm2, %v1010_v8, 0.0  ;;  %v12195_v34 = vsub.f32 %v17355_v0, %v11926_v5  ;;  %v1014_v8 = vmul.f32 %v12187_v29, %v12187_v29 }
 0x1a3   :  { %v1101_v24 = vadd.f32 %v1100_v9, %v1099_v57  ;;  %v1104_v57 = vsel %vm781_vm2, %v1011_v16, 0.0  ;;  %v12203_v9 = vsub.f32 %v17356_v28, %v11926_v5  ;;  %v1015_v16 = vmul.f32 %v12195_v34, %v12195_v34 }
 0x1a4   :  { %v12219_v28 = vsub.f32 %v17360_v18, %v11926_v5  ;;  %v12235_v18 = vsub.f32 %v17365_v20, %v11926_v5  ;;  %v12251_v20 = vsub.f32 %v17369_v39, %v11926_v5  ;;  %v17374_v39 = vmax.f32 %v17373_v13, 0.0  ;;  %v17377_v13 = vld [vmem:[#allocation10_spill] sm:$0xff] }
 0x1a5   :  { %v1103_v48 = vadd.f32 %v1102_v45, %v1101_v24  ;;  %17357 = vst [vmem:[#allocation21_spill] sm:$0xff] %v12203_v9  ;;  %v1106_v24 = vsel %vm781_vm2, %v1012_v4, 0.0  ;;  %v17359_v45 = vmax.f32 %v17358_v53, 0.0  ;;  %v1016_v4 = vmul.f32 %v12203_v9, %v12203_v9  ;;  %v17362_v53 = vld [vmem:[#allocation6_spill] sm:$0xff] }
 0x1a6   :  { %17361 = vst [vmem:[#allocation5_spill] sm:$0xff] %v12219_v28  ;;  %17370 = vst [vmem:[#allocation22_spill] sm:$0xff] %v12251_v20 }
 0x1a7   :  { %v1105_v54 = vadd.f32 %v1104_v57, %v1103_v48  ;;  %v12211_v0 = vsub.f32 %v17359_v45, %v11926_v5  ;;  %v1108_v48 = vsel %vm781_vm2, %v1013_v21, 0.0  ;;  %v17363_v45 = vmax.f32 %v17362_v53, 0.0  ;;  %v17366_v53 = vld [vmem:[#allocation7_spill] sm:$0xff] }
 0x1a9   :  { %v1107_v62 = vadd.f32 %v1106_v24, %v1105_v54  ;;  %v1110_v54 = vsel %vm781_vm2, %v1014_v8, 0.0  ;;  %v12227_v1 = vsub.f32 %v17363_v45, %v11926_v5  ;;  %v1017_v21 = vmul.f32 %v12211_v0, %v12211_v0 }
 0x1aa   :  { %v1018_v8 = vmul.f32 %v12219_v28, %v12219_v28  ;;  %v17367_v45 = vmax.f32 %v17366_v53, 0.0  ;;  %v17371_v53 = vld [vmem:[#allocation8_spill] sm:$0xff] }
 0x1ab   :  { %v1109_v57 = vadd.f32 %v1108_v48, %v1107_v62  ;;  %17364 = vst [vmem:[#allocation6_spill] sm:$0xff] %v12227_v1  ;;  %v1112_v62 = vsel %vm781_vm2, %v1015_v16, 0.0  ;;  %v1019_v16 = vmul.f32 %v12227_v1, %v12227_v1  ;;  %v12267_v1 = vsub.f32 %v17374_v39, %v11926_v5 }
 0x1ac   :  { %v12243_v9 = vsub.f32 %v17367_v45, %v11926_v5  ;;  %v17372_v45 = vmax.f32 %v17371_v53, 0.0  ;;  %v17375_v53 = vmax.f32 %v11773_v58, 0.0  ;;  %v17378_v39 = vmax.f32 %v17377_v13, 0.0  ;;  %v17380_v58 = vld [vmem:[#allocation11_spill] sm:$0xff] }
 0x1ad   :  { %v1111_v24 = vadd.f32 %v1110_v54, %v1109_v57  ;;  %v1114_v57 = vsel %vm781_vm2, %v1016_v4, 0.0  ;;  %v1020_v4 = vmul.f32 %v12235_v18, %v12235_v18  ;;  %v17382_v13 = vmax.f32 %v11797_v7, 0.0 }
 0x1ae   :  { %17368 = vst [vmem:[#allocation7_spill] sm:$0xff] %v12243_v9  ;;  %v12259_v28 = vsub.f32 %v17372_v45, %v11926_v5  ;;  %v12275_v45 = vsub.f32 %v17375_v53, %v11926_v5  ;;  %v17381_v53 = vmax.f32 %v17380_v58, 0.0  ;;  %v17274_v58 = vmov 0  }
 0x1af   :  { %v1113_v48 = vadd.f32 %v1112_v62, %v1111_v24  ;;  %v1116_v24 = vsel %vm781_vm2, %v1017_v21, 0.0  ;;  %v1021_v21 = vmul.f32 %v12243_v9, %v12243_v9  ;;  %v12283_v9 = vsub.f32 %v17378_v39, %v11926_v5  ;;  %3342 = vmatprep.subr.bf16.mxu1 %v17274_v58  ;;  %3951 = vmatprep.subr.bf16.mxu0 %v17274_v58 }
 0x1b0   :  { %17376 = vst [vmem:[#allocation8_spill] sm:$0xff] %v12275_v45  ;;  %v12299_v39 = vsub.f32 %v17382_v13, %v11926_v5 }
 0x1b1   :  { %v1115_v54 = vadd.f32 %v1114_v57, %v1113_v48  ;;  %v1118_v48 = vsel %vm781_vm2, %v1018_v8, 0.0  ;;  %v1022_v8 = vmul.f32 %v12251_v20, %v12251_v20  ;;  %17379 = vst [vmem:[#allocation9_spill] sm:$0xff] %v12283_v9  ;;  %v12291_v20 = vsub.f32 %v17381_v53, %v11926_v5  ;;  %v17384_v53 = vld [vmem:[#allocation12_spill] sm:$0xff] }
 0x1b2   :  { %17383 = vst [vmem:[#allocation10_spill] sm:$0xff] %v12299_v39 }
 0x1b3   :  { %v1117_v62 = vadd.f32 %v1116_v24, %v1115_v54  ;;  %v1120_v54 = vsel %vm781_vm2, %v1019_v16, 0.0  ;;  %v1023_v16 = vmul.f32 %v12259_v28, %v12259_v28  ;;  %v1027_v7 = vmul.f32 %v12291_v20, %v12291_v20 }
 0x1b5   :  { %v1119_v57 = vadd.f32 %v1118_v48, %v1117_v62  ;;  %v1122_v62 = vsel %vm781_vm2, %v1020_v4, 0.0  ;;  %v1024_v4 = vmul.f32 %v12267_v1, %v12267_v1 }
 0x1b7   :  { %v1121_v24 = vadd.f32 %v1120_v54, %v1119_v57  ;;  %v1124_v57 = vsel %vm781_vm2, %v1021_v21, 0.0  ;;  %v1025_v21 = vmul.f32 %v12275_v45, %v12275_v45 }
 0x1b9   :  { %v1123_v48 = vadd.f32 %v1122_v62, %v1121_v24  ;;  %v1126_v24 = vsel %vm781_vm2, %v1022_v8, 0.0  ;;  %v1026_v8 = vmul.f32 %v12283_v9, %v12283_v9 }
 0x1bb   :  { %v1125_v54 = vadd.f32 %v1124_v57, %v1123_v48  ;;  %v1128_v48 = vsel %vm781_vm2, %v1023_v16, 0.0  ;;  %v17385_v16 = vmax.f32 %v17384_v53, 0.0  ;;  %v1134_v58 = vsel %vm781_vm2, %v1026_v8, 0.0  ;;  %v17388_v53 = vld [vmem:[#allocation13_spill] sm:$0xff] }
 0x1bd   :  { %v1127_v62 = vadd.f32 %v1126_v24, %v1125_v54  ;;  %v1130_v54 = vsel %vm781_vm2, %v1024_v4, 0.0  ;;  %v17386_v4 = vmax.f32 %v11812_v42, 0.0  ;;  %v17391_v42 = vmax.f32 %v11826_v31, 0.0 }
 0x1be   :  { %v17396_v31 = vmax.f32 %v11840_v10, 0.0  ;;  %v17401_v10 = vld [vmem:[#allocation16_spill] sm:$0xff] }
 0x1bf   :  { %v1129_v57 = vadd.f32 %v1128_v48, %v1127_v62  ;;  %v12309_v62 = vsub.f32 %v17385_v16, %v11926_v5  ;;  %v1132_v48 = vsel %vm781_vm2, %v1025_v21, 0.0  ;;  %v17389_v16 = vmax.f32 %v17388_v53, 0.0  ;;  %v17393_v53 = vld [vmem:[#allocation14_spill] sm:$0xff] }
 0x1c1   :  { %v1131_v24 = vadd.f32 %v1130_v54, %v1129_v57  ;;  %v12317_v57 = vsub.f32 %v17386_v4, %v11926_v5  ;;  %v1028_v54 = vmul.f32 %v12299_v39, %v12299_v39  ;;  %v12325_v45 = vsub.f32 %v17389_v16, %v11926_v5 }
 0x1c2   :  { %v1029_v21 = vmul.f32 %v12309_v62, %v12309_v62  ;;  %v12333_v4 = vsub.f32 %v17391_v42, %v11926_v5  ;;  %v17394_v16 = vmax.f32 %v17393_v53, 0.0  ;;  %v12349_v42 = vsub.f32 %v17396_v31, %v11926_v5  ;;  %v17398_v53 = vld [vmem:[#allocation15_spill] sm:$0xff] }
 0x1c3   :  { %v1133_v13 = vadd.f32 %v1132_v48, %v1131_v24  ;;  %17387 = vst [vmem:[#allocation11_spill] sm:$0xff] %v12317_v57  ;;  %17390 = vst [vmem:[#allocation12_spill] sm:$0xff] %v12325_v45  ;;  %v1136_v24 = vsel %vm781_vm2, %v1027_v7, 0.0  ;;  %v1030_v8 = vmul.f32 %v12317_v57, %v12317_v57  ;;  %v1031_v7 = vmul.f32 %v12325_v45, %v12325_v45 }
 0x1c4   :  { %17392 = vst [vmem:[#allocation13_spill] sm:$0xff] %v12333_v4  ;;  %v12341_v39 = vsub.f32 %v17394_v16, %v11926_v5  ;;  %17397 = vst [vmem:[#allocation23_spill] sm:$0xff] %v12349_v42  ;;  %v17399_v16 = vmax.f32 %v17398_v53, 0.0  ;;  %v17402_v31 = vmax.f32 %v17401_v10, 0.0  ;;  %v17404_v53 = vmax.f32 %v11861_v36, 0.0  ;;  %v17406_v10 = vld [vmem:[#allocation17_spill] sm:$0xff] }
 0x1c5   :  { %v1135_v9 = vadd.f32 %v1134_v58, %v1133_v13  ;;  %v1138_v58 = vsel %vm781_vm2, %v1028_v54, 0.0  ;;  %v1032_v54 = vmul.f32 %v12333_v4, %v12333_v4  ;;  %v17409_v36 = vmax.f32 %v11875_v17, 0.0  ;;  %v17414_v17 = vld [vmem:[#allocation19_spill] sm:$0xff] }
 0x1c6   :  { %17395 = vst [vmem:[#allocation14_spill] sm:$0xff] %v12341_v39  ;;  %v12357_v57 = vsub.f32 %v17399_v16, %v11926_v5  ;;  %v12365_v45 = vsub.f32 %v17402_v31, %v11926_v5  ;;  %v12373_v16 = vsub.f32 %v17404_v53, %v11926_v5  ;;  %v17407_v31 = vmax.f32 %v17406_v10, 0.0  ;;  %v17411_v10 = vld [vmem:[#allocation18_spill] sm:$0xff] }
 0x1c7   :  { %v1137_v48 = vadd.f32 %v1136_v24, %v1135_v9  ;;  %v1140_v9 = vsel %vm781_vm2, %v1029_v21, 0.0  ;;  %v1033_v21 = vmul.f32 %v12341_v39, %v12341_v39  ;;  %v12389_v53 = vsub.f32 %v17409_v36, %v11926_v5 }
 0x1c8   :  { %17400 = vst [vmem:[#allocation15_spill] sm:$0xff] %v12357_v57  ;;  %17403 = vst [vmem:[#allocation16_spill] sm:$0xff] %v12365_v45  ;;  %v12381_v39 = vsub.f32 %v17407_v31, %v11926_v5  ;;  %v17412_v31 = vmax.f32 %v17411_v10, 0.0  ;;  %v17415_v36 = vmax.f32 %v17414_v17, 0.0  ;;  %v17417_v10 = vld [vmem:[#allocation20_spill] sm:$0xff]  ;;  %v17420_v17 = vmax.f32 %v11910_v15, 0.0 }
 0x1c9   :  { %v1139_v13 = vadd.f32 %v1138_v58, %v1137_v48  ;;  %v1142_v48 = vsel %vm781_vm2, %v1030_v8, 0.0  ;;  %v1034_v8 = vmul.f32 %v12349_v42, %v12349_v42  ;;  %17405 = vst [vmem:[#allocation24_spill] sm:$0xff] %v12373_v16  ;;  %17410 = vst [vmem:[#allocation25_spill] sm:$0xff] %v12389_v53 }
 0x1ca   :  { %17408 = vst [vmem:[#allocation17_spill] sm:$0xff] %v12381_v39 }
 0x1cb   :  { %v1141_v24 = vadd.f32 %v1140_v9, %v1139_v13  ;;  %v1144_v13 = vsel %vm781_vm2, %v1031_v7, 0.0  ;;  %v1035_v7 = vmul.f32 %v12357_v57, %v12357_v57  ;;  %v12397_v57 = vsub.f32 %v17412_v31, %v11926_v5 }
 0x1cc   :  { %v17418_v31 = vmax.f32 %v17417_v10, 0.0 }
 0x1cd   :  { %v1143_v58 = vadd.f32 %v1142_v48, %v1141_v24  ;;  %v1146_v24 = vsel %vm781_vm2, %v1032_v54, 0.0  ;;  %v1036_v54 = vmul.f32 %v12365_v45, %v12365_v45  ;;  %17413 = vst [vmem:[#allocation18_spill] sm:$0xff] %v12397_v57  ;;  %v12405_v45 = vsub.f32 %v17415_v36, %v11926_v5 }
 0x1ce   :  { %v979_v36 = vsub.f32 %v17420_v17, %v11926_v5 }
 0x1cf   :  { %v1145_v9 = vadd.f32 %v1144_v13, %v1143_v58  ;;  %v1148_v58 = vsel %vm781_vm2, %v1033_v21, 0.0  ;;  %v1037_v21 = vmul.f32 %v12373_v16, %v12373_v16  ;;  %17416 = vst [vmem:[#allocation19_spill] sm:$0xff] %v12405_v45  ;;  %v12413_v16 = vsub.f32 %v17418_v31, %v11926_v5 }
 0x1d1   :  { %v1147_v48 = vadd.f32 %v1146_v24, %v1145_v9  ;;  %v1150_v9 = vsel %vm781_vm2, %v1034_v8, 0.0  ;;  %v1038_v8 = vmul.f32 %v12381_v39, %v12381_v39  ;;  %17419 = vst [vmem:[#allocation20_spill] sm:$0xff] %v12413_v16  ;;  %v1042_v31 = vmul.f32 %v12413_v16, %v12413_v16 }
 0x1d3   :  { %v1149_v13 = vadd.f32 %v1148_v58, %v1147_v48  ;;  %v1152_v48 = vsel %vm781_vm2, %v1035_v7, 0.0  ;;  %v1039_v7 = vmul.f32 %v12389_v53, %v12389_v53  ;;  %v1041_v53 = vmul.f32 %v12405_v45, %v12405_v45 }
 0x1d4   :  { %v1166_v45 = vsel %vm781_vm2, %v1042_v31, 0.0 }
 0x1d5   :  { %v1151_v24 = vadd.f32 %v1150_v9, %v1149_v13  ;;  %v1154_v13 = vsel %vm781_vm2, %v1036_v54, 0.0  ;;  %v1040_v54 = vmul.f32 %v12397_v57, %v12397_v57  ;;  %v1164_v15 = vsel %vm781_vm2, %v1041_v53, 0.0  ;;  %v10287_v53 = vld [vmem:[%s17174_s5 + $0x4] ss:$16 sps:$4 sm:$0xff]  }
 0x1d6   :  { %3374 = vmatprep.mubr.bf16.mxu1 %v10287_v53  ;;  %v17437_v53 = vld [vmem:[#allocation22_spill] sm:$0xff] }
 0x1d7   :  { %v1153_v58 = vadd.f32 %v1152_v48, %v1151_v24  ;;  %v1156_v24 = vsel %vm781_vm2, %v1037_v21, 0.0  ;;  %v1160_v21 = vsel %vm781_vm2, %v1039_v7, 0.0 }
 0x1d9   :  { %v1155_v9 = vadd.f32 %v1154_v13, %v1153_v58  ;;  %v1158_v58 = vsel %vm781_vm2, %v1038_v8, 0.0  ;;  %v1162_v8 = vsel %vm781_vm2, %v1040_v54, 0.0 }
 0x1db   :  { %v1157_v48 = vadd.f32 %v1156_v24, %v1155_v9  ;;  %v17421_v24 = vmax.f32 %v11916_v52, 0.0 }
 0x1dd   :  { %v1159_v13 = vadd.f32 %v1158_v58, %v1157_v48  ;;  %v980_v10 = vsub.f32 %v17421_v24, %v11926_v5  ;;  %v1043_v58 = vmul.f32 %v979_v36, %v979_v36 }
 0x1df   :  { %v1161_v9 = vadd.f32 %v1160_v21, %v1159_v13  ;;  %v1044_v57 = vmul.f32 %v980_v10, %v980_v10  ;;  %v1168_v7 = vsel %vm781_vm2, %v1043_v58, 0.0 }
 0x1e1   :  { %v1163_v48 = vadd.f32 %v1162_v8, %v1161_v9  ;;  %v1170_v52 = vsel %vm781_vm2, %v1044_v57, 0.0 }
 0x1e3   :  { %v1165_v17 = vadd.f32 %v1164_v15, %v1163_v48  ;;  %v12454_v48 = vld [vmem:[%s17173_s4] ss:$0 sm:$0xff] }
 0x1e4   :  { %17422 = vst [vmem:[#allocation26_spill] sm:$0xff] %v12454_v48 }
 0x1e5   :  { %v1167_v39 = vadd.f32 %v1166_v45, %v1165_v17  ;;  %v10290_v45 = vld [vmem:[%s17174_s5 + $0xc] ss:$16 sps:$4 sm:$0xff]  }
 0x1e6   :  { %3983 = vmatprep.mubr.bf16.mxu0 %v10290_v45 }
 0x1e7   :  { %v1169_v13 = vadd.f32 %v1168_v7, %v1167_v39 }
 0x1e9   :  { %v1171_v5 = vadd.f32 %v1170_v52, %v1169_v13 }
 0x1eb   :  { %v1172_v21 = vrot.slane %v1171_v5, 4 }
 0x1ed   :  { %v1173_v24 = vadd.f32 %v1172_v21, %v1171_v5 }
 0x1ef   :  { %v1174_v16 = vrot.slane %v1173_v24, 2 }
 0x1f1   :  { %v1175_v42 = vadd.f32 %v1174_v16, %v1173_v24  ;;  %v17433_v24 = vld [vmem:[#allocation21_spill] sm:$0xff] }
 0x1f3   :  { %v1176_v54 = vrot.slane %v1175_v42, 1 }
 0x1f5   :  { %v1177_v9 = vadd.f32 %v1176_v54, %v1175_v42  ;;  %v17434_v54 = vld [vmem:[#allocation5_spill] sm:$0xff] }
 0x1f7   :  { %v1178_v8 = vmul.f32 0.001953125, %v1177_v9  ;;  %v17435_v9 = vld [vmem:[#allocation6_spill] sm:$0xff] }
 0x1f9   :  { %v1179_v4 = vadd.f32 1e-05, %v1178_v8  ;;  %v17436_v8 = vld [vmem:[#allocation7_spill] sm:$0xff] }
 0x1fb   :  { %10745 = vrsqrt.f32 %v1179_v4  ;;  %v12447_v4 = vld [vmem:[%s17172_s3] ss:$0 sm:$0xff] }
 0x208   :  { %v12440_v39 = vpop.eup %10745 }
 0x209   :  { %v1243_v57 = vmul.f32 %v12440_v39, %v979_v36  ;;  %v1244_v16 = vmul.f32 %v12440_v39, %v980_v10  ;;  %v12458_v58 = vmul.f32 %v12440_v39, %v11931_v30  ;;  %v12462_v36 = vmul.f32 %v12440_v39, %v11936_v63 }
 0x20a   :  { %v12472_v17 = vmul.f32 %v12440_v39, %v11941_v11  ;;  %v12476_v7 = vmul.f32 %v12440_v39, %v11946_v25  ;;  %v12480_v30 = vmul.f32 %v12440_v39, %v11955_v43  ;;  %v12484_v63 = vmul.f32 %v12440_v39, %v11962_v12 }
 0x20b   :  { %v1313_v42 = vmul.f32 %v12447_v4, %v1243_v57  ;;  %v1314_v31 = vmul.f32 %v12447_v4, %v1244_v16  ;;  %v12488_v13 = vmul.f32 %v12440_v39, %v11971_v41  ;;  %v12492_v11 = vmul.f32 %v12440_v39, %v11979_v32  ;;  %v17438_v57 = vld [vmem:[#allocation8_spill] sm:$0xff] }
 0x20c   :  { %v12496_v25 = vmul.f32 %v12440_v39, %v11987_v37  ;;  %v12500_v43 = vmul.f32 %v12440_v39, %v11995_v22  ;;  %v12504_v12 = vmul.f32 %v12440_v39, %v12003_v23  ;;  %v12508_v41 = vmul.f32 %v12440_v39, %v12011_v47 }
 0x20d   :  { %v12465_v10 = vadd.f32 %v12454_v48, %v1313_v42  ;;  %v12468_v15 = vadd.f32 %v12454_v48, %v1314_v31  ;;  %v12512_v32 = vmul.f32 %v12440_v39, %v12019_v6  ;;  %v12516_v37 = vmul.f32 %v12440_v39, %v12027_v61  ;;  %v17439_v42 = vld [vmem:[#allocation9_spill] sm:$0xff]  ;;  %v17446_v48 = vld [vmem:[#allocation15_spill] sm:$0xff] }
 0x20e   :  { %17425 = vst [vmem:[#allocation29_spill] sm:$0xff] %v12500_v43  ;;  %17426 = vst [vmem:[#allocation30_spill] sm:$0xff] %v12504_v12  ;;  %v12520_v22 = vmul.f32 %v12440_v39, %v12035_v27  ;;  %v12524_v23 = vmul.f32 %v12440_v39, %v12043_v51  ;;  %v1197_v6 = vmul.f32 %v12440_v39, %v12051_v38  ;;  %v17452_v12 = vld [vmem:[#allocation19_spill] sm:$0xff]  ;;  %v17453_v43 = vld [vmem:[#allocation20_spill] sm:$0xff] }
 0x20f   :  { %17423 = vst [vmem:[#allocation27_spill] sm:$0xff] %v12465_v10  ;;  %17424 = vst [vmem:[#allocation28_spill] sm:$0xff] %v12468_v15  ;;  %v12528_v47 = vpack.c.bf16 %v12468_v15, %v12465_v10  ;;  %v1198_v52 = vmul.f32 %v12440_v39, %v12059_v33  ;;  %v1199_v61 = vmul.f32 %v12440_v39, %v12067_v49  ;;  %v17443_v15 = vld [vmem:[#allocation13_spill] sm:$0xff]  ;;  %v17444_v10 = vld [vmem:[#allocation14_spill] sm:$0xff] }
 0x210   :  { %17427 = vst [vmem:[#allocation31_spill] sm:$0xff] %v12508_v41  ;;  %17428 = vst [vmem:[#allocation32_spill] sm:$0xff] %v12512_v32  ;;  %v1200_v27 = vmul.f32 %v12440_v39, %v12075_v44  ;;  %v1201_v51 = vmul.f32 %v12440_v39, %v12083_v60  ;;  %v1202_v5 = vmul.f32 %v12440_v39, %v12091_v55  ;;  %v17450_v32 = vld [vmem:[#allocation25_spill] sm:$0xff]  ;;  %v17451_v41 = vld [vmem:[#allocation18_spill] sm:$0xff] }
 0x211   :  { %17429 = vst [vmem:[#allocation33_spill] sm:$0xff] %v12516_v37  ;;  %17430 = vst [vmem:[#allocation34_spill] sm:$0xff] %v12520_v22  ;;  %v1203_v21 = vmul.f32 %v12440_v39, %v12099_v14  ;;  %v1204_v38 = vmul.f32 %v12440_v39, %v12107_v2  ;;  %v1205_v33 = vmul.f32 %v12440_v39, %v12115_v35  ;;  %v17448_v22 = vld [vmem:[#allocation24_spill] sm:$0xff]  ;;  %v17449_v37 = vld [vmem:[#allocation17_spill] sm:$0xff] }
 0x212   :  { %17431 = vst [vmem:[#allocation35_spill] sm:$0xff] %v12524_v23  ;;  %17432 = vst [vmem:[#allocation36_spill] sm:$0xff] %v12528_v47  ;;  %v1206_v49 = vmul.f32 %v12440_v39, %v12123_v26  ;;  %v1207_v44 = vmul.f32 %v12440_v39, %v12131_v56  ;;  %v1208_v60 = vmul.f32 %v12440_v39, %v12139_v46  ;;  %v17445_v47 = vld [vmem:[#allocation23_spill] sm:$0xff]  ;;  %v17447_v23 = vld [vmem:[#allocation16_spill] sm:$0xff] }
 0x213   :  { %v1209_v55 = vmul.f32 %v12440_v39, %v12147_v19  ;;  %v1210_v14 = vmul.f32 %v12440_v39, %v12155_v3  ;;  %v1211_v2 = vmul.f32 %v12440_v39, %v12163_v59  ;;  %v1212_v35 = vmul.f32 %v12440_v39, %v12171_v40 }
 0x214   :  { %v1213_v26 = vmul.f32 %v12440_v39, %v12179_v50  ;;  %v1214_v56 = vmul.f32 %v12440_v39, %v12187_v29  ;;  %v1215_v46 = vmul.f32 %v12440_v39, %v12195_v34  ;;  %v1216_v19 = vmul.f32 %v12440_v39, %v17433_v24  ;;  %v17440_v24 = vld [vmem:[#allocation10_spill] sm:$0xff] }
 0x215   :  { %v1217_v3 = vmul.f32 %v12440_v39, %v12211_v0  ;;  %v1218_v59 = vmul.f32 %v12440_v39, %v17434_v54  ;;  %v1219_v40 = vmul.f32 %v12440_v39, %v17435_v9  ;;  %v1220_v50 = vmul.f32 %v12440_v39, %v12235_v18 }
 0x216   :  { %v1221_v29 = vmul.f32 %v12440_v39, %v17436_v8  ;;  %v1222_v34 = vmul.f32 %v12440_v39, %v17437_v53  ;;  %v1223_v45 = vmul.f32 %v12440_v39, %v12259_v28  ;;  %v1224_v0 = vmul.f32 %v12440_v39, %v12267_v1  ;;  %v17441_v8 = vld [vmem:[#allocation11_spill] sm:$0xff]  ;;  %v17442_v53 = vld [vmem:[#allocation12_spill] sm:$0xff] }
 0x217   :  { %v1225_v16 = vmul.f32 %v12440_v39, %v17438_v57  ;;  %v1226_v31 = vmul.f32 %v12440_v39, %v17439_v42  ;;  %v1227_v18 = vmul.f32 %v12440_v39, %v12291_v20  ;;  %v1228_v54 = vmul.f32 %v12440_v39, %v17440_v24 }
 0x218   :  { %v1229_v9 = vmul.f32 %v12440_v39, %v12309_v62  ;;  %v1230_v28 = vmul.f32 %v12440_v39, %v17441_v8  ;;  %v1231_v1 = vmul.f32 %v12440_v39, %v17442_v53  ;;  %v1232_v57 = vmul.f32 %v12440_v39, %v17443_v15 }
 0x219   :  { %v1233_v42 = vmul.f32 %v12440_v39, %v17444_v10  ;;  %v1234_v20 = vmul.f32 %v12440_v39, %v17445_v47  ;;  %v1235_v24 = vmul.f32 %v12440_v39, %v17446_v48  ;;  %v1236_v62 = vmul.f32 %v12440_v39, %v17447_v23 }
 0x21a   :  { %v1237_v8 = vmul.f32 %v12440_v39, %v17448_v22  ;;  %v1238_v53 = vmul.f32 %v12440_v39, %v17449_v37  ;;  %v1239_v15 = vmul.f32 %v12440_v39, %v17450_v32  ;;  %v1240_v10 = vmul.f32 %v12440_v39, %v17451_v41 }
 0x21b   :  { %v1241_v47 = vmul.f32 %v12440_v39, %v17452_v12  ;;  %v12622_v48 = vmul.f32 %v12440_v39, %v17453_v43  ;;  %v12626_v23 = vmul.f32 %v12447_v4, %v12458_v58  ;;  %v12630_v37 = vmul.f32 %v12447_v4, %v12462_v36  ;;  %v17460_v43 = vld [vmem:[#allocation29_spill] sm:$0xff] }
 0x21c   :  { %v12634_v32 = vmul.f32 %v12447_v4, %v12472_v17  ;;  %v12638_v41 = vmul.f32 %v12447_v4, %v12476_v7  ;;  %v12642_v39 = vmul.f32 %v12447_v4, %v12480_v30  ;;  %v12646_v58 = vmul.f32 %v12447_v4, %v12484_v63  ;;  %v17461_v30 = vld [vmem:[#allocation30_spill] sm:$0xff] }
 0x21d   :  { %17454 = vst [vmem:[#allocation21_spill] sm:$0xff] %v12626_v23  ;;  %17455 = vst [vmem:[#allocation5_spill] sm:$0xff] %v12630_v37  ;;  %v12650_v36 = vmul.f32 %v12447_v4, %v12488_v13  ;;  %v12654_v17 = vmul.f32 %v12447_v4, %v12492_v11  ;;  %v1259_v7 = vmul.f32 %v12447_v4, %v12496_v25  ;;  %v17462_v37 = vld [vmem:[#allocation31_spill] sm:$0xff]  ;;  %v17463_v23 = vld [vmem:[#allocation32_spill] sm:$0xff] }
 0x21e   :  { %17456 = vst [vmem:[#allocation6_spill] sm:$0xff] %v12634_v32  ;;  %17457 = vst [vmem:[#allocation7_spill] sm:$0xff] %v12638_v41  ;;  %v1260_v12 = vmul.f32 %v12447_v4, %v17460_v43  ;;  %v1261_v22 = vmul.f32 %v12447_v4, %v17461_v30  ;;  %v1262_v63 = vmul.f32 %v12447_v4, %v17462_v37  ;;  %v17464_v41 = vld [vmem:[#allocation33_spill] sm:$0xff]  ;;  %v17465_v11 = vld [vmem:[#allocation34_spill] sm:$0xff] }
 0x21f   :  { %17458 = vst [vmem:[#allocation22_spill] sm:$0xff] %v12650_v36  ;;  %17459 = vst [vmem:[#allocation8_spill] sm:$0xff] %v12654_v17  ;;  %v1263_v13 = vmul.f32 %v12447_v4, %v17463_v23  ;;  %v1264_v32 = vmul.f32 %v12447_v4, %v17464_v41  ;;  %v1265_v17 = vmul.f32 %v12447_v4, %v17465_v11  ;;  %v17466_v36 = vld [vmem:[#allocation35_spill] sm:$0xff] }
 0x220   :  { %v1266_v25 = vmul.f32 %v12447_v4, %v17466_v36  ;;  %v12673_v43 = vmul.f32 %v12447_v4, %v1197_v6  ;;  %v12676_v30 = vmul.f32 %v12447_v4, %v1198_v52  ;;  %v12679_v37 = vmul.f32 %v12447_v4, %v1199_v61 }
 0x221   :  { %v12682_v23 = vmul.f32 %v12447_v4, %v1200_v27  ;;  %v12685_v41 = vmul.f32 %v12447_v4, %v1201_v51  ;;  %v12688_v11 = vmul.f32 %v12447_v4, %v1202_v5  ;;  %v12691_v36 = vmul.f32 %v12447_v4, %v1203_v21 }
 0x222   :  { %17467 = vst [vmem:[#allocation9_spill] sm:$0xff] %v12673_v43  ;;  %17468 = vst [vmem:[#allocation10_spill] sm:$0xff] %v12676_v30  ;;  %v12694_v6 = vmul.f32 %v12447_v4, %v1204_v38  ;;  %v12697_v52 = vmul.f32 %v12447_v4, %v1205_v33  ;;  %v12700_v61 = vmul.f32 %v12447_v4, %v1206_v49 }
 0x223   :  { %17469 = vst [vmem:[#allocation11_spill] sm:$0xff] %v12682_v23  ;;  %17470 = vst [vmem:[#allocation12_spill] sm:$0xff] %v12685_v41  ;;  %v12703_v27 = vmul.f32 %v12447_v4, %v1207_v44  ;;  %v12706_v51 = vmul.f32 %v12447_v4, %v1208_v60  ;;  %v12709_v5 = vmul.f32 %v12447_v4, %v1209_v55 }
 0x224   :  { %17471 = vst [vmem:[#allocation13_spill] sm:$0xff] %v12688_v11  ;;  %17472 = vst [vmem:[#allocation14_spill] sm:$0xff] %v12691_v36  ;;  %v12712_v21 = vmul.f32 %v12447_v4, %v1210_v14  ;;  %v12715_v38 = vmul.f32 %v12447_v4, %v1211_v2  ;;  %v12718_v33 = vmul.f32 %v12447_v4, %v1212_v35 }
 0x225   :  { %17473 = vst [vmem:[#allocation23_spill] sm:$0xff] %v12694_v6  ;;  %17474 = vst [vmem:[#allocation15_spill] sm:$0xff] %v12700_v61  ;;  %v12721_v49 = vmul.f32 %v12447_v4, %v1213_v26  ;;  %v12724_v44 = vmul.f32 %v12447_v4, %v1214_v56  ;;  %v12727_v60 = vmul.f32 %v12447_v4, %v1215_v46 }
 0x226   :  { %17475 = vst [vmem:[#allocation16_spill] sm:$0xff] %v12706_v51  ;;  %v12730_v55 = vmul.f32 %v12447_v4, %v1216_v19  ;;  %v1287_v14 = vmul.f32 %v12447_v4, %v1217_v3  ;;  %v12734_v2 = vmul.f32 %v12447_v4, %v1218_v59  ;;  %v1289_v35 = vmul.f32 %v12447_v4, %v1219_v40 }
 0x227   :  { %v1290_v30 = vmul.f32 %v12447_v4, %v1220_v50  ;;  %v1291_v26 = vmul.f32 %v12447_v4, %v1221_v29  ;;  %v1292_v56 = vmul.f32 %v12447_v4, %v1222_v34  ;;  %v1293_v43 = vmul.f32 %v12447_v4, %v1223_v45 }
 0x228   :  { %v1294_v46 = vmul.f32 %v12447_v4, %v1224_v0  ;;  %v1295_v19 = vmul.f32 %v12447_v4, %v1225_v16  ;;  %v1296_v23 = vmul.f32 %v12447_v4, %v1226_v31  ;;  %v1297_v3 = vmul.f32 %v12447_v4, %v1227_v18 }
 0x229   :  { %v1298_v59 = vmul.f32 %v12447_v4, %v1228_v54  ;;  %v12747_v40 = vmul.f32 %v12447_v4, %v1229_v9  ;;  %v12750_v50 = vmul.f32 %v12447_v4, %v1230_v28  ;;  %v12753_v29 = vmul.f32 %v12447_v4, %v1231_v1 }
 0x22a   :  { %v12756_v34 = vmul.f32 %v12447_v4, %v1232_v57  ;;  %v12759_v45 = vmul.f32 %v12447_v4, %v1233_v42  ;;  %v12762_v0 = vmul.f32 %v12447_v4, %v1234_v20  ;;  %v12765_v16 = vmul.f32 %v12447_v4, %v1235_v24  ;;  %v17488_v57 = vld [vmem:[#allocation26_spill] sm:$0xff] }
 0x22b   :  { %17476 = vst [vmem:[#allocation24_spill] sm:$0xff] %v12747_v40  ;;  %17477 = vst [vmem:[#allocation17_spill] sm:$0xff] %v12750_v50  ;;  %v12768_v31 = vmul.f32 %v12447_v4, %v1236_v62  ;;  %v12771_v18 = vmul.f32 %v12447_v4, %v1237_v8  ;;  %v12774_v54 = vmul.f32 %v12447_v4, %v1238_v53 }
 0x22c   :  { %17478 = vst [vmem:[#allocation25_spill] sm:$0xff] %v12753_v29  ;;  %17479 = vst [vmem:[#allocation18_spill] sm:$0xff] %v12756_v34  ;;  %v12777_v9 = vmul.f32 %v12447_v4, %v1239_v15  ;;  %v12780_v28 = vmul.f32 %v12447_v4, %v1240_v10  ;;  %v12783_v1 = vmul.f32 %v12447_v4, %v1241_v47 }
 0x22d   :  { %17480 = vst [vmem:[#allocation19_spill] sm:$0xff] %v12759_v45  ;;  %17481 = vst [vmem:[#allocation20_spill] sm:$0xff] %v12762_v0  ;;  %v12786_v42 = vadd.f32 %v17488_v57, %v1259_v7  ;;  %v12789_v20 = vadd.f32 %v17488_v57, %v1260_v12  ;;  %v1335_v24 = vadd.f32 %v17488_v57, %v1265_v17 }
 0x22e   :  { %17482 = vst [vmem:[#allocation29_spill] sm:$0xff] %v12765_v16  ;;  %17483 = vst [vmem:[#allocation30_spill] sm:$0xff] %v12768_v31  ;;  %v1336_v62 = vadd.f32 %v17488_v57, %v1266_v25  ;;  %v1333_v8 = vadd.f32 %v17488_v57, %v1263_v13  ;;  %v1334_v53 = vadd.f32 %v17488_v57, %v1264_v32 }
 0x22f   :  { %17484 = vst [vmem:[#allocation31_spill] sm:$0xff] %v12771_v18  ;;  %17485 = vst [vmem:[#allocation32_spill] sm:$0xff] %v12774_v54  ;;  %v1365_v15 = vadd.f32 %v17488_v57, %v1295_v19  ;;  %v1366_v10 = vadd.f32 %v17488_v57, %v1296_v23  ;;  %v1331_v47 = vadd.f32 %v17488_v57, %v1261_v22 }
 0x230   :  { %17486 = vst [vmem:[#allocation33_spill] sm:$0xff] %v12777_v9  ;;  %17487 = vst [vmem:[#allocation34_spill] sm:$0xff] %v12780_v28  ;;  %v1332_v7 = vadd.f32 %v17488_v57, %v1262_v63  ;;  %v1367_v50 = vadd.f32 %v17488_v57, %v1297_v3  ;;  %v1368_v12 = vadd.f32 %v17488_v57, %v1298_v59 }
 0x231   :  { %v12802_v17 = vadd.f32 %v17488_v57, %v1291_v26  ;;  %v12805_v25 = vadd.f32 %v17488_v57, %v1292_v56  ;;  %v1363_v32 = vadd.f32 %v17488_v57, %v1293_v43  ;;  %v1364_v13 = vadd.f32 %v17488_v57, %v1294_v46  ;;  %v17490_v56 = vld [vmem:[#allocation22_spill] sm:$0xff]  ;;  %v17491_v43 = vld [vmem:[#allocation8_spill] sm:$0xff] }
 0x232   :  { %v12811_v23 = vmul.f32 %v12447_v4, %v12622_v48  ;;  %v12815_v22 = vadd.f32 %v17488_v57, %v12642_v39  ;;  %v12819_v63 = vadd.f32 %v17488_v57, %v12646_v58  ;;  %v12821_v26 = vpack.c.bf16 %v1336_v62, %v1335_v24 }
 0x233   :  { %v12825_v19 = vadd.f32 %v17488_v57, %v17490_v56  ;;  %v12829_v46 = vadd.f32 %v17488_v57, %v17491_v43  ;;  %v12831_v4 = vpack.c.bf16 %v1334_v53, %v1333_v8  ;;  %v12833_v48 = vpack.c.bf16 %v1366_v10, %v1365_v15 }
 0x234   :  { %17489 = vst [vmem:[#allocation35_spill] sm:$0xff] %v12821_v26  ;;  %v12836_v39 = vadd.f32 %v17488_v57, %v1287_v14  ;;  %v12839_v58 = vadd.f32 %v17488_v57, %v1289_v35  ;;  %v12842_v3 = vadd.f32 %v17488_v57, %v1290_v30  ;;  %v12844_v59 = vpack.c.bf16 %v1368_v12, %v1367_v50 }
 0x235   :  { %17492 = vst [vmem:[#allocation26_spill] sm:$0xff] %v12831_v4  ;;  %v12848_v56 = vpack.c.bf16 %v12789_v20, %v12786_v42  ;;  %v12850_v43 = vpack.c.bf16 %v1332_v7, %v1331_v47  ;;  %v12854_v40 = vpack.c.bf16 %v12805_v25, %v12802_v17  ;;  %v12856_v14 = vpack.c.bf16 %v1364_v13, %v1363_v32 }
 0x236   :  { %17493 = vst [vmem:[#allocation22_spill] sm:$0xff] %v12844_v59  ;;  %v1756_v35 = vunpack.c.l.bf16 %v12821_v26  ;;  %v1757_v34 = vunpack.c.h.bf16 %v12821_v26  ;;  %v1788_v30 = vunpack.c.l.bf16 %v12844_v59  ;;  %v1789_v29 = vunpack.c.h.bf16 %v12844_v59 }
 0x237   :  { %v1754_v0 = vunpack.c.l.bf16 %v12831_v4  ;;  %v1755_v45 = vunpack.c.h.bf16 %v12831_v4  ;;  %v1786_v11 = vunpack.c.l.bf16 %v12833_v48  ;;  %v1787_v41 = vunpack.c.h.bf16 %v12833_v48 }
 0x238   :  { %v1820_v31 = vsub.f32 %v1335_v24, %v1756_v35  ;;  %v1821_v16 = vsub.f32 %v1336_v62, %v1757_v34  ;;  %v1852_v6 = vsub.f32 %v1367_v50, %v1788_v30  ;;  %v1853_v36 = vsub.f32 %v1368_v12, %v1789_v29  ;;  %v17497_v35 = vld [vmem:[#allocation21_spill] sm:$0xff] }
 0x239   :  { %v1818_v54 = vsub.f32 %v1333_v8, %v1754_v0  ;;  %v1819_v18 = vsub.f32 %v1334_v53, %v1755_v45  ;;  %v1850_v61 = vsub.f32 %v1365_v15, %v1786_v11  ;;  %v1851_v26 = vsub.f32 %v1366_v10, %v1787_v41 }
 0x23a   :  { %v1877_v28 = vpack.c.bf16 %v1821_v16, %v1820_v31  ;;  %v1893_v9 = vpack.c.bf16 %v1853_v36, %v1852_v6  ;;  %v1752_v59 = vunpack.c.l.bf16 %v12850_v43  ;;  %v1753_v51 = vunpack.c.h.bf16 %v12850_v43 }
 0x23b   :  { %v12870_v4 = vadd.f32 %v17488_v57, %v12734_v2  ;;  %v12874_v24 = vpack.c.bf16 %v12829_v46, %v12825_v19  ;;  %v1784_v50 = vunpack.c.l.bf16 %v12856_v14  ;;  %v1785_v29 = vunpack.c.h.bf16 %v12856_v14 }
 0x23c   :  { %v12880_v41 = vpack.c.bf16 %v12842_v3, %v12839_v58  ;;  %3343 = vmatpush1.bf16.msra.mxu1 %v1877_v28  ;;  %3952 = vmatpush1.bf16.msra.mxu0 %v1893_v9  ;;  %v1876_v11 = vpack.c.bf16 %v1819_v18, %v1818_v54  ;;  %v1892_v36 = vpack.c.bf16 %v1851_v26, %v1850_v61  ;;  %v17494_v6 = vmov 0   ;;  %v17495_v28 = vld [vmem:[#allocation6_spill] sm:$0xff]  ;;  %v17496_v61 = vld [vmem:[#allocation7_spill] sm:$0xff] }
 0x23d   :  { %3344 = vmatprep.subr.bf16.mxu1 %v17494_v6  ;;  %3953 = vmatprep.subr.bf16.mxu0 %v17494_v6  ;;  %v1816_v2 = vsub.f32 %v1331_v47, %v1752_v59  ;;  %v1817_v34 = vsub.f32 %v1332_v7, %v1753_v51  ;;  %v1750_v45 = vunpack.c.l.bf16 %v12848_v56  ;;  %v1751_v0 = vunpack.c.h.bf16 %v12848_v56 }
 0x23e   :  { %v1848_v16 = vsub.f32 %v1363_v32, %v1784_v50  ;;  %v1849_v31 = vsub.f32 %v1364_v13, %v1785_v29  ;;  %v1782_v62 = vunpack.c.l.bf16 %v12854_v40  ;;  %v1783_v8 = vunpack.c.h.bf16 %v12854_v40  ;;  %v17498_v50 = vld [vmem:[#allocation5_spill] sm:$0xff] }
 0x23f   :  { %v12890_v18 = vadd.f32 %v17488_v57, %v17495_v28  ;;  %v12894_v54 = vadd.f32 %v17488_v57, %v17496_v61  ;;  %v12898_v51 = vadd.f32 %v17488_v57, %v12727_v60  ;;  %v12902_v9 = vadd.f32 %v17488_v57, %v12730_v55 }
 0x240   :  { %v12906_v53 = vpack.c.bf16 %v12819_v63, %v12815_v22  ;;  %v12910_v15 = vpack.c.bf16 %v12870_v4, %v12836_v39  ;;  %3345 = vmatpush1.bf16.msra.mxu1 %v1876_v11  ;;  %3954 = vmatpush1.bf16.msra.mxu0 %v1892_v36  ;;  %v1748_v10 = vunpack.c.l.bf16 %v12874_v24  ;;  %v1749_v47 = vunpack.c.h.bf16 %v12874_v24 }
 0x241   :  { %3346 = vmatprep.subr.bf16.mxu1 %v17494_v6  ;;  %3955 = vmatprep.subr.bf16.mxu0 %v17494_v6  ;;  %v1875_v60 = vpack.c.bf16 %v1817_v34, %v1816_v2  ;;  %v1814_v55 = vsub.f32 %v12786_v42, %v1750_v45  ;;  %v1780_v7 = vunpack.c.l.bf16 %v12880_v41  ;;  %v1781_v12 = vunpack.c.h.bf16 %v12880_v41 }
 0x242   :  { %v1891_v32 = vpack.c.bf16 %v1849_v31, %v1848_v16  ;;  %v1815_v13 = vsub.f32 %v12789_v20, %v1751_v0  ;;  %v1846_v26 = vsub.f32 %v12802_v17, %v1782_v62  ;;  %v1847_v59 = vsub.f32 %v12805_v25, %v1783_v8 }
 0x243   :  { %v12924_v30 = vadd.f32 %v17488_v57, %v17497_v35  ;;  %v12928_v29 = vadd.f32 %v17488_v57, %v17498_v50  ;;  %v12932_v42 = vadd.f32 %v17488_v57, %v12721_v49  ;;  %v12936_v11 = vadd.f32 %v17488_v57, %v12724_v44 }
 0x244   :  { %v12940_v20 = vpack.c.bf16 %v12894_v54, %v12890_v18  ;;  %3347 = vmatpush1.bf16.msra.mxu1 %v1875_v60  ;;  %3956 = vmatpush1.bf16.msra.mxu0 %v1891_v32  ;;  %v1812_v17 = vsub.f32 %v12825_v19, %v1748_v10  ;;  %v1813_v25 = vsub.f32 %v12829_v46, %v1749_v47  ;;  %v1746_v36 = vunpack.c.l.bf16 %v12906_v53 }
 0x245   :  { %3348 = vmatprep.subr.bf16.mxu1 %v17494_v6  ;;  %3957 = vmatprep.subr.bf16.mxu0 %v17494_v6  ;;  %v1844_v49 = vsub.f32 %v12839_v58, %v1780_v7  ;;  %v1845_v44 = vsub.f32 %v12842_v3, %v1781_v12  ;;  %v1747_v2 = vunpack.c.h.bf16 %v12906_v53  ;;  %v1778_v34 = vunpack.c.l.bf16 %v12910_v15 }
 0x246   :  { %v12953_v45 = vpack.c.bf16 %v12902_v9, %v12898_v51  ;;  %v1874_v19 = vpack.c.bf16 %v1815_v13, %v1814_v55  ;;  %v1890_v46 = vpack.c.bf16 %v1847_v59, %v1846_v26  ;;  %v1779_v0 = vunpack.c.h.bf16 %v12910_v15 }
 0x247   :  { %v12958_v16 = vadd.f32 %v17488_v57, %v12679_v37  ;;  %v12962_v58 = vadd.f32 %v17488_v57, %v12715_v38  ;;  %v12966_v3 = vadd.f32 %v17488_v57, %v12718_v33  ;;  %v12970_v31 = vpack.c.bf16 %v12928_v29, %v12924_v30 }
 0x248   :  { %v12974_v62 = vpack.c.bf16 %v12936_v11, %v12932_v42  ;;  %3349 = vmatpush1.bf16.msra.mxu1 %v1874_v19  ;;  %3958 = vmatpush1.bf16.msra.mxu0 %v1890_v46  ;;  %v1873_v37 = vpack.c.bf16 %v1813_v25, %v1812_v17  ;;  %v1810_v8 = vsub.f32 %v12815_v22, %v1746_v36  ;;  %v1744_v61 = vunpack.c.l.bf16 %v12940_v20  ;;  %v17499_v17 = vld [vmem:[#allocation16_spill] sm:$0xff] }
 0x249   :  { %3350 = vmatprep.subr.bf16.mxu1 %v17494_v6  ;;  %3959 = vmatprep.subr.bf16.mxu0 %v17494_v6  ;;  %v1889_v38 = vpack.c.bf16 %v1845_v44, %v1844_v49  ;;  %v1811_v33 = vsub.f32 %v12819_v63, %v1747_v2  ;;  %v1842_v28 = vsub.f32 %v12836_v39, %v1778_v34  ;;  %v1745_v47 = vunpack.c.h.bf16 %v12940_v20  ;;  %v17501_v49 = vld [vmem:[#allocation34_spill] sm:$0xff] }
 0x24a   :  { %v1843_v10 = vsub.f32 %v12870_v4, %v1779_v0  ;;  %v1776_v60 = vunpack.c.l.bf16 %v12953_v45  ;;  %v1777_v55 = vunpack.c.h.bf16 %v12953_v45  ;;  %v12988_v22 = vadd.f32 %v17488_v57, %v12697_v52 }
 0x24b   :  { %v12992_v7 = vadd.f32 %v17488_v57, %v12709_v5  ;;  %v12996_v63 = vadd.f32 %v17488_v57, %v12712_v21  ;;  %v13000_v4 = vadd.f32 %v17488_v57, %v12783_v1  ;;  %v13004_v39 = vadd.f32 %v17488_v57, %v12811_v23 }
 0x24c   :  { %v13008_v52 = vpack.c.bf16 %v12966_v3, %v12962_v58  ;;  %3351 = vmatpush1.bf16.msra.mxu1 %v1873_v37  ;;  %3960 = vmatpush1.bf16.msra.mxu0 %v1889_v38  ;;  %v1742_v5 = vunpack.c.l.bf16 %v12970_v31  ;;  %v1743_v12 = vunpack.c.h.bf16 %v12970_v31  ;;  %v1872_v21 = vpack.c.bf16 %v1811_v33, %v1810_v8  ;;  %v17502_v37 = vld [vmem:[#allocation36_spill] sm:$0xff]  ;;  %v17503_v38 = vld [vmem:[#allocation15_spill] sm:$0xff] }
 0x24d   :  { %3352 = vmatprep.subr.bf16.mxu1 %v17494_v6  ;;  %3961 = vmatprep.subr.bf16.mxu0 %v17494_v6  ;;  %v1808_v1 = vsub.f32 %v12890_v18, %v1744_v61  ;;  %v1774_v23 = vunpack.c.l.bf16 %v12974_v62  ;;  %v1775_v32 = vunpack.c.h.bf16 %v12974_v62  ;;  %v1888_v13 = vpack.c.bf16 %v1843_v10, %v1842_v28  ;;  %v17500_v18 = vld [vmem:[#allocation33_spill] sm:$0xff]  ;;  %v17504_v28 = vld [vmem:[#allocation31_spill] sm:$0xff]  ;;  %v17505_v10 = vld [vmem:[#allocation32_spill] sm:$0xff] }
 0x24e   :  { %v1809_v26 = vsub.f32 %v12894_v54, %v1745_v47  ;;  %v1840_v59 = vsub.f32 %v12898_v51, %v1776_v60  ;;  %v1841_v35 = vsub.f32 %v12902_v9, %v1777_v55  ;;  %v13022_v50 = vadd.f32 %v17488_v57, %v12703_v27 }
 0x24f   :  { %v13026_v25 = vadd.f32 %v17488_v57, %v17499_v17  ;;  %v13030_v36 = vadd.f32 %v17488_v57, %v17500_v18  ;;  %v13034_v44 = vadd.f32 %v17488_v57, %v17501_v49  ;;  %v13038_v54 = vpack.c.bf16 %v12996_v63, %v12992_v7  ;;  %v17509_v18 = vld [vmem:[#allocation23_spill] sm:$0xff] }
 0x250   :  { %3353 = vmatpush1.bf16.msra.mxu1 %v1872_v21  ;;  %3962 = vmatpush1.bf16.msra.mxu0 %v1888_v13  ;;  %v1806_v27 = vsub.f32 %v12924_v30, %v1742_v5  ;;  %v1807_v51 = vsub.f32 %v12928_v29, %v1743_v12  ;;  %v1772_v9 = vunpack.c.l.bf16 %v13008_v52  ;;  %v13045_v2 = vpack.c.bf16 %v13004_v39, %v13000_v4  ;;  %v17507_v13 = vld [vmem:[#allocation28_spill] sm:$0xff] }
 0x251   :  { %3354 = vmatprep.subr.bf16.mxu1 %v17494_v6  ;;  %3963 = vmatprep.subr.bf16.mxu0 %v17494_v6  ;;  %v1838_v34 = vsub.f32 %v12932_v42, %v1774_v23  ;;  %v1839_v19 = vsub.f32 %v12936_v11, %v1775_v32  ;;  %v1773_v46 = vunpack.c.h.bf16 %v13008_v52  ;;  %v1871_v0 = vpack.c.bf16 %v1809_v26, %v1808_v1  ;;  %v17506_v23 = vld [vmem:[#allocation27_spill] sm:$0xff] }
 0x252   :  { %v1887_v30 = vpack.c.bf16 %v1841_v35, %v1840_v59  ;;  %v1804_v29 = vunpack.c.l.bf16 %v17502_v37  ;;  %v1805_v8 = vunpack.c.h.bf16 %v17502_v37  ;;  %v13056_v33 = vadd.f32 %v17488_v57, %v17503_v38 }
 0x253   :  { %v13060_v61 = vadd.f32 %v17488_v57, %v17504_v28  ;;  %v13064_v42 = vadd.f32 %v17488_v57, %v17505_v10  ;;  %v13068_v11 = vpack.c.bf16 %v13026_v25, %v13022_v50  ;;  %v13072_v47 = vpack.c.bf16 %v13034_v44, %v13030_v36 }
 0x254   :  { %3355 = vmatpush1.bf16.msra.mxu1 %v1871_v0  ;;  %3964 = vmatpush1.bf16.msra.mxu0 %v1887_v30  ;;  %v1870_v60 = vpack.c.bf16 %v1807_v51, %v1806_v27  ;;  %v1836_v55 = vsub.f32 %v12962_v58, %v1772_v9  ;;  %v1886_v5 = vpack.c.bf16 %v1839_v19, %v1838_v34  ;;  %v1770_v21 = vunpack.c.l.bf16 %v13038_v54  ;;  %v17508_v58 = vld [vmem:[#allocation14_spill] sm:$0xff] }
 0x255   :  { %3356 = vmatprep.subr.bf16.mxu1 %v17494_v6  ;;  %3965 = vmatprep.subr.bf16.mxu0 %v17494_v6  ;;  %v1837_v12 = vsub.f32 %v12966_v3, %v1773_v46  ;;  %v1771_v1 = vunpack.c.h.bf16 %v13038_v54  ;;  %v1868_v32 = vsub.f32 %v17506_v23, %v1804_v29  ;;  %v1869_v26 = vsub.f32 %v17507_v13, %v1805_v8  ;;  %v17510_v3 = vld [vmem:[#allocation29_spill] sm:$0xff]  ;;  %v17511_v51 = vld [vmem:[#allocation30_spill] sm:$0xff]  ;;  %v17512_v23 = vld [vmem:[#allocation12_spill] sm:$0xff] }
 0x256   :  { %v1802_v59 = vunpack.c.l.bf16 %v13045_v2  ;;  %v1803_v35 = vunpack.c.h.bf16 %v13045_v2  ;;  %v13086_v17 = vadd.f32 %v17488_v57, %v17508_v58  ;;  %v13090_v49 = vadd.f32 %v17488_v57, %v17509_v18  ;;  %v17513_v58 = vld [vmem:[#allocation13_spill] sm:$0xff] }
 0x257   :  { %v13094_v27 = vadd.f32 %v17488_v57, %v17510_v3  ;;  %v13098_v9 = vadd.f32 %v17488_v57, %v17511_v51  ;;  %v13102_v34 = vpack.c.bf16 %v13056_v33, %v12988_v22  ;;  %v13106_v19 = vpack.c.bf16 %v13064_v42, %v13060_v61 }
 0x258   :  { %3357 = vmatpush1.bf16.msra.mxu1 %v1870_v60  ;;  %3966 = vmatpush1.bf16.msra.mxu0 %v1886_v5  ;;  %v1768_v46 = vunpack.c.l.bf16 %v13068_v11  ;;  %v1769_v0 = vunpack.c.h.bf16 %v13068_v11  ;;  %v1885_v30 = vpack.c.bf16 %v1837_v12, %v1836_v55  ;;  %v1834_v29 = vsub.f32 %v12992_v7, %v1770_v21  ;;  %v17514_v55 = vld [vmem:[#allocation19_spill] sm:$0xff]  ;;  %v17515_v12 = vld [vmem:[#allocation20_spill] sm:$0xff] }
 0x259   :  { %3358 = vmatprep.subr.bf16.mxu1 %v17494_v6  ;;  %3967 = vmatprep.subr.bf16.mxu0 %v17494_v6  ;;  %v1800_v8 = vunpack.c.l.bf16 %v13072_v47  ;;  %v1801_v38 = vunpack.c.h.bf16 %v13072_v47  ;;  %v1901_v28 = vpack.c.bf16 %v1869_v26, %v1868_v32  ;;  %v1835_v10 = vsub.f32 %v12996_v63, %v1771_v1 }
 0x25a   :  { %v1866_v60 = vsub.f32 %v13000_v4, %v1802_v59  ;;  %v1867_v5 = vsub.f32 %v13004_v39, %v1803_v35  ;;  %v1341_v13 = vadd.f32 %v17488_v57, %v17512_v23  ;;  %v1342_v18 = vadd.f32 %v17488_v57, %v17513_v58 }
 0x25b   :  { %v13124_v7 = vadd.f32 %v17488_v57, %v17514_v55  ;;  %v13128_v21 = vadd.f32 %v17488_v57, %v17515_v12  ;;  %v13132_v63 = vpack.c.bf16 %v13090_v49, %v13086_v17  ;;  %v1832_v4 = vsub.f32 %v13022_v50, %v1768_v46  ;;  %v17516_v46 = vld [vmem:[#allocation11_spill] sm:$0xff] }
 0x25c   :  { %3359 = vmatpush2.bf16.msra.mxu1 %v1885_v30  ;;  %3968 = vmatpush2.bf16.msra.mxu0 %v1901_v28  ;;  %v1833_v39 = vsub.f32 %v13026_v25, %v1769_v0  ;;  %v1766_v1 = vunpack.c.l.bf16 %v13102_v34  ;;  %v1864_v32 = vsub.f32 %v13030_v36, %v1800_v8  ;;  %v1865_v26 = vsub.f32 %v13034_v44, %v1801_v38  ;;  %v17517_v30 = vld [vmem:[#allocation25_spill] sm:$0xff]  ;;  %v17518_v44 = vld [vmem:[#allocation18_spill] sm:$0xff] }
 0x25d   :  { %3360 = vmatprep.subr.bf16.mxu1 %v17494_v6  ;;  %3969 = vmatprep.subr.bf16.mxu0 %v17494_v6  ;;  %v1767_v59 = vunpack.c.h.bf16 %v13102_v34  ;;  %v1798_v35 = vunpack.c.l.bf16 %v13106_v19  ;;  %v13145_v3 = vpack.c.bf16 %v13098_v9, %v13094_v27  ;;  %v1884_v50 = vpack.c.bf16 %v1835_v10, %v1834_v29 }
 0x25e   :  { %v1900_v25 = vpack.c.bf16 %v1867_v5, %v1866_v60  ;;  %v1799_v51 = vunpack.c.h.bf16 %v13106_v19  ;;  %v1340_v0 = vadd.f32 %v17488_v57, %v17516_v46  ;;  %v13152_v36 = vadd.f32 %v17488_v57, %v17517_v30 }
 0x25f   :  { %v13156_v8 = vadd.f32 %v17488_v57, %v17518_v44  ;;  %v13158_v38 = vpack.c.bf16 %v1342_v18, %v1341_v13  ;;  %v13162_v28 = vpack.c.bf16 %v13128_v21, %v13124_v7  ;;  %v1883_v29 = vpack.c.bf16 %v1833_v39, %v1832_v4 }
 0x260   :  { %3361 = vmatpush2.bf16.msra.mxu1 %v1884_v50  ;;  %3970 = vmatpush2.bf16.msra.mxu0 %v1900_v25  ;;  %v1830_v10 = vsub.f32 %v12988_v22, %v1766_v1  ;;  %v1899_v60 = vpack.c.bf16 %v1865_v26, %v1864_v32  ;;  %v1831_v5 = vsub.f32 %v13056_v33, %v1767_v59  ;;  %v1764_v58 = vunpack.c.l.bf16 %v13132_v63  ;;  %v17520_v22 = vld [vmem:[#allocation9_spill] sm:$0xff]  ;;  %v17521_v1 = vld [vmem:[#allocation10_spill] sm:$0xff]  ;;  %v17522_v26 = vld [vmem:[#allocation24_spill] sm:$0xff] }
 0x261   :  { %17519 = vst [vmem:[#allocation8_spill] sm:$0xff] %v13158_v38  ;;  %3362 = vmatprep.subr.bf16.mxu1 %v17494_v6  ;;  %3971 = vmatprep.subr.bf16.mxu0 %v17494_v6  ;;  %v1862_v23 = vsub.f32 %v13060_v61, %v1798_v35  ;;  %v1863_v55 = vsub.f32 %v13064_v42, %v1799_v51  ;;  %v1765_v12 = vunpack.c.h.bf16 %v13132_v63  ;;  %v1796_v50 = vunpack.c.l.bf16 %v13145_v3  ;;  %v17523_v61 = vld [vmem:[#allocation17_spill] sm:$0xff] }
 0x262   :  { %v1797_v4 = vunpack.c.h.bf16 %v13145_v3  ;;  %v1337_v39 = vadd.f32 %v17488_v57, %v17520_v22  ;;  %v1338_v32 = vadd.f32 %v17488_v57, %v17521_v1  ;;  %v1369_v33 = vadd.f32 %v17488_v57, %v17522_v26 }
 0x263   :  { %v1370_v59 = vadd.f32 %v17488_v57, %v17523_v61  ;;  %v13183_v42 = vpack.c.bf16 %v1340_v0, %v12958_v16  ;;  %v13187_v35 = vpack.c.bf16 %v13156_v8, %v13152_v36  ;;  %v1762_v25 = vunpack.c.l.bf16 %v13158_v38 }
 0x264   :  { %3363 = vmatpush2.bf16.msra.mxu1 %v1883_v29  ;;  %3972 = vmatpush2.bf16.msra.mxu0 %v1899_v60  ;;  %v1763_v51 = vunpack.c.h.bf16 %v13158_v38  ;;  %v1882_v46 = vpack.c.bf16 %v1831_v5, %v1830_v10  ;;  %v1828_v57 = vsub.f32 %v13086_v17, %v1764_v58  ;;  %v1794_v30 = vunpack.c.l.bf16 %v13162_v28 }
 0x265   :  { %3364 = vmatprep.subr.bf16.mxu1 %v17494_v6  ;;  %3973 = vmatprep.subr.bf16.mxu0 %v17494_v6  ;;  %v1795_v44 = vunpack.c.h.bf16 %v13162_v28  ;;  %v1898_v22 = vpack.c.bf16 %v1863_v55, %v1862_v23  ;;  %v1829_v1 = vsub.f32 %v13090_v49, %v1765_v12  ;;  %v1860_v29 = vsub.f32 %v13094_v27, %v1796_v50 }
 0x266   :  { %v1861_v60 = vsub.f32 %v13098_v9, %v1797_v4  ;;  %v13199_v26 = vpack.c.bf16 %v1338_v32, %v1337_v39  ;;  %v1826_v61 = vsub.f32 %v1341_v13, %v1762_v25  ;;  %v1827_v38 = vsub.f32 %v1342_v18, %v1763_v51 }
 0x267   :  { %v1760_v10 = vunpack.c.l.bf16 %v13183_v42  ;;  %v13202_v17 = vpack.c.bf16 %v1370_v59, %v1369_v33  ;;  %v1858_v49 = vsub.f32 %v13124_v7, %v1794_v30  ;;  %v1859_v27 = vsub.f32 %v13128_v21, %v1795_v44 }
 0x268   :  { %3365 = vmatpush2.bf16.msra.mxu1 %v1882_v46  ;;  %3974 = vmatpush2.bf16.msra.mxu0 %v1898_v22  ;;  %v1761_v9 = vunpack.c.h.bf16 %v13183_v42  ;;  %v1881_v5 = vpack.c.bf16 %v1829_v1, %v1828_v57  ;;  %v1897_v23 = vpack.c.bf16 %v1861_v60, %v1860_v29  ;;  %v1792_v58 = vunpack.c.l.bf16 %v13187_v35  ;;  %v10285_v22 = vld [vmem:[%s17174_s5] ss:$16 sps:$4 sm:$0xff]   ;;  %v10296_v60 = vld [vmem:[%s17174_s5 + $0x28] ss:$16 sps:$4 sm:$0xff]  }
 0x269   :  { %3366 = vmatprep.subr.bf16.mxu1 %v17494_v6  ;;  %3975 = vmatprep.subr.bf16.mxu0 %v17494_v6  ;;  %v1793_v13 = vunpack.c.h.bf16 %v13187_v35  ;;  %v1880_v18 = vpack.c.bf16 %v1827_v38, %v1826_v61  ;;  %v1824_v55 = vsub.f32 %v12958_v16, %v1760_v10  ;;  %v1896_v7 = vpack.c.bf16 %v1859_v27, %v1858_v49  ;;  %v17525_v1 = vld [vmem:[#allocation22_spill] sm:$0xff]  ;;  %v10297_v10 = vld [vmem:[%s17174_s5 + $0x44] ss:$16 sps:$4 sm:$0xff]  }
 0x26a   :  { %v1825_v12 = vsub.f32 %v1340_v0, %v1761_v9  ;;  %v1758_v21 = vunpack.c.l.bf16 %v13199_v26  ;;  %v1759_v50 = vunpack.c.h.bf16 %v13199_v26  ;;  %v1856_v4 = vsub.f32 %v13152_v36, %v1792_v58  ;;  %v10295_v29 = vld [vmem:[%s17174_s5 + $0x20] ss:$16 sps:$4 sm:$0xff]   ;;  %v10299_v49 = vld [vmem:[%s17174_s5 + $0x4c] ss:$16 sps:$4 sm:$0xff]   ;;  %v10302_v27 = vld [vmem:[%s17174_s5 + $0x48] ss:$16 sps:$4 sm:$0xff]  }
 0x26b   :  { %v1857_v25 = vsub.f32 %v13156_v8, %v1793_v13  ;;  %v1790_v51 = vunpack.c.l.bf16 %v13202_v17  ;;  %v1791_v38 = vunpack.c.h.bf16 %v13202_v17  ;;  %v17526_v61 = vld [vmem:[#allocation26_spill] sm:$0xff]  ;;  %v17527_v9 = vld [vmem:[#allocation8_spill] sm:$0xff] }
 0x26c   :  { %3367 = vmatpush2.bf16.msra.mxu1 %v1881_v5  ;;  %3976 = vmatpush2.bf16.msra.mxu0 %v1897_v23  ;;  %v1879_v16 = vpack.c.bf16 %v1825_v12, %v1824_v55  ;;  %v1822_v0 = vsub.f32 %v1337_v39, %v1758_v21  ;;  %v1823_v57 = vsub.f32 %v1338_v32, %v1759_v50  ;;  %v10288_v39 = vld [vmem:[%s17174_s5 + $0x8] ss:$16 sps:$4 sm:$0xff]   ;;  %v10291_v32 = vld [vmem:[%s17174_s5 + $0x24] ss:$16 sps:$4 sm:$0xff]   ;;  %v10347_v23 = vld [vmem:[%s17174_s5 + $0x14c] ss:$16 sps:$4 sm:$0xff]  }
 0x26d   :  { %3368 = vmatprep.subr.bf16.mxu1 %v17494_v6  ;;  %3977 = vmatprep.subr.bf16.mxu0 %v17494_v6  ;;  %v1895_v46 = vpack.c.bf16 %v1857_v25, %v1856_v4  ;;  %v1854_v30 = vsub.f32 %v1369_v33, %v1790_v51  ;;  %v1855_v44 = vsub.f32 %v1370_v59, %v1791_v38  ;;  %v10293_v33 = vld [vmem:[%s17174_s5 + $0x2c] ss:$16 sps:$4 sm:$0xff]   ;;  %v17524_v59 = vld [vmem:[#allocation35_spill] sm:$0xff] }
 0x26e   :  { %v1878_v36 = vpack.c.bf16 %v1823_v57, %v1822_v0  ;;  %v10338_v5 = vld [vmem:[%s17174_s5 + $0x108] ss:$16 sps:$4 sm:$0xff]   ;;  %v10349_v58 = vld [vmem:[%s17174_s5 + $0x140] ss:$16 sps:$4 sm:$0xff]   ;;  %v10353_v55 = vld [vmem:[%s17174_s5 + $0x16c] ss:$16 sps:$4 sm:$0xff]  }
 0x26f   :  { %v1894_v8 = vpack.c.bf16 %v1855_v44, %v1854_v30  ;;  %v10350_v13 = vld [vmem:[%s17174_s5 + $0x148] ss:$16 sps:$4 sm:$0xff]   ;;  %v10357_v21 = vld [vmem:[%s17174_s5 + $0x184] ss:$16 sps:$4 sm:$0xff]   ;;  %v10359_v50 = vld [vmem:[%s17174_s5 + $0x18c] ss:$16 sps:$4 sm:$0xff]  }
 0x270   :  { %3369 = vmatpush2.bf16.msra.mxu1 %v1880_v18  ;;  %3978 = vmatpush2.bf16.msra.mxu0 %v1896_v7  ;;  %v10351_v18 = vld [vmem:[%s17174_s5 + $0x164] ss:$16 sps:$4 sm:$0xff]   ;;  %v10355_v7 = vld [vmem:[%s17174_s5 + $0x160] ss:$16 sps:$4 sm:$0xff]   ;;  %v10356_v12 = vld [vmem:[%s17174_s5 + $0x168] ss:$16 sps:$4 sm:$0xff]  }
 0x271   :  { %3370 = vmatprep.subr.bf16.mxu1 %v17494_v6  ;;  %3979 = vmatprep.subr.bf16.mxu0 %v17494_v6  ;;  %v10361_v4 = vld [vmem:[%s17174_s5 + $0x180] ss:$16 sps:$4 sm:$0xff]   ;;  %v10362_v25 = vld [vmem:[%s17174_s5 + $0x188] ss:$16 sps:$4 sm:$0xff]   ;;  %v10363_v51 = vld [vmem:[%s17174_s5 + $0x1a4] ss:$16 sps:$4 sm:$0xff]  }
 0x272   :  { %v10365_v38 = vld [vmem:[%s17174_s5 + $0x1ac] ss:$16 sps:$4 sm:$0xff]   ;;  %v10368_v0 = vld [vmem:[%s17174_s5 + $0x1a8] ss:$16 sps:$4 sm:$0xff]   ;;  %v10373_v30 = vld [vmem:[%s17174_s5 + $0x1c0] ss:$16 sps:$4 sm:$0xff]  }
 0x273   :  { %v10371_v57 = vld [vmem:[%s17174_s5 + $0x1cc] ss:$16 sps:$4 sm:$0xff]   ;;  %v10374_v44 = vld [vmem:[%s17174_s5 + $0x1c8] ss:$16 sps:$4 sm:$0xff]  }
 0x274   :  { %3371 = vmatpush2.bf16.msra.mxu1 %v1879_v16  ;;  %3980 = vmatpush2.bf16.msra.mxu0 %v1895_v46  ;;  %v10367_v16 = vld [vmem:[%s17174_s5 + $0x1a0] ss:$16 sps:$4 sm:$0xff]   ;;  %v10369_v46 = vld [vmem:[%s17174_s5 + $0x1c4] ss:$16 sps:$4 sm:$0xff]  }
 0x275   :  { %3372 = vmatprep.subr.bf16.mxu1 %v17494_v6  ;;  %3981 = vmatprep.subr.bf16.mxu0 %v17494_v6 }
 0x278   :  { %3373 = vmatpush2.bf16.msra.mxu1 %v1878_v36  ;;  %3982 = vmatpush2.bf16.msra.mxu0 %v1894_v8  ;;  %v10375_v36 = vld [vmem:[%s17174_s5 + $0x1e4] ss:$16 sps:$4 sm:$0xff]   ;;  %v10377_v8 = vld [vmem:[%s17174_s5 + $0x1ec] ss:$16 sps:$4 sm:$0xff]  }
 0x279   :  { %4560 = vmatprep.subr.bf16.mxu1 %v17494_v6  ;;  %5169 = vmatprep.subr.bf16.mxu0 %v17494_v6 }
 0x27b   :  { %3375 = vmatmul.mubr.bf16.vlgmr.msra.gmra.mxu1 %v10285_v22  ;;  %3984 = vmatmul.mubr.bf16.vlgmr.msra.gmra.mxu0 %v10288_v39  ;;  %v10379_v22 = vld [vmem:[%s17174_s5 + $0x1e0] ss:$16 sps:$4 sm:$0xff]   ;;  %v10380_v39 = vld [vmem:[%s17174_s5 + $0x1e8] ss:$16 sps:$4 sm:$0xff]  }
 0x27c   :  { %4561 = vmatpush1.bf16.msra.mxu1 %v17524_v59  ;;  %5170 = vmatpush1.bf16.msra.mxu0 %v17525_v1  ;;  %v10385_v59 = vld [vmem:[%s17174_s5 + $0x200] ss:$16 sps:$4 sm:$0xff]   ;;  %v10386_v1 = vld [vmem:[%s17174_s5 + $0x208] ss:$16 sps:$4 sm:$0xff]  }
 0x27d   :  { %4562 = vmatprep.subr.bf16.mxu1 %v17494_v6  ;;  %5171 = vmatprep.subr.bf16.mxu0 %v17494_v6 }
 0x27e   :  { %3382 = vmatprep.mubr.bf16.mxu1 %v10291_v32  ;;  %3991 = vmatprep.mubr.bf16.mxu0 %v10293_v33  ;;  %v10381_v32 = vld [vmem:[%s17174_s5 + $0x204] ss:$16 sps:$4 sm:$0xff]   ;;  %v10383_v33 = vld [vmem:[%s17174_s5 + $0x20c] ss:$16 sps:$4 sm:$0xff]  }
 0x280   :  { %4563 = vmatpush1.bf16.msra.mxu1 %v17526_v61  ;;  %5172 = vmatpush1.bf16.msra.mxu0 %v12833_v48  ;;  %v10301_v48 = vld [vmem:[%s17174_s5 + $0x40] ss:$16 sps:$4 sm:$0xff]  }
 0x281   :  { %4564 = vmatprep.subr.bf16.mxu1 %v17494_v6  ;;  %5173 = vmatprep.subr.bf16.mxu0 %v17494_v6  ;;  %v10391_v61 = vld [vmem:[%s17174_s5 + $0x220] ss:$16 sps:$4 sm:$0xff]  }
 0x283   :  { %3383 = vmatmul.mubr.bf16.gmra.mxu1 %v10295_v29  ;;  %3992 = vmatmul.mubr.bf16.gmra.mxu0 %v10296_v60  ;;  %v10387_v29 = vld [vmem:[%s17174_s5 + $0x224] ss:$16 sps:$4 sm:$0xff]   ;;  %v10389_v60 = vld [vmem:[%s17174_s5 + $0x22c] ss:$16 sps:$4 sm:$0xff]  }
 0x284   :  { %4565 = vmatpush1.bf16.msra.mxu1 %v12850_v43  ;;  %5174 = vmatpush1.bf16.msra.mxu0 %v12856_v14  ;;  %v10303_v43 = vld [vmem:[%s17174_s5 + $0x64] ss:$16 sps:$4 sm:$0xff]   ;;  %v10305_v14 = vld [vmem:[%s17174_s5 + $0x6c] ss:$16 sps:$4 sm:$0xff]  }
 0x285   :  { %4566 = vmatprep.subr.bf16.mxu1 %v17494_v6  ;;  %5175 = vmatprep.subr.bf16.mxu0 %v17494_v6 }
 0x286   :  { %3390 = vmatprep.mubr.bf16.mxu1 %v10297_v10  ;;  %3999 = vmatprep.mubr.bf16.mxu0 %v10299_v49  ;;  %v10392_v10 = vld [vmem:[%s17174_s5 + $0x228] ss:$16 sps:$4 sm:$0xff]   ;;  %v10393_v49 = vld [vmem:[%s17174_s5 + $0x244] ss:$16 sps:$4 sm:$0xff]  }
 0x288   :  { %4567 = vmatpush1.bf16.msra.mxu1 %v12848_v56  ;;  %5176 = vmatpush1.bf16.msra.mxu0 %v12854_v40  ;;  %v10307_v40 = vld [vmem:[%s17174_s5 + $0x60] ss:$16 sps:$4 sm:$0xff]   ;;  %v10308_v56 = vld [vmem:[%s17174_s5 + $0x68] ss:$16 sps:$4 sm:$0xff]  }
 0x289   :  { %4568 = vmatprep.subr.bf16.mxu1 %v17494_v6  ;;  %5177 = vmatprep.subr.bf16.mxu0 %v17494_v6 }
 0x28b   :  { %3391 = vmatmul.mubr.bf16.gmra.mxu1 %v10301_v48  ;;  %4000 = vmatmul.mubr.bf16.gmra.mxu0 %v10302_v27  ;;  %v10395_v48 = vld [vmem:[%s17174_s5 + $0x24c] ss:$16 sps:$4 sm:$0xff]   ;;  %v10397_v27 = vld [vmem:[%s17174_s5 + $0x240] ss:$16 sps:$4 sm:$0xff]  }
 0x28c   :  { %4569 = vmatpush1.bf16.msra.mxu1 %v12874_v24  ;;  %5178 = vmatpush1.bf16.msra.mxu0 %v12880_v41  ;;  %v10309_v24 = vld [vmem:[%s17174_s5 + $0x84] ss:$16 sps:$4 sm:$0xff]   ;;  %v10311_v41 = vld [vmem:[%s17174_s5 + $0x8c] ss:$16 sps:$4 sm:$0xff]  }
 0x28d   :  { %4570 = vmatprep.subr.bf16.mxu1 %v17494_v6  ;;  %5179 = vmatprep.subr.bf16.mxu0 %v17494_v6 }
 0x28e   :  { %3398 = vmatprep.mubr.bf16.mxu1 %v10303_v43  ;;  %4007 = vmatprep.mubr.bf16.mxu0 %v10305_v14  ;;  %v10398_v43 = vld [vmem:[%s17174_s5 + $0x248] ss:$16 sps:$4 sm:$0xff]   ;;  %v10399_v14 = vld [vmem:[%s17174_s5 + $0x264] ss:$16 sps:$4 sm:$0xff]  }
 0x290   :  { %4571 = vmatpush1.bf16.msra.mxu1 %v12906_v53  ;;  %5180 = vmatpush1.bf16.msra.mxu0 %v12910_v15  ;;  %v10313_v53 = vld [vmem:[%s17174_s5 + $0x80] ss:$16 sps:$4 sm:$0xff]   ;;  %v10314_v15 = vld [vmem:[%s17174_s5 + $0x88] ss:$16 sps:$4 sm:$0xff]  }
 0x291   :  { %4572 = vmatprep.subr.bf16.mxu1 %v17494_v6  ;;  %5181 = vmatprep.subr.bf16.mxu0 %v17494_v6 }
 0x293   :  { %3399 = vmatmul.mubr.bf16.gmra.mxu1 %v10307_v40  ;;  %4008 = vmatmul.mubr.bf16.gmra.mxu0 %v10308_v56  ;;  %v10401_v40 = vld [vmem:[%s17174_s5 + $0x26c] ss:$16 sps:$4 sm:$0xff]   ;;  %v10403_v56 = vld [vmem:[%s17174_s5 + $0x260] ss:$16 sps:$4 sm:$0xff]  }
 0x294   :  { %4573 = vmatpush1.bf16.msra.mxu1 %v12940_v20  ;;  %5182 = vmatpush1.bf16.msra.mxu0 %v12953_v45  ;;  %v10315_v20 = vld [vmem:[%s17174_s5 + $0xa4] ss:$16 sps:$4 sm:$0xff]   ;;  %v10317_v45 = vld [vmem:[%s17174_s5 + $0xac] ss:$16 sps:$4 sm:$0xff]  }
 0x295   :  { %4574 = vmatprep.subr.bf16.mxu1 %v17494_v6  ;;  %5183 = vmatprep.subr.bf16.mxu0 %v17494_v6 }
 0x296   :  { %3406 = vmatprep.mubr.bf16.mxu1 %v10309_v24  ;;  %4015 = vmatprep.mubr.bf16.mxu0 %v10311_v41  ;;  %v10404_v24 = vld [vmem:[%s17174_s5 + $0x268] ss:$16 sps:$4 sm:$0xff]   ;;  %v10407_v41 = vld [vmem:[%s17174_s5 + $0x284] ss:$16 sps:$4 sm:$0xff]  }
 0x298   :  { %4575 = vmatpush1.bf16.msra.mxu1 %v12970_v31  ;;  %5184 = vmatpush1.bf16.msra.mxu0 %v12974_v62  ;;  %v10319_v31 = vld [vmem:[%s17174_s5 + $0xa0] ss:$16 sps:$4 sm:$0xff]   ;;  %v10320_v62 = vld [vmem:[%s17174_s5 + $0xa8] ss:$16 sps:$4 sm:$0xff]  }
 0x299   :  { %4576 = vmatprep.subr.bf16.mxu1 %v17494_v6  ;;  %5185 = vmatprep.subr.bf16.mxu0 %v17494_v6 }
 0x29b   :  { %3407 = vmatmul.mubr.bf16.gmra.mxu1 %v10313_v53  ;;  %4016 = vmatmul.mubr.bf16.gmra.mxu0 %v10314_v15  ;;  %v10410_v53 = vld [vmem:[%s17174_s5 + $0x28c] ss:$16 sps:$4 sm:$0xff]   ;;  %v10405_v15 = vld [vmem:[%s17174_s5 + $0x280] ss:$16 sps:$4 sm:$0xff]  }
 0x29c   :  { %4577 = vmatpush2.bf16.msra.mxu1 %v13008_v52  ;;  %5186 = vmatpush2.bf16.msra.mxu0 %v17502_v37  ;;  %v10321_v52 = vld [vmem:[%s17174_s5 + $0xc4] ss:$16 sps:$4 sm:$0xff]   ;;  %v10323_v37 = vld [vmem:[%s17174_s5 + $0xcc] ss:$16 sps:$4 sm:$0xff]  }
 0x29d   :  { %4578 = vmatprep.subr.bf16.mxu1 %v17494_v6  ;;  %5187 = vmatprep.subr.bf16.mxu0 %v17494_v6 }
 0x29e   :  { %3414 = vmatprep.mubr.bf16.mxu1 %v10315_v20  ;;  %4023 = vmatprep.mubr.bf16.mxu0 %v10317_v45  ;;  %v10408_v20 = vld [vmem:[%s17174_s5 + $0x288] ss:$16 sps:$4 sm:$0xff]   ;;  %v10413_v45 = vld [vmem:[%s17174_s5 + $0x2a4] ss:$16 sps:$4 sm:$0xff]  }
 0x2a0   :  { %4579 = vmatpush2.bf16.msra.mxu1 %v13038_v54  ;;  %5188 = vmatpush2.bf16.msra.mxu0 %v13045_v2  ;;  %v10325_v54 = vld [vmem:[%s17174_s5 + $0xc0] ss:$16 sps:$4 sm:$0xff]   ;;  %v10326_v2 = vld [vmem:[%s17174_s5 + $0xc8] ss:$16 sps:$4 sm:$0xff]  }
 0x2a1   :  { %4580 = vmatprep.subr.bf16.mxu1 %v17494_v6  ;;  %5189 = vmatprep.subr.bf16.mxu0 %v17494_v6 }
 0x2a3   :  { %3415 = vmatmul.mubr.bf16.gmra.mxu1 %v10319_v31  ;;  %4024 = vmatmul.mubr.bf16.gmra.mxu0 %v10320_v62  ;;  %v10416_v31 = vld [vmem:[%s17174_s5 + $0x2ac] ss:$16 sps:$4 sm:$0xff]   ;;  %v10411_v62 = vld [vmem:[%s17174_s5 + $0x2a0] ss:$16 sps:$4 sm:$0xff]  }
 0x2a4   :  { %4581 = vmatpush2.bf16.msra.mxu1 %v13068_v11  ;;  %5190 = vmatpush2.bf16.msra.mxu0 %v13072_v47  ;;  %v10327_v11 = vld [vmem:[%s17174_s5 + $0xe4] ss:$16 sps:$4 sm:$0xff]   ;;  %v10329_v47 = vld [vmem:[%s17174_s5 + $0xec] ss:$16 sps:$4 sm:$0xff]  }
 0x2a5   :  { %4582 = vmatprep.subr.bf16.mxu1 %v17494_v6  ;;  %5191 = vmatprep.subr.bf16.mxu0 %v17494_v6 }
 0x2a6   :  { %3422 = vmatprep.mubr.bf16.mxu1 %v10321_v52  ;;  %4031 = vmatprep.mubr.bf16.mxu0 %v10323_v37  ;;  %v10414_v52 = vld [vmem:[%s17174_s5 + $0x2a8] ss:$16 sps:$4 sm:$0xff]   ;;  %v10419_v37 = vld [vmem:[%s17174_s5 + $0x2c4] ss:$16 sps:$4 sm:$0xff]  }
 0x2a8   :  { %4583 = vmatpush2.bf16.msra.mxu1 %v13102_v34  ;;  %5192 = vmatpush2.bf16.msra.mxu0 %v13106_v19  ;;  %v10331_v34 = vld [vmem:[%s17174_s5 + $0xe0] ss:$16 sps:$4 sm:$0xff]   ;;  %v10332_v19 = vld [vmem:[%s17174_s5 + $0xe8] ss:$16 sps:$4 sm:$0xff]  }
 0x2a9   :  { %4584 = vmatprep.subr.bf16.mxu1 %v17494_v6  ;;  %5193 = vmatprep.subr.bf16.mxu0 %v17494_v6 }
 0x2ab   :  { %3423 = vmatmul.mubr.bf16.gmra.mxu1 %v10325_v54  ;;  %4032 = vmatmul.mubr.bf16.gmra.mxu0 %v10326_v2  ;;  %v10422_v54 = vld [vmem:[%s17174_s5 + $0x2cc] ss:$16 sps:$4 sm:$0xff]   ;;  %v10417_v2 = vld [vmem:[%s17174_s5 + $0x2c0] ss:$16 sps:$4 sm:$0xff]  }
 0x2ac   :  { %4585 = vmatpush2.bf16.msra.mxu1 %v13132_v63  ;;  %5194 = vmatpush2.bf16.msra.mxu0 %v13145_v3  ;;  %v10333_v63 = vld [vmem:[%s17174_s5 + $0x104] ss:$16 sps:$4 sm:$0xff]   ;;  %v10335_v3 = vld [vmem:[%s17174_s5 + $0x10c] ss:$16 sps:$4 sm:$0xff]  }
 0x2ad   :  { %4586 = vmatprep.subr.bf16.mxu1 %v17494_v6  ;;  %5195 = vmatprep.subr.bf16.mxu0 %v17494_v6 }
 0x2ae   :  { %3430 = vmatprep.mubr.bf16.mxu1 %v10327_v11  ;;  %4039 = vmatprep.mubr.bf16.mxu0 %v10329_v47  ;;  %v10420_v11 = vld [vmem:[%s17174_s5 + $0x2c8] ss:$16 sps:$4 sm:$0xff]   ;;  %v10425_v47 = vld [vmem:[%s17174_s5 + $0x2e4] ss:$16 sps:$4 sm:$0xff]  }
 0x2b0   :  { %4587 = vmatpush2.bf16.msra.mxu1 %v17527_v9  ;;  %5196 = vmatpush2.bf16.msra.mxu0 %v13162_v28  ;;  %v10337_v28 = vld [vmem:[%s17174_s5 + $0x100] ss:$16 sps:$4 sm:$0xff]   ;;  %v10426_v9 = vld [vmem:[%s17174_s5 + $0x2e8] ss:$16 sps:$4 sm:$0xff]  }
 0x2b1   :  { %4588 = vmatprep.subr.bf16.mxu1 %v17494_v6  ;;  %5197 = vmatprep.subr.bf16.mxu0 %v17494_v6 }
 0x2b3   :  { %3431 = vmatmul.mubr.bf16.gmra.mxu1 %v10331_v34  ;;  %4040 = vmatmul.mubr.bf16.gmra.mxu0 %v10332_v19  ;;  %v10428_v34 = vld [vmem:[%s17174_s5 + $0x2ec] ss:$16 sps:$4 sm:$0xff]   ;;  %v10423_v19 = vld [vmem:[%s17174_s5 + $0x2e0] ss:$16 sps:$4 sm:$0xff]  }
 0x2b4   :  { %4589 = vmatpush2.bf16.msra.mxu1 %v13183_v42  ;;  %5198 = vmatpush2.bf16.msra.mxu0 %v13187_v35  ;;  %v10339_v42 = vld [vmem:[%s17174_s5 + $0x124] ss:$16 sps:$4 sm:$0xff]   ;;  %v10343_v35 = vld [vmem:[%s17174_s5 + $0x120] ss:$16 sps:$4 sm:$0xff]  }
 0x2b5   :  { %4590 = vmatprep.subr.bf16.mxu1 %v17494_v6  ;;  %5199 = vmatprep.subr.bf16.mxu0 %v17494_v6  ;;  %v10341_v6 = vld [vmem:[%s17174_s5 + $0x12c] ss:$16 sps:$4 sm:$0xff]  }
 0x2b6   :  { %3438 = vmatprep.mubr.bf16.mxu1 %v10333_v63  ;;  %4047 = vmatprep.mubr.bf16.mxu0 %v10335_v3  ;;  %v10431_v63 = vld [vmem:[%s17174_s5 + $0x304] ss:$16 sps:$4 sm:$0xff]   ;;  %v10434_v3 = vld [vmem:[%s17174_s5 + $0x30c] ss:$16 sps:$4 sm:$0xff]  }
 0x2b8   :  { %4591 = vmatpush2.bf16.msra.mxu1 %v13199_v26  ;;  %5200 = vmatpush2.bf16.msra.mxu0 %v13202_v17  ;;  %v10344_v26 = vld [vmem:[%s17174_s5 + $0x128] ss:$16 sps:$4 sm:$0xff]   ;;  %v10345_v17 = vld [vmem:[%s17174_s5 + $0x144] ss:$16 sps:$4 sm:$0xff]  }
 0x2bb   :  { %3439 = vmatmul.mubr.bf16.gmra.mxu1 %v10337_v28  ;;  %4048 = vmatmul.mubr.bf16.gmra.mxu0 %v10338_v5  ;;  %v10429_v28 = vld [vmem:[%s17174_s5 + $0x300] ss:$16 sps:$4 sm:$0xff]   ;;  %v10432_v5 = vld [vmem:[%s17174_s5 + $0x308] ss:$16 sps:$4 sm:$0xff]  }
 0x2bc   :  { %3446 = vmatprep.mubr.bf16.mxu1 %v10339_v42  ;;  %4055 = vmatprep.mubr.bf16.mxu0 %v10341_v6  ;;  %v10437_v42 = vld [vmem:[%s17174_s5 + $0x324] ss:$16 sps:$4 sm:$0xff]   ;;  %v10440_v6 = vld [vmem:[%s17174_s5 + $0x32c] ss:$16 sps:$4 sm:$0xff]  }
 0x2c3   :  { %3447 = vmatmul.mubr.bf16.gmra.mxu1 %v10343_v35  ;;  %4056 = vmatmul.mubr.bf16.gmra.mxu0 %v10344_v26 }
 0x2c4   :  { %3454 = vmatprep.mubr.bf16.mxu1 %v10345_v17  ;;  %4063 = vmatprep.mubr.bf16.mxu0 %v10347_v23 }
 0x2cb   :  { %3455 = vmatmul.mubr.bf16.gmra.mxu1 %v10349_v58  ;;  %4064 = vmatmul.mubr.bf16.gmra.mxu0 %v10350_v13 }
 0x2cc   :  { %3462 = vmatprep.mubr.bf16.mxu1 %v10351_v18  ;;  %4071 = vmatprep.mubr.bf16.mxu0 %v10353_v55  ;;  %v10435_v55 = vld [vmem:[%s17174_s5 + $0x320] ss:$16 sps:$4 sm:$0xff]  }
 0x2d3   :  { %3463 = vmatmul.mubr.bf16.gmra.mxu1 %v10355_v7  ;;  %4072 = vmatmul.mubr.bf16.gmra.mxu0 %v10356_v12  ;;  %v10438_v7 = vld [vmem:[%s17174_s5 + $0x328] ss:$16 sps:$4 sm:$0xff]  }
 0x2d4   :  { %3470 = vmatprep.mubr.bf16.mxu1 %v10357_v21  ;;  %4079 = vmatprep.mubr.bf16.mxu0 %v10359_v50  ;;  %v10443_v21 = vld [vmem:[%s17174_s5 + $0x344] ss:$16 sps:$4 sm:$0xff]   ;;  %v10446_v50 = vld [vmem:[%s17174_s5 + $0x34c] ss:$16 sps:$4 sm:$0xff]  }
 0x2db   :  { %3471 = vmatmul.mubr.bf16.gmra.mxu1 %v10361_v4  ;;  %4080 = vmatmul.mubr.bf16.gmra.mxu0 %v10362_v25 }
 0x2dc   :  { %3478 = vmatprep.mubr.bf16.mxu1 %v10363_v51  ;;  %4087 = vmatprep.mubr.bf16.mxu0 %v10365_v38 }
 0x2e3   :  { %3479 = vmatmul.mubr.bf16.gmra.mxu1 %v10367_v16  ;;  %4088 = vmatmul.mubr.bf16.gmra.mxu0 %v10368_v0 }
 0x2e4   :  { %3486 = vmatprep.mubr.bf16.mxu1 %v10369_v46  ;;  %4095 = vmatprep.mubr.bf16.mxu0 %v10371_v57 }
 0x2eb   :  { %3487 = vmatmul.mubr.bf16.gmra.mxu1 %v10373_v30  ;;  %4096 = vmatmul.mubr.bf16.gmra.mxu0 %v10374_v44  ;;  %v10441_v44 = vld [vmem:[%s17174_s5 + $0x340] ss:$16 sps:$4 sm:$0xff]  }
 0x2ec   :  { %3494 = vmatprep.mubr.bf16.mxu1 %v10375_v36  ;;  %4103 = vmatprep.mubr.bf16.mxu0 %v10377_v8  ;;  %v10444_v36 = vld [vmem:[%s17174_s5 + $0x348] ss:$16 sps:$4 sm:$0xff]  }
 0x2f3   :  { %3495 = vmatmul.mubr.bf16.gmra.mxu1 %v10379_v22  ;;  %4104 = vmatmul.mubr.bf16.gmra.mxu0 %v10380_v39  ;;  %v10449_v22 = vld [vmem:[%s17174_s5 + $0x364] ss:$16 sps:$4 sm:$0xff]   ;;  %v10452_v39 = vld [vmem:[%s17174_s5 + $0x36c] ss:$16 sps:$4 sm:$0xff]  }
 0x2f4   :  { %3502 = vmatprep.mubr.bf16.mxu1 %v10381_v32  ;;  %4111 = vmatprep.mubr.bf16.mxu0 %v10383_v33 }
 0x2fb   :  { %3503 = vmatmul.mubr.bf16.gmra.mxu1 %v10385_v59  ;;  %4112 = vmatmul.mubr.bf16.gmra.mxu0 %v10386_v1 }
 0x2fc   :  { %3510 = vmatprep.mubr.bf16.mxu1 %v10387_v29  ;;  %4119 = vmatprep.mubr.bf16.mxu0 %v10389_v60 }
 0x303   :  { %3511 = vmatmul.mubr.bf16.gmra.mxu1 %v10391_v61  ;;  %4120 = vmatmul.mubr.bf16.gmra.mxu0 %v10392_v10 }
 0x304   :  { %3518 = vmatprep.mubr.bf16.mxu1 %v10393_v49  ;;  %4127 = vmatprep.mubr.bf16.mxu0 %v10395_v48  ;;  %v10447_v48 = vld [vmem:[%s17174_s5 + $0x360] ss:$16 sps:$4 sm:$0xff]  }
 0x30b   :  { %3519 = vmatmul.mubr.bf16.gmra.mxu1 %v10397_v27  ;;  %4128 = vmatmul.mubr.bf16.gmra.mxu0 %v10398_v43  ;;  %v10450_v27 = vld [vmem:[%s17174_s5 + $0x368] ss:$16 sps:$4 sm:$0xff]  }
 0x30c   :  { %3526 = vmatprep.mubr.bf16.mxu1 %v10399_v14  ;;  %4135 = vmatprep.mubr.bf16.mxu0 %v10401_v40  ;;  %v10455_v14 = vld [vmem:[%s17174_s5 + $0x384] ss:$16 sps:$4 sm:$0xff]   ;;  %v10458_v40 = vld [vmem:[%s17174_s5 + $0x38c] ss:$16 sps:$4 sm:$0xff]  }
 0x313   :  { %3527 = vmatmul.mubr.bf16.gmra.mxu1 %v10403_v56  ;;  %4136 = vmatmul.mubr.bf16.gmra.mxu0 %v10404_v24 }
 0x314   :  { %3534 = vmatprep.mubr.bf16.mxu1 %v10407_v41  ;;  %4143 = vmatprep.mubr.bf16.mxu0 %v10410_v53 }
 0x31b   :  { %3535 = vmatmul.mubr.bf16.gmra.mxu1 %v10405_v15  ;;  %4144 = vmatmul.mubr.bf16.gmra.mxu0 %v10408_v20 }
 0x31c   :  { %3542 = vmatprep.mubr.bf16.mxu1 %v10413_v45  ;;  %4151 = vmatprep.mubr.bf16.mxu0 %v10416_v31 }
 0x323   :  { %3543 = vmatmul.mubr.bf16.gmra.mxu1 %v10411_v62  ;;  %4152 = vmatmul.mubr.bf16.gmra.mxu0 %v10414_v52  ;;  %v10453_v52 = vld [vmem:[%s17174_s5 + $0x380] ss:$16 sps:$4 sm:$0xff]  }
 0x324   :  { %3550 = vmatprep.mubr.bf16.mxu1 %v10419_v37  ;;  %4159 = vmatprep.mubr.bf16.mxu0 %v10422_v54  ;;  %v10456_v37 = vld [vmem:[%s17174_s5 + $0x388] ss:$16 sps:$4 sm:$0xff]  }
 0x32b   :  { %3551 = vmatmul.mubr.bf16.gmra.mxu1 %v10417_v2  ;;  %4160 = vmatmul.mubr.bf16.gmra.mxu0 %v10420_v11  ;;  %v10461_v2 = vld [vmem:[%s17174_s5 + $0x3a4] ss:$16 sps:$4 sm:$0xff]   ;;  %v10464_v11 = vld [vmem:[%s17174_s5 + $0x3ac] ss:$16 sps:$4 sm:$0xff]  }
 0x32c   :  { %3558 = vmatprep.mubr.bf16.mxu1 %v10425_v47  ;;  %4167 = vmatprep.mubr.bf16.mxu0 %v10428_v34 }
 0x333   :  { %3559 = vmatmul.mubr.bf16.gmra.mxu1 %v10423_v19  ;;  %4168 = vmatmul.mubr.bf16.gmra.mxu0 %v10426_v9 }
 0x334   :  { %3566 = vmatprep.mubr.bf16.mxu1 %v10431_v63  ;;  %4175 = vmatprep.mubr.bf16.mxu0 %v10434_v3 }
 0x33b   :  { %v3376_v35 = vpop.f32.mrf.mxu1  ;;  %3567 = vmatmul.mubr.bf16.gmra.mxu1 %v10429_v28  ;;  %v3985_v26 = vpop.f32.mrf.mxu0  ;;  %4176 = vmatmul.mubr.bf16.gmra.mxu0 %v10432_v5 }
 0x33c   :  { %v13588_v17 = vadd.f32 %v3985_v26, %v3376_v35  ;;  %3574 = vmatprep.mubr.bf16.mxu1 %v10437_v42  ;;  %4183 = vmatprep.mubr.bf16.mxu0 %v10440_v6  ;;  %v10459_v6 = vld [vmem:[%s17174_s5 + $0x3a0] ss:$16 sps:$4 sm:$0xff]   ;;  %v10462_v35 = vld [vmem:[%s17174_s5 + $0x3a8] ss:$16 sps:$4 sm:$0xff]  }
 0x33d   :  { %v3378_v23 = vpop.f32.mrf.mxu1  ;;  %v3987_v58 = vpop.f32.mrf.mxu0 }
 0x33e   :  { %v10467_v23 = vld [vmem:[%s17174_s5 + $0x3c4] ss:$16 sps:$4 sm:$0xff]   ;;  %v10470_v58 = vld [vmem:[%s17174_s5 + $0x3cc] ss:$16 sps:$4 sm:$0xff]  }
 0x33f   :  { %v3379_v13 = vpop.f32.mrf.mxu1  ;;  %v3988_v18 = vpop.f32.mrf.mxu0 }
 0x340   :  { %v13596_v12 = vadd.f32 %v3988_v18, %v3379_v13 }
 0x341   :  { %v3381_v4 = vpop.f32.mrf.mxu1  ;;  %v3990_v25 = vpop.f32.mrf.mxu0 }
 0x343   :  { %v3384_v51 = vpop.f32.mrf.mxu1  ;;  %3575 = vmatmul.mubr.bf16.gmra.mxu1 %v10435_v55  ;;  %v3993_v38 = vpop.f32.mrf.mxu0  ;;  %4184 = vmatmul.mubr.bf16.gmra.mxu0 %v10438_v7 }
 0x344   :  { %v13604_v16 = vadd.f32 %v3993_v38, %v3384_v51  ;;  %3582 = vmatprep.mubr.bf16.mxu1 %v10443_v21  ;;  %4191 = vmatprep.mubr.bf16.mxu0 %v10446_v50  ;;  %v10465_v38 = vld [vmem:[%s17174_s5 + $0x3c0] ss:$16 sps:$4 sm:$0xff]  }
 0x345   :  { %v3386_v0 = vpop.f32.mrf.mxu1  ;;  %v3995_v46 = vpop.f32.mrf.mxu0 }
 0x346   :  { %v10468_v0 = vld [vmem:[%s17174_s5 + $0x3c8] ss:$16 sps:$4 sm:$0xff]  }
 0x347   :  { %v3387_v57 = vpop.f32.mrf.mxu1  ;;  %v3996_v30 = vpop.f32.mrf.mxu0 }
 0x348   :  { %v13612_v8 = vadd.f32 %v3996_v30, %v3387_v57  ;;  %v10473_v57 = vld [vmem:[%s17174_s5 + $0x3e4] ss:$16 sps:$4 sm:$0xff]   ;;  %v10476_v30 = vld [vmem:[%s17174_s5 + $0x3ec] ss:$16 sps:$4 sm:$0xff]  }
 0x349   :  { %v3389_v32 = vpop.f32.mrf.mxu1  ;;  %v3998_v33 = vpop.f32.mrf.mxu0 }
 0x34b   :  { %v3392_v59 = vpop.f32.mrf.mxu1  ;;  %3583 = vmatmul.mubr.bf16.gmra.mxu1 %v10441_v44  ;;  %v4001_v1 = vpop.f32.mrf.mxu0  ;;  %4192 = vmatmul.mubr.bf16.gmra.mxu0 %v10444_v36 }
 0x34c   :  { %v13620_v29 = vadd.f32 %v4001_v1, %v3392_v59  ;;  %3590 = vmatprep.mubr.bf16.mxu1 %v10449_v22  ;;  %4199 = vmatprep.mubr.bf16.mxu0 %v10452_v39 }
 0x34d   :  { %v3394_v60 = vpop.f32.mrf.mxu1  ;;  %v4003_v61 = vpop.f32.mrf.mxu0 }
 0x34e   :  { %v10471_v61 = vld [vmem:[%s17174_s5 + $0x3e0] ss:$16 sps:$4 sm:$0xff]  }
 0x34f   :  { %v3395_v10 = vpop.f32.mrf.mxu1  ;;  %v4004_v49 = vpop.f32.mrf.mxu0 }
 0x350   :  { %v13628_v43 = vadd.f32 %v4004_v49, %v3395_v10  ;;  %v10474_v10 = vld [vmem:[%s17174_s5 + $0x3e8] ss:$16 sps:$4 sm:$0xff]  }
 0x351   :  { %v3397_v56 = vpop.f32.mrf.mxu1  ;;  %v4006_v24 = vpop.f32.mrf.mxu0 }
 0x353   :  { %v3400_v41 = vpop.f32.mrf.mxu1  ;;  %3591 = vmatmul.mubr.bf16.gmra.mxu1 %v10447_v48  ;;  %v4009_v53 = vpop.f32.mrf.mxu0  ;;  %4200 = vmatmul.mubr.bf16.gmra.mxu0 %v10450_v27  ;;  %v10479_v48 = vld [vmem:[%s17174_s5 + $0x404] ss:$16 sps:$4 sm:$0xff]   ;;  %v10482_v27 = vld [vmem:[%s17174_s5 + $0x40c] ss:$16 sps:$4 sm:$0xff]  }
 0x354   :  { %v13636_v15 = vadd.f32 %v4009_v53, %v3400_v41  ;;  %3598 = vmatprep.mubr.bf16.mxu1 %v10455_v14  ;;  %4207 = vmatprep.mubr.bf16.mxu0 %v10458_v40 }
 0x355   :  { %v3402_v20 = vpop.f32.mrf.mxu1  ;;  %v4011_v45 = vpop.f32.mrf.mxu0 }
 0x357   :  { %v3403_v31 = vpop.f32.mrf.mxu1  ;;  %v4012_v62 = vpop.f32.mrf.mxu0 }
 0x358   :  { %v13644_v54 = vadd.f32 %v4012_v62, %v3403_v31  ;;  %v10477_v62 = vld [vmem:[%s17174_s5 + $0x400] ss:$16 sps:$4 sm:$0xff]  }
 0x359   :  { %v3405_v47 = vpop.f32.mrf.mxu1  ;;  %v4014_v34 = vpop.f32.mrf.mxu0 }
 0x35b   :  { %v3408_v19 = vpop.f32.mrf.mxu1  ;;  %3599 = vmatmul.mubr.bf16.gmra.mxu1 %v10453_v52  ;;  %v4017_v9 = vpop.f32.mrf.mxu0  ;;  %4208 = vmatmul.mubr.bf16.gmra.mxu0 %v10456_v37  ;;  %v10480_v52 = vld [vmem:[%s17174_s5 + $0x408] ss:$16 sps:$4 sm:$0xff]  }
 0x35c   :  { %v13652_v63 = vadd.f32 %v4017_v9, %v3408_v19  ;;  %3606 = vmatprep.mubr.bf16.mxu1 %v10461_v2  ;;  %4215 = vmatprep.mubr.bf16.mxu0 %v10464_v11  ;;  %v10485_v2 = vld [vmem:[%s17174_s5 + $0x424] ss:$16 sps:$4 sm:$0xff]   ;;  %v10488_v11 = vld [vmem:[%s17174_s5 + $0x42c] ss:$16 sps:$4 sm:$0xff]  }
 0x35d   :  { %v3410_v3 = vpop.f32.mrf.mxu1  ;;  %v4019_v28 = vpop.f32.mrf.mxu0 }
 0x35f   :  { %v3411_v5 = vpop.f32.mrf.mxu1  ;;  %v4020_v42 = vpop.f32.mrf.mxu0 }
 0x360   :  { %v13660_v26 = vadd.f32 %v4020_v42, %v3411_v5 }
 0x361   :  { %v3413_v13 = vpop.f32.mrf.mxu1  ;;  %v4022_v18 = vpop.f32.mrf.mxu0 }
 0x362   :  { %v10491_v13 = vld [vmem:[%s17174_s5 + $0x444] ss:$16 sps:$4 sm:$0xff]   ;;  %v10494_v18 = vld [vmem:[%s17174_s5 + $0x44c] ss:$16 sps:$4 sm:$0xff]  }
 0x363   :  { %v3416_v55 = vpop.f32.mrf.mxu1  ;;  %3607 = vmatmul.mubr.bf16.gmra.mxu1 %v10459_v6  ;;  %v4025_v7 = vpop.f32.mrf.mxu0  ;;  %4216 = vmatmul.mubr.bf16.gmra.mxu0 %v10462_v35  ;;  %v10483_v35 = vld [vmem:[%s17174_s5 + $0x420] ss:$16 sps:$4 sm:$0xff]  }
 0x364   :  { %v13668_v21 = vadd.f32 %v4025_v7, %v3416_v55  ;;  %3614 = vmatprep.mubr.bf16.mxu1 %v10467_v23  ;;  %4223 = vmatprep.mubr.bf16.mxu0 %v10470_v58  ;;  %v10486_v23 = vld [vmem:[%s17174_s5 + $0x428] ss:$16 sps:$4 sm:$0xff]  }
 0x365   :  { %v3418_v50 = vpop.f32.mrf.mxu1  ;;  %v4027_v4 = vpop.f32.mrf.mxu0 }
 0x367   :  { %v3419_v25 = vpop.f32.mrf.mxu1  ;;  %v4028_v51 = vpop.f32.mrf.mxu0 }
 0x368   :  { %v13676_v46 = vadd.f32 %v4028_v51, %v3419_v25 }
 0x369   :  { %v3421_v44 = vpop.f32.mrf.mxu1  ;;  %v4030_v36 = vpop.f32.mrf.mxu0 }
 0x36a   :  { %v10492_v44 = vld [vmem:[%s17174_s5 + $0x448] ss:$16 sps:$4 sm:$0xff]  }
 0x36b   :  { %v3424_v22 = vpop.f32.mrf.mxu1  ;;  %3615 = vmatmul.mubr.bf16.gmra.mxu1 %v10465_v38  ;;  %v4033_v39 = vpop.f32.mrf.mxu0  ;;  %4224 = vmatmul.mubr.bf16.gmra.mxu0 %v10468_v0 }
 0x36c   :  { %v13684_v32 = vadd.f32 %v4033_v39, %v3424_v22  ;;  %3622 = vmatprep.mubr.bf16.mxu1 %v10473_v57  ;;  %4231 = vmatprep.mubr.bf16.mxu0 %v10476_v30  ;;  %v10489_v30 = vld [vmem:[%s17174_s5 + $0x440] ss:$16 sps:$4 sm:$0xff]   ;;  %v10497_v22 = vld [vmem:[%s17174_s5 + $0x464] ss:$16 sps:$4 sm:$0xff]   ;;  %v10500_v39 = vld [vmem:[%s17174_s5 + $0x46c] ss:$16 sps:$4 sm:$0xff]  }
 0x36d   :  { %v3426_v33 = vpop.f32.mrf.mxu1  ;;  %v4035_v59 = vpop.f32.mrf.mxu0 }
 0x36f   :  { %v3427_v1 = vpop.f32.mrf.mxu1  ;;  %v4036_v60 = vpop.f32.mrf.mxu0 }
 0x370   :  { %v13692_v49 = vadd.f32 %v4036_v60, %v3427_v1 }
 0x371   :  { %v3429_v14 = vpop.f32.mrf.mxu1  ;;  %v4038_v40 = vpop.f32.mrf.mxu0 }
 0x372   :  { %v10495_v40 = vld [vmem:[%s17174_s5 + $0x460] ss:$16 sps:$4 sm:$0xff]  }
 0x373   :  { %v3432_v56 = vpop.f32.mrf.mxu1  ;;  %3623 = vmatmul.mubr.bf16.gmra.mxu1 %v10471_v61  ;;  %v4041_v24 = vpop.f32.mrf.mxu0  ;;  %4232 = vmatmul.mubr.bf16.gmra.mxu0 %v10474_v10 }
 0x374   :  { %v13700_v41 = vadd.f32 %v4041_v24, %v3432_v56  ;;  %3630 = vmatprep.mubr.bf16.mxu1 %v10479_v48  ;;  %4239 = vmatprep.mubr.bf16.mxu0 %v10482_v27  ;;  %v10498_v56 = vld [vmem:[%s17174_s5 + $0x468] ss:$16 sps:$4 sm:$0xff]  }
 0x375   :  { %v3434_v53 = vpop.f32.mrf.mxu1  ;;  %v4043_v20 = vpop.f32.mrf.mxu0 }
 0x376   :  { %v10503_v53 = vld [vmem:[%s17174_s5 + $0x484] ss:$16 sps:$4 sm:$0xff]   ;;  %v10506_v20 = vld [vmem:[%s17174_s5 + $0x48c] ss:$16 sps:$4 sm:$0xff]  }
 0x377   :  { %v3435_v45 = vpop.f32.mrf.mxu1  ;;  %v4044_v31 = vpop.f32.mrf.mxu0 }
 0x378   :  { %v13708_v37 = vadd.f32 %v4044_v31, %v3435_v45 }
 0x379   :  { %v3437_v47 = vpop.f32.mrf.mxu1  ;;  %v4046_v34 = vpop.f32.mrf.mxu0 }
 0x37b   :  { %v3440_v19 = vpop.f32.mrf.mxu1  ;;  %3631 = vmatmul.mubr.bf16.gmra.mxu1 %v10477_v62  ;;  %v4049_v9 = vpop.f32.mrf.mxu0  ;;  %4240 = vmatmul.mubr.bf16.gmra.mxu0 %v10480_v52 }
 0x37c   :  { %v13716_v3 = vadd.f32 %v4049_v9, %v3440_v19  ;;  %3638 = vmatprep.mubr.bf16.mxu1 %v10485_v2  ;;  %4247 = vmatprep.mubr.bf16.mxu0 %v10488_v11  ;;  %v10501_v9 = vld [vmem:[%s17174_s5 + $0x480] ss:$16 sps:$4 sm:$0xff]  }
 0x37d   :  { %v3442_v28 = vpop.f32.mrf.mxu1  ;;  %v4051_v5 = vpop.f32.mrf.mxu0 }
 0x37e   :  { %v10504_v28 = vld [vmem:[%s17174_s5 + $0x488] ss:$16 sps:$4 sm:$0xff]  }
 0x37f   :  { %v3443_v42 = vpop.f32.mrf.mxu1  ;;  %v4052_v6 = vpop.f32.mrf.mxu0 }
 0x380   :  { %v13724_v58 = vadd.f32 %v4052_v6, %v3443_v42  ;;  %v10509_v42 = vld [vmem:[%s17174_s5 + $0x4a4] ss:$16 sps:$4 sm:$0xff]   ;;  %v10512_v6 = vld [vmem:[%s17174_s5 + $0x4ac] ss:$16 sps:$4 sm:$0xff]  }
 0x381   :  { %v3445_v55 = vpop.f32.mrf.mxu1  ;;  %v4054_v7 = vpop.f32.mrf.mxu0 }
 0x383   :  { %v3448_v50 = vpop.f32.mrf.mxu1  ;;  %3639 = vmatmul.mubr.bf16.gmra.mxu1 %v10483_v35  ;;  %v4057_v4 = vpop.f32.mrf.mxu0  ;;  %4248 = vmatmul.mubr.bf16.gmra.mxu0 %v10486_v23 }
 0x384   :  { %v13732_v25 = vadd.f32 %v4057_v4, %v3448_v50  ;;  %3646 = vmatprep.mubr.bf16.mxu1 %v10491_v13  ;;  %4255 = vmatprep.mubr.bf16.mxu0 %v10494_v18 }
 0x385   :  { %v3450_v51 = vpop.f32.mrf.mxu1  ;;  %v4059_v38 = vpop.f32.mrf.mxu0 }
 0x386   :  { %v10507_v38 = vld [vmem:[%s17174_s5 + $0x4a0] ss:$16 sps:$4 sm:$0xff]  }
 0x387   :  { %v3451_v0 = vpop.f32.mrf.mxu1  ;;  %v4060_v57 = vpop.f32.mrf.mxu0 }
 0x388   :  { %v13740_v36 = vadd.f32 %v4060_v57, %v3451_v0  ;;  %v10510_v0 = vld [vmem:[%s17174_s5 + $0x4a8] ss:$16 sps:$4 sm:$0xff]  }
 0x389   :  { %v3453_v33 = vpop.f32.mrf.mxu1  ;;  %v4062_v59 = vpop.f32.mrf.mxu0 }
 0x38b   :  { %v3456_v1 = vpop.f32.mrf.mxu1  ;;  %3647 = vmatmul.mubr.bf16.gmra.mxu1 %v10489_v30  ;;  %v4065_v60 = vpop.f32.mrf.mxu0  ;;  %4256 = vmatmul.mubr.bf16.gmra.mxu0 %v10492_v44  ;;  %v10515_v30 = vld [vmem:[%s17174_s5 + $0x4c4] ss:$16 sps:$4 sm:$0xff]   ;;  %v10518_v44 = vld [vmem:[%s17174_s5 + $0x4cc] ss:$16 sps:$4 sm:$0xff]  }
 0x38c   :  { %v13748_v61 = vadd.f32 %v4065_v60, %v3456_v1  ;;  %3654 = vmatprep.mubr.bf16.mxu1 %v10497_v22  ;;  %4263 = vmatprep.mubr.bf16.mxu0 %v10500_v39 }
 0x38d   :  { %v3458_v10 = vpop.f32.mrf.mxu1  ;;  %v4067_v48 = vpop.f32.mrf.mxu0 }
 0x38f   :  { %v3459_v27 = vpop.f32.mrf.mxu1  ;;  %v4068_v14 = vpop.f32.mrf.mxu0 }
 0x390   :  { %v13756_v24 = vadd.f32 %v4068_v14, %v3459_v27  ;;  %v10513_v14 = vld [vmem:[%s17174_s5 + $0x4c0] ss:$16 sps:$4 sm:$0xff]  }
 0x391   :  { %v3461_v45 = vpop.f32.mrf.mxu1  ;;  %v4070_v31 = vpop.f32.mrf.mxu0 }
 0x393   :  { %v3464_v62 = vpop.f32.mrf.mxu1  ;;  %3655 = vmatmul.mubr.bf16.gmra.mxu1 %v10495_v40  ;;  %v4073_v52 = vpop.f32.mrf.mxu0  ;;  %4264 = vmatmul.mubr.bf16.gmra.mxu0 %v10498_v56  ;;  %v10516_v40 = vld [vmem:[%s17174_s5 + $0x4c8] ss:$16 sps:$4 sm:$0xff]  }
 0x394   :  { %v13764_v2 = vadd.f32 %v4073_v52, %v3464_v62  ;;  %3662 = vmatprep.mubr.bf16.mxu1 %v10503_v53  ;;  %4271 = vmatprep.mubr.bf16.mxu0 %v10506_v20  ;;  %v10521_v53 = vld [vmem:[%s17174_s5 + $0x4e4] ss:$16 sps:$4 sm:$0xff]   ;;  %v10524_v20 = vld [vmem:[%s17174_s5 + $0x4ec] ss:$16 sps:$4 sm:$0xff]  }
 0x395   :  { %v3466_v11 = vpop.f32.mrf.mxu1  ;;  %v4075_v47 = vpop.f32.mrf.mxu0 }
 0x397   :  { %v3467_v34 = vpop.f32.mrf.mxu1  ;;  %v4076_v19 = vpop.f32.mrf.mxu0 }
 0x398   :  { %v13772_v5 = vadd.f32 %v4076_v19, %v3467_v34 }
 0x399   :  { %v3469_v35 = vpop.f32.mrf.mxu1  ;;  %v4078_v23 = vpop.f32.mrf.mxu0 }
 0x39a   :  { %v10527_v35 = vld [vmem:[%s17174_s5 + $0x504] ss:$16 sps:$4 sm:$0xff]   ;;  %v10530_v23 = vld [vmem:[%s17174_s5 + $0x50c] ss:$16 sps:$4 sm:$0xff]  }
 0x39b   :  { %v3472_v13 = vpop.f32.mrf.mxu1  ;;  %3663 = vmatmul.mubr.bf16.gmra.mxu1 %v10501_v9  ;;  %v4081_v18 = vpop.f32.mrf.mxu0  ;;  %4272 = vmatmul.mubr.bf16.gmra.mxu0 %v10504_v28  ;;  %v10519_v28 = vld [vmem:[%s17174_s5 + $0x4e0] ss:$16 sps:$4 sm:$0xff]  }
 0x39c   :  { %v13780_v55 = vadd.f32 %v4081_v18, %v3472_v13  ;;  %3670 = vmatprep.mubr.bf16.mxu1 %v10509_v42  ;;  %4279 = vmatprep.mubr.bf16.mxu0 %v10512_v6  ;;  %v10522_v42 = vld [vmem:[%s17174_s5 + $0x4e8] ss:$16 sps:$4 sm:$0xff]  }
 0x39d   :  { %v3474_v7 = vpop.f32.mrf.mxu1  ;;  %v4083_v50 = vpop.f32.mrf.mxu0 }
 0x39f   :  { %v3475_v4 = vpop.f32.mrf.mxu1  ;;  %v4084_v51 = vpop.f32.mrf.mxu0 }
 0x3a0   :  { %v13788_v57 = vadd.f32 %v4084_v51, %v3475_v4 }
 0x3a1   :  { %v3477_v22 = vpop.f32.mrf.mxu1  ;;  %v4086_v39 = vpop.f32.mrf.mxu0 }
 0x3a2   :  { %v10528_v22 = vld [vmem:[%s17174_s5 + $0x508] ss:$16 sps:$4 sm:$0xff]  }
 0x3a3   :  { %v3480_v33 = vpop.f32.mrf.mxu1  ;;  %3671 = vmatmul.mubr.bf16.gmra.mxu1 %v10507_v38  ;;  %v4089_v59 = vpop.f32.mrf.mxu0  ;;  %4280 = vmatmul.mubr.bf16.gmra.mxu0 %v10510_v0 }
 0x3a4   :  { %v13796_v1 = vadd.f32 %v4089_v59, %v3480_v33  ;;  %3678 = vmatprep.mubr.bf16.mxu1 %v10515_v30  ;;  %4287 = vmatprep.mubr.bf16.mxu0 %v10518_v44  ;;  %v10525_v44 = vld [vmem:[%s17174_s5 + $0x500] ss:$16 sps:$4 sm:$0xff]   ;;  %v10533_v33 = vld [vmem:[%s17174_s5 + $0x524] ss:$16 sps:$4 sm:$0xff]   ;;  %v10536_v59 = vld [vmem:[%s17174_s5 + $0x52c] ss:$16 sps:$4 sm:$0xff]  }
 0x3a5   :  { %v3482_v60 = vpop.f32.mrf.mxu1  ;;  %v4091_v10 = vpop.f32.mrf.mxu0 }
 0x3a7   :  { %v3483_v48 = vpop.f32.mrf.mxu1  ;;  %v4092_v27 = vpop.f32.mrf.mxu0 }
 0x3a8   :  { %v13804_v56 = vadd.f32 %v4092_v27, %v3483_v48 }
 0x3a9   :  { %v3485_v45 = vpop.f32.mrf.mxu1  ;;  %v4094_v31 = vpop.f32.mrf.mxu0 }
 0x3aa   :  { %v10531_v31 = vld [vmem:[%s17174_s5 + $0x520] ss:$16 sps:$4 sm:$0xff]  }
 0x3ab   :  { %v3488_v62 = vpop.f32.mrf.mxu1  ;;  %3679 = vmatmul.mubr.bf16.gmra.mxu1 %v10513_v14  ;;  %v4097_v52 = vpop.f32.mrf.mxu0  ;;  %4288 = vmatmul.mubr.bf16.gmra.mxu0 %v10516_v40 }
 0x3ac   :  { %v13812_v11 = vadd.f32 %v4097_v52, %v3488_v62  ;;  %3686 = vmatprep.mubr.bf16.mxu1 %v10521_v53  ;;  %4295 = vmatprep.mubr.bf16.mxu0 %v10524_v20  ;;  %v10534_v62 = vld [vmem:[%s17174_s5 + $0x528] ss:$16 sps:$4 sm:$0xff]  }
 0x3ad   :  { %v3490_v47 = vpop.f32.mrf.mxu1  ;;  %v4099_v34 = vpop.f32.mrf.mxu0 }
 0x3ae   :  { %v10539_v47 = vld [vmem:[%s17174_s5 + $0x544] ss:$16 sps:$4 sm:$0xff]   ;;  %v10542_v34 = vld [vmem:[%s17174_s5 + $0x54c] ss:$16 sps:$4 sm:$0xff]  }
 0x3af   :  { %v3491_v19 = vpop.f32.mrf.mxu1  ;;  %v4100_v9 = vpop.f32.mrf.mxu0 }
 0x3b0   :  { %v13820_v6 = vadd.f32 %v4100_v9, %v3491_v19 }
 0x3b1   :  { %v3493_v13 = vpop.f32.mrf.mxu1  ;;  %v4102_v18 = vpop.f32.mrf.mxu0 }
 0x3b3   :  { %v3496_v7 = vpop.f32.mrf.mxu1  ;;  %3687 = vmatmul.mubr.bf16.gmra.mxu1 %v10519_v28  ;;  %v4105_v50 = vpop.f32.mrf.mxu0  ;;  %4296 = vmatmul.mubr.bf16.gmra.mxu0 %v10522_v42 }
 0x3b4   :  { %v13828_v4 = vadd.f32 %v4105_v50, %v3496_v7  ;;  %3694 = vmatprep.mubr.bf16.mxu1 %v10527_v35  ;;  %4303 = vmatprep.mubr.bf16.mxu0 %v10530_v23  ;;  %v10537_v50 = vld [vmem:[%s17174_s5 + $0x540] ss:$16 sps:$4 sm:$0xff]  }
 0x3b5   :  { %v3498_v51 = vpop.f32.mrf.mxu1  ;;  %v4107_v38 = vpop.f32.mrf.mxu0 }
 0x3b6   :  { %v10540_v51 = vld [vmem:[%s17174_s5 + $0x548] ss:$16 sps:$4 sm:$0xff]  }
 0x3b7   :  { %v3499_v0 = vpop.f32.mrf.mxu1  ;;  %v4108_v30 = vpop.f32.mrf.mxu0 }
 0x3b8   :  { %v13836_v39 = vadd.f32 %v4108_v30, %v3499_v0  ;;  %v10545_v0 = vld [vmem:[%s17174_s5 + $0x564] ss:$16 sps:$4 sm:$0xff]   ;;  %v10548_v30 = vld [vmem:[%s17174_s5 + $0x56c] ss:$16 sps:$4 sm:$0xff]  }
 0x3b9   :  { %v3501_v60 = vpop.f32.mrf.mxu1  ;;  %v4110_v10 = vpop.f32.mrf.mxu0 }
 0x3bb   :  { %v3504_v48 = vpop.f32.mrf.mxu1  ;;  %3695 = vmatmul.mubr.bf16.gmra.mxu1 %v10525_v44  ;;  %v4113_v27 = vpop.f32.mrf.mxu0  ;;  %4304 = vmatmul.mubr.bf16.gmra.mxu0 %v10528_v22 }
 0x3bc   :  { %v13844_v14 = vadd.f32 %v4113_v27, %v3504_v48  ;;  %3702 = vmatprep.mubr.bf16.mxu1 %v10533_v33  ;;  %4311 = vmatprep.mubr.bf16.mxu0 %v10536_v59 }
 0x3bd   :  { %v3506_v40 = vpop.f32.mrf.mxu1  ;;  %v4115_v53 = vpop.f32.mrf.mxu0 }
 0x3be   :  { %v10543_v53 = vld [vmem:[%s17174_s5 + $0x560] ss:$16 sps:$4 sm:$0xff]  }
 0x3bf   :  { %v3507_v20 = vpop.f32.mrf.mxu1  ;;  %v4116_v45 = vpop.f32.mrf.mxu0 }
 0x3c0   :  { %v13852_v52 = vadd.f32 %v4116_v45, %v3507_v20  ;;  %v10546_v20 = vld [vmem:[%s17174_s5 + $0x568] ss:$16 sps:$4 sm:$0xff]  }
 0x3c1   :  { %v3509_v19 = vpop.f32.mrf.mxu1  ;;  %v4118_v9 = vpop.f32.mrf.mxu0 }
 0x3c3   :  { %v3512_v28 = vpop.f32.mrf.mxu1  ;;  %3703 = vmatmul.mubr.bf16.gmra.mxu1 %v10531_v31  ;;  %v4121_v42 = vpop.f32.mrf.mxu0  ;;  %4312 = vmatmul.mubr.bf16.gmra.mxu0 %v10534_v62  ;;  %v10551_v31 = vld [vmem:[%s17174_s5 + $0x584] ss:$16 sps:$4 sm:$0xff]   ;;  %v10554_v62 = vld [vmem:[%s17174_s5 + $0x58c] ss:$16 sps:$4 sm:$0xff]  }
 0x3c4   :  { %v13860_v35 = vadd.f32 %v4121_v42, %v3512_v28  ;;  %3710 = vmatprep.mubr.bf16.mxu1 %v10539_v47  ;;  %4319 = vmatprep.mubr.bf16.mxu0 %v10542_v34 }
 0x3c5   :  { %v3514_v23 = vpop.f32.mrf.mxu1  ;;  %v4123_v13 = vpop.f32.mrf.mxu0 }
 0x3c7   :  { %v3515_v18 = vpop.f32.mrf.mxu1  ;;  %v4124_v7 = vpop.f32.mrf.mxu0 }
 0x3c8   :  { %v13868_v38 = vadd.f32 %v4124_v7, %v3515_v18  ;;  %v10549_v7 = vld [vmem:[%s17174_s5 + $0x580] ss:$16 sps:$4 sm:$0xff]  }
 0x3c9   :  { %v3517_v44 = vpop.f32.mrf.mxu1  ;;  %v4126_v22 = vpop.f32.mrf.mxu0 }
 0x3cb   :  { %v3520_v33 = vpop.f32.mrf.mxu1  ;;  %3711 = vmatmul.mubr.bf16.gmra.mxu1 %v10537_v50  ;;  %v4129_v59 = vpop.f32.mrf.mxu0  ;;  %4320 = vmatmul.mubr.bf16.gmra.mxu0 %v10540_v51  ;;  %v10552_v50 = vld [vmem:[%s17174_s5 + $0x588] ss:$16 sps:$4 sm:$0xff]  }
 0x3cc   :  { %v13876_v60 = vadd.f32 %v4129_v59, %v3520_v33  ;;  %3718 = vmatprep.mubr.bf16.mxu1 %v10545_v0  ;;  %4327 = vmatprep.mubr.bf16.mxu0 %v10548_v30  ;;  %v10557_v0 = vld [vmem:[%s17174_s5 + $0x5a4] ss:$16 sps:$4 sm:$0xff]   ;;  %v10560_v30 = vld [vmem:[%s17174_s5 + $0x5ac] ss:$16 sps:$4 sm:$0xff]  }
 0x3cd   :  { %v3522_v10 = vpop.f32.mrf.mxu1  ;;  %v4131_v48 = vpop.f32.mrf.mxu0 }
 0x3cf   :  { %v3523_v27 = vpop.f32.mrf.mxu1  ;;  %v4132_v40 = vpop.f32.mrf.mxu0 }
 0x3d0   :  { %v13884_v45 = vadd.f32 %v4132_v40, %v3523_v27 }
 0x3d1   :  { %v3525_v47 = vpop.f32.mrf.mxu1  ;;  %v4134_v34 = vpop.f32.mrf.mxu0 }
 0x3d2   :  { %v10563_v47 = vld [vmem:[%s17174_s5 + $0x5c4] ss:$16 sps:$4 sm:$0xff]   ;;  %v10566_v34 = vld [vmem:[%s17174_s5 + $0x5cc] ss:$16 sps:$4 sm:$0xff]  }
 0x3d3   :  { %v3528_v19 = vpop.f32.mrf.mxu1  ;;  %3719 = vmatmul.mubr.bf16.gmra.mxu1 %v10543_v53  ;;  %v4137_v9 = vpop.f32.mrf.mxu0  ;;  %4328 = vmatmul.mubr.bf16.gmra.mxu0 %v10546_v20  ;;  %v10555_v20 = vld [vmem:[%s17174_s5 + $0x5a0] ss:$16 sps:$4 sm:$0xff]  }
 0x3d4   :  { %v13892_v28 = vadd.f32 %v4137_v9, %v3528_v19  ;;  %3726 = vmatprep.mubr.bf16.mxu1 %v10551_v31  ;;  %4335 = vmatprep.mubr.bf16.mxu0 %v10554_v62  ;;  %v10558_v31 = vld [vmem:[%s17174_s5 + $0x5a8] ss:$16 sps:$4 sm:$0xff]  }
 0x3d5   :  { %v3530_v42 = vpop.f32.mrf.mxu1  ;;  %v4139_v23 = vpop.f32.mrf.mxu0 }
 0x3d7   :  { %v3531_v13 = vpop.f32.mrf.mxu1  ;;  %v4140_v18 = vpop.f32.mrf.mxu0 }
 0x3d8   :  { %v13900_v51 = vadd.f32 %v4140_v18, %v3531_v13 }
 0x3d9   :  { %v3533_v44 = vpop.f32.mrf.mxu1  ;;  %v4142_v22 = vpop.f32.mrf.mxu0 }
 0x3da   :  { %v10564_v44 = vld [vmem:[%s17174_s5 + $0x5c8] ss:$16 sps:$4 sm:$0xff]  }
 0x3db   :  { %v3536_v33 = vpop.f32.mrf.mxu1  ;;  %3727 = vmatmul.mubr.bf16.gmra.mxu1 %v10549_v7  ;;  %v4145_v59 = vpop.f32.mrf.mxu0  ;;  %4336 = vmatmul.mubr.bf16.gmra.mxu0 %v10552_v50 }
 0x3dc   :  { %v13908_v10 = vadd.f32 %v4145_v59, %v3536_v33  ;;  %3734 = vmatprep.mubr.bf16.mxu1 %v10557_v0  ;;  %4343 = vmatprep.mubr.bf16.mxu0 %v10560_v30  ;;  %v10561_v30 = vld [vmem:[%s17174_s5 + $0x5c0] ss:$16 sps:$4 sm:$0xff]   ;;  %v10569_v33 = vld [vmem:[%s17174_s5 + $0x5e4] ss:$16 sps:$4 sm:$0xff]   ;;  %v10572_v59 = vld [vmem:[%s17174_s5 + $0x5ec] ss:$16 sps:$4 sm:$0xff]  }
 0x3dd   :  { %v3538_v48 = vpop.f32.mrf.mxu1  ;;  %v4147_v27 = vpop.f32.mrf.mxu0 }
 0x3df   :  { %v3539_v40 = vpop.f32.mrf.mxu1  ;;  %v4148_v53 = vpop.f32.mrf.mxu0 }
 0x3e0   :  { %v13916_v62 = vadd.f32 %v4148_v53, %v3539_v40 }
 0x3e1   :  { %v3541_v19 = vpop.f32.mrf.mxu1  ;;  %v4150_v9 = vpop.f32.mrf.mxu0 }
 0x3e2   :  { %v10567_v9 = vld [vmem:[%s17174_s5 + $0x5e0] ss:$16 sps:$4 sm:$0xff]  }
 0x3e3   :  { %v3544_v42 = vpop.f32.mrf.mxu1  ;;  %3735 = vmatmul.mubr.bf16.gmra.mxu1 %v10555_v20  ;;  %v4153_v23 = vpop.f32.mrf.mxu0  ;;  %4344 = vmatmul.mubr.bf16.gmra.mxu0 %v10558_v31 }
 0x3e4   :  { %v13924_v13 = vadd.f32 %v4153_v23, %v3544_v42  ;;  %3742 = vmatprep.mubr.bf16.mxu1 %v10563_v47  ;;  %4351 = vmatprep.mubr.bf16.mxu0 %v10566_v34  ;;  %v10570_v42 = vld [vmem:[%s17174_s5 + $0x5e8] ss:$16 sps:$4 sm:$0xff]  }
 0x3e5   :  { %v3546_v18 = vpop.f32.mrf.mxu1  ;;  %v4155_v7 = vpop.f32.mrf.mxu0 }
 0x3e6   :  { %v10575_v18 = vld [vmem:[%s17174_s5 + $0x604] ss:$16 sps:$4 sm:$0xff]   ;;  %v10578_v7 = vld [vmem:[%s17174_s5 + $0x60c] ss:$16 sps:$4 sm:$0xff]  }
 0x3e7   :  { %v3547_v50 = vpop.f32.mrf.mxu1  ;;  %v4156_v0 = vpop.f32.mrf.mxu0 }
 0x3e8   :  { %v13932_v22 = vadd.f32 %v4156_v0, %v3547_v50 }
 0x3e9   :  { %v3549_v48 = vpop.f32.mrf.mxu1  ;;  %v4158_v27 = vpop.f32.mrf.mxu0 }
 0x3eb   :  { %v3552_v40 = vpop.f32.mrf.mxu1  ;;  %3743 = vmatmul.mubr.bf16.gmra.mxu1 %v10561_v30  ;;  %v4161_v53 = vpop.f32.mrf.mxu0  ;;  %4352 = vmatmul.mubr.bf16.gmra.mxu0 %v10564_v44 }
 0x3ec   :  { %v13940_v20 = vadd.f32 %v4161_v53, %v3552_v40  ;;  %3750 = vmatprep.mubr.bf16.mxu1 %v10569_v33  ;;  %4359 = vmatprep.mubr.bf16.mxu0 %v10572_v59  ;;  %v10573_v53 = vld [vmem:[%s17174_s5 + $0x600] ss:$16 sps:$4 sm:$0xff]  }
 0x3ed   :  { %v3554_v31 = vpop.f32.mrf.mxu1  ;;  %v4163_v47 = vpop.f32.mrf.mxu0 }
 0x3ee   :  { %v10576_v31 = vld [vmem:[%s17174_s5 + $0x608] ss:$16 sps:$4 sm:$0xff]  }
 0x3ef   :  { %v3555_v34 = vpop.f32.mrf.mxu1  ;;  %v4164_v19 = vpop.f32.mrf.mxu0 }
 0x3f0   :  { %v13948_v23 = vadd.f32 %v4164_v19, %v3555_v34  ;;  %v10581_v34 = vld [vmem:[%s17174_s5 + $0x624] ss:$16 sps:$4 sm:$0xff]   ;;  %v10584_v19 = vld [vmem:[%s17174_s5 + $0x62c] ss:$16 sps:$4 sm:$0xff]  }
 0x3f1   :  { %v3557_v50 = vpop.f32.mrf.mxu1  ;;  %v4166_v0 = vpop.f32.mrf.mxu0 }
 0x3f3   :  { %v3560_v30 = vpop.f32.mrf.mxu1  ;;  %3751 = vmatmul.mubr.bf16.gmra.mxu1 %v10567_v9  ;;  %v4169_v44 = vpop.f32.mrf.mxu0  ;;  %4360 = vmatmul.mubr.bf16.gmra.mxu0 %v10570_v42 }
 0x3f4   :  { %v13956_v33 = vadd.f32 %v4169_v44, %v3560_v30  ;;  %3758 = vmatprep.mubr.bf16.mxu1 %v10575_v18  ;;  %4367 = vmatprep.mubr.bf16.mxu0 %v10578_v7 }
 0x3f5   :  { %v3562_v59 = vpop.f32.mrf.mxu1  ;;  %v4171_v48 = vpop.f32.mrf.mxu0 }
 0x3f6   :  { %v10579_v48 = vld [vmem:[%s17174_s5 + $0x620] ss:$16 sps:$4 sm:$0xff]  }
 0x3f7   :  { %v3563_v27 = vpop.f32.mrf.mxu1  ;;  %v4172_v40 = vpop.f32.mrf.mxu0 }
 0x3f8   :  { %v13964_v47 = vadd.f32 %v4172_v40, %v3563_v27  ;;  %v10582_v27 = vld [vmem:[%s17174_s5 + $0x628] ss:$16 sps:$4 sm:$0xff]  }
 0x3f9   :  { %v3565_v9 = vpop.f32.mrf.mxu1  ;;  %v4174_v42 = vpop.f32.mrf.mxu0 }
 0x3fb   :  { %v3568_v18 = vpop.f32.mrf.mxu1  ;;  %3759 = vmatmul.mubr.bf16.gmra.mxu1 %v10573_v53  ;;  %v4177_v7 = vpop.f32.mrf.mxu0  ;;  %4368 = vmatmul.mubr.bf16.gmra.mxu0 %v10576_v31  ;;  %v10587_v53 = vld [vmem:[%s17174_s5 + $0x644] ss:$16 sps:$4 sm:$0xff]   ;;  %v10590_v31 = vld [vmem:[%s17174_s5 + $0x64c] ss:$16 sps:$4 sm:$0xff]  }
 0x3fc   :  { %v13972_v50 = vadd.f32 %v4177_v7, %v3568_v18  ;;  %3766 = vmatprep.mubr.bf16.mxu1 %v10581_v34  ;;  %4375 = vmatprep.mubr.bf16.mxu0 %v10584_v19 }
 0x3fd   :  { %v3570_v0 = vpop.f32.mrf.mxu1  ;;  %v4179_v30 = vpop.f32.mrf.mxu0 }
 0x3ff   :  { %v3571_v44 = vpop.f32.mrf.mxu1  ;;  %v4180_v59 = vpop.f32.mrf.mxu0 }
 0x400   :  { %v13980_v40 = vadd.f32 %v4180_v59, %v3571_v44  ;;  %v10585_v59 = vld [vmem:[%s17174_s5 + $0x640] ss:$16 sps:$4 sm:$0xff]  }
 0x401   :  { %v3573_v34 = vpop.f32.mrf.mxu1  ;;  %v4182_v19 = vpop.f32.mrf.mxu0 }
 0x402   :  { %v10588_v34 = vld [vmem:[%s17174_s5 + $0x648] ss:$16 sps:$4 sm:$0xff]  }
 0x403   :  { %v3576_v9 = vpop.f32.mrf.mxu1  ;;  %3767 = vmatmul.mubr.bf16.gmra.mxu1 %v10579_v48  ;;  %v4185_v42 = vpop.f32.mrf.mxu0  ;;  %4376 = vmatmul.mubr.bf16.gmra.mxu0 %v10582_v27  ;;  %v10593_v48 = vld [vmem:[%s17174_s5 + $0x664] ss:$16 sps:$4 sm:$0xff]   ;;  %v10596_v27 = vld [vmem:[%s17174_s5 + $0x66c] ss:$16 sps:$4 sm:$0xff]  }
 0x404   :  { %v13988_v18 = vadd.f32 %v4185_v42, %v3576_v9  ;;  %3774 = vmatprep.mubr.bf16.mxu1 %v10587_v53  ;;  %4383 = vmatprep.mubr.bf16.mxu0 %v10590_v31 }
 0x405   :  { %v3578_v7 = vpop.f32.mrf.mxu1  ;;  %v4187_v0 = vpop.f32.mrf.mxu0 }
 0x406   :  { %17528 = vst [vmem:[#allocation6_spill] sm:$0xff] %v13988_v18  ;;  %v10591_v18 = vld [vmem:[%s17174_s5 + $0x660] ss:$16 sps:$4 sm:$0xff]  }
 0x407   :  { %v3579_v30 = vpop.f32.mrf.mxu1  ;;  %v4188_v44 = vpop.f32.mrf.mxu0 }
 0x408   :  { %v13996_v19 = vadd.f32 %v4188_v44, %v3579_v30 }
 0x409   :  { %v3581_v53 = vpop.f32.mrf.mxu1  ;;  %v4190_v31 = vpop.f32.mrf.mxu0 }
 0x40a   :  { %17529 = vst [vmem:[#allocation7_spill] sm:$0xff] %v13996_v19  ;;  %v10594_v53 = vld [vmem:[%s17174_s5 + $0x668] ss:$16 sps:$4 sm:$0xff]  }
 0x40b   :  { %v3584_v9 = vpop.f32.mrf.mxu1  ;;  %3775 = vmatmul.mubr.bf16.gmra.mxu1 %v10585_v59  ;;  %v4193_v42 = vpop.f32.mrf.mxu0  ;;  %4384 = vmatmul.mubr.bf16.gmra.mxu0 %v10588_v34  ;;  %v10599_v59 = vld [vmem:[%s17174_s5 + $0x684] ss:$16 sps:$4 sm:$0xff]   ;;  %v10602_v34 = vld [vmem:[%s17174_s5 + $0x68c] ss:$16 sps:$4 sm:$0xff]  }
 0x40c   :  { %v14004_v7 = vadd.f32 %v4193_v42, %v3584_v9  ;;  %3782 = vmatprep.mubr.bf16.mxu1 %v10593_v48  ;;  %4391 = vmatprep.mubr.bf16.mxu0 %v10596_v27 }
 0x40d   :  { %v3586_v0 = vpop.f32.mrf.mxu1  ;;  %v4195_v30 = vpop.f32.mrf.mxu0 }
 0x40e   :  { %17530 = vst [vmem:[#allocation21_spill] sm:$0xff] %v14004_v7  ;;  %v10597_v7 = vld [vmem:[%s17174_s5 + $0x680] ss:$16 sps:$4 sm:$0xff]  }
 0x40f   :  { %v3587_v44 = vpop.f32.mrf.mxu1  ;;  %v4196_v19 = vpop.f32.mrf.mxu0 }
 0x410   :  { %v14012_v31 = vadd.f32 %v4196_v19, %v3587_v44 }
 0x411   :  { %v3589_v48 = vpop.f32.mrf.mxu1  ;;  %v4198_v27 = vpop.f32.mrf.mxu0 }
 0x412   :  { %17531 = vst [vmem:[#allocation5_spill] sm:$0xff] %v14012_v31  ;;  %v10600_v48 = vld [vmem:[%s17174_s5 + $0x688] ss:$16 sps:$4 sm:$0xff]  }
 0x413   :  { %v3592_v9 = vpop.f32.mrf.mxu1  ;;  %3783 = vmatmul.mubr.bf16.gmra.mxu1 %v10591_v18  ;;  %v4201_v42 = vpop.f32.mrf.mxu0  ;;  %4392 = vmatmul.mubr.bf16.gmra.mxu0 %v10594_v53  ;;  %v10605_v18 = vld [vmem:[%s17174_s5 + $0x6a4] ss:$16 sps:$4 sm:$0xff]   ;;  %v10608_v53 = vld [vmem:[%s17174_s5 + $0x6ac] ss:$16 sps:$4 sm:$0xff]  }
 0x414   :  { %v14020_v0 = vadd.f32 %v4201_v42, %v3592_v9  ;;  %3790 = vmatprep.mubr.bf16.mxu1 %v10599_v59  ;;  %4399 = vmatprep.mubr.bf16.mxu0 %v10602_v34 }
 0x415   :  { %v3594_v19 = vpop.f32.mrf.mxu1  ;;  %v4203_v30 = vpop.f32.mrf.mxu0 }
 0x416   :  { %17532 = vst [vmem:[#allocation16_spill] sm:$0xff] %v14020_v0  ;;  %v10603_v0 = vld [vmem:[%s17174_s5 + $0x6a0] ss:$16 sps:$4 sm:$0xff]  }
 0x417   :  { %v3595_v44 = vpop.f32.mrf.mxu1  ;;  %v4204_v31 = vpop.f32.mrf.mxu0 }
 0x418   :  { %v14028_v27 = vadd.f32 %v4204_v31, %v3595_v44 }
 0x419   :  { %v3597_v59 = vpop.f32.mrf.mxu1  ;;  %v4206_v34 = vpop.f32.mrf.mxu0 }
 0x41a   :  { %17533 = vst [vmem:[#allocation33_spill] sm:$0xff] %v14028_v27  ;;  %v10606_v59 = vld [vmem:[%s17174_s5 + $0x6a8] ss:$16 sps:$4 sm:$0xff]  }
 0x41b   :  { %v3600_v9 = vpop.f32.mrf.mxu1  ;;  %3791 = vmatmul.mubr.bf16.gmra.mxu1 %v10597_v7  ;;  %v4209_v42 = vpop.f32.mrf.mxu0  ;;  %4400 = vmatmul.mubr.bf16.gmra.mxu0 %v10600_v48  ;;  %v10611_v7 = vld [vmem:[%s17174_s5 + $0x6c4] ss:$16 sps:$4 sm:$0xff]   ;;  %v10614_v48 = vld [vmem:[%s17174_s5 + $0x6cc] ss:$16 sps:$4 sm:$0xff]  }
 0x41c   :  { %v14036_v19 = vadd.f32 %v4209_v42, %v3600_v9  ;;  %3798 = vmatprep.mubr.bf16.mxu1 %v10605_v18  ;;  %4407 = vmatprep.mubr.bf16.mxu0 %v10608_v53 }
 0x41d   :  { %v3602_v31 = vpop.f32.mrf.mxu1  ;;  %v4211_v30 = vpop.f32.mrf.mxu0 }
 0x41e   :  { %17534 = vst [vmem:[#allocation34_spill] sm:$0xff] %v14036_v19  ;;  %v10609_v19 = vld [vmem:[%s17174_s5 + $0x6c0] ss:$16 sps:$4 sm:$0xff]  }
 0x41f   :  { %v3603_v44 = vpop.f32.mrf.mxu1  ;;  %v4212_v27 = vpop.f32.mrf.mxu0 }
 0x420   :  { %v14044_v34 = vadd.f32 %v4212_v27, %v3603_v44 }
 0x421   :  { %v3605_v18 = vpop.f32.mrf.mxu1  ;;  %v4214_v53 = vpop.f32.mrf.mxu0 }
 0x422   :  { %17535 = vst [vmem:[#allocation36_spill] sm:$0xff] %v14044_v34  ;;  %v10612_v18 = vld [vmem:[%s17174_s5 + $0x6c8] ss:$16 sps:$4 sm:$0xff]  }
 0x423   :  { %v3608_v9 = vpop.f32.mrf.mxu1  ;;  %3799 = vmatmul.mubr.bf16.gmra.mxu1 %v10603_v0  ;;  %v4217_v42 = vpop.f32.mrf.mxu0  ;;  %4408 = vmatmul.mubr.bf16.gmra.mxu0 %v10606_v59  ;;  %v10617_v0 = vld [vmem:[%s17174_s5 + $0x6e4] ss:$16 sps:$4 sm:$0xff]   ;;  %v10620_v59 = vld [vmem:[%s17174_s5 + $0x6ec] ss:$16 sps:$4 sm:$0xff]  }
 0x424   :  { %v14052_v31 = vadd.f32 %v4217_v42, %v3608_v9  ;;  %3806 = vmatprep.mubr.bf16.mxu1 %v10611_v7  ;;  %4415 = vmatprep.mubr.bf16.mxu0 %v10614_v48 }
 0x425   :  { %v3610_v27 = vpop.f32.mrf.mxu1  ;;  %v4219_v30 = vpop.f32.mrf.mxu0 }
 0x426   :  { %17536 = vst [vmem:[#allocation15_spill] sm:$0xff] %v14052_v31  ;;  %v10615_v31 = vld [vmem:[%s17174_s5 + $0x6e0] ss:$16 sps:$4 sm:$0xff]  }
 0x427   :  { %v3611_v44 = vpop.f32.mrf.mxu1  ;;  %v4220_v34 = vpop.f32.mrf.mxu0 }
 0x428   :  { %v14060_v53 = vadd.f32 %v4220_v34, %v3611_v44 }
 0x429   :  { %v3613_v7 = vpop.f32.mrf.mxu1  ;;  %v4222_v48 = vpop.f32.mrf.mxu0 }
 0x42a   :  { %17537 = vst [vmem:[#allocation31_spill] sm:$0xff] %v14060_v53  ;;  %v10618_v7 = vld [vmem:[%s17174_s5 + $0x6e8] ss:$16 sps:$4 sm:$0xff]  }
 0x42b   :  { %v3616_v9 = vpop.f32.mrf.mxu1  ;;  %3807 = vmatmul.mubr.bf16.gmra.mxu1 %v10609_v19  ;;  %v4225_v42 = vpop.f32.mrf.mxu0  ;;  %4416 = vmatmul.mubr.bf16.gmra.mxu0 %v10612_v18  ;;  %v10623_v19 = vld [vmem:[%s17174_s5 + $0x704] ss:$16 sps:$4 sm:$0xff]   ;;  %v10626_v18 = vld [vmem:[%s17174_s5 + $0x70c] ss:$16 sps:$4 sm:$0xff]  }
 0x42c   :  { %v14068_v27 = vadd.f32 %v4225_v42, %v3616_v9  ;;  %3814 = vmatprep.mubr.bf16.mxu1 %v10617_v0  ;;  %4423 = vmatprep.mubr.bf16.mxu0 %v10620_v59 }
 0x42d   :  { %v3618_v34 = vpop.f32.mrf.mxu1  ;;  %v4227_v30 = vpop.f32.mrf.mxu0 }
 0x42e   :  { %17538 = vst [vmem:[#allocation32_spill] sm:$0xff] %v14068_v27  ;;  %v10621_v27 = vld [vmem:[%s17174_s5 + $0x700] ss:$16 sps:$4 sm:$0xff]  }
 0x42f   :  { %v3619_v44 = vpop.f32.mrf.mxu1  ;;  %v4228_v53 = vpop.f32.mrf.mxu0 }
 0x430   :  { %v14076_v48 = vadd.f32 %v4228_v53, %v3619_v44 }
 0x431   :  { %v3621_v0 = vpop.f32.mrf.mxu1  ;;  %v4230_v59 = vpop.f32.mrf.mxu0 }
 0x432   :  { %17539 = vst [vmem:[#allocation27_spill] sm:$0xff] %v14076_v48  ;;  %v10624_v0 = vld [vmem:[%s17174_s5 + $0x708] ss:$16 sps:$4 sm:$0xff]  }
 0x433   :  { %v3624_v9 = vpop.f32.mrf.mxu1  ;;  %3815 = vmatmul.mubr.bf16.gmra.mxu1 %v10615_v31  ;;  %v4233_v42 = vpop.f32.mrf.mxu0  ;;  %4424 = vmatmul.mubr.bf16.gmra.mxu0 %v10618_v7  ;;  %v10629_v31 = vld [vmem:[%s17174_s5 + $0x724] ss:$16 sps:$4 sm:$0xff]   ;;  %v10632_v7 = vld [vmem:[%s17174_s5 + $0x72c] ss:$16 sps:$4 sm:$0xff]  }
 0x434   :  { %v14084_v34 = vadd.f32 %v4233_v42, %v3624_v9  ;;  %3822 = vmatprep.mubr.bf16.mxu1 %v10623_v19  ;;  %4431 = vmatprep.mubr.bf16.mxu0 %v10626_v18 }
 0x435   :  { %v3626_v53 = vpop.f32.mrf.mxu1  ;;  %v4235_v30 = vpop.f32.mrf.mxu0 }
 0x436   :  { %17540 = vst [vmem:[#allocation28_spill] sm:$0xff] %v14084_v34  ;;  %v10627_v34 = vld [vmem:[%s17174_s5 + $0x720] ss:$16 sps:$4 sm:$0xff]  }
 0x437   :  { %v3627_v44 = vpop.f32.mrf.mxu1  ;;  %v4236_v48 = vpop.f32.mrf.mxu0 }
 0x438   :  { %v14092_v59 = vadd.f32 %v4236_v48, %v3627_v44 }
 0x439   :  { %v3629_v19 = vpop.f32.mrf.mxu1  ;;  %v4238_v18 = vpop.f32.mrf.mxu0 }
 0x43a   :  { %17541 = vst [vmem:[#allocation14_spill] sm:$0xff] %v14092_v59  ;;  %v10630_v19 = vld [vmem:[%s17174_s5 + $0x728] ss:$16 sps:$4 sm:$0xff]  }
 0x43b   :  { %v3632_v9 = vpop.f32.mrf.mxu1  ;;  %3823 = vmatmul.mubr.bf16.gmra.mxu1 %v10621_v27  ;;  %v4241_v42 = vpop.f32.mrf.mxu0  ;;  %4432 = vmatmul.mubr.bf16.gmra.mxu0 %v10624_v0  ;;  %v10635_v27 = vld [vmem:[%s17174_s5 + $0x744] ss:$16 sps:$4 sm:$0xff]   ;;  %v10638_v0 = vld [vmem:[%s17174_s5 + $0x74c] ss:$16 sps:$4 sm:$0xff]  }
 0x43c   :  { %v14100_v53 = vadd.f32 %v4241_v42, %v3632_v9  ;;  %3830 = vmatprep.mubr.bf16.mxu1 %v10629_v31  ;;  %4439 = vmatprep.mubr.bf16.mxu0 %v10632_v7 }
 0x43d   :  { %v3634_v48 = vpop.f32.mrf.mxu1  ;;  %v4243_v30 = vpop.f32.mrf.mxu0 }
 0x43e   :  { %17542 = vst [vmem:[#allocation23_spill] sm:$0xff] %v14100_v53  ;;  %v10633_v53 = vld [vmem:[%s17174_s5 + $0x740] ss:$16 sps:$4 sm:$0xff]  }
 0x43f   :  { %v3635_v44 = vpop.f32.mrf.mxu1  ;;  %v4244_v59 = vpop.f32.mrf.mxu0 }
 0x440   :  { %v14108_v18 = vadd.f32 %v4244_v59, %v3635_v44 }
 0x441   :  { %v3637_v31 = vpop.f32.mrf.mxu1  ;;  %v4246_v7 = vpop.f32.mrf.mxu0 }
 0x442   :  { %17543 = vst [vmem:[#allocation29_spill] sm:$0xff] %v14108_v18  ;;  %v10636_v31 = vld [vmem:[%s17174_s5 + $0x748] ss:$16 sps:$4 sm:$0xff]  }
 0x443   :  { %v3640_v9 = vpop.f32.mrf.mxu1  ;;  %3831 = vmatmul.mubr.bf16.gmra.mxu1 %v10627_v34  ;;  %v4249_v42 = vpop.f32.mrf.mxu0  ;;  %4440 = vmatmul.mubr.bf16.gmra.mxu0 %v10630_v19  ;;  %v10641_v34 = vld [vmem:[%s17174_s5 + $0x764] ss:$16 sps:$4 sm:$0xff]   ;;  %v10644_v19 = vld [vmem:[%s17174_s5 + $0x76c] ss:$16 sps:$4 sm:$0xff]  }
 0x444   :  { %v14116_v48 = vadd.f32 %v4249_v42, %v3640_v9  ;;  %3838 = vmatprep.mubr.bf16.mxu1 %v10635_v27  ;;  %4447 = vmatprep.mubr.bf16.mxu0 %v10638_v0 }
 0x445   :  { %v3642_v59 = vpop.f32.mrf.mxu1  ;;  %v4251_v30 = vpop.f32.mrf.mxu0 }
 0x446   :  { %17544 = vst [vmem:[#allocation30_spill] sm:$0xff] %v14116_v48  ;;  %v10639_v48 = vld [vmem:[%s17174_s5 + $0x760] ss:$16 sps:$4 sm:$0xff]  }
 0x447   :  { %v3643_v44 = vpop.f32.mrf.mxu1  ;;  %v4252_v18 = vpop.f32.mrf.mxu0 }
 0x448   :  { %v14124_v7 = vadd.f32 %v4252_v18, %v3643_v44 }
 0x449   :  { %v3645_v27 = vpop.f32.mrf.mxu1  ;;  %v4254_v0 = vpop.f32.mrf.mxu0 }
 0x44a   :  { %17545 = vst [vmem:[#allocation12_spill] sm:$0xff] %v14124_v7  ;;  %v10642_v27 = vld [vmem:[%s17174_s5 + $0x768] ss:$16 sps:$4 sm:$0xff]  }
 0x44b   :  { %v3648_v9 = vpop.f32.mrf.mxu1  ;;  %3839 = vmatmul.mubr.bf16.gmra.mxu1 %v10633_v53  ;;  %v4257_v42 = vpop.f32.mrf.mxu0  ;;  %4448 = vmatmul.mubr.bf16.gmra.mxu0 %v10636_v31  ;;  %v10647_v53 = vld [vmem:[%s17174_s5 + $0x784] ss:$16 sps:$4 sm:$0xff]   ;;  %v10650_v31 = vld [vmem:[%s17174_s5 + $0x78c] ss:$16 sps:$4 sm:$0xff]  }
 0x44c   :  { %v14132_v59 = vadd.f32 %v4257_v42, %v3648_v9  ;;  %3846 = vmatprep.mubr.bf16.mxu1 %v10641_v34  ;;  %4455 = vmatprep.mubr.bf16.mxu0 %v10644_v19 }
 0x44d   :  { %v3650_v18 = vpop.f32.mrf.mxu1  ;;  %v4259_v30 = vpop.f32.mrf.mxu0 }
 0x44e   :  { %17546 = vst [vmem:[#allocation13_spill] sm:$0xff] %v14132_v59  ;;  %v10645_v59 = vld [vmem:[%s17174_s5 + $0x780] ss:$16 sps:$4 sm:$0xff]  }
 0x44f   :  { %v3651_v44 = vpop.f32.mrf.mxu1  ;;  %v4260_v7 = vpop.f32.mrf.mxu0 }
 0x450   :  { %v14140_v0 = vadd.f32 %v4260_v7, %v3651_v44 }
 0x451   :  { %v3653_v34 = vpop.f32.mrf.mxu1  ;;  %v4262_v19 = vpop.f32.mrf.mxu0 }
 0x452   :  { %17547 = vst [vmem:[#allocation19_spill] sm:$0xff] %v14140_v0  ;;  %v10648_v34 = vld [vmem:[%s17174_s5 + $0x788] ss:$16 sps:$4 sm:$0xff]  }
 0x453   :  { %v3656_v9 = vpop.f32.mrf.mxu1  ;;  %3847 = vmatmul.mubr.bf16.gmra.mxu1 %v10639_v48  ;;  %v4265_v42 = vpop.f32.mrf.mxu0  ;;  %4456 = vmatmul.mubr.bf16.gmra.mxu0 %v10642_v27  ;;  %v10653_v48 = vld [vmem:[%s17174_s5 + $0x7a4] ss:$16 sps:$4 sm:$0xff]   ;;  %v10656_v27 = vld [vmem:[%s17174_s5 + $0x7ac] ss:$16 sps:$4 sm:$0xff]  }
 0x454   :  { %v14148_v18 = vadd.f32 %v4265_v42, %v3656_v9  ;;  %3854 = vmatprep.mubr.bf16.mxu1 %v10647_v53  ;;  %4463 = vmatprep.mubr.bf16.mxu0 %v10650_v31 }
 0x455   :  { %v3658_v7 = vpop.f32.mrf.mxu1  ;;  %v4267_v30 = vpop.f32.mrf.mxu0 }
 0x456   :  { %17548 = vst [vmem:[#allocation20_spill] sm:$0xff] %v14148_v18  ;;  %v10651_v18 = vld [vmem:[%s17174_s5 + $0x7a0] ss:$16 sps:$4 sm:$0xff]  }
 0x457   :  { %v3659_v44 = vpop.f32.mrf.mxu1  ;;  %v4268_v0 = vpop.f32.mrf.mxu0 }
 0x458   :  { %v14156_v19 = vadd.f32 %v4268_v0, %v3659_v44 }
 0x459   :  { %v3661_v53 = vpop.f32.mrf.mxu1  ;;  %v4270_v31 = vpop.f32.mrf.mxu0 }
 0x45a   :  { %17549 = vst [vmem:[#allocation11_spill] sm:$0xff] %v14156_v19  ;;  %v10654_v53 = vld [vmem:[%s17174_s5 + $0x7a8] ss:$16 sps:$4 sm:$0xff]  }
 0x45b   :  { %v3664_v9 = vpop.f32.mrf.mxu1  ;;  %3855 = vmatmul.mubr.bf16.gmra.mxu1 %v10645_v59  ;;  %v4273_v42 = vpop.f32.mrf.mxu0  ;;  %4464 = vmatmul.mubr.bf16.gmra.mxu0 %v10648_v34  ;;  %v10659_v59 = vld [vmem:[%s17174_s5 + $0x7c4] ss:$16 sps:$4 sm:$0xff]   ;;  %v10662_v34 = vld [vmem:[%s17174_s5 + $0x7cc] ss:$16 sps:$4 sm:$0xff]  }
 0x45c   :  { %v14164_v7 = vadd.f32 %v4273_v42, %v3664_v9  ;;  %3862 = vmatprep.mubr.bf16.mxu1 %v10653_v48  ;;  %4471 = vmatprep.mubr.bf16.mxu0 %v10656_v27 }
 0x45d   :  { %v3666_v0 = vpop.f32.mrf.mxu1  ;;  %v4275_v30 = vpop.f32.mrf.mxu0 }
 0x45e   :  { %17550 = vst [vmem:[#allocation25_spill] sm:$0xff] %v14164_v7  ;;  %v10657_v7 = vld [vmem:[%s17174_s5 + $0x7c0] ss:$16 sps:$4 sm:$0xff]  }
 0x45f   :  { %v3667_v44 = vpop.f32.mrf.mxu1  ;;  %v4276_v19 = vpop.f32.mrf.mxu0 }
 0x460   :  { %v14172_v31 = vadd.f32 %v4276_v19, %v3667_v44 }
 0x461   :  { %v3669_v48 = vpop.f32.mrf.mxu1  ;;  %v4278_v27 = vpop.f32.mrf.mxu0 }
 0x462   :  { %17551 = vst [vmem:[#allocation18_spill] sm:$0xff] %v14172_v31  ;;  %v10660_v48 = vld [vmem:[%s17174_s5 + $0x7c8] ss:$16 sps:$4 sm:$0xff]  }
 0x463   :  { %v3672_v9 = vpop.f32.mrf.mxu1  ;;  %3863 = vmatmul.mubr.bf16.gmra.mxu1 %v10651_v18  ;;  %v4281_v42 = vpop.f32.mrf.mxu0  ;;  %4472 = vmatmul.mubr.bf16.gmra.mxu0 %v10654_v53  ;;  %v10665_v18 = vld [vmem:[%s17174_s5 + $0x7e4] ss:$16 sps:$4 sm:$0xff]   ;;  %v10668_v53 = vld [vmem:[%s17174_s5 + $0x7ec] ss:$16 sps:$4 sm:$0xff]  }
 0x464   :  { %v14180_v0 = vadd.f32 %v4281_v42, %v3672_v9  ;;  %3870 = vmatprep.mubr.bf16.mxu1 %v10659_v59  ;;  %4479 = vmatprep.mubr.bf16.mxu0 %v10662_v34 }
 0x465   :  { %v3674_v19 = vpop.f32.mrf.mxu1  ;;  %v4283_v30 = vpop.f32.mrf.mxu0 }
 0x466   :  { %17552 = vst [vmem:[#allocation9_spill] sm:$0xff] %v14180_v0  ;;  %v10663_v0 = vld [vmem:[%s17174_s5 + $0x7e0] ss:$16 sps:$4 sm:$0xff]  }
 0x467   :  { %v3675_v44 = vpop.f32.mrf.mxu1  ;;  %v4284_v31 = vpop.f32.mrf.mxu0 }
 0x468   :  { %v14188_v27 = vadd.f32 %v4284_v31, %v3675_v44 }
 0x469   :  { %v3677_v59 = vpop.f32.mrf.mxu1  ;;  %v4286_v34 = vpop.f32.mrf.mxu0 }
 0x46a   :  { %17553 = vst [vmem:[#allocation10_spill] sm:$0xff] %v14188_v27  ;;  %v10666_v59 = vld [vmem:[%s17174_s5 + $0x7e8] ss:$16 sps:$4 sm:$0xff]  }
 0x46b   :  { %v3680_v9 = vpop.f32.mrf.mxu1  ;;  %3871 = vmatmul.mubr.bf16.gmra.mxu1 %v10657_v7  ;;  %v4289_v42 = vpop.f32.mrf.mxu0  ;;  %4480 = vmatmul.mubr.bf16.gmra.mxu0 %v10660_v48  ;;  %v10671_v7 = vld [vmem:[%s17174_s5 + $0x804] ss:$16 sps:$4 sm:$0xff]   ;;  %v10674_v48 = vld [vmem:[%s17174_s5 + $0x80c] ss:$16 sps:$4 sm:$0xff]  }
 0x46c   :  { %v14196_v19 = vadd.f32 %v4289_v42, %v3680_v9  ;;  %3878 = vmatprep.mubr.bf16.mxu1 %v10665_v18  ;;  %4487 = vmatprep.mubr.bf16.mxu0 %v10668_v53 }
 0x46d   :  { %v3682_v31 = vpop.f32.mrf.mxu1  ;;  %v4291_v30 = vpop.f32.mrf.mxu0 }
 0x46e   :  { %17554 = vst [vmem:[#allocation24_spill] sm:$0xff] %v14196_v19  ;;  %v10669_v19 = vld [vmem:[%s17174_s5 + $0x800] ss:$16 sps:$4 sm:$0xff]  }
 0x46f   :  { %v3683_v44 = vpop.f32.mrf.mxu1  ;;  %v4292_v27 = vpop.f32.mrf.mxu0 }
 0x470   :  { %v14204_v34 = vadd.f32 %v4292_v27, %v3683_v44 }
 0x471   :  { %v3685_v18 = vpop.f32.mrf.mxu1  ;;  %v4294_v53 = vpop.f32.mrf.mxu0 }
 0x472   :  { %17555 = vst [vmem:[#allocation17_spill] sm:$0xff] %v14204_v34  ;;  %v10672_v18 = vld [vmem:[%s17174_s5 + $0x808] ss:$16 sps:$4 sm:$0xff]  }
 0x473   :  { %v3688_v9 = vpop.f32.mrf.mxu1  ;;  %3879 = vmatmul.mubr.bf16.gmra.mxu1 %v10663_v0  ;;  %v4297_v42 = vpop.f32.mrf.mxu0  ;;  %4488 = vmatmul.mubr.bf16.gmra.mxu0 %v10666_v59  ;;  %v10677_v0 = vld [vmem:[%s17174_s5 + $0x824] ss:$16 sps:$4 sm:$0xff]   ;;  %v10680_v59 = vld [vmem:[%s17174_s5 + $0x82c] ss:$16 sps:$4 sm:$0xff]  }
 0x474   :  { %v14212_v31 = vadd.f32 %v4297_v42, %v3688_v9  ;;  %3886 = vmatprep.mubr.bf16.mxu1 %v10671_v7  ;;  %4495 = vmatprep.mubr.bf16.mxu0 %v10674_v48 }
 0x475   :  { %v3690_v27 = vpop.f32.mrf.mxu1  ;;  %v4299_v30 = vpop.f32.mrf.mxu0 }
 0x476   :  { %17556 = vst [vmem:[#allocation35_spill] sm:$0xff] %v14212_v31  ;;  %v10675_v31 = vld [vmem:[%s17174_s5 + $0x820] ss:$16 sps:$4 sm:$0xff]  }
 0x477   :  { %v3691_v44 = vpop.f32.mrf.mxu1  ;;  %v4300_v34 = vpop.f32.mrf.mxu0 }
 0x478   :  { %v14220_v53 = vadd.f32 %v4300_v34, %v3691_v44 }
 0x479   :  { %v3693_v7 = vpop.f32.mrf.mxu1  ;;  %v4302_v48 = vpop.f32.mrf.mxu0 }
 0x47a   :  { %17557 = vst [vmem:[#allocation22_spill] sm:$0xff] %v14220_v53  ;;  %v10678_v7 = vld [vmem:[%s17174_s5 + $0x828] ss:$16 sps:$4 sm:$0xff]  }
 0x47b   :  { %v3696_v9 = vpop.f32.mrf.mxu1  ;;  %3887 = vmatmul.mubr.bf16.gmra.mxu1 %v10669_v19  ;;  %v4305_v42 = vpop.f32.mrf.mxu0  ;;  %4496 = vmatmul.mubr.bf16.gmra.mxu0 %v10672_v18  ;;  %v10683_v19 = vld [vmem:[%s17174_s5 + $0x844] ss:$16 sps:$4 sm:$0xff]   ;;  %v10686_v18 = vld [vmem:[%s17174_s5 + $0x84c] ss:$16 sps:$4 sm:$0xff]  }
 0x47c   :  { %v14228_v27 = vadd.f32 %v4305_v42, %v3696_v9  ;;  %3894 = vmatprep.mubr.bf16.mxu1 %v10677_v0  ;;  %4503 = vmatprep.mubr.bf16.mxu0 %v10680_v59 }
 0x47d   :  { %v3698_v34 = vpop.f32.mrf.mxu1  ;;  %v4307_v30 = vpop.f32.mrf.mxu0 }
 0x47e   :  { %17558 = vst [vmem:[#allocation26_spill] sm:$0xff] %v14228_v27  ;;  %v10681_v27 = vld [vmem:[%s17174_s5 + $0x840] ss:$16 sps:$4 sm:$0xff]  }
 0x47f   :  { %v3699_v44 = vpop.f32.mrf.mxu1  ;;  %v4308_v53 = vpop.f32.mrf.mxu0 }
 0x480   :  { %v14236_v48 = vadd.f32 %v4308_v53, %v3699_v44 }
 0x481   :  { %v3701_v0 = vpop.f32.mrf.mxu1  ;;  %v4310_v59 = vpop.f32.mrf.mxu0 }
 0x482   :  { %17559 = vst [vmem:[#allocation8_spill] sm:$0xff] %v14236_v48  ;;  %v10684_v0 = vld [vmem:[%s17174_s5 + $0x848] ss:$16 sps:$4 sm:$0xff]  }
 0x483   :  { %v3704_v9 = vpop.f32.mrf.mxu1  ;;  %3895 = vmatmul.mubr.bf16.gmra.mxu1 %v10675_v31  ;;  %v4313_v42 = vpop.f32.mrf.mxu0  ;;  %4504 = vmatmul.mubr.bf16.gmra.mxu0 %v10678_v7  ;;  %v10689_v31 = vld [vmem:[%s17174_s5 + $0x864] ss:$16 sps:$4 sm:$0xff]   ;;  %v10692_v7 = vld [vmem:[%s17174_s5 + $0x86c] ss:$16 sps:$4 sm:$0xff]  }
 0x484   :  { %v14244_v34 = vadd.f32 %v4313_v42, %v3704_v9  ;;  %3902 = vmatprep.mubr.bf16.mxu1 %v10683_v19  ;;  %4511 = vmatprep.mubr.bf16.mxu0 %v10686_v18 }
 0x485   :  { %v3706_v53 = vpop.f32.mrf.mxu1  ;;  %v4315_v30 = vpop.f32.mrf.mxu0 }
 0x486   :  { %17560 = vst [vmem:[#allocation37_spill] sm:$0xff] %v14244_v34  ;;  %v10687_v34 = vld [vmem:[%s17174_s5 + $0x860] ss:$16 sps:$4 sm:$0xff]  }
 0x487   :  { %v3707_v44 = vpop.f32.mrf.mxu1  ;;  %v4316_v48 = vpop.f32.mrf.mxu0 }
 0x488   :  { %v14252_v59 = vadd.f32 %v4316_v48, %v3707_v44 }
 0x489   :  { %v3709_v19 = vpop.f32.mrf.mxu1  ;;  %v4318_v18 = vpop.f32.mrf.mxu0 }
 0x48a   :  { %17561 = vst [vmem:[#allocation38_spill] sm:$0xff] %v14252_v59  ;;  %v10690_v19 = vld [vmem:[%s17174_s5 + $0x868] ss:$16 sps:$4 sm:$0xff]  }
 0x48b   :  { %v3712_v9 = vpop.f32.mrf.mxu1  ;;  %3903 = vmatmul.mubr.bf16.gmra.mxu1 %v10681_v27  ;;  %v4321_v42 = vpop.f32.mrf.mxu0  ;;  %4512 = vmatmul.mubr.bf16.gmra.mxu0 %v10684_v0  ;;  %v10695_v27 = vld [vmem:[%s17174_s5 + $0x884] ss:$16 sps:$4 sm:$0xff]   ;;  %v10698_v0 = vld [vmem:[%s17174_s5 + $0x88c] ss:$16 sps:$4 sm:$0xff]  }
 0x48c   :  { %v14260_v53 = vadd.f32 %v4321_v42, %v3712_v9  ;;  %3910 = vmatprep.mubr.bf16.mxu1 %v10689_v31  ;;  %4519 = vmatprep.mubr.bf16.mxu0 %v10692_v7 }
 0x48d   :  { %v3714_v48 = vpop.f32.mrf.mxu1  ;;  %v4323_v30 = vpop.f32.mrf.mxu0 }
 0x48e   :  { %17562 = vst [vmem:[#allocation39_spill] sm:$0xff] %v14260_v53  ;;  %v10693_v53 = vld [vmem:[%s17174_s5 + $0x880] ss:$16 sps:$4 sm:$0xff]  }
 0x48f   :  { %v3715_v44 = vpop.f32.mrf.mxu1  ;;  %v4324_v59 = vpop.f32.mrf.mxu0 }
 0x490   :  { %v14268_v18 = vadd.f32 %v4324_v59, %v3715_v44 }
 0x491   :  { %v3717_v31 = vpop.f32.mrf.mxu1  ;;  %v4326_v7 = vpop.f32.mrf.mxu0 }
 0x492   :  { %17563 = vst [vmem:[#allocation40_spill] sm:$0xff] %v14268_v18  ;;  %v10696_v31 = vld [vmem:[%s17174_s5 + $0x888] ss:$16 sps:$4 sm:$0xff]  }
 0x493   :  { %v3720_v9 = vpop.f32.mrf.mxu1  ;;  %3911 = vmatmul.mubr.bf16.gmra.mxu1 %v10687_v34  ;;  %v4329_v42 = vpop.f32.mrf.mxu0  ;;  %4520 = vmatmul.mubr.bf16.gmra.mxu0 %v10690_v19  ;;  %v10701_v34 = vld [vmem:[%s17174_s5 + $0x8a4] ss:$16 sps:$4 sm:$0xff]   ;;  %v10704_v19 = vld [vmem:[%s17174_s5 + $0x8ac] ss:$16 sps:$4 sm:$0xff]  }
 0x494   :  { %v14276_v48 = vadd.f32 %v4329_v42, %v3720_v9  ;;  %3918 = vmatprep.mubr.bf16.mxu1 %v10695_v27  ;;  %4527 = vmatprep.mubr.bf16.mxu0 %v10698_v0 }
 0x495   :  { %v3722_v59 = vpop.f32.mrf.mxu1  ;;  %v4331_v30 = vpop.f32.mrf.mxu0 }
 0x496   :  { %17564 = vst [vmem:[#allocation41_spill] sm:$0xff] %v14276_v48  ;;  %v10699_v48 = vld [vmem:[%s17174_s5 + $0x8a0] ss:$16 sps:$4 sm:$0xff]  }
 0x497   :  { %v3723_v44 = vpop.f32.mrf.mxu1  ;;  %v4332_v18 = vpop.f32.mrf.mxu0 }
 0x498   :  { %v14284_v7 = vadd.f32 %v4332_v18, %v3723_v44 }
 0x499   :  { %v3725_v27 = vpop.f32.mrf.mxu1  ;;  %v4334_v0 = vpop.f32.mrf.mxu0 }
 0x49a   :  { %17565 = vst [vmem:[#allocation42_spill] sm:$0xff] %v14284_v7  ;;  %v10702_v27 = vld [vmem:[%s17174_s5 + $0x8a8] ss:$16 sps:$4 sm:$0xff]  }
 0x49b   :  { %v3728_v9 = vpop.f32.mrf.mxu1  ;;  %3919 = vmatmul.mubr.bf16.gmra.mxu1 %v10693_v53  ;;  %v4337_v42 = vpop.f32.mrf.mxu0  ;;  %4528 = vmatmul.mubr.bf16.gmra.mxu0 %v10696_v31  ;;  %v10707_v53 = vld [vmem:[%s17174_s5 + $0x8c4] ss:$16 sps:$4 sm:$0xff]   ;;  %v10710_v31 = vld [vmem:[%s17174_s5 + $0x8cc] ss:$16 sps:$4 sm:$0xff]  }
 0x49c   :  { %v14292_v59 = vadd.f32 %v4337_v42, %v3728_v9  ;;  %3926 = vmatprep.mubr.bf16.mxu1 %v10701_v34  ;;  %4535 = vmatprep.mubr.bf16.mxu0 %v10704_v19 }
 0x49d   :  { %v3730_v18 = vpop.f32.mrf.mxu1  ;;  %v4339_v30 = vpop.f32.mrf.mxu0 }
 0x49e   :  { %17566 = vst [vmem:[#allocation43_spill] sm:$0xff] %v14292_v59  ;;  %v10705_v59 = vld [vmem:[%s17174_s5 + $0x8c0] ss:$16 sps:$4 sm:$0xff]  }
 0x49f   :  { %v3731_v44 = vpop.f32.mrf.mxu1  ;;  %v4340_v7 = vpop.f32.mrf.mxu0 }
 0x4a0   :  { %v14300_v0 = vadd.f32 %v4340_v7, %v3731_v44 }
 0x4a1   :  { %v3733_v34 = vpop.f32.mrf.mxu1  ;;  %v4342_v19 = vpop.f32.mrf.mxu0 }
 0x4a2   :  { %17567 = vst [vmem:[#allocation44_spill] sm:$0xff] %v14300_v0  ;;  %v10708_v34 = vld [vmem:[%s17174_s5 + $0x8c8] ss:$16 sps:$4 sm:$0xff]  }
 0x4a3   :  { %v3736_v9 = vpop.f32.mrf.mxu1  ;;  %3927 = vmatmul.mubr.bf16.gmra.mxu1 %v10699_v48  ;;  %v4345_v42 = vpop.f32.mrf.mxu0  ;;  %4536 = vmatmul.mubr.bf16.gmra.mxu0 %v10702_v27  ;;  %v10713_v48 = vld [vmem:[%s17174_s5 + $0x8e4] ss:$16 sps:$4 sm:$0xff]   ;;  %v10716_v27 = vld [vmem:[%s17174_s5 + $0x8ec] ss:$16 sps:$4 sm:$0xff]  }
 0x4a4   :  { %v14308_v18 = vadd.f32 %v4345_v42, %v3736_v9  ;;  %3934 = vmatprep.mubr.bf16.mxu1 %v10707_v53  ;;  %4543 = vmatprep.mubr.bf16.mxu0 %v10710_v31 }
 0x4a5   :  { %v3738_v7 = vpop.f32.mrf.mxu1  ;;  %v4347_v30 = vpop.f32.mrf.mxu0 }
 0x4a6   :  { %17568 = vst [vmem:[#allocation45_spill] sm:$0xff] %v14308_v18  ;;  %v10711_v18 = vld [vmem:[%s17174_s5 + $0x8e0] ss:$16 sps:$4 sm:$0xff]  }
 0x4a7   :  { %v3739_v44 = vpop.f32.mrf.mxu1  ;;  %v4348_v0 = vpop.f32.mrf.mxu0 }
 0x4a8   :  { %v14316_v19 = vadd.f32 %v4348_v0, %v3739_v44 }
 0x4a9   :  { %v3741_v53 = vpop.f32.mrf.mxu1  ;;  %v4350_v31 = vpop.f32.mrf.mxu0 }
 0x4aa   :  { %17569 = vst [vmem:[#allocation46_spill] sm:$0xff] %v14316_v19  ;;  %v10714_v53 = vld [vmem:[%s17174_s5 + $0x8e8] ss:$16 sps:$4 sm:$0xff]  }
 0x4ab   :  { %v3744_v9 = vpop.f32.mrf.mxu1  ;;  %3935 = vmatmul.mubr.bf16.gmra.mxu1 %v10705_v59  ;;  %v4353_v42 = vpop.f32.mrf.mxu0  ;;  %4544 = vmatmul.mubr.bf16.gmra.mxu0 %v10708_v34 }
 0x4ac   :  { %v14324_v7 = vadd.f32 %v4353_v42, %v3744_v9  ;;  %3942 = vmatprep.mubr.bf16.mxu1 %v10713_v48  ;;  %4551 = vmatprep.mubr.bf16.mxu0 %v10716_v27  ;;  %v10747_v42 = vld [vmem:[%s17174_s5 + $0x4] ss:$16 sps:$4 sm:$0xff]  }
 0x4ad   :  { %v3746_v0 = vpop.f32.mrf.mxu1  ;;  %v4355_v30 = vpop.f32.mrf.mxu0 }
 0x4ae   :  { %17570 = vst [vmem:[#allocation47_spill] sm:$0xff] %v14324_v7  ;;  %v10748_v0 = vld [vmem:[%s17174_s5 + $0xc] ss:$16 sps:$4 sm:$0xff]  }
 0x4af   :  { %v3747_v44 = vpop.f32.mrf.mxu1  ;;  %v4356_v19 = vpop.f32.mrf.mxu0 }
 0x4b0   :  { %v14332_v31 = vadd.f32 %v4356_v19, %v3747_v44 }
 0x4b1   :  { %v3749_v59 = vpop.f32.mrf.mxu1  ;;  %v4358_v34 = vpop.f32.mrf.mxu0 }
 0x4b2   :  { %17571 = vst [vmem:[#allocation48_spill] sm:$0xff] %v14332_v31 }
 0x4b3   :  { %v3752_v9 = vpop.f32.mrf.mxu1  ;;  %3943 = vmatmul.mubr.bf16.gmra.mxu1 %v10711_v18  ;;  %v4361_v48 = vpop.f32.mrf.mxu0  ;;  %4552 = vmatmul.mubr.bf16.gmra.mxu0 %v10714_v53 }
 0x4b4   :  { %v14334_v27 = vadd.f32 %v4361_v48, %v3752_v9  ;;  %4592 = vmatprep.mubr.bf16.mxu1 %v10747_v42  ;;  %5201 = vmatprep.mubr.bf16.mxu0 %v10748_v0  ;;  %v10750_v42 = vld [vmem:[%s17174_s5 + $0x8] ss:$16 sps:$4 sm:$0xff]  }
 0x4b5   :  { %v3754_v19 = vpop.f32.mrf.mxu1  ;;  %v4363_v30 = vpop.f32.mrf.mxu0 }
 0x4b6   :  { %17572 = vst [vmem:[#allocation49_spill] sm:$0xff] %v14334_v27  ;;  %v10749_v27 = vld [vmem:[%s17174_s5] ss:$16 sps:$4 sm:$0xff]   ;;  %v10751_v19 = vld [vmem:[%s17174_s5 + $0x24] ss:$16 sps:$4 sm:$0xff]  }
 0x4b7   :  { %v3755_v44 = vpop.f32.mrf.mxu1  ;;  %v4364_v59 = vpop.f32.mrf.mxu0  ;;  %v10752_v30 = vld [vmem:[%s17174_s5 + $0x2c] ss:$16 sps:$4 sm:$0xff]  }
 0x4b8   :  { %v14342_v34 = vadd.f32 %v4364_v59, %v3755_v44 }
 0x4b9   :  { %v3757_v18 = vpop.f32.mrf.mxu1  ;;  %v4366_v53 = vpop.f32.mrf.mxu0 }
 0x4ba   :  { %17573 = vst [vmem:[#allocation50_spill] sm:$0xff] %v14342_v34 }
 0x4bb   :  { %v3760_v9 = vpop.f32.mrf.mxu1  ;;  %v4369_v48 = vpop.f32.mrf.mxu0  ;;  %4593 = vmatmul.mubr.bf16.vlgmr.msra.gmra.mxu1 %v10749_v27  ;;  %5202 = vmatmul.mubr.bf16.vlgmr.msra.gmra.mxu0 %v10750_v42 }
 0x4bc   :  { %v14350_v0 = vadd.f32 %v4369_v48, %v3760_v9  ;;  %4600 = vmatprep.mubr.bf16.mxu1 %v10751_v19  ;;  %5209 = vmatprep.mubr.bf16.mxu0 %v10752_v30  ;;  %v10754_v19 = vld [vmem:[%s17174_s5 + $0x28] ss:$16 sps:$4 sm:$0xff]  }
 0x4bd   :  { %v3762_v44 = vpop.f32.mrf.mxu1  ;;  %v4371_v59 = vpop.f32.mrf.mxu0 }
 0x4be   :  { %17574 = vst [vmem:[#allocation51_spill] sm:$0xff] %v14350_v0  ;;  %v10753_v0 = vld [vmem:[%s17174_s5 + $0x20] ss:$16 sps:$4 sm:$0xff]   ;;  %v10755_v44 = vld [vmem:[%s17174_s5 + $0x44] ss:$16 sps:$4 sm:$0xff]  }
 0x4bf   :  { %v3763_v27 = vpop.f32.mrf.mxu1  ;;  %v4372_v18 = vpop.f32.mrf.mxu0 }
 0x4c0   :  { %v14358_v53 = vadd.f32 %v4372_v18, %v3763_v27 }
 0x4c1   :  { %v3765_v34 = vpop.f32.mrf.mxu1  ;;  %v4374_v42 = vpop.f32.mrf.mxu0 }
 0x4c2   :  { %17575 = vst [vmem:[#allocation52_spill] sm:$0xff] %v14358_v53  ;;  %v10756_v34 = vld [vmem:[%s17174_s5 + $0x4c] ss:$16 sps:$4 sm:$0xff]  }
 0x4c3   :  { %v3768_v9 = vpop.f32.mrf.mxu1  ;;  %v4377_v48 = vpop.f32.mrf.mxu0  ;;  %4601 = vmatmul.mubr.bf16.gmra.mxu1 %v10753_v0  ;;  %5210 = vmatmul.mubr.bf16.gmra.mxu0 %v10754_v19 }
 0x4c4   :  { %v14366_v30 = vadd.f32 %v4377_v48, %v3768_v9  ;;  %4608 = vmatprep.mubr.bf16.mxu1 %v10755_v44  ;;  %5217 = vmatprep.mubr.bf16.mxu0 %v10756_v34  ;;  %v10758_v44 = vld [vmem:[%s17174_s5 + $0x48] ss:$16 sps:$4 sm:$0xff]  }
 0x4c5   :  { %v3770_v59 = vpop.f32.mrf.mxu1  ;;  %v4379_v27 = vpop.f32.mrf.mxu0 }
 0x4c6   :  { %17576 = vst [vmem:[#allocation53_spill] sm:$0xff] %v14366_v30  ;;  %v10757_v30 = vld [vmem:[%s17174_s5 + $0x40] ss:$16 sps:$4 sm:$0xff]   ;;  %v10759_v59 = vld [vmem:[%s17174_s5 + $0x64] ss:$16 sps:$4 sm:$0xff]  }
 0x4c7   :  { %v3771_v0 = vpop.f32.mrf.mxu1  ;;  %v4380_v18 = vpop.f32.mrf.mxu0 }
 0x4c8   :  { %v14374_v42 = vadd.f32 %v4380_v18, %v3771_v0 }
 0x4c9   :  { %v3773_v53 = vpop.f32.mrf.mxu1  ;;  %v4382_v19 = vpop.f32.mrf.mxu0 }
 0x4ca   :  { %17577 = vst [vmem:[#allocation54_spill] sm:$0xff] %v14374_v42  ;;  %v10760_v53 = vld [vmem:[%s17174_s5 + $0x6c] ss:$16 sps:$4 sm:$0xff]  }
 0x4cb   :  { %v3776_v9 = vpop.f32.mrf.mxu1  ;;  %v4385_v48 = vpop.f32.mrf.mxu0  ;;  %4609 = vmatmul.mubr.bf16.gmra.mxu1 %v10757_v30  ;;  %5218 = vmatmul.mubr.bf16.gmra.mxu0 %v10758_v44 }
 0x4cc   :  { %v14382_v34 = vadd.f32 %v4385_v48, %v3776_v9  ;;  %4616 = vmatprep.mubr.bf16.mxu1 %v10759_v59  ;;  %5225 = vmatprep.mubr.bf16.mxu0 %v10760_v53  ;;  %v10762_v59 = vld [vmem:[%s17174_s5 + $0x68] ss:$16 sps:$4 sm:$0xff]  }
 0x4cd   :  { %v3778_v27 = vpop.f32.mrf.mxu1  ;;  %v4387_v0 = vpop.f32.mrf.mxu0 }
 0x4ce   :  { %17578 = vst [vmem:[#allocation55_spill] sm:$0xff] %v14382_v34  ;;  %v10761_v34 = vld [vmem:[%s17174_s5 + $0x60] ss:$16 sps:$4 sm:$0xff]   ;;  %v10763_v27 = vld [vmem:[%s17174_s5 + $0x84] ss:$16 sps:$4 sm:$0xff]  }
 0x4cf   :  { %v3779_v30 = vpop.f32.mrf.mxu1  ;;  %v4388_v18 = vpop.f32.mrf.mxu0 }
 0x4d0   :  { %v14390_v19 = vadd.f32 %v4388_v18, %v3779_v30 }
 0x4d1   :  { %v3781_v42 = vpop.f32.mrf.mxu1  ;;  %v4390_v44 = vpop.f32.mrf.mxu0 }
 0x4d2   :  { %17579 = vst [vmem:[#allocation56_spill] sm:$0xff] %v14390_v19  ;;  %v10764_v42 = vld [vmem:[%s17174_s5 + $0x8c] ss:$16 sps:$4 sm:$0xff]  }
 0x4d3   :  { %v3784_v9 = vpop.f32.mrf.mxu1  ;;  %v4393_v48 = vpop.f32.mrf.mxu0  ;;  %4617 = vmatmul.mubr.bf16.gmra.mxu1 %v10761_v34  ;;  %5226 = vmatmul.mubr.bf16.gmra.mxu0 %v10762_v59 }
 0x4d4   :  { %v14398_v53 = vadd.f32 %v4393_v48, %v3784_v9  ;;  %4624 = vmatprep.mubr.bf16.mxu1 %v10763_v27  ;;  %5233 = vmatprep.mubr.bf16.mxu0 %v10764_v42  ;;  %v10766_v27 = vld [vmem:[%s17174_s5 + $0x88] ss:$16 sps:$4 sm:$0xff]  }
 0x4d5   :  { %v3786_v0 = vpop.f32.mrf.mxu1  ;;  %v4395_v30 = vpop.f32.mrf.mxu0 }
 0x4d6   :  { %17580 = vst [vmem:[#allocation57_spill] sm:$0xff] %v14398_v53  ;;  %v10765_v53 = vld [vmem:[%s17174_s5 + $0x80] ss:$16 sps:$4 sm:$0xff]   ;;  %v10767_v0 = vld [vmem:[%s17174_s5 + $0xa4] ss:$16 sps:$4 sm:$0xff]  }
 0x4d7   :  { %v3787_v34 = vpop.f32.mrf.mxu1  ;;  %v4396_v18 = vpop.f32.mrf.mxu0 }
 0x4d8   :  { %v14406_v44 = vadd.f32 %v4396_v18, %v3787_v34 }
 0x4d9   :  { %v3789_v19 = vpop.f32.mrf.mxu1  ;;  %v4398_v59 = vpop.f32.mrf.mxu0 }
 0x4da   :  { %17581 = vst [vmem:[#allocation58_spill] sm:$0xff] %v14406_v44  ;;  %v10768_v19 = vld [vmem:[%s17174_s5 + $0xac] ss:$16 sps:$4 sm:$0xff]  }
 0x4db   :  { %v3792_v9 = vpop.f32.mrf.mxu1  ;;  %v4401_v48 = vpop.f32.mrf.mxu0  ;;  %4625 = vmatmul.mubr.bf16.gmra.mxu1 %v10765_v53  ;;  %5234 = vmatmul.mubr.bf16.gmra.mxu0 %v10766_v27 }
 0x4dc   :  { %v14414_v42 = vadd.f32 %v4401_v48, %v3792_v9  ;;  %4632 = vmatprep.mubr.bf16.mxu1 %v10767_v0  ;;  %5241 = vmatprep.mubr.bf16.mxu0 %v10768_v19  ;;  %v10770_v0 = vld [vmem:[%s17174_s5 + $0xa8] ss:$16 sps:$4 sm:$0xff]  }
 0x4dd   :  { %v3794_v30 = vpop.f32.mrf.mxu1  ;;  %v4403_v34 = vpop.f32.mrf.mxu0 }
 0x4de   :  { %17582 = vst [vmem:[#allocation59_spill] sm:$0xff] %v14414_v42  ;;  %v10769_v42 = vld [vmem:[%s17174_s5 + $0xa0] ss:$16 sps:$4 sm:$0xff]   ;;  %v10771_v30 = vld [vmem:[%s17174_s5 + $0xc4] ss:$16 sps:$4 sm:$0xff]  }
 0x4df   :  { %v3795_v53 = vpop.f32.mrf.mxu1  ;;  %v4404_v18 = vpop.f32.mrf.mxu0 }
 0x4e0   :  { %v14422_v59 = vadd.f32 %v4404_v18, %v3795_v53 }
 0x4e1   :  { %v3797_v44 = vpop.f32.mrf.mxu1  ;;  %v4406_v27 = vpop.f32.mrf.mxu0 }
 0x4e2   :  { %17583 = vst [vmem:[#allocation60_spill] sm:$0xff] %v14422_v59  ;;  %v10772_v44 = vld [vmem:[%s17174_s5 + $0xcc] ss:$16 sps:$4 sm:$0xff]  }
 0x4e3   :  { %v3800_v9 = vpop.f32.mrf.mxu1  ;;  %v4409_v48 = vpop.f32.mrf.mxu0  ;;  %4633 = vmatmul.mubr.bf16.gmra.mxu1 %v10769_v42  ;;  %5242 = vmatmul.mubr.bf16.gmra.mxu0 %v10770_v0 }
 0x4e4   :  { %v14430_v19 = vadd.f32 %v4409_v48, %v3800_v9  ;;  %4640 = vmatprep.mubr.bf16.mxu1 %v10771_v30  ;;  %5249 = vmatprep.mubr.bf16.mxu0 %v10772_v44  ;;  %v10774_v30 = vld [vmem:[%s17174_s5 + $0xc8] ss:$16 sps:$4 sm:$0xff]  }
 0x4e5   :  { %v3802_v34 = vpop.f32.mrf.mxu1  ;;  %v4411_v53 = vpop.f32.mrf.mxu0 }
 0x4e6   :  { %17584 = vst [vmem:[#allocation61_spill] sm:$0xff] %v14430_v19  ;;  %v10773_v19 = vld [vmem:[%s17174_s5 + $0xc0] ss:$16 sps:$4 sm:$0xff]   ;;  %v10775_v34 = vld [vmem:[%s17174_s5 + $0xe4] ss:$16 sps:$4 sm:$0xff]  }
 0x4e7   :  { %v3803_v42 = vpop.f32.mrf.mxu1  ;;  %v4412_v18 = vpop.f32.mrf.mxu0 }
 0x4e8   :  { %v14438_v27 = vadd.f32 %v4412_v18, %v3803_v42 }
 0x4e9   :  { %v3805_v59 = vpop.f32.mrf.mxu1  ;;  %v4414_v0 = vpop.f32.mrf.mxu0 }
 0x4ea   :  { %17585 = vst [vmem:[#allocation62_spill] sm:$0xff] %v14438_v27  ;;  %v10776_v59 = vld [vmem:[%s17174_s5 + $0xec] ss:$16 sps:$4 sm:$0xff]  }
 0x4eb   :  { %v3808_v9 = vpop.f32.mrf.mxu1  ;;  %v4417_v48 = vpop.f32.mrf.mxu0  ;;  %4641 = vmatmul.mubr.bf16.gmra.mxu1 %v10773_v19  ;;  %5250 = vmatmul.mubr.bf16.gmra.mxu0 %v10774_v30 }
 0x4ec   :  { %v14446_v44 = vadd.f32 %v4417_v48, %v3808_v9  ;;  %4648 = vmatprep.mubr.bf16.mxu1 %v10775_v34  ;;  %5257 = vmatprep.mubr.bf16.mxu0 %v10776_v59  ;;  %v10778_v34 = vld [vmem:[%s17174_s5 + $0xe8] ss:$16 sps:$4 sm:$0xff]  }
 0x4ed   :  { %v3810_v53 = vpop.f32.mrf.mxu1  ;;  %v4419_v42 = vpop.f32.mrf.mxu0 }
 0x4ee   :  { %17586 = vst [vmem:[#allocation63_spill] sm:$0xff] %v14446_v44  ;;  %v10777_v44 = vld [vmem:[%s17174_s5 + $0xe0] ss:$16 sps:$4 sm:$0xff]   ;;  %v10779_v53 = vld [vmem:[%s17174_s5 + $0x104] ss:$16 sps:$4 sm:$0xff]  }
 0x4ef   :  { %v3811_v19 = vpop.f32.mrf.mxu1  ;;  %v4420_v18 = vpop.f32.mrf.mxu0 }
 0x4f0   :  { %v14454_v0 = vadd.f32 %v4420_v18, %v3811_v19 }
 0x4f1   :  { %v3813_v27 = vpop.f32.mrf.mxu1  ;;  %v4422_v30 = vpop.f32.mrf.mxu0 }
 0x4f2   :  { %17587 = vst [vmem:[#allocation64_spill] sm:$0xff] %v14454_v0  ;;  %v10780_v27 = vld [vmem:[%s17174_s5 + $0x10c] ss:$16 sps:$4 sm:$0xff]  }
 0x4f3   :  { %v3816_v9 = vpop.f32.mrf.mxu1  ;;  %v4425_v48 = vpop.f32.mrf.mxu0  ;;  %4649 = vmatmul.mubr.bf16.gmra.mxu1 %v10777_v44  ;;  %5258 = vmatmul.mubr.bf16.gmra.mxu0 %v10778_v34 }
 0x4f4   :  { %v14462_v59 = vadd.f32 %v4425_v48, %v3816_v9  ;;  %4656 = vmatprep.mubr.bf16.mxu1 %v10779_v53  ;;  %5265 = vmatprep.mubr.bf16.mxu0 %v10780_v27  ;;  %v10782_v53 = vld [vmem:[%s17174_s5 + $0x108] ss:$16 sps:$4 sm:$0xff]  }
 0x4f5   :  { %v3818_v42 = vpop.f32.mrf.mxu1  ;;  %v4427_v19 = vpop.f32.mrf.mxu0 }
 0x4f6   :  { %17588 = vst [vmem:[#allocation65_spill] sm:$0xff] %v14462_v59  ;;  %v10781_v59 = vld [vmem:[%s17174_s5 + $0x100] ss:$16 sps:$4 sm:$0xff]   ;;  %v10783_v42 = vld [vmem:[%s17174_s5 + $0x124] ss:$16 sps:$4 sm:$0xff]  }
 0x4f7   :  { %v3819_v44 = vpop.f32.mrf.mxu1  ;;  %v4428_v18 = vpop.f32.mrf.mxu0 }
 0x4f8   :  { %v14470_v30 = vadd.f32 %v4428_v18, %v3819_v44 }
 0x4f9   :  { %v3821_v0 = vpop.f32.mrf.mxu1  ;;  %v4430_v34 = vpop.f32.mrf.mxu0 }
 0x4fa   :  { %17589 = vst [vmem:[#allocation66_spill] sm:$0xff] %v14470_v30  ;;  %v10784_v0 = vld [vmem:[%s17174_s5 + $0x12c] ss:$16 sps:$4 sm:$0xff]  }
 0x4fb   :  { %v3824_v9 = vpop.f32.mrf.mxu1  ;;  %v4433_v48 = vpop.f32.mrf.mxu0  ;;  %4657 = vmatmul.mubr.bf16.gmra.mxu1 %v10781_v59  ;;  %5266 = vmatmul.mubr.bf16.gmra.mxu0 %v10782_v53 }
 0x4fc   :  { %v14478_v27 = vadd.f32 %v4433_v48, %v3824_v9  ;;  %4664 = vmatprep.mubr.bf16.mxu1 %v10783_v42  ;;  %5273 = vmatprep.mubr.bf16.mxu0 %v10784_v0  ;;  %v10786_v42 = vld [vmem:[%s17174_s5 + $0x128] ss:$16 sps:$4 sm:$0xff]  }
 0x4fd   :  { %v3826_v19 = vpop.f32.mrf.mxu1  ;;  %v4435_v44 = vpop.f32.mrf.mxu0 }
 0x4fe   :  { %17590 = vst [vmem:[#allocation67_spill] sm:$0xff] %v14478_v27  ;;  %v10785_v27 = vld [vmem:[%s17174_s5 + $0x120] ss:$16 sps:$4 sm:$0xff]   ;;  %v10787_v19 = vld [vmem:[%s17174_s5 + $0x144] ss:$16 sps:$4 sm:$0xff]  }
 0x4ff   :  { %v3827_v59 = vpop.f32.mrf.mxu1  ;;  %v4436_v18 = vpop.f32.mrf.mxu0 }
 0x500   :  { %v14486_v34 = vadd.f32 %v4436_v18, %v3827_v59 }
 0x501   :  { %v3829_v30 = vpop.f32.mrf.mxu1  ;;  %v4438_v53 = vpop.f32.mrf.mxu0 }
 0x502   :  { %17591 = vst [vmem:[#allocation68_spill] sm:$0xff] %v14486_v34  ;;  %v10788_v30 = vld [vmem:[%s17174_s5 + $0x14c] ss:$16 sps:$4 sm:$0xff]  }
 0x503   :  { %v3832_v9 = vpop.f32.mrf.mxu1  ;;  %v4441_v48 = vpop.f32.mrf.mxu0  ;;  %4665 = vmatmul.mubr.bf16.gmra.mxu1 %v10785_v27  ;;  %5274 = vmatmul.mubr.bf16.gmra.mxu0 %v10786_v42 }
 0x504   :  { %v14494_v0 = vadd.f32 %v4441_v48, %v3832_v9  ;;  %4672 = vmatprep.mubr.bf16.mxu1 %v10787_v19  ;;  %5281 = vmatprep.mubr.bf16.mxu0 %v10788_v30  ;;  %v10790_v19 = vld [vmem:[%s17174_s5 + $0x148] ss:$16 sps:$4 sm:$0xff]  }
 0x505   :  { %v3834_v44 = vpop.f32.mrf.mxu1  ;;  %v4443_v59 = vpop.f32.mrf.mxu0 }
 0x506   :  { %17592 = vst [vmem:[#allocation69_spill] sm:$0xff] %v14494_v0  ;;  %v10789_v0 = vld [vmem:[%s17174_s5 + $0x140] ss:$16 sps:$4 sm:$0xff]   ;;  %v10791_v44 = vld [vmem:[%s17174_s5 + $0x164] ss:$16 sps:$4 sm:$0xff]  }
 0x507   :  { %v3835_v27 = vpop.f32.mrf.mxu1  ;;  %v4444_v18 = vpop.f32.mrf.mxu0 }
 0x508   :  { %v14502_v53 = vadd.f32 %v4444_v18, %v3835_v27 }
 0x509   :  { %v3837_v34 = vpop.f32.mrf.mxu1  ;;  %v4446_v42 = vpop.f32.mrf.mxu0 }
 0x50a   :  { %17593 = vst [vmem:[#allocation70_spill] sm:$0xff] %v14502_v53  ;;  %v10792_v34 = vld [vmem:[%s17174_s5 + $0x16c] ss:$16 sps:$4 sm:$0xff]  }
 0x50b   :  { %v3840_v9 = vpop.f32.mrf.mxu1  ;;  %v4449_v48 = vpop.f32.mrf.mxu0  ;;  %4673 = vmatmul.mubr.bf16.gmra.mxu1 %v10789_v0  ;;  %5282 = vmatmul.mubr.bf16.gmra.mxu0 %v10790_v19 }
 0x50c   :  { %v14510_v30 = vadd.f32 %v4449_v48, %v3840_v9  ;;  %4680 = vmatprep.mubr.bf16.mxu1 %v10791_v44  ;;  %5289 = vmatprep.mubr.bf16.mxu0 %v10792_v34  ;;  %v10794_v44 = vld [vmem:[%s17174_s5 + $0x168] ss:$16 sps:$4 sm:$0xff]  }
 0x50d   :  { %v3842_v59 = vpop.f32.mrf.mxu1  ;;  %v4451_v27 = vpop.f32.mrf.mxu0 }
 0x50e   :  { %17594 = vst [vmem:[#allocation71_spill] sm:$0xff] %v14510_v30  ;;  %v10793_v30 = vld [vmem:[%s17174_s5 + $0x160] ss:$16 sps:$4 sm:$0xff]   ;;  %v10795_v59 = vld [vmem:[%s17174_s5 + $0x184] ss:$16 sps:$4 sm:$0xff]  }
 0x50f   :  { %v3843_v0 = vpop.f32.mrf.mxu1  ;;  %v4452_v18 = vpop.f32.mrf.mxu0 }
 0x510   :  { %v14518_v42 = vadd.f32 %v4452_v18, %v3843_v0  ;;  %v1688_v18 = vld [vmem:[%s17175_s6 + $0x78] sm:$0xff] }
 0x511   :  { %v3845_v53 = vpop.f32.mrf.mxu1  ;;  %v4454_v19 = vpop.f32.mrf.mxu0 }
 0x512   :  { %17595 = vst [vmem:[#allocation72_spill] sm:$0xff] %v14518_v42  ;;  %v10796_v53 = vld [vmem:[%s17174_s5 + $0x18c] ss:$16 sps:$4 sm:$0xff]  }
 0x513   :  { %v3848_v9 = vpop.f32.mrf.mxu1  ;;  %v4457_v48 = vpop.f32.mrf.mxu0  ;;  %4681 = vmatmul.mubr.bf16.gmra.mxu1 %v10793_v30  ;;  %5290 = vmatmul.mubr.bf16.gmra.mxu0 %v10794_v44  ;;  %v1704_v30 = vld [vmem:[%s17175_s6 + $0xf8] sm:$0xff] }
 0x514   :  { %v14526_v34 = vadd.f32 %v4457_v48, %v3848_v9  ;;  %4688 = vmatprep.mubr.bf16.mxu1 %v10795_v59  ;;  %5297 = vmatprep.mubr.bf16.mxu0 %v10796_v53 }
 0x515   :  { %v3850_v27 = vpop.f32.mrf.mxu1  ;;  %v4459_v0 = vpop.f32.mrf.mxu0  ;;  %9142 = vmatprep.subr.mxu1 %v1704_v30  ;;  %v10799_v30 = vld [vmem:[%s17174_s5 + $0x1a4] ss:$16 sps:$4 sm:$0xff]  }
 0x516   :  { %17596 = vst [vmem:[#allocation73_spill] sm:$0xff] %v14526_v34  ;;  %9143 = vmatpush3.msra.mxu1 %v1688_v18  ;;  %v10797_v27 = vld [vmem:[%s17174_s5 + $0x180] ss:$16 sps:$4 sm:$0xff]   ;;  %v10798_v0 = vld [vmem:[%s17174_s5 + $0x188] ss:$16 sps:$4 sm:$0xff]  }
 0x517   :  { %v3851_v19 = vpop.f32.mrf.mxu1  ;;  %v4460_v9 = vpop.f32.mrf.mxu0  ;;  %v10800_v18 = vld [vmem:[%s17174_s5 + $0x1ac] ss:$16 sps:$4 sm:$0xff]  }
 0x518   :  { %v14540_v48 = vadd.f32 %v4460_v9, %v3851_v19 }
 0x519   :  { %v3853_v44 = vpop.f32.mrf.mxu1  ;;  %v4462_v59 = vpop.f32.mrf.mxu0 }
 0x51a   :  { %17597 = vst [vmem:[#allocation74_spill] sm:$0xff] %v14540_v48 }
 0x51b   :  { %v3856_v34 = vpop.f32.mrf.mxu1  ;;  %v4465_v53 = vpop.f32.mrf.mxu0  ;;  %4689 = vmatmul.mubr.bf16.gmra.mxu1 %v10797_v27  ;;  %5298 = vmatmul.mubr.bf16.gmra.mxu0 %v10798_v0 }
 0x51c   :  { %v14548_v42 = vadd.f32 %v4465_v53, %v3856_v34  ;;  %4696 = vmatprep.mubr.bf16.mxu1 %v10799_v30  ;;  %5305 = vmatprep.mubr.bf16.mxu0 %v10800_v18  ;;  %v10802_v30 = vld [vmem:[%s17174_s5 + $0x1a8] ss:$16 sps:$4 sm:$0xff]  }
 0x51d   :  { %v3858_v19 = vpop.f32.mrf.mxu1  ;;  %v4467_v9 = vpop.f32.mrf.mxu0 }
 0x51e   :  { %17598 = vst [vmem:[#allocation75_spill] sm:$0xff] %v14548_v42  ;;  %v10801_v42 = vld [vmem:[%s17174_s5 + $0x1a0] ss:$16 sps:$4 sm:$0xff]   ;;  %v10803_v19 = vld [vmem:[%s17174_s5 + $0x1c4] ss:$16 sps:$4 sm:$0xff]  }
 0x51f   :  { %v3859_v44 = vpop.f32.mrf.mxu1  ;;  %v4468_v59 = vpop.f32.mrf.mxu0 }
 0x520   :  { %v14556_v27 = vadd.f32 %v4468_v59, %v3859_v44 }
 0x521   :  { %v3861_v48 = vpop.f32.mrf.mxu1  ;;  %v4470_v0 = vpop.f32.mrf.mxu0 }
 0x522   :  { %17599 = vst [vmem:[#allocation76_spill] sm:$0xff] %v14556_v27  ;;  %v10804_v48 = vld [vmem:[%s17174_s5 + $0x1cc] ss:$16 sps:$4 sm:$0xff]  }
 0x523   :  { %v3864_v34 = vpop.f32.mrf.mxu1  ;;  %v4473_v53 = vpop.f32.mrf.mxu0  ;;  %4697 = vmatmul.mubr.bf16.gmra.mxu1 %v10801_v42  ;;  %5306 = vmatmul.mubr.bf16.gmra.mxu0 %v10802_v30 }
 0x524   :  { %v14564_v18 = vadd.f32 %v4473_v53, %v3864_v34  ;;  %4704 = vmatprep.mubr.bf16.mxu1 %v10803_v19  ;;  %5313 = vmatprep.mubr.bf16.mxu0 %v10804_v48  ;;  %v10806_v19 = vld [vmem:[%s17174_s5 + $0x1c8] ss:$16 sps:$4 sm:$0xff]  }
 0x525   :  { %v3866_v9 = vpop.f32.mrf.mxu1  ;;  %v4475_v44 = vpop.f32.mrf.mxu0 }
 0x526   :  { %17600 = vst [vmem:[#allocation77_spill] sm:$0xff] %v14564_v18  ;;  %v10805_v18 = vld [vmem:[%s17174_s5 + $0x1c0] ss:$16 sps:$4 sm:$0xff]   ;;  %v10807_v9 = vld [vmem:[%s17174_s5 + $0x1e4] ss:$16 sps:$4 sm:$0xff]  }
 0x527   :  { %v3867_v42 = vpop.f32.mrf.mxu1  ;;  %v4476_v59 = vpop.f32.mrf.mxu0 }
 0x528   :  { %v14572_v0 = vadd.f32 %v4476_v59, %v3867_v42 }
 0x529   :  { %v3869_v27 = vpop.f32.mrf.mxu1  ;;  %v4478_v30 = vpop.f32.mrf.mxu0 }
 0x52a   :  { %17601 = vst [vmem:[#allocation78_spill] sm:$0xff] %v14572_v0  ;;  %v10808_v27 = vld [vmem:[%s17174_s5 + $0x1ec] ss:$16 sps:$4 sm:$0xff]  }
 0x52b   :  { %v3872_v34 = vpop.f32.mrf.mxu1  ;;  %v4481_v53 = vpop.f32.mrf.mxu0  ;;  %4705 = vmatmul.mubr.bf16.gmra.mxu1 %v10805_v18  ;;  %5314 = vmatmul.mubr.bf16.gmra.mxu0 %v10806_v19 }
 0x52c   :  { %v14580_v48 = vadd.f32 %v4481_v53, %v3872_v34  ;;  %4712 = vmatprep.mubr.bf16.mxu1 %v10807_v9  ;;  %5321 = vmatprep.mubr.bf16.mxu0 %v10808_v27  ;;  %v10810_v9 = vld [vmem:[%s17174_s5 + $0x1e8] ss:$16 sps:$4 sm:$0xff]  }
 0x52d   :  { %v3874_v44 = vpop.f32.mrf.mxu1  ;;  %v4483_v42 = vpop.f32.mrf.mxu0 }
 0x52e   :  { %17602 = vst [vmem:[#allocation79_spill] sm:$0xff] %v14580_v48  ;;  %v10809_v48 = vld [vmem:[%s17174_s5 + $0x1e0] ss:$16 sps:$4 sm:$0xff]   ;;  %v10811_v44 = vld [vmem:[%s17174_s5 + $0x204] ss:$16 sps:$4 sm:$0xff]  }
 0x52f   :  { %v3875_v18 = vpop.f32.mrf.mxu1  ;;  %v4484_v59 = vpop.f32.mrf.mxu0 }
 0x530   :  { %v14588_v30 = vadd.f32 %v4484_v59, %v3875_v18 }
 0x531   :  { %v3877_v0 = vpop.f32.mrf.mxu1  ;;  %v4486_v19 = vpop.f32.mrf.mxu0 }
 0x532   :  { %17603 = vst [vmem:[#allocation80_spill] sm:$0xff] %v14588_v30  ;;  %v10812_v0 = vld [vmem:[%s17174_s5 + $0x20c] ss:$16 sps:$4 sm:$0xff]  }
 0x533   :  { %v3880_v34 = vpop.f32.mrf.mxu1  ;;  %v4489_v53 = vpop.f32.mrf.mxu0  ;;  %4713 = vmatmul.mubr.bf16.gmra.mxu1 %v10809_v48  ;;  %5322 = vmatmul.mubr.bf16.gmra.mxu0 %v10810_v9 }
 0x534   :  { %v14596_v27 = vadd.f32 %v4489_v53, %v3880_v34  ;;  %4720 = vmatprep.mubr.bf16.mxu1 %v10811_v44  ;;  %5329 = vmatprep.mubr.bf16.mxu0 %v10812_v0  ;;  %v1703_v34 = vld [vmem:[%s17175_s6 + $0xf0] sm:$0xff]  ;;  %v1708_v53 = vld [vmem:[%s17175_s6 + $0x118] sm:$0xff] }
 0x535   :  { %v3882_v42 = vpop.f32.mrf.mxu1  ;;  %v4491_v18 = vpop.f32.mrf.mxu0  ;;  %v10813_v0 = vld [vmem:[%s17174_s5 + $0x200] ss:$16 sps:$4 sm:$0xff]   ;;  %9144 = vmatprep.subr.mxu1 %v1703_v34  ;;  %9682 = vmatprep.subr.mxu0 %v1708_v53  ;;  %v10818_v34 = vld [vmem:[%s17174_s5 + $0x228] ss:$16 sps:$4 sm:$0xff]  }
 0x536   :  { %17604 = vst [vmem:[#allocation81_spill] sm:$0xff] %v14596_v27  ;;  %v1687_v42 = vld [vmem:[%s17175_s6 + $0x70] sm:$0xff]  ;;  %9683 = vmatpush3.msra.mxu0 %v1708_v53  ;;  %v10820_v53 = vld [vmem:[%s17174_s5 + $0x24c] ss:$16 sps:$4 sm:$0xff]  }
 0x537   :  { %v3883_v48 = vpop.f32.mrf.mxu1  ;;  %v4492_v59 = vpop.f32.mrf.mxu0  ;;  %9145 = vmatpush3.msra.mxu1 %v1687_v42 }
 0x538   :  { %v14604_v19 = vadd.f32 %v4492_v59, %v3883_v48  ;;  %v10815_v48 = vld [vmem:[%s17174_s5 + $0x224] ss:$16 sps:$4 sm:$0xff]   ;;  %v10816_v59 = vld [vmem:[%s17174_s5 + $0x22c] ss:$16 sps:$4 sm:$0xff]  }
 0x539   :  { %v3885_v30 = vpop.f32.mrf.mxu1  ;;  %v4494_v9 = vpop.f32.mrf.mxu0 }
 0x53a   :  { %17605 = vst [vmem:[#allocation82_spill] sm:$0xff] %v14604_v19  ;;  %v10814_v30 = vld [vmem:[%s17174_s5 + $0x208] ss:$16 sps:$4 sm:$0xff]  }
 0x53b   :  { %v3888_v44 = vpop.f32.mrf.mxu1  ;;  %v4497_v27 = vpop.f32.mrf.mxu0  ;;  %4721 = vmatmul.mubr.bf16.gmra.mxu1 %v10813_v0  ;;  %5330 = vmatmul.mubr.bf16.gmra.mxu0 %v10814_v30 }
 0x53c   :  { %v14621_v18 = vadd.f32 %v4497_v27, %v3888_v44  ;;  %4728 = vmatprep.mubr.bf16.mxu1 %v10815_v48  ;;  %5337 = vmatprep.mubr.bf16.mxu0 %v10816_v59  ;;  %v10817_v48 = vld [vmem:[%s17174_s5 + $0x220] ss:$16 sps:$4 sm:$0xff]  }
 0x53d   :  { %v3890_v9 = vpop.f32.mrf.mxu1  ;;  %v4499_v0 = vpop.f32.mrf.mxu0 }
 0x53e   :  { %17606 = vst [vmem:[#allocation83_spill] sm:$0xff] %v14621_v18 }
 0x53f   :  { %v3891_v30 = vpop.f32.mrf.mxu1  ;;  %v4500_v19 = vpop.f32.mrf.mxu0 }
 0x540   :  { %v14629_v27 = vadd.f32 %v4500_v19, %v3891_v30  ;;  %v10819_v19 = vld [vmem:[%s17174_s5 + $0x244] ss:$16 sps:$4 sm:$0xff]  }
 0x541   :  { %v3893_v44 = vpop.f32.mrf.mxu1  ;;  %v4502_v18 = vpop.f32.mrf.mxu0 }
 0x542   :  { %17607 = vst [vmem:[#allocation84_spill] sm:$0xff] %v14629_v27 }
 0x543   :  { %v3896_v31 = vpop.f32.mrf.mxu1  ;;  %v4505_v7 = vpop.f32.mrf.mxu0  ;;  %4729 = vmatmul.mubr.bf16.gmra.mxu1 %v10817_v48  ;;  %5338 = vmatmul.mubr.bf16.gmra.mxu0 %v10818_v34  ;;  %v10821_v34 = vld [vmem:[%s17174_s5 + $0x240] ss:$16 sps:$4 sm:$0xff]  }
 0x544   :  { %v14637_v42 = vadd.f32 %v4505_v7, %v3896_v31  ;;  %4736 = vmatprep.mubr.bf16.mxu1 %v10819_v19  ;;  %5345 = vmatprep.mubr.bf16.mxu0 %v10820_v53  ;;  %v10822_v19 = vld [vmem:[%s17174_s5 + $0x248] ss:$16 sps:$4 sm:$0xff]  }
 0x545   :  { %v3898_v18 = vpop.f32.mrf.mxu1  ;;  %v4507_v59 = vpop.f32.mrf.mxu0 }
 0x546   :  { %17608 = vst [vmem:[#allocation85_spill] sm:$0xff] %v14637_v42  ;;  %v10823_v18 = vld [vmem:[%s17174_s5 + $0x264] ss:$16 sps:$4 sm:$0xff]   ;;  %v10824_v59 = vld [vmem:[%s17174_s5 + $0x26c] ss:$16 sps:$4 sm:$0xff]  }
 0x547   :  { %v3899_v9 = vpop.f32.mrf.mxu1  ;;  %v4508_v0 = vpop.f32.mrf.mxu0 }
 0x548   :  { %v14645_v30 = vadd.f32 %v4508_v0, %v3899_v9 }
 0x549   :  { %v3901_v44 = vpop.f32.mrf.mxu1  ;;  %v4510_v48 = vpop.f32.mrf.mxu0 }
 0x54a   :  { %17609 = vst [vmem:[#allocation86_spill] sm:$0xff] %v14645_v30 }
 0x54b   :  { %v3904_v7 = vpop.f32.mrf.mxu1  ;;  %v4513_v31 = vpop.f32.mrf.mxu0  ;;  %4737 = vmatmul.mubr.bf16.gmra.mxu1 %v10821_v34  ;;  %5346 = vmatmul.mubr.bf16.gmra.mxu0 %v10822_v19 }
 0x54c   :  { %v14653_v53 = vadd.f32 %v4513_v31, %v3904_v7  ;;  %4744 = vmatprep.mubr.bf16.mxu1 %v10823_v18  ;;  %5353 = vmatprep.mubr.bf16.mxu0 %v10824_v59  ;;  %v10826_v18 = vld [vmem:[%s17174_s5 + $0x268] ss:$16 sps:$4 sm:$0xff]  }
 0x54d   :  { %v3906_v9 = vpop.f32.mrf.mxu1  ;;  %v4515_v0 = vpop.f32.mrf.mxu0 }
 0x54e   :  { %17610 = vst [vmem:[#allocation87_spill] sm:$0xff] %v14653_v53  ;;  %v10825_v53 = vld [vmem:[%s17174_s5 + $0x260] ss:$16 sps:$4 sm:$0xff]   ;;  %v10827_v9 = vld [vmem:[%s17174_s5 + $0x284] ss:$16 sps:$4 sm:$0xff]  }
 0x54f   :  { %v3907_v44 = vpop.f32.mrf.mxu1  ;;  %v4516_v48 = vpop.f32.mrf.mxu0 }
 0x550   :  { %v14661_v34 = vadd.f32 %v4516_v48, %v3907_v44 }
 0x551   :  { %v3909_v30 = vpop.f32.mrf.mxu1  ;;  %v4518_v19 = vpop.f32.mrf.mxu0 }
 0x552   :  { %17611 = vst [vmem:[#allocation88_spill] sm:$0xff] %v14661_v34  ;;  %v10828_v30 = vld [vmem:[%s17174_s5 + $0x28c] ss:$16 sps:$4 sm:$0xff]  }
 0x553   :  { %v3912_v7 = vpop.f32.mrf.mxu1  ;;  %v4521_v31 = vpop.f32.mrf.mxu0  ;;  %4745 = vmatmul.mubr.bf16.gmra.mxu1 %v10825_v53  ;;  %5354 = vmatmul.mubr.bf16.gmra.mxu0 %v10826_v18 }
 0x554   :  { %v14669_v59 = vadd.f32 %v4521_v31, %v3912_v7  ;;  %4752 = vmatprep.mubr.bf16.mxu1 %v10827_v9  ;;  %5361 = vmatprep.mubr.bf16.mxu0 %v10828_v30  ;;  %v10830_v9 = vld [vmem:[%s17174_s5 + $0x288] ss:$16 sps:$4 sm:$0xff]  }
 0x555   :  { %v3914_v0 = vpop.f32.mrf.mxu1  ;;  %v4523_v44 = vpop.f32.mrf.mxu0 }
 0x556   :  { %17612 = vst [vmem:[#allocation89_spill] sm:$0xff] %v14669_v59  ;;  %v10829_v59 = vld [vmem:[%s17174_s5 + $0x280] ss:$16 sps:$4 sm:$0xff]   ;;  %v10831_v0 = vld [vmem:[%s17174_s5 + $0x2a4] ss:$16 sps:$4 sm:$0xff]  }
 0x557   :  { %v3915_v53 = vpop.f32.mrf.mxu1  ;;  %v4524_v48 = vpop.f32.mrf.mxu0 }
 0x558   :  { %v14677_v19 = vadd.f32 %v4524_v48, %v3915_v53  ;;  %v1686_v48 = vld [vmem:[%s17175_s6 + $0x68] sm:$0xff] }
 0x559   :  { %v3917_v34 = vpop.f32.mrf.mxu1  ;;  %v4526_v18 = vpop.f32.mrf.mxu0 }
 0x55a   :  { %17613 = vst [vmem:[#allocation90_spill] sm:$0xff] %v14677_v19  ;;  %v10832_v34 = vld [vmem:[%s17174_s5 + $0x2ac] ss:$16 sps:$4 sm:$0xff]  }
 0x55b   :  { %v3920_v7 = vpop.f32.mrf.mxu1  ;;  %v4529_v31 = vpop.f32.mrf.mxu0  ;;  %4753 = vmatmul.mubr.bf16.gmra.mxu1 %v10829_v59  ;;  %5362 = vmatmul.mubr.bf16.gmra.mxu0 %v10830_v9  ;;  %v1702_v59 = vld [vmem:[%s17175_s6 + $0xe8] sm:$0xff] }
 0x55c   :  { %v14685_v30 = vadd.f32 %v4529_v31, %v3920_v7  ;;  %4760 = vmatprep.mubr.bf16.mxu1 %v10831_v0  ;;  %5369 = vmatprep.mubr.bf16.mxu0 %v10832_v34 }
 0x55d   :  { %v3922_v44 = vpop.f32.mrf.mxu1  ;;  %v4531_v53 = vpop.f32.mrf.mxu0  ;;  %9146 = vmatprep.subr.mxu1 %v1702_v59  ;;  %v10835_v59 = vld [vmem:[%s17174_s5 + $0x2c4] ss:$16 sps:$4 sm:$0xff]  }
 0x55e   :  { %17614 = vst [vmem:[#allocation91_spill] sm:$0xff] %v14685_v30  ;;  %9147 = vmatpush3.msra.mxu1 %v1686_v48  ;;  %v10833_v44 = vld [vmem:[%s17174_s5 + $0x2a0] ss:$16 sps:$4 sm:$0xff]   ;;  %v10834_v53 = vld [vmem:[%s17174_s5 + $0x2a8] ss:$16 sps:$4 sm:$0xff]  }
 0x55f   :  { %v3923_v18 = vpop.f32.mrf.mxu1  ;;  %v4532_v7 = vpop.f32.mrf.mxu0  ;;  %v10836_v48 = vld [vmem:[%s17174_s5 + $0x2cc] ss:$16 sps:$4 sm:$0xff]  }
 0x560   :  { %v14699_v31 = vadd.f32 %v4532_v7, %v3923_v18 }
 0x561   :  { %v3925_v9 = vpop.f32.mrf.mxu1  ;;  %v4534_v0 = vpop.f32.mrf.mxu0 }
 0x562   :  { %17615 = vst [vmem:[#allocation92_spill] sm:$0xff] %v14699_v31 }
 0x563   :  { %v3928_v30 = vpop.f32.mrf.mxu1  ;;  %v4537_v34 = vpop.f32.mrf.mxu0  ;;  %4761 = vmatmul.mubr.bf16.gmra.mxu1 %v10833_v44  ;;  %5370 = vmatmul.mubr.bf16.gmra.mxu0 %v10834_v53 }
 0x564   :  { %v14707_v19 = vadd.f32 %v4537_v34, %v3928_v30  ;;  %4768 = vmatprep.mubr.bf16.mxu1 %v10835_v59  ;;  %5377 = vmatprep.mubr.bf16.mxu0 %v10836_v48  ;;  %v10838_v59 = vld [vmem:[%s17174_s5 + $0x2c8] ss:$16 sps:$4 sm:$0xff]  }
 0x565   :  { %v3930_v18 = vpop.f32.mrf.mxu1  ;;  %v4539_v7 = vpop.f32.mrf.mxu0 }
 0x566   :  { %17616 = vst [vmem:[#allocation93_spill] sm:$0xff] %v14707_v19  ;;  %v10837_v19 = vld [vmem:[%s17174_s5 + $0x2c0] ss:$16 sps:$4 sm:$0xff]   ;;  %v10839_v18 = vld [vmem:[%s17174_s5 + $0x2e4] ss:$16 sps:$4 sm:$0xff]  }
 0x567   :  { %v3931_v9 = vpop.f32.mrf.mxu1  ;;  %v4540_v0 = vpop.f32.mrf.mxu0 }
 0x568   :  { %v14715_v44 = vadd.f32 %v4540_v0, %v3931_v9 }
 0x569   :  { %v3933_v31 = vpop.f32.mrf.mxu1  ;;  %v4542_v53 = vpop.f32.mrf.mxu0 }
 0x56a   :  { %17617 = vst [vmem:[#allocation94_spill] sm:$0xff] %v14715_v44  ;;  %v10840_v31 = vld [vmem:[%s17174_s5 + $0x2ec] ss:$16 sps:$4 sm:$0xff]  }
 0x56b   :  { %v3936_v30 = vpop.f32.mrf.mxu1  ;;  %v4545_v34 = vpop.f32.mrf.mxu0  ;;  %4769 = vmatmul.mubr.bf16.gmra.mxu1 %v10837_v19  ;;  %5378 = vmatmul.mubr.bf16.gmra.mxu0 %v10838_v59 }
 0x56c   :  { %v14723_v48 = vadd.f32 %v4545_v34, %v3936_v30  ;;  %4776 = vmatprep.mubr.bf16.mxu1 %v10839_v18  ;;  %5385 = vmatprep.mubr.bf16.mxu0 %v10840_v31  ;;  %v10842_v18 = vld [vmem:[%s17174_s5 + $0x2e8] ss:$16 sps:$4 sm:$0xff]  }
 0x56d   :  { %v3938_v7 = vpop.f32.mrf.mxu1  ;;  %v4547_v9 = vpop.f32.mrf.mxu0 }
 0x56e   :  { %17618 = vst [vmem:[#allocation95_spill] sm:$0xff] %v14723_v48  ;;  %v10841_v48 = vld [vmem:[%s17174_s5 + $0x2e0] ss:$16 sps:$4 sm:$0xff]   ;;  %v10843_v7 = vld [vmem:[%s17174_s5 + $0x304] ss:$16 sps:$4 sm:$0xff]  }
 0x56f   :  { %v3939_v19 = vpop.f32.mrf.mxu1  ;;  %v4548_v0 = vpop.f32.mrf.mxu0 }
 0x570   :  { %v14731_v53 = vadd.f32 %v4548_v0, %v3939_v19 }
 0x571   :  { %v3941_v44 = vpop.f32.mrf.mxu1  ;;  %v4550_v59 = vpop.f32.mrf.mxu0 }
 0x572   :  { %17619 = vst [vmem:[#allocation96_spill] sm:$0xff] %v14731_v53  ;;  %v10844_v44 = vld [vmem:[%s17174_s5 + $0x30c] ss:$16 sps:$4 sm:$0xff]  }
 0x573   :  { %v3944_v30 = vpop.f32.mrf.mxu1  ;;  %v4553_v34 = vpop.f32.mrf.mxu0  ;;  %4777 = vmatmul.mubr.bf16.gmra.mxu1 %v10841_v48  ;;  %5386 = vmatmul.mubr.bf16.gmra.mxu0 %v10842_v18 }
 0x574   :  { %v14739_v31 = vadd.f32 %v4553_v34, %v3944_v30  ;;  %4784 = vmatprep.mubr.bf16.mxu1 %v10843_v7  ;;  %5393 = vmatprep.mubr.bf16.mxu0 %v10844_v44  ;;  %v10845_v34 = vld [vmem:[%s17174_s5 + $0x300] ss:$16 sps:$4 sm:$0xff]  }
 0x575   :  { %v3946_v9 = vpop.f32.mrf.mxu1  ;;  %v4555_v19 = vpop.f32.mrf.mxu0 }
 0x576   :  { %17620 = vst [vmem:[#allocation97_spill] sm:$0xff] %v14739_v31  ;;  %v10846_v31 = vld [vmem:[%s17174_s5 + $0x308] ss:$16 sps:$4 sm:$0xff]   ;;  %v10847_v9 = vld [vmem:[%s17174_s5 + $0x324] ss:$16 sps:$4 sm:$0xff]  }
 0x577   :  { %v3947_v48 = vpop.f32.mrf.mxu1  ;;  %v4556_v0 = vpop.f32.mrf.mxu0 }
 0x578   :  { %v14747_v59 = vadd.f32 %v4556_v0, %v3947_v48 }
 0x579   :  { %v3949_v53 = vpop.f32.mrf.mxu1  ;;  %v4558_v18 = vpop.f32.mrf.mxu0 }
 0x57a   :  { %17621 = vst [vmem:[#allocation98_spill] sm:$0xff] %v14747_v59  ;;  %v10848_v53 = vld [vmem:[%s17174_s5 + $0x32c] ss:$16 sps:$4 sm:$0xff]  }
 0x57b   :  { %v4594_v30 = vpop.f32.mrf.mxu1  ;;  %4785 = vmatmul.mubr.bf16.gmra.mxu1 %v10845_v34  ;;  %v5203_v7 = vpop.f32.mrf.mxu0  ;;  %5394 = vmatmul.mubr.bf16.gmra.mxu0 %v10846_v31 }
 0x57c   :  { %v4595_v44 = vadd.f32 %v4594_v30, %v13588_v17  ;;  %4792 = vmatprep.mubr.bf16.mxu1 %v10847_v9  ;;  %5401 = vmatprep.mubr.bf16.mxu0 %v10848_v53  ;;  %v1701_v9 = vld [vmem:[%s17175_s6 + $0xe0] sm:$0xff] }
 0x57d   :  { %v4596_v19 = vpop.f32.mrf.mxu1  ;;  %v5205_v48 = vpop.f32.mrf.mxu0  ;;  %v10849_v53 = vld [vmem:[%s17174_s5 + $0x320] ss:$16 sps:$4 sm:$0xff]   ;;  %9148 = vmatprep.subr.mxu1 %v1701_v9  ;;  %v10854_v9 = vld [vmem:[%s17174_s5 + $0x348] ss:$16 sps:$4 sm:$0xff]  }
 0x57e   :  { %v14762_v0 = vadd.f32 %v5203_v7, %v4595_v44  ;;  %v10850_v44 = vld [vmem:[%s17174_s5 + $0x328] ss:$16 sps:$4 sm:$0xff]   ;;  %v10851_v19 = vld [vmem:[%s17174_s5 + $0x344] ss:$16 sps:$4 sm:$0xff]   ;;  %v10852_v48 = vld [vmem:[%s17174_s5 + $0x34c] ss:$16 sps:$4 sm:$0xff]  }
 0x57f   :  { %v4597_v18 = vpop.f32.mrf.mxu1  ;;  %v5206_v34 = vpop.f32.mrf.mxu0 }
 0x580   :  { %17622 = vst [vmem:[#allocation99_spill] sm:$0xff] %v14762_v0  ;;  %v4598_v31 = vadd.f32 %v4597_v18, %v13596_v12  ;;  %v1685_v12 = vld [vmem:[%s17175_s6 + $0x60] sm:$0xff] }
 0x581   :  { %v4599_v59 = vpop.f32.mrf.mxu1  ;;  %v5208_v17 = vpop.f32.mrf.mxu0  ;;  %9149 = vmatpush3.msra.mxu1 %v1685_v12  ;;  %v10853_v0 = vld [vmem:[%s17174_s5 + $0x340] ss:$16 sps:$4 sm:$0xff]   ;;  %v10856_v12 = vld [vmem:[%s17174_s5 + $0x36c] ss:$16 sps:$4 sm:$0xff]  }
 0x582   :  { %v14765_v30 = vadd.f32 %v5206_v34, %v4598_v31 }
 0x583   :  { %v4602_v42 = vpop.f32.mrf.mxu1  ;;  %4793 = vmatmul.mubr.bf16.gmra.mxu1 %v10849_v53  ;;  %v5211_v7 = vpop.f32.mrf.mxu0  ;;  %5402 = vmatmul.mubr.bf16.gmra.mxu0 %v10850_v44 }
 0x584   :  { %17623 = vst [vmem:[#allocation100_spill] sm:$0xff] %v14765_v30  ;;  %v4603_v59 = vadd.f32 %v4602_v42, %v13604_v16  ;;  %4800 = vmatprep.mubr.bf16.mxu1 %v10851_v19  ;;  %5409 = vmatprep.mubr.bf16.mxu0 %v10852_v48 }
 0x585   :  { %v4604_v18 = vpop.f32.mrf.mxu1  ;;  %v5213_v34 = vpop.f32.mrf.mxu0 }
 0x586   :  { %v14786_v31 = vadd.f32 %v5211_v7, %v4603_v59 }
 0x587   :  { %v4605_v17 = vpop.f32.mrf.mxu1  ;;  %v5214_v53 = vpop.f32.mrf.mxu0 }
 0x588   :  { %17624 = vst [vmem:[#allocation101_spill] sm:$0xff] %v14786_v31  ;;  %v4606_v16 = vadd.f32 %v4605_v17, %v13612_v8  ;;  %v10855_v8 = vld [vmem:[%s17174_s5 + $0x364] ss:$16 sps:$4 sm:$0xff]   ;;  %v17658_v31 = vld [vmem:[#allocation12_spill] sm:$0xff] }
 0x589   :  { %v4607_v42 = vpop.f32.mrf.mxu1  ;;  %v5216_v44 = vpop.f32.mrf.mxu0 }
 0x58a   :  { %v14789_v30 = vadd.f32 %v5214_v53, %v4606_v16 }
 0x58b   :  { %v4610_v19 = vpop.f32.mrf.mxu1  ;;  %4801 = vmatmul.mubr.bf16.gmra.mxu1 %v10853_v0  ;;  %v5219_v48 = vpop.f32.mrf.mxu0  ;;  %5410 = vmatmul.mubr.bf16.gmra.mxu0 %v10854_v9 }
 0x58c   :  { %17625 = vst [vmem:[#allocation102_spill] sm:$0xff] %v14789_v30  ;;  %v4611_v7 = vadd.f32 %v4610_v19, %v13620_v29  ;;  %4808 = vmatprep.mubr.bf16.mxu1 %v10855_v8  ;;  %5417 = vmatprep.mubr.bf16.mxu0 %v10856_v12  ;;  %v10857_v19 = vld [vmem:[%s17174_s5 + $0x360] ss:$16 sps:$4 sm:$0xff]   ;;  %v10860_v8 = vld [vmem:[%s17174_s5 + $0x38c] ss:$16 sps:$4 sm:$0xff]  }
 0x58d   :  { %v4612_v59 = vpop.f32.mrf.mxu1  ;;  %v5221_v0 = vpop.f32.mrf.mxu0 }
 0x58e   :  { %v14804_v18 = vadd.f32 %v5219_v48, %v4611_v7  ;;  %v10858_v48 = vld [vmem:[%s17174_s5 + $0x368] ss:$16 sps:$4 sm:$0xff]  }
 0x58f   :  { %v4613_v34 = vpop.f32.mrf.mxu1  ;;  %v5222_v17 = vpop.f32.mrf.mxu0 }
 0x590   :  { %17626 = vst [vmem:[#allocation103_spill] sm:$0xff] %v14804_v18  ;;  %v4614_v53 = vadd.f32 %v4613_v34, %v13628_v43  ;;  %v10859_v43 = vld [vmem:[%s17174_s5 + $0x384] ss:$16 sps:$4 sm:$0xff]  }
 0x591   :  { %v4615_v16 = vpop.f32.mrf.mxu1  ;;  %v5224_v29 = vpop.f32.mrf.mxu0 }
 0x592   :  { %v14807_v42 = vadd.f32 %v5222_v17, %v4614_v53 }
 0x593   :  { %v4618_v44 = vpop.f32.mrf.mxu1  ;;  %4809 = vmatmul.mubr.bf16.gmra.mxu1 %v10857_v19  ;;  %v5227_v9 = vpop.f32.mrf.mxu0  ;;  %5418 = vmatmul.mubr.bf16.gmra.mxu0 %v10858_v48  ;;  %v10861_v19 = vld [vmem:[%s17174_s5 + $0x380] ss:$16 sps:$4 sm:$0xff]  }
 0x594   :  { %17627 = vst [vmem:[#allocation104_spill] sm:$0xff] %v14807_v42  ;;  %v4619_v7 = vadd.f32 %v4618_v44, %v13636_v15  ;;  %4816 = vmatprep.mubr.bf16.mxu1 %v10859_v43  ;;  %5425 = vmatprep.mubr.bf16.mxu0 %v10860_v8  ;;  %v10864_v43 = vld [vmem:[%s17174_s5 + $0x3ac] ss:$16 sps:$4 sm:$0xff]  }
 0x595   :  { %v4620_v12 = vpop.f32.mrf.mxu1  ;;  %v5229_v59 = vpop.f32.mrf.mxu0 }
 0x596   :  { %v14822_v0 = vadd.f32 %v5227_v9, %v4619_v7  ;;  %v10862_v9 = vld [vmem:[%s17174_s5 + $0x388] ss:$16 sps:$4 sm:$0xff]  }
 0x597   :  { %v4621_v34 = vpop.f32.mrf.mxu1  ;;  %v5230_v17 = vpop.f32.mrf.mxu0 }
 0x598   :  { %17628 = vst [vmem:[#allocation105_spill] sm:$0xff] %v14822_v0  ;;  %v4622_v53 = vadd.f32 %v4621_v34, %v13644_v54  ;;  %v10863_v54 = vld [vmem:[%s17174_s5 + $0x3a4] ss:$16 sps:$4 sm:$0xff]  }
 0x599   :  { %v4623_v16 = vpop.f32.mrf.mxu1  ;;  %v5232_v15 = vpop.f32.mrf.mxu0 }
 0x59a   :  { %v14825_v29 = vadd.f32 %v5230_v17, %v4622_v53 }
 0x59b   :  { %v4626_v44 = vpop.f32.mrf.mxu1  ;;  %4817 = vmatmul.mubr.bf16.gmra.mxu1 %v10861_v19  ;;  %v5235_v48 = vpop.f32.mrf.mxu0  ;;  %5426 = vmatmul.mubr.bf16.gmra.mxu0 %v10862_v9  ;;  %v10865_v19 = vld [vmem:[%s17174_s5 + $0x3a0] ss:$16 sps:$4 sm:$0xff]  }
 0x59c   :  { %17629 = vst [vmem:[#allocation106_spill] sm:$0xff] %v14825_v29  ;;  %v4627_v7 = vadd.f32 %v4626_v44, %v13652_v63  ;;  %4824 = vmatprep.mubr.bf16.mxu1 %v10863_v54  ;;  %5433 = vmatprep.mubr.bf16.mxu0 %v10864_v43  ;;  %v10868_v54 = vld [vmem:[%s17174_s5 + $0x3cc] ss:$16 sps:$4 sm:$0xff]  }
 0x59d   :  { %v4628_v8 = vpop.f32.mrf.mxu1  ;;  %v5237_v12 = vpop.f32.mrf.mxu0 }
 0x59e   :  { %v14840_v59 = vadd.f32 %v5235_v48, %v4627_v7  ;;  %v10866_v48 = vld [vmem:[%s17174_s5 + $0x3a8] ss:$16 sps:$4 sm:$0xff]  }
 0x59f   :  { %v4629_v34 = vpop.f32.mrf.mxu1  ;;  %v5238_v17 = vpop.f32.mrf.mxu0 }
 0x5a0   :  { %17630 = vst [vmem:[#allocation107_spill] sm:$0xff] %v14840_v59  ;;  %v4630_v53 = vadd.f32 %v4629_v34, %v13660_v26  ;;  %v10867_v26 = vld [vmem:[%s17174_s5 + $0x3c4] ss:$16 sps:$4 sm:$0xff]   ;;  %v1700_v34 = vld [vmem:[%s17175_s6 + $0xd8] sm:$0xff] }
 0x5a1   :  { %v4631_v16 = vpop.f32.mrf.mxu1  ;;  %v5240_v63 = vpop.f32.mrf.mxu0  ;;  %9150 = vmatprep.subr.mxu1 %v1700_v34 }
 0x5a2   :  { %v14843_v15 = vadd.f32 %v5238_v17, %v4630_v53 }
 0x5a3   :  { %v4634_v44 = vpop.f32.mrf.mxu1  ;;  %4825 = vmatmul.mubr.bf16.gmra.mxu1 %v10865_v19  ;;  %v5243_v9 = vpop.f32.mrf.mxu0  ;;  %5434 = vmatmul.mubr.bf16.gmra.mxu0 %v10866_v48  ;;  %v10869_v48 = vld [vmem:[%s17174_s5 + $0x3c0] ss:$16 sps:$4 sm:$0xff]  }
 0x5a4   :  { %17631 = vst [vmem:[#allocation108_spill] sm:$0xff] %v14843_v15  ;;  %v4635_v7 = vadd.f32 %v4634_v44, %v13668_v21  ;;  %4832 = vmatprep.mubr.bf16.mxu1 %v10867_v26  ;;  %5441 = vmatprep.mubr.bf16.mxu0 %v10868_v54  ;;  %v1684_v21 = vld [vmem:[%s17175_s6 + $0x58] sm:$0xff] }
 0x5a5   :  { %v4636_v43 = vpop.f32.mrf.mxu1  ;;  %v5245_v8 = vpop.f32.mrf.mxu0  ;;  %9151 = vmatpush3.msra.mxu1 %v1684_v21  ;;  %v10870_v26 = vld [vmem:[%s17174_s5 + $0x3c8] ss:$16 sps:$4 sm:$0xff]  }
 0x5a6   :  { %v14858_v12 = vadd.f32 %v5243_v9, %v4635_v7  ;;  %v10872_v43 = vld [vmem:[%s17174_s5 + $0x3ec] ss:$16 sps:$4 sm:$0xff]  }
 0x5a7   :  { %v4637_v17 = vpop.f32.mrf.mxu1  ;;  %v5246_v53 = vpop.f32.mrf.mxu0 }
 0x5a8   :  { %17632 = vst [vmem:[#allocation109_spill] sm:$0xff] %v14858_v12  ;;  %v4638_v16 = vadd.f32 %v4637_v17, %v13676_v46  ;;  %v10871_v46 = vld [vmem:[%s17174_s5 + $0x3e4] ss:$16 sps:$4 sm:$0xff]  }
 0x5a9   :  { %v4639_v63 = vpop.f32.mrf.mxu1  ;;  %v5248_v44 = vpop.f32.mrf.mxu0 }
 0x5aa   :  { %v14867_v19 = vadd.f32 %v5246_v53, %v4638_v16 }
 0x5ab   :  { %v4642_v9 = vpop.f32.mrf.mxu1  ;;  %4833 = vmatmul.mubr.bf16.gmra.mxu1 %v10869_v48  ;;  %v5251_v7 = vpop.f32.mrf.mxu0  ;;  %5442 = vmatmul.mubr.bf16.gmra.mxu0 %v10870_v26  ;;  %v10873_v48 = vld [vmem:[%s17174_s5 + $0x3e0] ss:$16 sps:$4 sm:$0xff]  }
 0x5ac   :  { %17633 = vst [vmem:[#allocation110_spill] sm:$0xff] %v14867_v19  ;;  %v4643_v54 = vadd.f32 %v4642_v9, %v13684_v32  ;;  %4840 = vmatprep.mubr.bf16.mxu1 %v10871_v46  ;;  %5449 = vmatprep.mubr.bf16.mxu0 %v10872_v43  ;;  %v10876_v46 = vld [vmem:[%s17174_s5 + $0x40c] ss:$16 sps:$4 sm:$0xff]  }
 0x5ad   :  { %v4644_v8 = vpop.f32.mrf.mxu1  ;;  %v5253_v34 = vpop.f32.mrf.mxu0 }
 0x5ae   :  { %v14882_v21 = vadd.f32 %v5251_v7, %v4643_v54  ;;  %v10874_v7 = vld [vmem:[%s17174_s5 + $0x3e8] ss:$16 sps:$4 sm:$0xff]  }
 0x5af   :  { %v4645_v17 = vpop.f32.mrf.mxu1  ;;  %v5254_v53 = vpop.f32.mrf.mxu0 }
 0x5b0   :  { %17634 = vst [vmem:[#allocation111_spill] sm:$0xff] %v14882_v21  ;;  %v4646_v16 = vadd.f32 %v4645_v17, %v13692_v49  ;;  %v10875_v49 = vld [vmem:[%s17174_s5 + $0x404] ss:$16 sps:$4 sm:$0xff]  }
 0x5b1   :  { %v4647_v63 = vpop.f32.mrf.mxu1  ;;  %v5256_v32 = vpop.f32.mrf.mxu0 }
 0x5b2   :  { %v14885_v44 = vadd.f32 %v5254_v53, %v4646_v16 }
 0x5b3   :  { %v4650_v9 = vpop.f32.mrf.mxu1  ;;  %4841 = vmatmul.mubr.bf16.gmra.mxu1 %v10873_v48  ;;  %v5259_v26 = vpop.f32.mrf.mxu0  ;;  %5450 = vmatmul.mubr.bf16.gmra.mxu0 %v10874_v7  ;;  %v10877_v48 = vld [vmem:[%s17174_s5 + $0x400] ss:$16 sps:$4 sm:$0xff]  }
 0x5b4   :  { %17635 = vst [vmem:[#allocation112_spill] sm:$0xff] %v14885_v44  ;;  %v4651_v54 = vadd.f32 %v4650_v9, %v13700_v41  ;;  %4848 = vmatprep.mubr.bf16.mxu1 %v10875_v49  ;;  %5457 = vmatprep.mubr.bf16.mxu0 %v10876_v46  ;;  %v10880_v49 = vld [vmem:[%s17174_s5 + $0x42c] ss:$16 sps:$4 sm:$0xff]  }
 0x5b5   :  { %v4652_v43 = vpop.f32.mrf.mxu1  ;;  %v5261_v8 = vpop.f32.mrf.mxu0 }
 0x5b6   :  { %v14900_v34 = vadd.f32 %v5259_v26, %v4651_v54  ;;  %v10878_v26 = vld [vmem:[%s17174_s5 + $0x408] ss:$16 sps:$4 sm:$0xff]  }
 0x5b7   :  { %v4653_v17 = vpop.f32.mrf.mxu1  ;;  %v5262_v53 = vpop.f32.mrf.mxu0 }
 0x5b8   :  { %17636 = vst [vmem:[#allocation113_spill] sm:$0xff] %v14900_v34  ;;  %v4654_v16 = vadd.f32 %v4653_v17, %v13708_v37  ;;  %v10879_v37 = vld [vmem:[%s17174_s5 + $0x424] ss:$16 sps:$4 sm:$0xff]  }
 0x5b9   :  { %v4655_v63 = vpop.f32.mrf.mxu1  ;;  %v5264_v41 = vpop.f32.mrf.mxu0 }
 0x5ba   :  { %v14903_v32 = vadd.f32 %v5262_v53, %v4654_v16 }
 0x5bb   :  { %v4658_v9 = vpop.f32.mrf.mxu1  ;;  %4849 = vmatmul.mubr.bf16.gmra.mxu1 %v10877_v48  ;;  %v5267_v7 = vpop.f32.mrf.mxu0  ;;  %5458 = vmatmul.mubr.bf16.gmra.mxu0 %v10878_v26  ;;  %v10881_v48 = vld [vmem:[%s17174_s5 + $0x420] ss:$16 sps:$4 sm:$0xff]  }
 0x5bc   :  { %17637 = vst [vmem:[#allocation114_spill] sm:$0xff] %v14903_v32  ;;  %v4659_v54 = vadd.f32 %v4658_v9, %v13716_v3  ;;  %4856 = vmatprep.mubr.bf16.mxu1 %v10879_v37  ;;  %5465 = vmatprep.mubr.bf16.mxu0 %v10880_v49  ;;  %v10884_v37 = vld [vmem:[%s17174_s5 + $0x44c] ss:$16 sps:$4 sm:$0xff]  }
 0x5bd   :  { %v4660_v46 = vpop.f32.mrf.mxu1  ;;  %v5269_v43 = vpop.f32.mrf.mxu0 }
 0x5be   :  { %v14918_v8 = vadd.f32 %v5267_v7, %v4659_v54  ;;  %v10882_v7 = vld [vmem:[%s17174_s5 + $0x428] ss:$16 sps:$4 sm:$0xff]  }
 0x5bf   :  { %v4661_v17 = vpop.f32.mrf.mxu1  ;;  %v5270_v53 = vpop.f32.mrf.mxu0 }
 0x5c0   :  { %v4662_v16 = vadd.f32 %v4661_v17, %v13724_v58  ;;  %v10883_v58 = vld [vmem:[%s17174_s5 + $0x444] ss:$16 sps:$4 sm:$0xff]  }
 0x5c1   :  { %v4663_v63 = vpop.f32.mrf.mxu1  ;;  %v5272_v3 = vpop.f32.mrf.mxu0 }
 0x5c2   :  { %v14921_v41 = vadd.f32 %v5270_v53, %v4662_v16 }
 0x5c3   :  { %v4666_v9 = vpop.f32.mrf.mxu1  ;;  %4857 = vmatmul.mubr.bf16.gmra.mxu1 %v10881_v48  ;;  %v5275_v26 = vpop.f32.mrf.mxu0  ;;  %5466 = vmatmul.mubr.bf16.gmra.mxu0 %v10882_v7  ;;  %v1707_v48 = vld [vmem:[%s17175_s6 + $0x110] sm:$0xff] }
 0x5c4   :  { %v4667_v54 = vadd.f32 %v4666_v9, %v13732_v25  ;;  %4864 = vmatprep.mubr.bf16.mxu1 %v10883_v58  ;;  %5473 = vmatprep.mubr.bf16.mxu0 %v10884_v37  ;;  %v1699_v9 = vld [vmem:[%s17175_s6 + $0xd0] sm:$0xff] }
 0x5c5   :  { %v4668_v49 = vpop.f32.mrf.mxu1  ;;  %v5277_v46 = vpop.f32.mrf.mxu0  ;;  %v1683_v58 = vld [vmem:[%s17175_s6 + $0x50] sm:$0xff]  ;;  %9152 = vmatprep.subr.mxu1 %v1699_v9  ;;  %9684 = vmatprep.subr.mxu0 %v1707_v48 }
 0x5c6   :  { %v14936_v43 = vadd.f32 %v5275_v26, %v4667_v54  ;;  %v10885_v26 = vld [vmem:[%s17174_s5 + $0x440] ss:$16 sps:$4 sm:$0xff]   ;;  %v10887_v49 = vld [vmem:[%s17174_s5 + $0x464] ss:$16 sps:$4 sm:$0xff]   ;;  %v10888_v46 = vld [vmem:[%s17174_s5 + $0x46c] ss:$16 sps:$4 sm:$0xff]   ;;  %9153 = vmatpush3.msra.mxu1 %v1683_v58  ;;  %9685 = vmatpush3.msra.mxu0 %v1707_v48 }
 0x5c7   :  { %v4669_v17 = vpop.f32.mrf.mxu1  ;;  %v5278_v53 = vpop.f32.mrf.mxu0  ;;  %v10892_v58 = vld [vmem:[%s17174_s5 + $0x48c] ss:$16 sps:$4 sm:$0xff]  }
 0x5c8   :  { %v4670_v16 = vadd.f32 %v4669_v17, %v13740_v36  ;;  %v10886_v36 = vld [vmem:[%s17174_s5 + $0x448] ss:$16 sps:$4 sm:$0xff]  }
 0x5c9   :  { %v4671_v63 = vpop.f32.mrf.mxu1  ;;  %v5280_v25 = vpop.f32.mrf.mxu0 }
 0x5ca   :  { %v14939_v3 = vadd.f32 %v5278_v53, %v4670_v16 }
 0x5cb   :  { %v4674_v7 = vpop.f32.mrf.mxu1  ;;  %4865 = vmatmul.mubr.bf16.gmra.mxu1 %v10885_v26  ;;  %v5283_v54 = vpop.f32.mrf.mxu0  ;;  %5474 = vmatmul.mubr.bf16.gmra.mxu0 %v10886_v36 }
 0x5cc   :  { %v4675_v37 = vadd.f32 %v4674_v7, %v13748_v61  ;;  %4872 = vmatprep.mubr.bf16.mxu1 %v10887_v49  ;;  %5481 = vmatprep.mubr.bf16.mxu0 %v10888_v46  ;;  %v10889_v46 = vld [vmem:[%s17174_s5 + $0x460] ss:$16 sps:$4 sm:$0xff]  }
 0x5cd   :  { %v4676_v17 = vpop.f32.mrf.mxu1  ;;  %v5285_v53 = vpop.f32.mrf.mxu0 }
 0x5ce   :  { %v14963_v16 = vadd.f32 %v5283_v54, %v4675_v37  ;;  %v10890_v54 = vld [vmem:[%s17174_s5 + $0x468] ss:$16 sps:$4 sm:$0xff]  }
 0x5cf   :  { %v4677_v63 = vpop.f32.mrf.mxu1  ;;  %v5286_v61 = vpop.f32.mrf.mxu0 }
 0x5d0   :  { %v4678_v25 = vadd.f32 %v4677_v63, %v13756_v24  ;;  %v10891_v24 = vld [vmem:[%s17174_s5 + $0x484] ss:$16 sps:$4 sm:$0xff]  }
 0x5d1   :  { %v4679_v7 = vpop.f32.mrf.mxu1  ;;  %v5288_v26 = vpop.f32.mrf.mxu0 }
 0x5d2   :  { %v14966_v36 = vadd.f32 %v5286_v61, %v4678_v25 }
 0x5d3   :  { %v4682_v49 = vpop.f32.mrf.mxu1  ;;  %4873 = vmatmul.mubr.bf16.gmra.mxu1 %v10889_v46  ;;  %v5291_v9 = vpop.f32.mrf.mxu0  ;;  %5482 = vmatmul.mubr.bf16.gmra.mxu0 %v10890_v54  ;;  %v10893_v46 = vld [vmem:[%s17174_s5 + $0x480] ss:$16 sps:$4 sm:$0xff]  }
 0x5d4   :  { %v4683_v48 = vadd.f32 %v4682_v49, %v13764_v2  ;;  %4880 = vmatprep.mubr.bf16.mxu1 %v10891_v24  ;;  %5489 = vmatprep.mubr.bf16.mxu0 %v10892_v58  ;;  %v10896_v24 = vld [vmem:[%s17174_s5 + $0x4ac] ss:$16 sps:$4 sm:$0xff]  }
 0x5d5   :  { %v4684_v37 = vpop.f32.mrf.mxu1  ;;  %v5293_v17 = vpop.f32.mrf.mxu0 }
 0x5d6   :  { %v14981_v53 = vadd.f32 %v5291_v9, %v4683_v48  ;;  %v10894_v9 = vld [vmem:[%s17174_s5 + $0x488] ss:$16 sps:$4 sm:$0xff]  }
 0x5d7   :  { %v4685_v63 = vpop.f32.mrf.mxu1  ;;  %v5294_v61 = vpop.f32.mrf.mxu0 }
 0x5d8   :  { %v4686_v25 = vadd.f32 %v4685_v63, %v13772_v5  ;;  %v10895_v5 = vld [vmem:[%s17174_s5 + $0x4a4] ss:$16 sps:$4 sm:$0xff]  }
 0x5d9   :  { %v4687_v7 = vpop.f32.mrf.mxu1  ;;  %v5296_v2 = vpop.f32.mrf.mxu0 }
 0x5da   :  { %v14984_v26 = vadd.f32 %v5294_v61, %v4686_v25 }
 0x5db   :  { %v4690_v49 = vpop.f32.mrf.mxu1  ;;  %4881 = vmatmul.mubr.bf16.gmra.mxu1 %v10893_v46  ;;  %v5299_v54 = vpop.f32.mrf.mxu0  ;;  %5490 = vmatmul.mubr.bf16.gmra.mxu0 %v10894_v9  ;;  %v10897_v46 = vld [vmem:[%s17174_s5 + $0x4a0] ss:$16 sps:$4 sm:$0xff]  }
 0x5dc   :  { %v4691_v48 = vadd.f32 %v4690_v49, %v13780_v55  ;;  %4888 = vmatprep.mubr.bf16.mxu1 %v10895_v5  ;;  %5497 = vmatprep.mubr.bf16.mxu0 %v10896_v24  ;;  %v10900_v5 = vld [vmem:[%s17174_s5 + $0x4cc] ss:$16 sps:$4 sm:$0xff]  }
 0x5dd   :  { %v4692_v58 = vpop.f32.mrf.mxu1  ;;  %v5301_v37 = vpop.f32.mrf.mxu0 }
 0x5de   :  { %v14999_v17 = vadd.f32 %v5299_v54, %v4691_v48  ;;  %v10898_v54 = vld [vmem:[%s17174_s5 + $0x4a8] ss:$16 sps:$4 sm:$0xff]  }
 0x5df   :  { %v4693_v63 = vpop.f32.mrf.mxu1  ;;  %v5302_v61 = vpop.f32.mrf.mxu0 }
 0x5e0   :  { %v4694_v25 = vadd.f32 %v4693_v63, %v13788_v57  ;;  %v10899_v57 = vld [vmem:[%s17174_s5 + $0x4c4] ss:$16 sps:$4 sm:$0xff]  }
 0x5e1   :  { %v4695_v7 = vpop.f32.mrf.mxu1  ;;  %v5304_v55 = vpop.f32.mrf.mxu0 }
 0x5e2   :  { %v15002_v2 = vadd.f32 %v5302_v61, %v4694_v25 }
 0x5e3   :  { %v4698_v49 = vpop.f32.mrf.mxu1  ;;  %4889 = vmatmul.mubr.bf16.gmra.mxu1 %v10897_v46  ;;  %v5307_v9 = vpop.f32.mrf.mxu0  ;;  %5498 = vmatmul.mubr.bf16.gmra.mxu0 %v10898_v54  ;;  %v10901_v46 = vld [vmem:[%s17174_s5 + $0x4c0] ss:$16 sps:$4 sm:$0xff]  }
 0x5e4   :  { %v4699_v48 = vadd.f32 %v4698_v49, %v13796_v1  ;;  %4896 = vmatprep.mubr.bf16.mxu1 %v10899_v57  ;;  %5505 = vmatprep.mubr.bf16.mxu0 %v10900_v5  ;;  %v10904_v57 = vld [vmem:[%s17174_s5 + $0x4ec] ss:$16 sps:$4 sm:$0xff]  }
 0x5e5   :  { %v4700_v24 = vpop.f32.mrf.mxu1  ;;  %v5309_v58 = vpop.f32.mrf.mxu0 }
 0x5e6   :  { %v15017_v37 = vadd.f32 %v5307_v9, %v4699_v48  ;;  %v10902_v9 = vld [vmem:[%s17174_s5 + $0x4c8] ss:$16 sps:$4 sm:$0xff]  }
 0x5e7   :  { %v4701_v63 = vpop.f32.mrf.mxu1  ;;  %v5310_v61 = vpop.f32.mrf.mxu0 }
 0x5e8   :  { %v4702_v25 = vadd.f32 %v4701_v63, %v13804_v56  ;;  %v10903_v56 = vld [vmem:[%s17174_s5 + $0x4e4] ss:$16 sps:$4 sm:$0xff]   ;;  %v1698_v63 = vld [vmem:[%s17175_s6 + $0xc8] sm:$0xff] }
 0x5e9   :  { %v4703_v7 = vpop.f32.mrf.mxu1  ;;  %v5312_v1 = vpop.f32.mrf.mxu0  ;;  %9154 = vmatprep.subr.mxu1 %v1698_v63 }
 0x5ea   :  { %v15020_v55 = vadd.f32 %v5310_v61, %v4702_v25 }
 0x5eb   :  { %v4706_v49 = vpop.f32.mrf.mxu1  ;;  %4897 = vmatmul.mubr.bf16.gmra.mxu1 %v10901_v46  ;;  %v5315_v54 = vpop.f32.mrf.mxu0  ;;  %5506 = vmatmul.mubr.bf16.gmra.mxu0 %v10902_v9  ;;  %v10905_v9 = vld [vmem:[%s17174_s5 + $0x4e0] ss:$16 sps:$4 sm:$0xff]  }
 0x5ec   :  { %v4707_v48 = vadd.f32 %v4706_v49, %v13812_v11  ;;  %4904 = vmatprep.mubr.bf16.mxu1 %v10903_v56  ;;  %5513 = vmatprep.mubr.bf16.mxu0 %v10904_v57  ;;  %v1682_v11 = vld [vmem:[%s17175_s6 + $0x48] sm:$0xff] }
 0x5ed   :  { %v4708_v5 = vpop.f32.mrf.mxu1  ;;  %v5317_v24 = vpop.f32.mrf.mxu0  ;;  %9155 = vmatpush3.msra.mxu1 %v1682_v11  ;;  %v10906_v56 = vld [vmem:[%s17174_s5 + $0x4e8] ss:$16 sps:$4 sm:$0xff]  }
 0x5ee   :  { %v15035_v58 = vadd.f32 %v5315_v54, %v4707_v48  ;;  %v10908_v5 = vld [vmem:[%s17174_s5 + $0x50c] ss:$16 sps:$4 sm:$0xff]  }
 0x5ef   :  { %v4709_v61 = vpop.f32.mrf.mxu1  ;;  %v5318_v25 = vpop.f32.mrf.mxu0 }
 0x5f0   :  { %v4710_v7 = vadd.f32 %v4709_v61, %v13820_v6  ;;  %v10907_v6 = vld [vmem:[%s17174_s5 + $0x504] ss:$16 sps:$4 sm:$0xff]  }
 0x5f1   :  { %v4711_v1 = vpop.f32.mrf.mxu1  ;;  %v5320_v49 = vpop.f32.mrf.mxu0 }
 0x5f2   :  { %v15044_v46 = vadd.f32 %v5318_v25, %v4710_v7 }
 0x5f3   :  { %v4714_v54 = vpop.f32.mrf.mxu1  ;;  %4905 = vmatmul.mubr.bf16.gmra.mxu1 %v10905_v9  ;;  %v5323_v48 = vpop.f32.mrf.mxu0  ;;  %5514 = vmatmul.mubr.bf16.gmra.mxu0 %v10906_v56  ;;  %v10909_v9 = vld [vmem:[%s17174_s5 + $0x500] ss:$16 sps:$4 sm:$0xff]  }
 0x5f4   :  { %v4715_v57 = vadd.f32 %v4714_v54, %v13828_v4  ;;  %4912 = vmatprep.mubr.bf16.mxu1 %v10907_v6  ;;  %5521 = vmatprep.mubr.bf16.mxu0 %v10908_v5  ;;  %v10912_v6 = vld [vmem:[%s17174_s5 + $0x52c] ss:$16 sps:$4 sm:$0xff]  }
 0x5f5   :  { %v4716_v24 = vpop.f32.mrf.mxu1  ;;  %v5325_v63 = vpop.f32.mrf.mxu0 }
 0x5f6   :  { %v15059_v11 = vadd.f32 %v5323_v48, %v4715_v57  ;;  %v10910_v48 = vld [vmem:[%s17174_s5 + $0x508] ss:$16 sps:$4 sm:$0xff]  }
 0x5f7   :  { %v4717_v61 = vpop.f32.mrf.mxu1  ;;  %v5326_v25 = vpop.f32.mrf.mxu0 }
 0x5f8   :  { %v4718_v7 = vadd.f32 %v4717_v61, %v13836_v39  ;;  %v10911_v39 = vld [vmem:[%s17174_s5 + $0x524] ss:$16 sps:$4 sm:$0xff]  }
 0x5f9   :  { %v4719_v1 = vpop.f32.mrf.mxu1  ;;  %v5328_v4 = vpop.f32.mrf.mxu0 }
 0x5fa   :  { %v15062_v49 = vadd.f32 %v5326_v25, %v4718_v7 }
 0x5fb   :  { %v4722_v54 = vpop.f32.mrf.mxu1  ;;  %4913 = vmatmul.mubr.bf16.gmra.mxu1 %v10909_v9  ;;  %v5331_v56 = vpop.f32.mrf.mxu0  ;;  %5522 = vmatmul.mubr.bf16.gmra.mxu0 %v10910_v48  ;;  %v10913_v9 = vld [vmem:[%s17174_s5 + $0x520] ss:$16 sps:$4 sm:$0xff]  }
 0x5fc   :  { %v4723_v57 = vadd.f32 %v4722_v54, %v13844_v14  ;;  %4920 = vmatprep.mubr.bf16.mxu1 %v10911_v39  ;;  %5529 = vmatprep.mubr.bf16.mxu0 %v10912_v6  ;;  %v10916_v39 = vld [vmem:[%s17174_s5 + $0x54c] ss:$16 sps:$4 sm:$0xff]  }
 0x5fd   :  { %v4724_v5 = vpop.f32.mrf.mxu1  ;;  %v5333_v24 = vpop.f32.mrf.mxu0 }
 0x5fe   :  { %v15077_v63 = vadd.f32 %v5331_v56, %v4723_v57  ;;  %v10914_v56 = vld [vmem:[%s17174_s5 + $0x528] ss:$16 sps:$4 sm:$0xff]  }
 0x5ff   :  { %v4725_v61 = vpop.f32.mrf.mxu1  ;;  %v5334_v25 = vpop.f32.mrf.mxu0 }
 0x600   :  { %v4726_v7 = vadd.f32 %v4725_v61, %v13852_v52  ;;  %v10915_v52 = vld [vmem:[%s17174_s5 + $0x544] ss:$16 sps:$4 sm:$0xff]  }
 0x601   :  { %v4727_v1 = vpop.f32.mrf.mxu1  ;;  %v5336_v14 = vpop.f32.mrf.mxu0 }
 0x602   :  { %v15080_v4 = vadd.f32 %v5334_v25, %v4726_v7 }
 0x603   :  { %v4730_v54 = vpop.f32.mrf.mxu1  ;;  %4921 = vmatmul.mubr.bf16.gmra.mxu1 %v10913_v9  ;;  %v5339_v48 = vpop.f32.mrf.mxu0  ;;  %5530 = vmatmul.mubr.bf16.gmra.mxu0 %v10914_v56  ;;  %v10917_v9 = vld [vmem:[%s17174_s5 + $0x540] ss:$16 sps:$4 sm:$0xff]  }
 0x604   :  { %v4731_v57 = vadd.f32 %v4730_v54, %v13860_v35  ;;  %4928 = vmatprep.mubr.bf16.mxu1 %v10915_v52  ;;  %5537 = vmatprep.mubr.bf16.mxu0 %v10916_v39  ;;  %v10920_v52 = vld [vmem:[%s17174_s5 + $0x56c] ss:$16 sps:$4 sm:$0xff]  }
 0x605   :  { %v4732_v6 = vpop.f32.mrf.mxu1  ;;  %v5341_v5 = vpop.f32.mrf.mxu0 }
 0x606   :  { %v15095_v24 = vadd.f32 %v5339_v48, %v4731_v57  ;;  %v10918_v48 = vld [vmem:[%s17174_s5 + $0x548] ss:$16 sps:$4 sm:$0xff]  }
 0x607   :  { %v4733_v61 = vpop.f32.mrf.mxu1  ;;  %v5342_v25 = vpop.f32.mrf.mxu0 }
 0x608   :  { %v4734_v7 = vadd.f32 %v4733_v61, %v13868_v38  ;;  %v10919_v38 = vld [vmem:[%s17174_s5 + $0x564] ss:$16 sps:$4 sm:$0xff]  }
 0x609   :  { %v4735_v1 = vpop.f32.mrf.mxu1  ;;  %v5344_v35 = vpop.f32.mrf.mxu0 }
 0x60a   :  { %v15098_v14 = vadd.f32 %v5342_v25, %v4734_v7 }
 0x60b   :  { %v4738_v54 = vpop.f32.mrf.mxu1  ;;  %4929 = vmatmul.mubr.bf16.gmra.mxu1 %v10917_v9  ;;  %v5347_v56 = vpop.f32.mrf.mxu0  ;;  %5538 = vmatmul.mubr.bf16.gmra.mxu0 %v10918_v48  ;;  %v10921_v48 = vld [vmem:[%s17174_s5 + $0x560] ss:$16 sps:$4 sm:$0xff]  }
 0x60c   :  { %v4739_v57 = vadd.f32 %v4738_v54, %v13876_v60  ;;  %4936 = vmatprep.mubr.bf16.mxu1 %v10919_v38  ;;  %5545 = vmatprep.mubr.bf16.mxu0 %v10920_v52  ;;  %v1697_v54 = vld [vmem:[%s17175_s6 + $0xc0] sm:$0xff] }
 0x60d   :  { %v4740_v39 = vpop.f32.mrf.mxu1  ;;  %v5349_v6 = vpop.f32.mrf.mxu0  ;;  %v10923_v52 = vld [vmem:[%s17174_s5 + $0x584] ss:$16 sps:$4 sm:$0xff]   ;;  %9156 = vmatprep.subr.mxu1 %v1697_v54  ;;  %v10926_v54 = vld [vmem:[%s17174_s5 + $0x588] ss:$16 sps:$4 sm:$0xff]  }
 0x60e   :  { %v15113_v5 = vadd.f32 %v5347_v56, %v4739_v57  ;;  %v10922_v57 = vld [vmem:[%s17174_s5 + $0x568] ss:$16 sps:$4 sm:$0xff]   ;;  %v10924_v39 = vld [vmem:[%s17174_s5 + $0x58c] ss:$16 sps:$4 sm:$0xff]  }
 0x60f   :  { %v4741_v61 = vpop.f32.mrf.mxu1  ;;  %v5350_v25 = vpop.f32.mrf.mxu0 }
 0x610   :  { %v4742_v7 = vadd.f32 %v4741_v61, %v13884_v45  ;;  %v1681_v45 = vld [vmem:[%s17175_s6 + $0x40] sm:$0xff] }
 0x611   :  { %v4743_v1 = vpop.f32.mrf.mxu1  ;;  %v5352_v60 = vpop.f32.mrf.mxu0  ;;  %9157 = vmatpush3.msra.mxu1 %v1681_v45  ;;  %v10928_v45 = vld [vmem:[%s17174_s5 + $0x5ac] ss:$16 sps:$4 sm:$0xff]  }
 0x612   :  { %v15116_v35 = vadd.f32 %v5350_v25, %v4742_v7 }
 0x613   :  { %v4746_v9 = vpop.f32.mrf.mxu1  ;;  %4937 = vmatmul.mubr.bf16.gmra.mxu1 %v10921_v48  ;;  %v5355_v56 = vpop.f32.mrf.mxu0  ;;  %5546 = vmatmul.mubr.bf16.gmra.mxu0 %v10922_v57 }
 0x614   :  { %v4747_v38 = vadd.f32 %v4746_v9, %v13892_v28  ;;  %4944 = vmatprep.mubr.bf16.mxu1 %v10923_v52  ;;  %5553 = vmatprep.mubr.bf16.mxu0 %v10924_v39  ;;  %v10925_v52 = vld [vmem:[%s17174_s5 + $0x580] ss:$16 sps:$4 sm:$0xff]  }
 0x615   :  { %v4748_v6 = vpop.f32.mrf.mxu1  ;;  %v5357_v61 = vpop.f32.mrf.mxu0 }
 0x616   :  { %v15137_v25 = vadd.f32 %v5355_v56, %v4747_v38 }
 0x617   :  { %v4749_v7 = vpop.f32.mrf.mxu1  ;;  %v5358_v1 = vpop.f32.mrf.mxu0 }
 0x618   :  { %v4750_v28 = vadd.f32 %v4749_v7, %v13900_v51  ;;  %v10927_v51 = vld [vmem:[%s17174_s5 + $0x5a4] ss:$16 sps:$4 sm:$0xff]  }
 0x619   :  { %v4751_v60 = vpop.f32.mrf.mxu1  ;;  %v5360_v9 = vpop.f32.mrf.mxu0 }
 0x61a   :  { %v15140_v48 = vadd.f32 %v5358_v1, %v4750_v28 }
 0x61b   :  { %v4754_v57 = vpop.f32.mrf.mxu1  ;;  %4945 = vmatmul.mubr.bf16.gmra.mxu1 %v10925_v52  ;;  %v5363_v39 = vpop.f32.mrf.mxu0  ;;  %5554 = vmatmul.mubr.bf16.gmra.mxu0 %v10926_v54  ;;  %v10929_v52 = vld [vmem:[%s17174_s5 + $0x5a0] ss:$16 sps:$4 sm:$0xff]  }
 0x61c   :  { %v4755_v56 = vadd.f32 %v4754_v57, %v13908_v10  ;;  %4952 = vmatprep.mubr.bf16.mxu1 %v10927_v51  ;;  %5561 = vmatprep.mubr.bf16.mxu0 %v10928_v45  ;;  %v10932_v51 = vld [vmem:[%s17174_s5 + $0x5cc] ss:$16 sps:$4 sm:$0xff]  }
 0x61d   :  { %v4756_v38 = vpop.f32.mrf.mxu1  ;;  %v5365_v6 = vpop.f32.mrf.mxu0 }
 0x61e   :  { %v15155_v61 = vadd.f32 %v5363_v39, %v4755_v56  ;;  %v10930_v39 = vld [vmem:[%s17174_s5 + $0x5a8] ss:$16 sps:$4 sm:$0xff]  }
 0x61f   :  { %v4757_v7 = vpop.f32.mrf.mxu1  ;;  %v5366_v1 = vpop.f32.mrf.mxu0 }
 0x620   :  { %v4758_v28 = vadd.f32 %v4757_v7, %v13916_v62  ;;  %v10931_v62 = vld [vmem:[%s17174_s5 + $0x5c4] ss:$16 sps:$4 sm:$0xff]  }
 0x621   :  { %v4759_v60 = vpop.f32.mrf.mxu1  ;;  %v5368_v10 = vpop.f32.mrf.mxu0 }
 0x622   :  { %v15158_v9 = vadd.f32 %v5366_v1, %v4758_v28 }
 0x623   :  { %v4762_v57 = vpop.f32.mrf.mxu1  ;;  %4953 = vmatmul.mubr.bf16.gmra.mxu1 %v10929_v52  ;;  %v5371_v54 = vpop.f32.mrf.mxu0  ;;  %5562 = vmatmul.mubr.bf16.gmra.mxu0 %v10930_v39  ;;  %v10933_v52 = vld [vmem:[%s17174_s5 + $0x5c0] ss:$16 sps:$4 sm:$0xff]  }
 0x624   :  { %v4763_v56 = vadd.f32 %v4762_v57, %v13924_v13  ;;  %4960 = vmatprep.mubr.bf16.mxu1 %v10931_v62  ;;  %5569 = vmatprep.mubr.bf16.mxu0 %v10932_v51  ;;  %v10936_v62 = vld [vmem:[%s17174_s5 + $0x5ec] ss:$16 sps:$4 sm:$0xff]  }
 0x625   :  { %v4764_v45 = vpop.f32.mrf.mxu1  ;;  %v5373_v38 = vpop.f32.mrf.mxu0 }
 0x626   :  { %v15173_v6 = vadd.f32 %v5371_v54, %v4763_v56  ;;  %v10934_v54 = vld [vmem:[%s17174_s5 + $0x5c8] ss:$16 sps:$4 sm:$0xff]  }
 0x627   :  { %v4765_v7 = vpop.f32.mrf.mxu1  ;;  %v5374_v1 = vpop.f32.mrf.mxu0 }
 0x628   :  { %v4766_v28 = vadd.f32 %v4765_v7, %v13932_v22  ;;  %v10935_v22 = vld [vmem:[%s17174_s5 + $0x5e4] ss:$16 sps:$4 sm:$0xff]  }
 0x629   :  { %v4767_v60 = vpop.f32.mrf.mxu1  ;;  %v5376_v13 = vpop.f32.mrf.mxu0 }
 0x62a   :  { %v15176_v10 = vadd.f32 %v5374_v1, %v4766_v28 }
 0x62b   :  { %v4770_v57 = vpop.f32.mrf.mxu1  ;;  %4961 = vmatmul.mubr.bf16.gmra.mxu1 %v10933_v52  ;;  %v5379_v39 = vpop.f32.mrf.mxu0  ;;  %5570 = vmatmul.mubr.bf16.gmra.mxu0 %v10934_v54  ;;  %v10937_v52 = vld [vmem:[%s17174_s5 + $0x5e0] ss:$16 sps:$4 sm:$0xff]  }
 0x62c   :  { %v4771_v56 = vadd.f32 %v4770_v57, %v13940_v20  ;;  %4968 = vmatprep.mubr.bf16.mxu1 %v10935_v22  ;;  %5577 = vmatprep.mubr.bf16.mxu0 %v10936_v62  ;;  %v10940_v22 = vld [vmem:[%s17174_s5 + $0x60c] ss:$16 sps:$4 sm:$0xff]  }
 0x62d   :  { %v4772_v51 = vpop.f32.mrf.mxu1  ;;  %v5381_v45 = vpop.f32.mrf.mxu0 }
 0x62e   :  { %v15191_v38 = vadd.f32 %v5379_v39, %v4771_v56  ;;  %v10938_v39 = vld [vmem:[%s17174_s5 + $0x5e8] ss:$16 sps:$4 sm:$0xff]  }
 0x62f   :  { %v4773_v7 = vpop.f32.mrf.mxu1  ;;  %v5382_v1 = vpop.f32.mrf.mxu0 }
 0x630   :  { %v4774_v28 = vadd.f32 %v4773_v7, %v13948_v23  ;;  %v10939_v23 = vld [vmem:[%s17174_s5 + $0x604] ss:$16 sps:$4 sm:$0xff]   ;;  %v1696_v7 = vld [vmem:[%s17175_s6 + $0xb8] sm:$0xff] }
 0x631   :  { %v4775_v60 = vpop.f32.mrf.mxu1  ;;  %v5384_v20 = vpop.f32.mrf.mxu0  ;;  %9158 = vmatprep.subr.mxu1 %v1696_v7 }
 0x632   :  { %v15194_v13 = vadd.f32 %v5382_v1, %v4774_v28 }
 0x633   :  { %v4778_v57 = vpop.f32.mrf.mxu1  ;;  %4969 = vmatmul.mubr.bf16.gmra.mxu1 %v10937_v52  ;;  %v5387_v54 = vpop.f32.mrf.mxu0  ;;  %5578 = vmatmul.mubr.bf16.gmra.mxu0 %v10938_v39  ;;  %v10941_v39 = vld [vmem:[%s17174_s5 + $0x600] ss:$16 sps:$4 sm:$0xff]  }
 0x634   :  { %v4779_v56 = vadd.f32 %v4778_v57, %v13956_v33  ;;  %4976 = vmatprep.mubr.bf16.mxu1 %v10939_v23  ;;  %5585 = vmatprep.mubr.bf16.mxu0 %v10940_v22  ;;  %v1680_v33 = vld [vmem:[%s17175_s6 + $0x38] sm:$0xff] }
 0x635   :  { %v4780_v62 = vpop.f32.mrf.mxu1  ;;  %v5389_v51 = vpop.f32.mrf.mxu0  ;;  %9159 = vmatpush3.msra.mxu1 %v1680_v33  ;;  %v10942_v23 = vld [vmem:[%s17174_s5 + $0x608] ss:$16 sps:$4 sm:$0xff]  }
 0x636   :  { %v15209_v45 = vadd.f32 %v5387_v54, %v4779_v56  ;;  %v10944_v62 = vld [vmem:[%s17174_s5 + $0x62c] ss:$16 sps:$4 sm:$0xff]  }
 0x637   :  { %v4781_v1 = vpop.f32.mrf.mxu1  ;;  %v5390_v28 = vpop.f32.mrf.mxu0 }
 0x638   :  { %v4782_v60 = vadd.f32 %v4781_v1, %v13964_v47  ;;  %v10943_v47 = vld [vmem:[%s17174_s5 + $0x624] ss:$16 sps:$4 sm:$0xff]  }
 0x639   :  { %v4783_v20 = vpop.f32.mrf.mxu1  ;;  %v5392_v57 = vpop.f32.mrf.mxu0 }
 0x63a   :  { %v15218_v52 = vadd.f32 %v5390_v28, %v4782_v60 }
 0x63b   :  { %v4786_v54 = vpop.f32.mrf.mxu1  ;;  %4977 = vmatmul.mubr.bf16.gmra.mxu1 %v10941_v39  ;;  %v5395_v56 = vpop.f32.mrf.mxu0  ;;  %5586 = vmatmul.mubr.bf16.gmra.mxu0 %v10942_v23  ;;  %v10945_v39 = vld [vmem:[%s17174_s5 + $0x620] ss:$16 sps:$4 sm:$0xff]  }
 0x63c   :  { %v4787_v22 = vadd.f32 %v4786_v54, %v13972_v50  ;;  %4984 = vmatprep.mubr.bf16.mxu1 %v10943_v47  ;;  %5593 = vmatprep.mubr.bf16.mxu0 %v10944_v62  ;;  %v10948_v62 = vld [vmem:[%s17174_s5 + $0x64c] ss:$16 sps:$4 sm:$0xff]  }
 0x63d   :  { %v4788_v51 = vpop.f32.mrf.mxu1  ;;  %v5397_v7 = vpop.f32.mrf.mxu0 }
 0x63e   :  { %v15233_v33 = vadd.f32 %v5395_v56, %v4787_v22  ;;  %v10946_v56 = vld [vmem:[%s17174_s5 + $0x628] ss:$16 sps:$4 sm:$0xff]  }
 0x63f   :  { %v4789_v1 = vpop.f32.mrf.mxu1  ;;  %v5398_v28 = vpop.f32.mrf.mxu0  ;;  %v17638_v22 = vld [vmem:[#allocation6_spill] sm:$0xff] }
 0x640   :  { %v4790_v60 = vadd.f32 %v4789_v1, %v13980_v40  ;;  %v10947_v40 = vld [vmem:[%s17174_s5 + $0x644] ss:$16 sps:$4 sm:$0xff]  }
 0x641   :  { %v4791_v20 = vpop.f32.mrf.mxu1  ;;  %v5400_v50 = vpop.f32.mrf.mxu0 }
 0x642   :  { %v15236_v57 = vadd.f32 %v5398_v28, %v4790_v60  ;;  %v17639_v20 = vld [vmem:[#allocation7_spill] sm:$0xff] }
 0x643   :  { %v4794_v54 = vpop.f32.mrf.mxu1  ;;  %4985 = vmatmul.mubr.bf16.gmra.mxu1 %v10945_v39  ;;  %v5403_v23 = vpop.f32.mrf.mxu0  ;;  %5594 = vmatmul.mubr.bf16.gmra.mxu0 %v10946_v56 }
 0x644   :  { %v4795_v47 = vadd.f32 %v4794_v54, %v17638_v22  ;;  %4992 = vmatprep.mubr.bf16.mxu1 %v10947_v40  ;;  %5601 = vmatprep.mubr.bf16.mxu0 %v10948_v62  ;;  %v10949_v40 = vld [vmem:[%s17174_s5 + $0x640] ss:$16 sps:$4 sm:$0xff]  }
 0x645   :  { %v4796_v51 = vpop.f32.mrf.mxu1  ;;  %v5405_v7 = vpop.f32.mrf.mxu0 }
 0x646   :  { %v15251_v1 = vadd.f32 %v5403_v23, %v4795_v47  ;;  %v10950_v23 = vld [vmem:[%s17174_s5 + $0x648] ss:$16 sps:$4 sm:$0xff]   ;;  %v10951_v51 = vld [vmem:[%s17174_s5 + $0x664] ss:$16 sps:$4 sm:$0xff]   ;;  %v10952_v7 = vld [vmem:[%s17174_s5 + $0x66c] ss:$16 sps:$4 sm:$0xff]  }
 0x647   :  { %v4797_v28 = vpop.f32.mrf.mxu1  ;;  %v5406_v60 = vpop.f32.mrf.mxu0  ;;  %v17640_v47 = vld [vmem:[#allocation21_spill] sm:$0xff] }
 0x648   :  { %v4798_v50 = vadd.f32 %v4797_v28, %v17639_v20 }
 0x649   :  { %v4799_v39 = vpop.f32.mrf.mxu1  ;;  %v5408_v54 = vpop.f32.mrf.mxu0 }
 0x64a   :  { %v15254_v56 = vadd.f32 %v5406_v60, %v4798_v50  ;;  %v17641_v54 = vld [vmem:[#allocation5_spill] sm:$0xff] }
 0x64b   :  { %v4802_v22 = vpop.f32.mrf.mxu1  ;;  %4993 = vmatmul.mubr.bf16.gmra.mxu1 %v10949_v40  ;;  %v5411_v32 = vpop.f32.mrf.mxu0  ;;  %5602 = vmatmul.mubr.bf16.gmra.mxu0 %v10950_v23 }
 0x64c   :  { %v4803_v62 = vadd.f32 %v4802_v22, %v17640_v47  ;;  %5000 = vmatprep.mubr.bf16.mxu1 %v10951_v51  ;;  %5609 = vmatprep.mubr.bf16.mxu0 %v10952_v7  ;;  %v10953_v51 = vld [vmem:[%s17174_s5 + $0x660] ss:$16 sps:$4 sm:$0xff]  }
 0x64d   :  { %v4804_v28 = vpop.f32.mrf.mxu1  ;;  %v5413_v60 = vpop.f32.mrf.mxu0 }
 0x64e   :  { %v15269_v20 = vadd.f32 %v5411_v32, %v4803_v62  ;;  %v10954_v32 = vld [vmem:[%s17174_s5 + $0x668] ss:$16 sps:$4 sm:$0xff]   ;;  %v10955_v28 = vld [vmem:[%s17174_s5 + $0x684] ss:$16 sps:$4 sm:$0xff]   ;;  %v10956_v60 = vld [vmem:[%s17174_s5 + $0x68c] ss:$16 sps:$4 sm:$0xff]  }
 0x64f   :  { %v4805_v50 = vpop.f32.mrf.mxu1  ;;  %v5414_v39 = vpop.f32.mrf.mxu0  ;;  %v17642_v62 = vld [vmem:[#allocation16_spill] sm:$0xff] }
 0x650   :  { %v4806_v40 = vadd.f32 %v4805_v50, %v17641_v54 }
 0x651   :  { %v4807_v23 = vpop.f32.mrf.mxu1  ;;  %v5416_v22 = vpop.f32.mrf.mxu0 }
 0x652   :  { %v15272_v47 = vadd.f32 %v5414_v39, %v4806_v40  ;;  %v17643_v22 = vld [vmem:[#allocation33_spill] sm:$0xff] }
 0x653   :  { %v4810_v34 = vpop.f32.mrf.mxu1  ;;  %5001 = vmatmul.mubr.bf16.gmra.mxu1 %v10953_v51  ;;  %v5419_v44 = vpop.f32.mrf.mxu0  ;;  %5610 = vmatmul.mubr.bf16.gmra.mxu0 %v10954_v32 }
 0x654   :  { %v4811_v7 = vadd.f32 %v4810_v34, %v17642_v62  ;;  %5008 = vmatprep.mubr.bf16.mxu1 %v10955_v28  ;;  %5617 = vmatprep.mubr.bf16.mxu0 %v10956_v60  ;;  %v10957_v28 = vld [vmem:[%s17174_s5 + $0x680] ss:$16 sps:$4 sm:$0xff]  }
 0x655   :  { %v4812_v50 = vpop.f32.mrf.mxu1  ;;  %v5421_v39 = vpop.f32.mrf.mxu0 }
 0x656   :  { %v15287_v54 = vadd.f32 %v5419_v44, %v4811_v7  ;;  %v10958_v44 = vld [vmem:[%s17174_s5 + $0x688] ss:$16 sps:$4 sm:$0xff]   ;;  %v10959_v50 = vld [vmem:[%s17174_s5 + $0x6a4] ss:$16 sps:$4 sm:$0xff]   ;;  %v10960_v39 = vld [vmem:[%s17174_s5 + $0x6ac] ss:$16 sps:$4 sm:$0xff]  }
 0x657   :  { %v4813_v40 = vpop.f32.mrf.mxu1  ;;  %v5422_v23 = vpop.f32.mrf.mxu0  ;;  %v17644_v7 = vld [vmem:[#allocation34_spill] sm:$0xff] }
 0x658   :  { %v4814_v51 = vadd.f32 %v4813_v40, %v17643_v22  ;;  %v1695_v40 = vld [vmem:[%s17175_s6 + $0xb0] sm:$0xff] }
 0x659   :  { %v4815_v32 = vpop.f32.mrf.mxu1  ;;  %v5424_v34 = vpop.f32.mrf.mxu0  ;;  %9160 = vmatprep.subr.mxu1 %v1695_v40 }
 0x65a   :  { %v15290_v62 = vadd.f32 %v5422_v23, %v4814_v51  ;;  %v1706_v23 = vld [vmem:[%s17175_s6 + $0x108] sm:$0xff] }
 0x65b   :  { %v4818_v21 = vpop.f32.mrf.mxu1  ;;  %5009 = vmatmul.mubr.bf16.gmra.mxu1 %v10957_v28  ;;  %v5427_v19 = vpop.f32.mrf.mxu0  ;;  %5618 = vmatmul.mubr.bf16.gmra.mxu0 %v10958_v44  ;;  %v17645_v44 = vld [vmem:[#allocation36_spill] sm:$0xff] }
 0x65c   :  { %v4819_v60 = vadd.f32 %v4818_v21, %v17644_v7  ;;  %5016 = vmatprep.mubr.bf16.mxu1 %v10959_v50  ;;  %5625 = vmatprep.mubr.bf16.mxu0 %v10960_v39  ;;  %v1679_v21 = vld [vmem:[%s17175_s6 + $0x30] sm:$0xff] }
 0x65d   :  { %v4820_v22 = vpop.f32.mrf.mxu1  ;;  %v5429_v51 = vpop.f32.mrf.mxu0  ;;  %9686 = vmatprep.subr.mxu0 %v1706_v23  ;;  %9161 = vmatpush3.msra.mxu1 %v1679_v21  ;;  %v10963_v21 = vld [vmem:[%s17174_s5 + $0x6c4] ss:$16 sps:$4 sm:$0xff]  }
 0x65e   :  { %v15314_v32 = vadd.f32 %v5427_v19, %v4819_v60  ;;  %9687 = vmatpush3.msra.mxu0 %v1706_v23  ;;  %v10961_v22 = vld [vmem:[%s17174_s5 + $0x6a0] ss:$16 sps:$4 sm:$0xff]   ;;  %v10962_v19 = vld [vmem:[%s17174_s5 + $0x6a8] ss:$16 sps:$4 sm:$0xff]   ;;  %v10964_v51 = vld [vmem:[%s17174_s5 + $0x6cc] ss:$16 sps:$4 sm:$0xff]  }
 0x65f   :  { %v4821_v34 = vpop.f32.mrf.mxu1  ;;  %v5430_v28 = vpop.f32.mrf.mxu0  ;;  %v17646_v60 = vld [vmem:[#allocation15_spill] sm:$0xff] }
 0x660   :  { %v4822_v7 = vadd.f32 %v4821_v34, %v17645_v44 }
 0x661   :  { %v4823_v50 = vpop.f32.mrf.mxu1  ;;  %v5432_v39 = vpop.f32.mrf.mxu0 }
 0x662   :  { %v15317_v12 = vadd.f32 %v5430_v28, %v4822_v7  ;;  %v17647_v39 = vld [vmem:[#allocation31_spill] sm:$0xff] }
 0x663   :  { %v4826_v15 = vpop.f32.mrf.mxu1  ;;  %5017 = vmatmul.mubr.bf16.gmra.mxu1 %v10961_v22  ;;  %v5435_v40 = vpop.f32.mrf.mxu0  ;;  %5626 = vmatmul.mubr.bf16.gmra.mxu0 %v10962_v19 }
 0x664   :  { %v4827_v23 = vadd.f32 %v4826_v15, %v17646_v60  ;;  %5024 = vmatprep.mubr.bf16.mxu1 %v10963_v21  ;;  %5633 = vmatprep.mubr.bf16.mxu0 %v10964_v51  ;;  %v10965_v21 = vld [vmem:[%s17174_s5 + $0x6c0] ss:$16 sps:$4 sm:$0xff]  }
 0x665   :  { %v4828_v34 = vpop.f32.mrf.mxu1  ;;  %v5437_v28 = vpop.f32.mrf.mxu0 }
 0x666   :  { %v15332_v44 = vadd.f32 %v5435_v40, %v4827_v23  ;;  %v10966_v40 = vld [vmem:[%s17174_s5 + $0x6c8] ss:$16 sps:$4 sm:$0xff]   ;;  %v10967_v34 = vld [vmem:[%s17174_s5 + $0x6e4] ss:$16 sps:$4 sm:$0xff]   ;;  %v10968_v28 = vld [vmem:[%s17174_s5 + $0x6ec] ss:$16 sps:$4 sm:$0xff]  }
 0x667   :  { %v4829_v7 = vpop.f32.mrf.mxu1  ;;  %v5438_v50 = vpop.f32.mrf.mxu0  ;;  %v17648_v23 = vld [vmem:[#allocation32_spill] sm:$0xff] }
 0x668   :  { %v4830_v22 = vadd.f32 %v4829_v7, %v17647_v39 }
 0x669   :  { %v4831_v19 = vpop.f32.mrf.mxu1  ;;  %v5440_v15 = vpop.f32.mrf.mxu0 }
 0x66a   :  { %v15335_v60 = vadd.f32 %v5438_v50, %v4830_v22  ;;  %v17649_v15 = vld [vmem:[#allocation27_spill] sm:$0xff] }
 0x66b   :  { %v4834_v59 = vpop.f32.mrf.mxu1  ;;  %5025 = vmatmul.mubr.bf16.gmra.mxu1 %v10965_v21  ;;  %v5443_v29 = vpop.f32.mrf.mxu0  ;;  %5634 = vmatmul.mubr.bf16.gmra.mxu0 %v10966_v40 }
 0x66c   :  { %v4835_v51 = vadd.f32 %v4834_v59, %v17648_v23  ;;  %5032 = vmatprep.mubr.bf16.mxu1 %v10967_v34  ;;  %5641 = vmatprep.mubr.bf16.mxu0 %v10968_v28  ;;  %v10969_v34 = vld [vmem:[%s17174_s5 + $0x6e0] ss:$16 sps:$4 sm:$0xff]  }
 0x66d   :  { %v4836_v7 = vpop.f32.mrf.mxu1  ;;  %v5445_v50 = vpop.f32.mrf.mxu0 }
 0x66e   :  { %v15350_v39 = vadd.f32 %v5443_v29, %v4835_v51  ;;  %v10970_v29 = vld [vmem:[%s17174_s5 + $0x6e8] ss:$16 sps:$4 sm:$0xff]   ;;  %v10971_v7 = vld [vmem:[%s17174_s5 + $0x704] ss:$16 sps:$4 sm:$0xff]   ;;  %v10972_v50 = vld [vmem:[%s17174_s5 + $0x70c] ss:$16 sps:$4 sm:$0xff]  }
 0x66f   :  { %v4837_v22 = vpop.f32.mrf.mxu1  ;;  %v5446_v19 = vpop.f32.mrf.mxu0  ;;  %v17650_v51 = vld [vmem:[#allocation28_spill] sm:$0xff] }
 0x670   :  { %v4838_v21 = vadd.f32 %v4837_v22, %v17649_v15 }
 0x671   :  { %v4839_v40 = vpop.f32.mrf.mxu1  ;;  %v5448_v59 = vpop.f32.mrf.mxu0 }
 0x672   :  { %v15353_v23 = vadd.f32 %v5446_v19, %v4838_v21  ;;  %v17651_v59 = vld [vmem:[#allocation14_spill] sm:$0xff] }
 0x673   :  { %v4842_v0 = vpop.f32.mrf.mxu1  ;;  %5033 = vmatmul.mubr.bf16.gmra.mxu1 %v10969_v34  ;;  %v5451_v42 = vpop.f32.mrf.mxu0  ;;  %5642 = vmatmul.mubr.bf16.gmra.mxu0 %v10970_v29 }
 0x674   :  { %v4843_v28 = vadd.f32 %v4842_v0, %v17650_v51  ;;  %5040 = vmatprep.mubr.bf16.mxu1 %v10971_v7  ;;  %5649 = vmatprep.mubr.bf16.mxu0 %v10972_v50  ;;  %v10973_v7 = vld [vmem:[%s17174_s5 + $0x700] ss:$16 sps:$4 sm:$0xff]  }
 0x675   :  { %v4844_v22 = vpop.f32.mrf.mxu1  ;;  %v5453_v19 = vpop.f32.mrf.mxu0 }
 0x676   :  { %v15368_v15 = vadd.f32 %v5451_v42, %v4843_v28  ;;  %v10974_v42 = vld [vmem:[%s17174_s5 + $0x708] ss:$16 sps:$4 sm:$0xff]   ;;  %v10975_v22 = vld [vmem:[%s17174_s5 + $0x724] ss:$16 sps:$4 sm:$0xff]   ;;  %v10976_v19 = vld [vmem:[%s17174_s5 + $0x72c] ss:$16 sps:$4 sm:$0xff]  }
 0x677   :  { %v4845_v21 = vpop.f32.mrf.mxu1  ;;  %v5454_v40 = vpop.f32.mrf.mxu0  ;;  %v17652_v28 = vld [vmem:[#allocation23_spill] sm:$0xff] }
 0x678   :  { %v4846_v34 = vadd.f32 %v4845_v21, %v17651_v59 }
 0x679   :  { %v4847_v29 = vpop.f32.mrf.mxu1  ;;  %v5456_v0 = vpop.f32.mrf.mxu0 }
 0x67a   :  { %v15371_v51 = vadd.f32 %v5454_v40, %v4846_v34  ;;  %v17654_v0 = vld [vmem:[#allocation29_spill] sm:$0xff] }
 0x67b   :  { %v4850_v18 = vpop.f32.mrf.mxu1  ;;  %5041 = vmatmul.mubr.bf16.gmra.mxu1 %v10973_v7  ;;  %v5459_v30 = vpop.f32.mrf.mxu0  ;;  %5650 = vmatmul.mubr.bf16.gmra.mxu0 %v10974_v42  ;;  %v1678_v42 = vld [vmem:[%s17175_s6 + $0x28] sm:$0xff] }
 0x67c   :  { %v4851_v50 = vadd.f32 %v4850_v18, %v17652_v28  ;;  %5048 = vmatprep.mubr.bf16.mxu1 %v10975_v22  ;;  %5657 = vmatprep.mubr.bf16.mxu0 %v10976_v19  ;;  %v1694_v18 = vld [vmem:[%s17175_s6 + $0xa8] sm:$0xff] }
 0x67d   :  { %v4852_v21 = vpop.f32.mrf.mxu1  ;;  %v5461_v40 = vpop.f32.mrf.mxu0  ;;  %9162 = vmatprep.subr.mxu1 %v1694_v18 }
 0x67e   :  { %v15386_v59 = vadd.f32 %v5459_v30, %v4851_v50  ;;  %9163 = vmatpush3.msra.mxu1 %v1678_v42  ;;  %v10977_v50 = vld [vmem:[%s17174_s5 + $0x720] ss:$16 sps:$4 sm:$0xff]   ;;  %v10978_v40 = vld [vmem:[%s17174_s5 + $0x728] ss:$16 sps:$4 sm:$0xff]  }
 0x67f   :  { %v4853_v34 = vpop.f32.mrf.mxu1  ;;  %v5462_v29 = vpop.f32.mrf.mxu0 }
 0x680   :  { %17653 = vst [vmem:[#allocation6_spill] sm:$0xff] %v15386_v59  ;;  %v4854_v7 = vadd.f32 %v4853_v34, %v17654_v0  ;;  %v17656_v34 = vld [vmem:[#allocation30_spill] sm:$0xff] }
 0x681   :  { %v4855_v28 = vpop.f32.mrf.mxu1  ;;  %v5464_v22 = vpop.f32.mrf.mxu0 }
 0x682   :  { %v15395_v19 = vadd.f32 %v5462_v29, %v4854_v7  ;;  %v10979_v29 = vld [vmem:[%s17174_s5 + $0x744] ss:$16 sps:$4 sm:$0xff]   ;;  %v10980_v7 = vld [vmem:[%s17174_s5 + $0x74c] ss:$16 sps:$4 sm:$0xff]  }
 0x683   :  { %v4858_v30 = vpop.f32.mrf.mxu1  ;;  %5049 = vmatmul.mubr.bf16.gmra.mxu1 %v10977_v50  ;;  %v5467_v21 = vpop.f32.mrf.mxu0  ;;  %5658 = vmatmul.mubr.bf16.gmra.mxu0 %v10978_v40 }
 0x684   :  { %17655 = vst [vmem:[#allocation7_spill] sm:$0xff] %v15395_v19  ;;  %v4859_v0 = vadd.f32 %v4858_v30, %v17656_v34  ;;  %5056 = vmatprep.mubr.bf16.mxu1 %v10979_v29  ;;  %5665 = vmatprep.mubr.bf16.mxu0 %v10980_v7  ;;  %v10981_v29 = vld [vmem:[%s17174_s5 + $0x740] ss:$16 sps:$4 sm:$0xff]  }
 0x685   :  { %v4860_v18 = vpop.f32.mrf.mxu1  ;;  %v5469_v42 = vpop.f32.mrf.mxu0 }
 0x686   :  { %v15410_v28 = vadd.f32 %v5467_v21, %v4859_v0  ;;  %v10982_v21 = vld [vmem:[%s17174_s5 + $0x748] ss:$16 sps:$4 sm:$0xff]  }
 0x687   :  { %v4861_v22 = vpop.f32.mrf.mxu1  ;;  %v5470_v50 = vpop.f32.mrf.mxu0  ;;  %v17660_v0 = vld [vmem:[#allocation13_spill] sm:$0xff] }
 0x688   :  { %17657 = vst [vmem:[#allocation21_spill] sm:$0xff] %v15410_v28  ;;  %v4862_v40 = vadd.f32 %v4861_v22, %v17658_v31  ;;  %v10983_v31 = vld [vmem:[%s17174_s5 + $0x764] ss:$16 sps:$4 sm:$0xff]  }
 0x689   :  { %v4863_v19 = vpop.f32.mrf.mxu1  ;;  %v5472_v30 = vpop.f32.mrf.mxu0 }
 0x68a   :  { %v15413_v34 = vadd.f32 %v5470_v50, %v4862_v40  ;;  %v10984_v19 = vld [vmem:[%s17174_s5 + $0x76c] ss:$16 sps:$4 sm:$0xff]   ;;  %v17662_v30 = vld [vmem:[#allocation19_spill] sm:$0xff] }
 0x68b   :  { %v4866_v59 = vpop.f32.mrf.mxu1  ;;  %5057 = vmatmul.mubr.bf16.gmra.mxu1 %v10981_v29  ;;  %v5475_v27 = vpop.f32.mrf.mxu0  ;;  %5666 = vmatmul.mubr.bf16.gmra.mxu0 %v10982_v21 }
 0x68c   :  { %17659 = vst [vmem:[#allocation5_spill] sm:$0xff] %v15413_v34  ;;  %v4867_v7 = vadd.f32 %v4866_v59, %v17660_v0  ;;  %5064 = vmatprep.mubr.bf16.mxu1 %v10983_v31  ;;  %5673 = vmatprep.mubr.bf16.mxu0 %v10984_v19  ;;  %v10985_v31 = vld [vmem:[%s17174_s5 + $0x760] ss:$16 sps:$4 sm:$0xff]  }
 0x68d   :  { %v4868_v18 = vpop.f32.mrf.mxu1  ;;  %v5477_v42 = vpop.f32.mrf.mxu0 }
 0x68e   :  { %v15428_v22 = vadd.f32 %v5475_v27, %v4867_v7  ;;  %v10986_v27 = vld [vmem:[%s17174_s5 + $0x768] ss:$16 sps:$4 sm:$0xff]   ;;  %v10987_v18 = vld [vmem:[%s17174_s5 + $0x784] ss:$16 sps:$4 sm:$0xff]   ;;  %v10988_v42 = vld [vmem:[%s17174_s5 + $0x78c] ss:$16 sps:$4 sm:$0xff]  }
 0x68f   :  { %v4869_v50 = vpop.f32.mrf.mxu1  ;;  %v5478_v40 = vpop.f32.mrf.mxu0  ;;  %v17664_v7 = vld [vmem:[#allocation20_spill] sm:$0xff] }
 0x690   :  { %17661 = vst [vmem:[#allocation16_spill] sm:$0xff] %v15428_v22  ;;  %v4870_v29 = vadd.f32 %v4869_v50, %v17662_v30 }
 0x691   :  { %v4871_v21 = vpop.f32.mrf.mxu1  ;;  %v5480_v59 = vpop.f32.mrf.mxu0 }
 0x692   :  { %v15431_v0 = vadd.f32 %v5478_v40, %v4870_v29  ;;  %v17666_v59 = vld [vmem:[#allocation11_spill] sm:$0xff] }
 0x693   :  { %v4874_v34 = vpop.f32.mrf.mxu1  ;;  %5065 = vmatmul.mubr.bf16.gmra.mxu1 %v10985_v31  ;;  %v5483_v28 = vpop.f32.mrf.mxu0  ;;  %5674 = vmatmul.mubr.bf16.gmra.mxu0 %v10986_v27 }
 0x694   :  { %17663 = vst [vmem:[#allocation33_spill] sm:$0xff] %v15431_v0  ;;  %v4875_v19 = vadd.f32 %v4874_v34, %v17664_v7  ;;  %5072 = vmatprep.mubr.bf16.mxu1 %v10987_v18  ;;  %5681 = vmatprep.mubr.bf16.mxu0 %v10988_v42  ;;  %v10989_v18 = vld [vmem:[%s17174_s5 + $0x780] ss:$16 sps:$4 sm:$0xff]  }
 0x695   :  { %v4876_v50 = vpop.f32.mrf.mxu1  ;;  %v5485_v40 = vpop.f32.mrf.mxu0 }
 0x696   :  { %v15446_v30 = vadd.f32 %v5483_v28, %v4875_v19  ;;  %v10990_v28 = vld [vmem:[%s17174_s5 + $0x788] ss:$16 sps:$4 sm:$0xff]   ;;  %v10991_v50 = vld [vmem:[%s17174_s5 + $0x7a4] ss:$16 sps:$4 sm:$0xff]   ;;  %v10992_v40 = vld [vmem:[%s17174_s5 + $0x7ac] ss:$16 sps:$4 sm:$0xff]  }
 0x697   :  { %v4877_v29 = vpop.f32.mrf.mxu1  ;;  %v5486_v21 = vpop.f32.mrf.mxu0  ;;  %v17668_v19 = vld [vmem:[#allocation25_spill] sm:$0xff] }
 0x698   :  { %17665 = vst [vmem:[#allocation34_spill] sm:$0xff] %v15446_v30  ;;  %v4878_v31 = vadd.f32 %v4877_v29, %v17666_v59 }
 0x699   :  { %v4879_v27 = vpop.f32.mrf.mxu1  ;;  %v5488_v34 = vpop.f32.mrf.mxu0 }
 0x69a   :  { %v15449_v7 = vadd.f32 %v5486_v21, %v4878_v31  ;;  %v17670_v34 = vld [vmem:[#allocation18_spill] sm:$0xff] }
 0x69b   :  { %v4882_v0 = vpop.f32.mrf.mxu1  ;;  %5073 = vmatmul.mubr.bf16.gmra.mxu1 %v10989_v18  ;;  %v5491_v22 = vpop.f32.mrf.mxu0  ;;  %5682 = vmatmul.mubr.bf16.gmra.mxu0 %v10990_v28 }
 0x69c   :  { %17667 = vst [vmem:[#allocation36_spill] sm:$0xff] %v15449_v7  ;;  %v4883_v42 = vadd.f32 %v4882_v0, %v17668_v19  ;;  %5080 = vmatprep.mubr.bf16.mxu1 %v10991_v50  ;;  %5689 = vmatprep.mubr.bf16.mxu0 %v10992_v40  ;;  %v10993_v50 = vld [vmem:[%s17174_s5 + $0x7a0] ss:$16 sps:$4 sm:$0xff]  }
 0x69d   :  { %v4884_v29 = vpop.f32.mrf.mxu1  ;;  %v5493_v21 = vpop.f32.mrf.mxu0 }
 0x69e   :  { %v15464_v59 = vadd.f32 %v5491_v22, %v4883_v42  ;;  %v10994_v22 = vld [vmem:[%s17174_s5 + $0x7a8] ss:$16 sps:$4 sm:$0xff]   ;;  %v10995_v29 = vld [vmem:[%s17174_s5 + $0x7c4] ss:$16 sps:$4 sm:$0xff]   ;;  %v10996_v21 = vld [vmem:[%s17174_s5 + $0x7cc] ss:$16 sps:$4 sm:$0xff]  }
 0x69f   :  { %v4885_v31 = vpop.f32.mrf.mxu1  ;;  %v5494_v27 = vpop.f32.mrf.mxu0  ;;  %v17672_v42 = vld [vmem:[#allocation9_spill] sm:$0xff] }
 0x6a0   :  { %17669 = vst [vmem:[#allocation15_spill] sm:$0xff] %v15464_v59  ;;  %v4886_v18 = vadd.f32 %v4885_v31, %v17670_v34  ;;  %v1693_v31 = vld [vmem:[%s17175_s6 + $0xa0] sm:$0xff] }
 0x6a1   :  { %v4887_v28 = vpop.f32.mrf.mxu1  ;;  %v5496_v0 = vpop.f32.mrf.mxu0  ;;  %9164 = vmatprep.subr.mxu1 %v1693_v31  ;;  %v10997_v59 = vld [vmem:[%s17174_s5 + $0x7c0] ss:$16 sps:$4 sm:$0xff]  }
 0x6a2   :  { %v15467_v19 = vadd.f32 %v5494_v27, %v4886_v18  ;;  %v1677_v27 = vld [vmem:[%s17175_s6 + $0x20] sm:$0xff] }
 0x6a3   :  { %v4890_v7 = vpop.f32.mrf.mxu1  ;;  %5081 = vmatmul.mubr.bf16.gmra.mxu1 %v10993_v50  ;;  %v5499_v30 = vpop.f32.mrf.mxu0  ;;  %5690 = vmatmul.mubr.bf16.gmra.mxu0 %v10994_v22  ;;  %v17674_v50 = vld [vmem:[#allocation10_spill] sm:$0xff] }
 0x6a4   :  { %17671 = vst [vmem:[#allocation31_spill] sm:$0xff] %v15467_v19  ;;  %v4891_v40 = vadd.f32 %v4890_v7, %v17672_v42  ;;  %5088 = vmatprep.mubr.bf16.mxu1 %v10995_v29  ;;  %5697 = vmatprep.mubr.bf16.mxu0 %v10996_v21 }
 0x6a5   :  { %v4892_v34 = vpop.f32.mrf.mxu1  ;;  %v5501_v7 = vpop.f32.mrf.mxu0  ;;  %9165 = vmatpush3.msra.mxu1 %v1677_v27  ;;  %v10999_v27 = vld [vmem:[%s17174_s5 + $0x7e4] ss:$16 sps:$4 sm:$0xff]  }
 0x6a6   :  { %v15488_v18 = vadd.f32 %v5499_v30, %v4891_v40  ;;  %v10998_v30 = vld [vmem:[%s17174_s5 + $0x7c8] ss:$16 sps:$4 sm:$0xff]   ;;  %v11000_v7 = vld [vmem:[%s17174_s5 + $0x7ec] ss:$16 sps:$4 sm:$0xff]  }
 0x6a7   :  { %v4893_v28 = vpop.f32.mrf.mxu1  ;;  %v5502_v0 = vpop.f32.mrf.mxu0  ;;  %v17676_v40 = vld [vmem:[#allocation24_spill] sm:$0xff] }
 0x6a8   :  { %17673 = vst [vmem:[#allocation32_spill] sm:$0xff] %v15488_v18  ;;  %v4894_v22 = vadd.f32 %v4893_v28, %v17674_v50 }
 0x6a9   :  { %v4895_v42 = vpop.f32.mrf.mxu1  ;;  %v5504_v29 = vpop.f32.mrf.mxu0 }
 0x6aa   :  { %v15491_v21 = vadd.f32 %v5502_v0, %v4894_v22  ;;  %v17678_v42 = vld [vmem:[#allocation17_spill] sm:$0xff] }
 0x6ab   :  { %v4898_v19 = vpop.f32.mrf.mxu1  ;;  %5089 = vmatmul.mubr.bf16.gmra.mxu1 %v10997_v59  ;;  %v5507_v34 = vpop.f32.mrf.mxu0  ;;  %5698 = vmatmul.mubr.bf16.gmra.mxu0 %v10998_v30 }
 0x6ac   :  { %17675 = vst [vmem:[#allocation27_spill] sm:$0xff] %v15491_v21  ;;  %v4899_v31 = vadd.f32 %v4898_v19, %v17676_v40  ;;  %5096 = vmatprep.mubr.bf16.mxu1 %v10999_v27  ;;  %5705 = vmatprep.mubr.bf16.mxu0 %v11000_v7  ;;  %v11001_v27 = vld [vmem:[%s17174_s5 + $0x7e0] ss:$16 sps:$4 sm:$0xff]  }
 0x6ad   :  { %v4900_v28 = vpop.f32.mrf.mxu1  ;;  %v5509_v59 = vpop.f32.mrf.mxu0 }
 0x6ae   :  { %v15506_v0 = vadd.f32 %v5507_v34, %v4899_v31  ;;  %v11002_v34 = vld [vmem:[%s17174_s5 + $0x7e8] ss:$16 sps:$4 sm:$0xff]   ;;  %v11003_v28 = vld [vmem:[%s17174_s5 + $0x804] ss:$16 sps:$4 sm:$0xff]   ;;  %v11004_v59 = vld [vmem:[%s17174_s5 + $0x80c] ss:$16 sps:$4 sm:$0xff]  }
 0x6af   :  { %v4901_v50 = vpop.f32.mrf.mxu1  ;;  %v5510_v22 = vpop.f32.mrf.mxu0  ;;  %v17680_v31 = vld [vmem:[#allocation35_spill] sm:$0xff] }
 0x6b0   :  { %17677 = vst [vmem:[#allocation28_spill] sm:$0xff] %v15506_v0  ;;  %v4902_v29 = vadd.f32 %v4901_v50, %v17678_v42 }
 0x6b1   :  { %v4903_v30 = vpop.f32.mrf.mxu1  ;;  %v5512_v19 = vpop.f32.mrf.mxu0 }
 0x6b2   :  { %v15509_v40 = vadd.f32 %v5510_v22, %v4902_v29  ;;  %v17682_v19 = vld [vmem:[#allocation22_spill] sm:$0xff] }
 0x6b3   :  { %v4906_v21 = vpop.f32.mrf.mxu1  ;;  %5097 = vmatmul.mubr.bf16.gmra.mxu1 %v11001_v27  ;;  %v5515_v18 = vpop.f32.mrf.mxu0  ;;  %5706 = vmatmul.mubr.bf16.gmra.mxu0 %v11002_v34 }
 0x6b4   :  { %17679 = vst [vmem:[#allocation14_spill] sm:$0xff] %v15509_v40  ;;  %v4907_v7 = vadd.f32 %v4906_v21, %v17680_v31  ;;  %5104 = vmatprep.mubr.bf16.mxu1 %v11003_v28  ;;  %5713 = vmatprep.mubr.bf16.mxu0 %v11004_v59  ;;  %v11005_v28 = vld [vmem:[%s17174_s5 + $0x800] ss:$16 sps:$4 sm:$0xff]  }
 0x6b5   :  { %v4908_v50 = vpop.f32.mrf.mxu1  ;;  %v5517_v22 = vpop.f32.mrf.mxu0 }
 0x6b6   :  { %v15524_v42 = vadd.f32 %v5515_v18, %v4907_v7  ;;  %v11006_v18 = vld [vmem:[%s17174_s5 + $0x808] ss:$16 sps:$4 sm:$0xff]   ;;  %v11007_v50 = vld [vmem:[%s17174_s5 + $0x824] ss:$16 sps:$4 sm:$0xff]   ;;  %v11008_v22 = vld [vmem:[%s17174_s5 + $0x82c] ss:$16 sps:$4 sm:$0xff]  }
 0x6b7   :  { %v4909_v29 = vpop.f32.mrf.mxu1  ;;  %v5518_v30 = vpop.f32.mrf.mxu0  ;;  %v17684_v7 = vld [vmem:[#allocation26_spill] sm:$0xff] }
 0x6b8   :  { %17681 = vst [vmem:[#allocation23_spill] sm:$0xff] %v15524_v42  ;;  %v4910_v27 = vadd.f32 %v4909_v29, %v17682_v19  ;;  %v17701_v42 = vld [vmem:[#allocation52_spill] sm:$0xff] }
 0x6b9   :  { %v4911_v34 = vpop.f32.mrf.mxu1  ;;  %v5520_v21 = vpop.f32.mrf.mxu0 }
 0x6ba   :  { %v15527_v31 = vadd.f32 %v5518_v30, %v4910_v27  ;;  %v17685_v21 = vld [vmem:[#allocation8_spill] sm:$0xff] }
 0x6bb   :  { %v4914_v40 = vpop.f32.mrf.mxu1  ;;  %5105 = vmatmul.mubr.bf16.gmra.mxu1 %v11005_v28  ;;  %v5523_v0 = vpop.f32.mrf.mxu0  ;;  %5714 = vmatmul.mubr.bf16.gmra.mxu0 %v11006_v18 }
 0x6bc   :  { %17683 = vst [vmem:[#allocation29_spill] sm:$0xff] %v15527_v31  ;;  %v4915_v59 = vadd.f32 %v4914_v40, %v17684_v7  ;;  %5112 = vmatprep.mubr.bf16.mxu1 %v11007_v50  ;;  %5721 = vmatprep.mubr.bf16.mxu0 %v11008_v22  ;;  %v11009_v22 = vld [vmem:[%s17174_s5 + $0x820] ss:$16 sps:$4 sm:$0xff]  }
 0x6bd   :  { %v4916_v29 = vpop.f32.mrf.mxu1  ;;  %v5525_v30 = vpop.f32.mrf.mxu0 }
 0x6be   :  { %v5524_v19 = vadd.f32 %v5523_v0, %v4915_v59  ;;  %v11010_v0 = vld [vmem:[%s17174_s5 + $0x828] ss:$16 sps:$4 sm:$0xff]  }
 0x6bf   :  { %v4917_v27 = vpop.f32.mrf.mxu1  ;;  %v5526_v34 = vpop.f32.mrf.mxu0  ;;  %v17686_v59 = vld [vmem:[#allocation37_spill] sm:$0xff] }
 0x6c0   :  { %v4918_v28 = vadd.f32 %v4917_v27, %v17685_v21  ;;  %v9985_v18 = vpack.i.bf16 %v14918_v8, %v5524_v19  ;;  %v11011_v19 = vld [vmem:[%s17174_s5 + $0x844] ss:$16 sps:$4 sm:$0xff]   ;;  %v11012_v27 = vld [vmem:[%s17174_s5 + $0x84c] ss:$16 sps:$4 sm:$0xff]  }
 0x6c1   :  { %v4919_v40 = vpop.f32.mrf.mxu1  ;;  %v5528_v7 = vpop.f32.mrf.mxu0 }
 0x6c2   :  { %v5527_v31 = vadd.f32 %v5526_v34, %v4918_v28  ;;  %9986 = vrot.lane.b32.xlu0 %v9985_v18, %s11058_s27 }
 0x6c3   :  { %v4922_v50 = vpop.f32.mrf.mxu1  ;;  %5113 = vmatmul.mubr.bf16.gmra.mxu1 %v11009_v22  ;;  %v5531_v29 = vpop.f32.mrf.mxu0  ;;  %5722 = vmatmul.mubr.bf16.gmra.mxu0 %v11010_v0  ;;  %v1676_v22 = vld [vmem:[%s17175_s6 + $0x18] sm:$0xff] }
 0x6c4   :  { %v4923_v8 = vadd.f32 %v4922_v50, %v17686_v59  ;;  %v9990_v30 = vpack.i.bf16 %v14921_v41, %v5527_v31  ;;  %5120 = vmatprep.mubr.bf16.mxu1 %v11011_v19  ;;  %5729 = vmatprep.mubr.bf16.mxu0 %v11012_v27  ;;  %v17687_v41 = vld [vmem:[#allocation38_spill] sm:$0xff]  ;;  %v1692_v50 = vld [vmem:[%s17175_s6 + $0x98] sm:$0xff] }
 0x6c5   :  { %v4924_v34 = vpop.f32.mrf.mxu1  ;;  %v5533_v21 = vpop.f32.mrf.mxu0  ;;  %9166 = vmatprep.subr.mxu1 %v1692_v50  ;;  %v11014_v19 = vld [vmem:[%s17174_s5 + $0x848] ss:$16 sps:$4 sm:$0xff]  }
 0x6c6   :  { %v5532_v28 = vadd.f32 %v5531_v29, %v4923_v8  ;;  %9991 = vrot.lane.b32.xlu1 %v9990_v30, %s11058_s27  ;;  %9167 = vmatpush3.msra.mxu1 %v1676_v22  ;;  %v17688_v34 = vld [vmem:[#allocation39_spill] sm:$0xff]  ;;  %v17689_v22 = vld [vmem:[#allocation40_spill] sm:$0xff] }
 0x6c7   :  { %v4925_v18 = vpop.f32.mrf.mxu1  ;;  %v5534_v40 = vpop.f32.mrf.mxu0 }
 0x6c8   :  { %v9995_v7 = vpack.i.bf16 %v14936_v43, %v5532_v28  ;;  %v4926_v31 = vadd.f32 %v4925_v18, %v17687_v41  ;;  %v11013_v43 = vld [vmem:[%s17174_s5 + $0x840] ss:$16 sps:$4 sm:$0xff]   ;;  %v11015_v28 = vld [vmem:[%s17174_s5 + $0x864] ss:$16 sps:$4 sm:$0xff]   ;;  %v11016_v18 = vld [vmem:[%s17174_s5 + $0x86c] ss:$16 sps:$4 sm:$0xff]  }
 0x6c9   :  { %v4927_v0 = vpop.f32.mrf.mxu1  ;;  %v5536_v59 = vpop.f32.mrf.mxu0 }
 0x6ca   :  { %v5535_v29 = vadd.f32 %v5534_v40, %v4926_v31  ;;  %9996 = vrot.lane.b32.xlu0 %v9995_v7, %s11058_s27 }
 0x6cb   :  { %v4930_v8 = vpop.f32.mrf.mxu1  ;;  %5121 = vmatmul.mubr.bf16.gmra.mxu1 %v11013_v43  ;;  %v5539_v30 = vpop.f32.mrf.mxu0  ;;  %5730 = vmatmul.mubr.bf16.gmra.mxu0 %v11014_v19  ;;  %v11017_v19 = vld [vmem:[%s17174_s5 + $0x860] ss:$16 sps:$4 sm:$0xff]  }
 0x6cc   :  { %v10000_v27 = vpack.i.bf16 %v14939_v3, %v5535_v29  ;;  %v4931_v21 = vadd.f32 %v4930_v8, %v17688_v34  ;;  %5128 = vmatprep.mubr.bf16.mxu1 %v11015_v28  ;;  %5737 = vmatprep.mubr.bf16.mxu0 %v11016_v18  ;;  %v17690_v34 = vld [vmem:[#allocation41_spill] sm:$0xff]  ;;  %v11020_v18 = vld [vmem:[%s17174_s5 + $0x88c] ss:$16 sps:$4 sm:$0xff]  }
 0x6cd   :  { %v4932_v40 = vpop.f32.mrf.mxu1  ;;  %v5541_v7 = vpop.f32.mrf.mxu0  ;;  %v11019_v28 = vld [vmem:[%s17174_s5 + $0x884] ss:$16 sps:$4 sm:$0xff]  }
 0x6ce   :  { %v5540_v41 = vadd.f32 %v5539_v30, %v4931_v21  ;;  %10001 = vrot.lane.b32.xlu1 %v10000_v27, %s11058_s27  ;;  %v11018_v27 = vld [vmem:[%s17174_s5 + $0x868] ss:$16 sps:$4 sm:$0xff]  }
 0x6cf   :  { %v4933_v31 = vpop.f32.mrf.mxu1  ;;  %v5542_v50 = vpop.f32.mrf.mxu0 }
 0x6d0   :  { %v10005_v3 = vpack.i.bf16 %v14963_v16, %v5540_v41  ;;  %v4934_v0 = vadd.f32 %v4933_v31, %v17689_v22 }
 0x6d1   :  { %v4935_v59 = vpop.f32.mrf.mxu1  ;;  %v5544_v29 = vpop.f32.mrf.mxu0 }
 0x6d2   :  { %v5543_v8 = vadd.f32 %v5542_v50, %v4934_v0  ;;  %10006 = vrot.lane.b32.xlu0 %v10005_v3, %s11058_s27  ;;  %v17691_v3 = vld [vmem:[#allocation42_spill] sm:$0xff] }
 0x6d3   :  { %v4938_v43 = vpop.f32.mrf.mxu1  ;;  %5129 = vmatmul.mubr.bf16.gmra.mxu1 %v11017_v19  ;;  %v5547_v30 = vpop.f32.mrf.mxu0  ;;  %5738 = vmatmul.mubr.bf16.gmra.mxu0 %v11018_v27  ;;  %v17692_v27 = vld [vmem:[#allocation43_spill] sm:$0xff] }
 0x6d4   :  { %v10010_v16 = vpack.i.bf16 %v14966_v36, %v5543_v8  ;;  %v4939_v21 = vadd.f32 %v4938_v43, %v17690_v34  ;;  %5136 = vmatprep.mubr.bf16.mxu1 %v11019_v28  ;;  %5745 = vmatprep.mubr.bf16.mxu0 %v11020_v18  ;;  %v11021_v43 = vld [vmem:[%s17174_s5 + $0x880] ss:$16 sps:$4 sm:$0xff]   ;;  %v11023_v34 = vld [vmem:[%s17174_s5 + $0x8a4] ss:$16 sps:$4 sm:$0xff]  }
 0x6d5   :  { %v4940_v40 = vpop.f32.mrf.mxu1  ;;  %v5549_v7 = vpop.f32.mrf.mxu0 }
 0x6d6   :  { %v5548_v41 = vadd.f32 %v5547_v30, %v4939_v21  ;;  %10011 = vrot.lane.b32.xlu1 %v10010_v16, %s11058_s27  ;;  %v11022_v30 = vld [vmem:[%s17174_s5 + $0x888] ss:$16 sps:$4 sm:$0xff]   ;;  %v11024_v21 = vld [vmem:[%s17174_s5 + $0x8ac] ss:$16 sps:$4 sm:$0xff]  }
 0x6d7   :  { %v4941_v31 = vpop.f32.mrf.mxu1  ;;  %v5550_v50 = vpop.f32.mrf.mxu0 }
 0x6d8   :  { %v10015_v36 = vpack.i.bf16 %v14981_v53, %v5548_v41  ;;  %v4942_v22 = vadd.f32 %v4941_v31, %v17691_v3  ;;  %v17693_v31 = vld [vmem:[#allocation44_spill] sm:$0xff] }
 0x6d9   :  { %v4943_v0 = vpop.f32.mrf.mxu1  ;;  %v5552_v59 = vpop.f32.mrf.mxu0 }
 0x6da   :  { %v5551_v29 = vadd.f32 %v5550_v50, %v4942_v22  ;;  %10016 = vrot.lane.b32.xlu0 %v10015_v36, %s11058_s27  ;;  %v11025_v59 = vld [vmem:[%s17174_s5 + $0x8a0] ss:$16 sps:$4 sm:$0xff]  }
 0x6db   :  { %v4946_v8 = vpop.f32.mrf.mxu1  ;;  %5137 = vmatmul.mubr.bf16.gmra.mxu1 %v11021_v43  ;;  %v5555_v19 = vpop.f32.mrf.mxu0  ;;  %5746 = vmatmul.mubr.bf16.gmra.mxu0 %v11022_v30  ;;  %v17694_v43 = vld [vmem:[#allocation45_spill] sm:$0xff] }
 0x6dc   :  { %v10020_v53 = vpack.i.bf16 %v14984_v26, %v5551_v29  ;;  %v4947_v16 = vadd.f32 %v4946_v8, %v17692_v27  ;;  %5144 = vmatprep.mubr.bf16.mxu1 %v11023_v34  ;;  %5753 = vmatprep.mubr.bf16.mxu0 %v11024_v21  ;;  %v11026_v8 = vld [vmem:[%s17174_s5 + $0x8a8] ss:$16 sps:$4 sm:$0xff]   ;;  %v11027_v30 = vld [vmem:[%s17174_s5 + $0x8c4] ss:$16 sps:$4 sm:$0xff]  }
 0x6dd   :  { %v4948_v28 = vpop.f32.mrf.mxu1  ;;  %v5557_v18 = vpop.f32.mrf.mxu0 }
 0x6de   :  { %v5556_v40 = vadd.f32 %v5555_v19, %v4947_v16  ;;  %10021 = vrot.lane.b32.xlu1 %v10020_v53, %s11058_s27  ;;  %v11028_v53 = vld [vmem:[%s17174_s5 + $0x8cc] ss:$16 sps:$4 sm:$0xff]  }
 0x6df   :  { %v4949_v7 = vpop.f32.mrf.mxu1  ;;  %v5558_v41 = vpop.f32.mrf.mxu0 }
 0x6e0   :  { %v10025_v26 = vpack.i.bf16 %v14999_v17, %v5556_v40  ;;  %v4950_v50 = vadd.f32 %v4949_v7, %v17693_v31  ;;  %v17695_v40 = vld [vmem:[#allocation46_spill] sm:$0xff] }
 0x6e1   :  { %v4951_v36 = vpop.f32.mrf.mxu1  ;;  %v5560_v3 = vpop.f32.mrf.mxu0 }
 0x6e2   :  { %v15622_v22 = vadd.f32 %v5558_v41, %v4950_v50  ;;  %10026 = vrot.lane.b32.xlu0 %v10025_v26, %s11058_s27  ;;  %v11029_v36 = vld [vmem:[%s17174_s5 + $0x8c0] ss:$16 sps:$4 sm:$0xff]  }
 0x6e3   :  { %v4954_v0 = vpop.f32.mrf.mxu1  ;;  %5145 = vmatmul.mubr.bf16.gmra.mxu1 %v11025_v59  ;;  %v5563_v29 = vpop.f32.mrf.mxu0  ;;  %5754 = vmatmul.mubr.bf16.gmra.mxu0 %v11026_v8 }
 0x6e4   :  { %v4955_v19 = vadd.f32 %v4954_v0, %v17694_v43  ;;  %5152 = vmatprep.mubr.bf16.mxu1 %v11027_v30  ;;  %5761 = vmatprep.mubr.bf16.mxu0 %v11028_v53  ;;  %v11030_v0 = vld [vmem:[%s17174_s5 + $0x8c8] ss:$16 sps:$4 sm:$0xff]   ;;  %v11031_v43 = vld [vmem:[%s17174_s5 + $0x8e4] ss:$16 sps:$4 sm:$0xff]  }
 0x6e5   :  { %v4956_v27 = vpop.f32.mrf.mxu1  ;;  %v5565_v16 = vpop.f32.mrf.mxu0  ;;  %v1691_v30 = vld [vmem:[%s17175_s6 + $0x90] sm:$0xff]  ;;  %v1705_v53 = vld [vmem:[%s17175_s6 + $0x100] sm:$0xff] }
 0x6e6   :  { %v15640_v34 = vadd.f32 %v5563_v29, %v4955_v19  ;;  %v17696_v29 = vld [vmem:[#allocation47_spill] sm:$0xff]  ;;  %v11032_v19 = vld [vmem:[%s17174_s5 + $0x8ec] ss:$16 sps:$4 sm:$0xff]   ;;  %9168 = vmatprep.subr.mxu1 %v1691_v30  ;;  %9688 = vmatprep.subr.mxu0 %v1705_v53 }
 0x6e7   :  { %v4957_v21 = vpop.f32.mrf.mxu1  ;;  %v5566_v28 = vpop.f32.mrf.mxu0  ;;  %v1675_v27 = vld [vmem:[%s17175_s6 + $0x10] sm:$0xff]  ;;  %9689 = vmatpush3.msra.mxu0 %v1705_v53  ;;  %v17698_v53 = vld [vmem:[#allocation49_spill] sm:$0xff] }
 0x6e8   :  { %v4958_v7 = vadd.f32 %v4957_v21, %v17695_v40  ;;  %9169 = vmatpush3.msra.mxu1 %v1675_v27 }
 0x6e9   :  { %v4959_v41 = vpop.f32.mrf.mxu1  ;;  %v5568_v26 = vpop.f32.mrf.mxu0 }
 0x6ea   :  { %v15645_v31 = vadd.f32 %v5566_v28, %v4958_v7  ;;  %v17697_v26 = vld [vmem:[#allocation48_spill] sm:$0xff] }
 0x6eb   :  { %v4962_v50 = vpop.f32.mrf.mxu1  ;;  %5153 = vmatmul.mubr.bf16.gmra.mxu1 %v11029_v36  ;;  %v5571_v3 = vpop.f32.mrf.mxu0  ;;  %5762 = vmatmul.mubr.bf16.gmra.mxu0 %v11030_v0 }
 0x6ec   :  { %v4963_v8 = vadd.f32 %v4962_v50, %v17696_v29  ;;  %5160 = vmatprep.mubr.bf16.mxu1 %v11031_v43  ;;  %5769 = vmatprep.mubr.bf16.mxu0 %v11032_v19  ;;  %v11033_v19 = vld [vmem:[%s17174_s5 + $0x8e0] ss:$16 sps:$4 sm:$0xff]  }
 0x6ed   :  { %v4964_v16 = vpop.f32.mrf.mxu1  ;;  %v5573_v21 = vpop.f32.mrf.mxu0 }
 0x6ee   :  { %v15671_v28 = vadd.f32 %v5571_v3, %v4963_v8  ;;  %v11034_v8 = vld [vmem:[%s17174_s5 + $0x8e8] ss:$16 sps:$4 sm:$0xff]   ;;  %s11059_s5 = smov 64  }
 0x6ef   :  { %v4965_v40 = vpop.f32.mrf.mxu1  ;;  %v5574_v7 = vpop.f32.mrf.mxu0 }
 0x6f0   :  { %v4966_v50 = vadd.f32 %v4965_v40, %v17697_v26 }
 0x6f1   :  { %v4967_v36 = vpop.f32.mrf.mxu1  ;;  %v5576_v0 = vpop.f32.mrf.mxu0 }
 0x6f2   :  { %v15676_v29 = vadd.f32 %v5574_v7, %v4966_v50  ;;  %v17699_v36 = vld [vmem:[#allocation50_spill] sm:$0xff] }
 0x6f3   :  { %v4970_v43 = vpop.f32.mrf.mxu1  ;;  %5161 = vmatmul.mubr.bf16.gmra.mxu1 %v11033_v19  ;;  %v5579_v3 = vpop.f32.mrf.mxu0  ;;  %5770 = vmatmul.mubr.bf16.gmra.mxu0 %v11034_v8 }
 0x6f4   :  { %v4971_v27 = vadd.f32 %v4970_v43, %v17698_v53  ;;  %v17700_v53 = vld [vmem:[#allocation51_spill] sm:$0xff] }
 0x6f5   :  { %v4972_v16 = vpop.f32.mrf.mxu1  ;;  %v5581_v21 = vpop.f32.mrf.mxu0 }
 0x6f6   :  { %v15687_v40 = vadd.f32 %v5579_v3, %v4971_v27 }
 0x6f7   :  { %v4973_v7 = vpop.f32.mrf.mxu1  ;;  %v5582_v26 = vpop.f32.mrf.mxu0 }
 0x6f8   :  { %v4974_v0 = vadd.f32 %v4973_v7, %v17699_v36 }
 0x6f9   :  { %v4975_v19 = vpop.f32.mrf.mxu1  ;;  %v5584_v41 = vpop.f32.mrf.mxu0 }
 0x6fa   :  { %v15692_v59 = vadd.f32 %v5582_v26, %v4974_v0 }
 0x6fb   :  { %v4978_v8 = vpop.f32.mrf.mxu1  ;;  %v5587_v18 = vpop.f32.mrf.mxu0 }
 0x6fc   :  { %v4979_v16 = vadd.f32 %v4978_v8, %v17700_v53  ;;  %v17702_v8 = vld [vmem:[#allocation53_spill] sm:$0xff] }
 0x6fd   :  { %v4980_v3 = vpop.f32.mrf.mxu1  ;;  %v5589_v27 = vpop.f32.mrf.mxu0 }
 0x6fe   :  { %v5588_v21 = vadd.f32 %v5587_v18, %v4979_v16 }
 0x6ff   :  { %v4981_v30 = vpop.f32.mrf.mxu1  ;;  %v5590_v17 = vpop.f32.mrf.mxu0 }
 0x700   :  { %v10030_v50 = vpack.i.bf16 %v15077_v63, %v5588_v21  ;;  %v4982_v7 = vadd.f32 %v4981_v30, %v17701_v42  ;;  %v17703_v30 = vld [vmem:[#allocation54_spill] sm:$0xff] }
 0x701   :  { %v4983_v36 = vpop.f32.mrf.mxu1  ;;  %v5592_v41 = vpop.f32.mrf.mxu0 }
 0x702   :  { %v5591_v26 = vadd.f32 %v5590_v17, %v4982_v7  ;;  %10031 = vrot.lane.b32.xlu0 %v10030_v50, %s11059_s5 }
 0x703   :  { %v4986_v0 = vpop.f32.mrf.mxu1  ;;  %v5595_v19 = vpop.f32.mrf.mxu0 }
 0x704   :  { %v10035_v43 = vpack.i.bf16 %v15080_v4, %v5591_v26  ;;  %v4987_v53 = vadd.f32 %v4986_v0, %v17702_v8  ;;  %v17704_v26 = vld [vmem:[#allocation55_spill] sm:$0xff] }
 0x705   :  { %v4988_v3 = vpop.f32.mrf.mxu1  ;;  %v5597_v18 = vpop.f32.mrf.mxu0 }
 0x706   :  { %v5596_v16 = vadd.f32 %v5595_v19, %v4987_v53  ;;  %10036 = vrot.lane.b32.xlu0 %v10035_v43, %s11059_s5  ;;  %v1690_v43 = vld [vmem:[%s17175_s6 + $0x88] sm:$0xff] }
 0x707   :  { %v4989_v63 = vpop.f32.mrf.mxu1  ;;  %v5598_v27 = vpop.f32.mrf.mxu0  ;;  %9170 = vmatprep.subr.mxu1 %v1690_v43  ;;  %v1674_v53 = vld [vmem:[%s17175_s6 + $0x8] sm:$0xff] }
 0x708   :  { %v10040_v42 = vpack.i.bf16 %v15095_v24, %v5596_v16  ;;  %v4990_v17 = vadd.f32 %v4989_v63, %v17703_v30  ;;  %9171 = vmatpush3.msra.mxu1 %v1674_v53  ;;  %v17705_v16 = vld [vmem:[#allocation56_spill] sm:$0xff] }
 0x709   :  { %v4991_v21 = vpop.f32.mrf.mxu1  ;;  %v5600_v7 = vpop.f32.mrf.mxu0 }
 0x70a   :  { %v5599_v50 = vadd.f32 %v5598_v27, %v4990_v17  ;;  %10041 = vrot.lane.b32.xlu1 %v10040_v42, %s11059_s5 }
 0x70b   :  { %v4994_v36 = vpop.f32.mrf.mxu1  ;;  %v5603_v4 = vpop.f32.mrf.mxu0 }
 0x70c   :  { %v10045_v41 = vpack.i.bf16 %v15098_v14, %v5599_v50  ;;  %v4995_v0 = vadd.f32 %v4994_v36, %v17704_v26  ;;  %v17706_v50 = vld [vmem:[#allocation57_spill] sm:$0xff] }
 0x70d   :  { %v4996_v19 = vpop.f32.mrf.mxu1  ;;  %v5605_v8 = vpop.f32.mrf.mxu0 }
 0x70e   :  { %v5604_v24 = vadd.f32 %v5603_v4, %v4995_v0  ;;  %10046 = vrot.lane.b32.xlu0 %v10045_v41, %s11059_s5  ;;  %v17707_v19 = vld [vmem:[#allocation58_spill] sm:$0xff] }
 0x70f   :  { %v4997_v3 = vpop.f32.mrf.mxu1  ;;  %v5606_v18 = vpop.f32.mrf.mxu0 }
 0x710   :  { %v10050_v14 = vpack.i.bf16 %v15113_v5, %v5604_v24  ;;  %v4998_v63 = vadd.f32 %v4997_v3, %v17705_v16  ;;  %v17708_v16 = vld [vmem:[#allocation59_spill] sm:$0xff] }
 0x711   :  { %v4999_v27 = vpop.f32.mrf.mxu1  ;;  %v5608_v42 = vpop.f32.mrf.mxu0 }
 0x712   :  { %v5607_v30 = vadd.f32 %v5606_v18, %v4998_v63  ;;  %10051 = vrot.lane.b32.xlu1 %v10050_v14, %s11059_s5 }
 0x713   :  { %v5002_v17 = vpop.f32.mrf.mxu1  ;;  %v5611_v21 = vpop.f32.mrf.mxu0 }
 0x714   :  { %v10055_v7 = vpack.i.bf16 %v15116_v35, %v5607_v30  ;;  %v5003_v36 = vadd.f32 %v5002_v17, %v17706_v50 }
 0x715   :  { %v5004_v4 = vpop.f32.mrf.mxu1  ;;  %v5613_v41 = vpop.f32.mrf.mxu0 }
 0x716   :  { %v5612_v26 = vadd.f32 %v5611_v21, %v5003_v36  ;;  %10056 = vrot.lane.b32.xlu0 %v10055_v7, %s11059_s5  ;;  %v17709_v7 = vld [vmem:[#allocation60_spill] sm:$0xff] }
 0x717   :  { %v5005_v0 = vpop.f32.mrf.mxu1  ;;  %v5614_v5 = vpop.f32.mrf.mxu0 }
 0x718   :  { %v10060_v43 = vpack.i.bf16 %v15137_v25, %v5612_v26  ;;  %v5006_v8 = vadd.f32 %v5005_v0, %v17707_v19 }
 0x719   :  { %v5007_v24 = vpop.f32.mrf.mxu1  ;;  %v5616_v53 = vpop.f32.mrf.mxu0 }
 0x71a   :  { %v5615_v3 = vadd.f32 %v5614_v5, %v5006_v8  ;;  %10061 = vrot.lane.b32.xlu1 %v10060_v43, %s11059_s5  ;;  %v17710_v5 = vld [vmem:[#allocation61_spill] sm:$0xff] }
 0x71b   :  { %v5010_v18 = vpop.f32.mrf.mxu1  ;;  %v5619_v35 = vpop.f32.mrf.mxu0 }
 0x71c   :  { %v10065_v14 = vpack.i.bf16 %v15140_v48, %v5615_v3  ;;  %v5011_v63 = vadd.f32 %v5010_v18, %v17708_v16  ;;  %v17711_v18 = vld [vmem:[#allocation62_spill] sm:$0xff] }
 0x71d   :  { %v5012_v27 = vpop.f32.mrf.mxu1  ;;  %v5621_v42 = vpop.f32.mrf.mxu0 }
 0x71e   :  { %v5620_v30 = vadd.f32 %v5619_v35, %v5011_v63  ;;  %10066 = vrot.lane.b32.xlu0 %v10065_v14, %s11059_s5 }
 0x71f   :  { %v5013_v17 = vpop.f32.mrf.mxu1  ;;  %v5622_v25 = vpop.f32.mrf.mxu0 }
 0x720   :  { %v10070_v21 = vpack.i.bf16 %v15155_v61, %v5620_v30  ;;  %v5014_v50 = vadd.f32 %v5013_v17, %v17709_v7  ;;  %v17712_v17 = vld [vmem:[#allocation63_spill] sm:$0xff]  ;;  %v17717_v30 = vld [vmem:[#allocation68_spill] sm:$0xff] }
 0x721   :  { %v5015_v36 = vpop.f32.mrf.mxu1  ;;  %v5624_v4 = vpop.f32.mrf.mxu0 }
 0x722   :  { %v15729_v41 = vadd.f32 %v5622_v25, %v5014_v50  ;;  %10071 = vrot.lane.b32.xlu1 %v10070_v21, %s11059_s5 }
 0x723   :  { %v5018_v48 = vpop.f32.mrf.mxu1  ;;  %v5627_v26 = vpop.f32.mrf.mxu0 }
 0x724   :  { %v10095_v0 = vpack.i.bf16 %v15158_v9, %v15729_v41  ;;  %v5019_v43 = vadd.f32 %v5018_v48, %v17710_v5  ;;  %v17723_v41 = vld [vmem:[#allocation73_spill] sm:$0xff] }
 0x725   :  { %v5020_v19 = vpop.f32.mrf.mxu1  ;;  %v5629_v8 = vpop.f32.mrf.mxu0 }
 0x726   :  { %v15735_v24 = vadd.f32 %v5627_v26, %v5019_v43  ;;  %v17713_v26 = vld [vmem:[#allocation64_spill] sm:$0xff] }
 0x727   :  { %v5021_v61 = vpop.f32.mrf.mxu1  ;;  %v5630_v53 = vpop.f32.mrf.mxu0  ;;  %v1689_v43 = vld [vmem:[%s17175_s6 + $0x80] sm:$0xff] }
 0x728   :  { %v10115_v3 = vpack.i.bf16 %v15173_v6, %v15735_v24  ;;  %v5022_v35 = vadd.f32 %v5021_v61, %v17711_v18  ;;  %9172 = vmatprep.subr.mxu1 %v1689_v43 }
 0x729   :  { %v5023_v14 = vpop.f32.mrf.mxu1  ;;  %v5632_v16 = vpop.f32.mrf.mxu0 }
 0x72a   :  { %v15740_v63 = vadd.f32 %v5630_v53, %v5022_v35  ;;  %v1673_v53 = vld [vmem:[%s17175_s6] sm:$0xff]  ;;  %s11060_s6 = smov 96  }
 0x72b   :  { %v5026_v27 = vpop.f32.mrf.mxu1  ;;  %v5635_v42 = vpop.f32.mrf.mxu0  ;;  %9173 = vmatpush3.msra.mxu1 %v1673_v53  ;;  %v17714_v16 = vld [vmem:[#allocation65_spill] sm:$0xff] }
 0x72c   :  { %v5027_v25 = vadd.f32 %v5026_v27, %v17712_v17 }
 0x72d   :  { %v5028_v21 = vpop.f32.mrf.mxu1  ;;  %v5637_v7 = vpop.f32.mrf.mxu0 }
 0x72e   :  { %v15745_v50 = vadd.f32 %v5635_v42, %v5027_v25 }
 0x72f   :  { %v5029_v36 = vpop.f32.mrf.mxu1  ;;  %v5638_v4 = vpop.f32.mrf.mxu0 }
 0x730   :  { %v5030_v5 = vadd.f32 %v5029_v36, %v17713_v26 }
 0x731   :  { %v5031_v19 = vpop.f32.mrf.mxu1  ;;  %v5640_v8 = vpop.f32.mrf.mxu0 }
 0x732   :  { %v15753_v61 = vadd.f32 %v5638_v4, %v5030_v5  ;;  %v17715_v4 = vld [vmem:[#allocation66_spill] sm:$0xff] }
 0x733   :  { %v5034_v18 = vpop.f32.mrf.mxu1  ;;  %v5643_v35 = vpop.f32.mrf.mxu0 }
 0x734   :  { %v5035_v27 = vadd.f32 %v5034_v18, %v17714_v16  ;;  %v17716_v16 = vld [vmem:[#allocation67_spill] sm:$0xff] }
 0x735   :  { %v5036_v42 = vpop.f32.mrf.mxu1  ;;  %v5645_v17 = vpop.f32.mrf.mxu0 }
 0x736   :  { %v15761_v25 = vadd.f32 %v5643_v35, %v5035_v27 }
 0x737   :  { %v5037_v21 = vpop.f32.mrf.mxu1  ;;  %v5646_v7 = vpop.f32.mrf.mxu0 }
 0x738   :  { %v5038_v26 = vadd.f32 %v5037_v21, %v17715_v4 }
 0x739   :  { %v5039_v5 = vpop.f32.mrf.mxu1  ;;  %v5648_v43 = vpop.f32.mrf.mxu0 }
 0x73a   :  { %v15766_v19 = vadd.f32 %v5646_v7, %v5038_v26 }
 0x73b   :  { %v5042_v8 = vpop.f32.mrf.mxu1  ;;  %v5651_v53 = vpop.f32.mrf.mxu0 }
 0x73c   :  { %v5043_v42 = vadd.f32 %v5042_v8, %v17716_v16  ;;  %v17718_v8 = vld [vmem:[#allocation69_spill] sm:$0xff] }
 0x73d   :  { %v5044_v35 = vpop.f32.mrf.mxu1  ;;  %v5653_v27 = vpop.f32.mrf.mxu0 }
 0x73e   :  { %v5652_v17 = vadd.f32 %v5651_v53, %v5043_v42 }
 0x73f   :  { %v5045_v14 = vpop.f32.mrf.mxu1  ;;  %v5654_v48 = vpop.f32.mrf.mxu0 }
 0x740   :  { %v10075_v36 = vpack.i.bf16 %v15233_v33, %v5652_v17  ;;  %v5046_v21 = vadd.f32 %v5045_v14, %v17717_v30  ;;  %v17719_v14 = vld [vmem:[#allocation70_spill] sm:$0xff] }
 0x741   :  { %v5047_v4 = vpop.f32.mrf.mxu1  ;;  %v5656_v5 = vpop.f32.mrf.mxu0 }
 0x742   :  { %v5655_v7 = vadd.f32 %v5654_v48, %v5046_v21  ;;  %10076 = vrot.lane.b32.xlu1 %v10075_v36, %s11060_s6 }
 0x743   :  { %v5050_v26 = vpop.f32.mrf.mxu1  ;;  %v5659_v43 = vpop.f32.mrf.mxu0 }
 0x744   :  { %v10080_v18 = vpack.i.bf16 %v15236_v57, %v5655_v7  ;;  %v5051_v16 = vadd.f32 %v5050_v26, %v17718_v8  ;;  %v17720_v57 = vpack.i.bf16 %v15002_v2, %v15622_v22  ;;  %v17721_v7 = vld [vmem:[#allocation71_spill] sm:$0xff] }
 0x745   :  { %v5052_v35 = vpop.f32.mrf.mxu1  ;;  %v5661_v53 = vpop.f32.mrf.mxu0 }
 0x746   :  { %v5660_v42 = vadd.f32 %v5659_v43, %v5051_v16  ;;  %10081 = vrot.lane.b32.xlu1 %v10080_v18, %s11060_s6  ;;  %v17722_v35 = vld [vmem:[#allocation72_spill] sm:$0xff] }
 0x747   :  { %v5053_v33 = vpop.f32.mrf.mxu1  ;;  %v5662_v27 = vpop.f32.mrf.mxu0 }
 0x748   :  { %v10090_v30 = vpack.i.bf16 %v15251_v1, %v5660_v42  ;;  %v5054_v48 = vadd.f32 %v5053_v33, %v17719_v14 }
 0x749   :  { %v5055_v17 = vpop.f32.mrf.mxu1  ;;  %v5664_v21 = vpop.f32.mrf.mxu0 }
 0x74a   :  { %v5663_v36 = vadd.f32 %v5662_v27, %v5054_v48  ;;  %10086 = vrot.lane.b32.xlu1 %v17720_v57, %s11058_s27  ;;  %10091 = vrot.lane.b32.xlu0 %v10090_v30, %s11060_s6  ;;  %v17724_v17 = vpack.i.bf16 %v15017_v37, %v15640_v34  ;;  %v17725_v21 = vld [vmem:[#allocation74_spill] sm:$0xff]  ;;  %v17727_v34 = vld [vmem:[#allocation75_spill] sm:$0xff] }
 0x74b   :  { %v5058_v4 = vpop.f32.mrf.mxu1  ;;  %v5667_v5 = vpop.f32.mrf.mxu0 }
 0x74c   :  { %v10100_v18 = vpack.i.bf16 %v15254_v56, %v5663_v36  ;;  %v5059_v26 = vadd.f32 %v5058_v4, %v17721_v7 }
 0x74d   :  { %v5060_v43 = vpop.f32.mrf.mxu1  ;;  %v5669_v1 = vpop.f32.mrf.mxu0 }
 0x74e   :  { %v5668_v8 = vadd.f32 %v5667_v5, %v5059_v26  ;;  %10101 = vrot.lane.b32.xlu1 %v10100_v18, %s11060_s6  ;;  %10096 = vrot.lane.b32.xlu0 %v10095_v0, %s11059_s5  ;;  %v17726_v5 = vpack.i.bf16 %v15020_v55, %v15645_v31 }
 0x74f   :  { %v5061_v2 = vpop.f32.mrf.mxu1  ;;  %v5670_v22 = vpop.f32.mrf.mxu0 }
 0x750   :  { %v10105_v16 = vpack.i.bf16 %v15269_v20, %v5668_v8  ;;  %v5062_v53 = vadd.f32 %v5061_v2, %v17722_v35  ;;  %v17728_v8 = vpack.i.bf16 %v15176_v10, %v15740_v63  ;;  %v17731_v63 = vld [vmem:[#allocation77_spill] sm:$0xff] }
 0x751   :  { %v5063_v42 = vpop.f32.mrf.mxu1  ;;  %v5672_v56 = vpop.f32.mrf.mxu0 }
 0x752   :  { %v5671_v33 = vadd.f32 %v5670_v22, %v5062_v53  ;;  %10116 = vrot.lane.b32.xlu1 %v10115_v3, %s11059_s5  ;;  %10106 = vrot.lane.b32.xlu0 %v10105_v16, %s11060_s6  ;;  %v17729_v22 = vld [vmem:[#allocation76_spill] sm:$0xff]  ;;  %v17730_v42 = vpack.i.bf16 %v15191_v38, %v15745_v50 }
 0x753   :  { %v5066_v27 = vpop.f32.mrf.mxu1  ;;  %v5675_v30 = vpop.f32.mrf.mxu0 }
 0x754   :  { %v10120_v9 = vpack.i.bf16 %v15272_v47, %v5671_v33  ;;  %v5067_v0 = vadd.f32 %v5066_v27, %v17723_v41  ;;  %v17732_v41 = vpack.i.bf16 %v15035_v58, %v15671_v28  ;;  %v17735_v28 = vld [vmem:[#allocation79_spill] sm:$0xff] }
 0x755   :  { %v5068_v14 = vpop.f32.mrf.mxu1  ;;  %v5677_v20 = vpop.f32.mrf.mxu0 }
 0x756   :  { %v5676_v48 = vadd.f32 %v5675_v30, %v5067_v0  ;;  %10121 = vrot.lane.b32.xlu1 %v10120_v9, %s11060_s6  ;;  %10111 = vrot.lane.b32.xlu0 %v17724_v17, %s11058_s27  ;;  %v17733_v14 = vld [vmem:[#allocation78_spill] sm:$0xff] }
 0x757   :  { %v5069_v6 = vpop.f32.mrf.mxu1  ;;  %v5678_v24 = vpop.f32.mrf.mxu0 }
 0x758   :  { %v10130_v3 = vpack.i.bf16 %v15287_v54, %v5676_v48  ;;  %v5070_v36 = vadd.f32 %v5069_v6, %v17725_v21  ;;  %v17734_v6 = vpack.i.bf16 %v15044_v46, %v15676_v29 }
 0x759   :  { %v5071_v57 = vpop.f32.mrf.mxu1  ;;  %v5680_v47 = vpop.f32.mrf.mxu0 }
 0x75a   :  { %v5679_v4 = vadd.f32 %v5678_v24, %v5070_v36  ;;  %10126 = vrot.lane.b32.xlu1 %v17726_v5, %s11058_s27  ;;  %10131 = vrot.lane.b32.xlu0 %v10130_v3, %s11060_s6  ;;  %v17736_v47 = vpack.i.bf16 %v15194_v13, %v15753_v61  ;;  %v17737_v5 = vld [vmem:[#allocation80_spill] sm:$0xff]  ;;  %v17739_v61 = vld [vmem:[#allocation81_spill] sm:$0xff] }
 0x75b   :  { %v5074_v18 = vpop.f32.mrf.mxu1  ;;  %v5683_v7 = vpop.f32.mrf.mxu0 }
 0x75c   :  { %v10140_v37 = vpack.i.bf16 %v15290_v62, %v5679_v4  ;;  %v5075_v26 = vadd.f32 %v5074_v18, %v17727_v34  ;;  %v17738_v34 = vpack.i.bf16 %v15209_v45, %v15761_v25 }
 0x75d   :  { %v5076_v43 = vpop.f32.mrf.mxu1  ;;  %v5685_v54 = vpop.f32.mrf.mxu0 }
 0x75e   :  { %v5684_v1 = vadd.f32 %v5683_v7, %v5075_v26  ;;  %10141 = vrot.lane.b32.xlu1 %v10140_v37, %s11060_s6  ;;  %10136 = vrot.lane.b32.xlu0 %v17728_v8, %s11059_s5 }
 0x75f   :  { %v5077_v55 = vpop.f32.mrf.mxu1  ;;  %v5686_v31 = vpop.f32.mrf.mxu0 }
 0x760   :  { %v10145_v2 = vpack.i.bf16 %v15314_v32, %v5684_v1  ;;  %v5078_v16 = vadd.f32 %v5077_v55, %v17729_v22  ;;  %v17740_v55 = vpack.i.bf16 %v15059_v11, %v15687_v40  ;;  %v17743_v40 = vld [vmem:[#allocation83_spill] sm:$0xff] }
 0x761   :  { %v5079_v35 = vpop.f32.mrf.mxu1  ;;  %v5688_v62 = vpop.f32.mrf.mxu0 }
 0x762   :  { %v5687_v53 = vadd.f32 %v5686_v31, %v5078_v16  ;;  %10156 = vrot.lane.b32.xlu1 %v17730_v42, %s11059_s5  ;;  %10146 = vrot.lane.b32.xlu0 %v10145_v2, %s11060_s6  ;;  %v17741_v2 = vld [vmem:[#allocation82_spill] sm:$0xff]  ;;  %v17742_v62 = vpack.i.bf16 %v15062_v49, %v15692_v59 }
 0x763   :  { %v5082_v56 = vpop.f32.mrf.mxu1  ;;  %v5691_v33 = vpop.f32.mrf.mxu0 }
 0x764   :  { %v10160_v10 = vpack.i.bf16 %v15317_v12, %v5687_v53  ;;  %v5083_v27 = vadd.f32 %v5082_v56, %v17731_v63  ;;  %v17744_v63 = vpack.i.bf16 %v15218_v52, %v15766_v19 }
 0x765   :  { %v5084_v30 = vpop.f32.mrf.mxu1  ;;  %v5693_v32 = vpop.f32.mrf.mxu0 }
 0x766   :  { %v5692_v9 = vadd.f32 %v5691_v33, %v5083_v27  ;;  %10161 = vrot.lane.b32.xlu1 %v10160_v10, %s11060_s6  ;;  %10151 = vrot.lane.b32.xlu0 %v17732_v41, %s11058_s27  ;;  %v17745_v27 = vld [vmem:[#allocation84_spill] sm:$0xff] }
 0x767   :  { %v5085_v38 = vpop.f32.mrf.mxu1  ;;  %v5694_v50 = vpop.f32.mrf.mxu0 }
 0x768   :  { %v10170_v0 = vpack.i.bf16 %v15332_v44, %v5692_v9  ;;  %v5086_v20 = vadd.f32 %v5085_v38, %v17733_v14 }
 0x769   :  { %v5087_v48 = vpop.f32.mrf.mxu1  ;;  %v5696_v12 = vpop.f32.mrf.mxu0 }
 0x76a   :  { %v5695_v17 = vadd.f32 %v5694_v50, %v5086_v20  ;;  %10166 = vrot.lane.b32.xlu1 %v17734_v6, %s11058_s27  ;;  %10171 = vrot.lane.b32.xlu0 %v10170_v0, %s11060_s6  ;;  %v17746_v50 = vld [vmem:[#allocation85_spill] sm:$0xff]  ;;  %v17747_v12 = vld [vmem:[#allocation86_spill] sm:$0xff] }
 0x76b   :  { %v5090_v24 = vpop.f32.mrf.mxu1  ;;  %v5699_v3 = vpop.f32.mrf.mxu0 }
 0x76c   :  { %v10180_v58 = vpack.i.bf16 %v15335_v60, %v5695_v17  ;;  %v5091_v21 = vadd.f32 %v5090_v24, %v17735_v28 }
 0x76d   :  { %v5092_v36 = vpop.f32.mrf.mxu1  ;;  %v5701_v44 = vpop.f32.mrf.mxu0 }
 0x76e   :  { %v5700_v57 = vadd.f32 %v5699_v3, %v5091_v21  ;;  %10181 = vrot.lane.b32.xlu1 %v10180_v58, %s11060_s6  ;;  %10176 = vrot.lane.b32.xlu0 %v17736_v47, %s11059_s5  ;;  %v17748_v21 = vld [vmem:[#allocation87_spill] sm:$0xff] }
 0x76f   :  { %v5093_v46 = vpop.f32.mrf.mxu1  ;;  %v5702_v29 = vpop.f32.mrf.mxu0 }
 0x770   :  { %v10185_v4 = vpack.i.bf16 %v15350_v39, %v5700_v57  ;;  %v5094_v18 = vadd.f32 %v5093_v46, %v17737_v5 }
 0x771   :  { %v5095_v7 = vpop.f32.mrf.mxu1  ;;  %v5704_v60 = vpop.f32.mrf.mxu0 }
 0x772   :  { %v5703_v37 = vadd.f32 %v5702_v29, %v5094_v18  ;;  %10196 = vrot.lane.b32.xlu1 %v17738_v34, %s11059_s5  ;;  %10186 = vrot.lane.b32.xlu0 %v10185_v4, %s11060_s6  ;;  %v17749_v4 = vld [vmem:[#allocation88_spill] sm:$0xff]  ;;  %v15885_v60 = vpop.permute.xlu0 %9986 }
 0x773   :  { %v5098_v26 = vpop.f32.mrf.mxu1  ;;  %v5707_v43 = vpop.f32.mrf.mxu0 }
 0x774   :  { %v10200_v13 = vpack.i.bf16 %v15353_v23, %v5703_v37  ;;  %v5099_v54 = vadd.f32 %v5098_v26, %v17739_v61 }
 0x775   :  { %v5100_v1 = vpop.f32.mrf.mxu1  ;;  %v5709_v39 = vpop.f32.mrf.mxu0 }
 0x776   :  { %v5708_v8 = vadd.f32 %v5707_v43, %v5099_v54  ;;  %10201 = vrot.lane.b32.xlu1 %v10200_v13, %s11060_s6  ;;  %10191 = vrot.lane.b32.xlu0 %v17740_v55, %s11058_s27  ;;  %v15887_v43 = vpop.permute.xlu1 %9991  ;;  %v17750_v13 = vld [vmem:[#allocation89_spill] sm:$0xff]  ;;  %v15891_v39 = vpop.permute.xlu0 %9996 }
 0x777   :  { %v5101_v45 = vpop.f32.mrf.mxu1  ;;  %v5710_v25 = vpop.f32.mrf.mxu0 }
 0x778   :  { %v10210_v31 = vpack.i.bf16 %v15368_v15, %v5708_v8  ;;  %v5102_v22 = vadd.f32 %v5101_v45, %v17741_v2 }
 0x779   :  { %v5103_v16 = vpop.f32.mrf.mxu1  ;;  %v5712_v23 = vpop.f32.mrf.mxu0 }
 0x77a   :  { %v5711_v35 = vadd.f32 %v5710_v25, %v5102_v22  ;;  %10206 = vrot.lane.b32.xlu1 %v17742_v62, %s11058_s27  ;;  %10211 = vrot.lane.b32.xlu0 %v10210_v31, %s11060_s6  ;;  %v15893_v25 = vpop.permute.xlu1 %10001  ;;  %v17751_v31 = vld [vmem:[#allocation90_spill] sm:$0xff]  ;;  %v15897_v23 = vpop.permute.xlu0 %10006 }
 0x77b   :  { %v5106_v53 = vpop.f32.mrf.mxu1  ;;  %v5715_v42 = vpop.f32.mrf.mxu0 }
 0x77c   :  { %v10220_v11 = vpack.i.bf16 %v15371_v51, %v5711_v35  ;;  %v5107_v56 = vadd.f32 %v5106_v53, %v17743_v40 }
 0x77d   :  { %v5108_v33 = vpop.f32.mrf.mxu1  ;;  %v5717_v15 = vpop.f32.mrf.mxu0 }
 0x77e   :  { %v5716_v10 = vadd.f32 %v5715_v42, %v5107_v56  ;;  %10221 = vrot.lane.b32.xlu1 %v10220_v11, %s11060_s6  ;;  %10216 = vrot.lane.b32.xlu0 %v17744_v63, %s11059_s5  ;;  %v15899_v42 = vpop.permute.xlu1 %10011  ;;  %v17752_v11 = vld [vmem:[#allocation91_spill] sm:$0xff]  ;;  %v15903_v15 = vpop.permute.xlu0 %10016 }
 0x77f   :  { %v5109_v49 = vpop.f32.mrf.mxu1  ;;  %v5718_v59 = vpop.f32.mrf.mxu0 }
 0x780   :  { %v5110_v30 = vadd.f32 %v5109_v49, %v17745_v27  ;;  %9690 = vmatprep.mubr.msk.f32.mxu0 %vm781_vm2, %v5716_v10  ;;  %v17753_v27 = vld [vmem:[#allocation92_spill] sm:$0xff] }
 0x781   :  { %v5111_v32 = vpop.f32.mrf.mxu1  ;;  %v5720_v51 = vpop.f32.mrf.mxu0 }
 0x782   :  { %v5719_v9 = vadd.f32 %v5718_v59, %v5110_v30  ;;  %v15905_v59 = vpop.permute.xlu1 %10021 }
 0x783   :  { %v5114_v41 = vpop.f32.mrf.mxu1  ;;  %v5723_v38 = vpop.f32.mrf.mxu0 }
 0x784   :  { %v5115_v0 = vadd.f32 %v5114_v41, %v17746_v50  ;;  %9691 = vmatmul.mubr.msk.f32.vlgmr.msra.gmra.mxu0 %vm781_vm2, %v5719_v9  ;;  %v15909_v9 = vpop.permute.xlu0 %10026 }
 0x785   :  { %v5116_v14 = vpop.f32.mrf.mxu1  ;;  %v5725_v20 = vpop.f32.mrf.mxu0 }
 0x786   :  { %v5724_v48 = vadd.f32 %v5723_v38, %v5115_v0  ;;  %v15911_v0 = vpop.permute.xlu1 %10041  ;;  %v17754_v14 = vld [vmem:[#allocation93_spill] sm:$0xff] }
 0x787   :  { %v5117_v52 = vpop.f32.mrf.mxu1  ;;  %v5726_v19 = vpop.f32.mrf.mxu0 }
 0x788   :  { %v5118_v17 = vadd.f32 %v5117_v52, %v17747_v12  ;;  %9693 = vmatprep.mubr.msk.f32.mxu0 %vm781_vm2, %v5724_v48 }
 0x789   :  { %v5119_v6 = vpop.f32.mrf.mxu1  ;;  %v5728_v24 = vpop.f32.mrf.mxu0 }
 0x78a   :  { %v5727_v3 = vadd.f32 %v5726_v19, %v5118_v17  ;;  %v10032_v19 = vpop.permute.xlu0 %10031  ;;  %v15915_v24 = vpop.permute.xlu1 %10051 }
 0x78b   :  { %v5122_v58 = vpop.f32.mrf.mxu1  ;;  %v5731_v28 = vpop.f32.mrf.mxu0 }
 0x78c   :  { %v5123_v36 = vadd.f32 %v5122_v58, %v17748_v21  ;;  %9694 = vmatmul.mubr.msk.f32.gmra.mxu0 %vm781_vm2, %v5727_v3  ;;  %v17755_v3 = vld [vmem:[#allocation94_spill] sm:$0xff] }
 0x78d   :  { %v5124_v44 = vpop.f32.mrf.mxu1  ;;  %v5733_v57 = vpop.f32.mrf.mxu0 }
 0x78e   :  { %v5732_v47 = vadd.f32 %v5731_v28, %v5123_v36 }
 0x78f   :  { %v5125_v46 = vpop.f32.mrf.mxu1  ;;  %v5734_v29 = vpop.f32.mrf.mxu0 }
 0x790   :  { %v5126_v5 = vadd.f32 %v5125_v46, %v17749_v4  ;;  %9696 = vmatprep.mubr.msk.f32.mxu0 %vm781_vm2, %v5732_v47  ;;  %v15919_v47 = vpop.permute.xlu0 %10036  ;;  %v15921_v46 = vpop.permute.xlu1 %10061 }
 0x791   :  { %v5127_v18 = vpop.f32.mrf.mxu1  ;;  %v5736_v7 = vpop.f32.mrf.mxu0 }
 0x792   :  { %v5735_v37 = vadd.f32 %v5734_v29, %v5126_v5  ;;  %v17756_v29 = vld [vmem:[#allocation95_spill] sm:$0xff] }
 0x793   :  { %v5130_v34 = vpop.f32.mrf.mxu1  ;;  %v5739_v26 = vpop.f32.mrf.mxu0 }
 0x794   :  { %v5131_v61 = vadd.f32 %v5130_v34, %v17750_v13  ;;  %9697 = vmatmul.mubr.msk.f32.gmra.mxu0 %vm781_vm2, %v5735_v37  ;;  %v9988_v13 = vunpack.i.l.bf16 %v15885_v60 }
 0x795   :  { %v5132_v54 = vpop.f32.mrf.mxu1  ;;  %v5741_v1 = vpop.f32.mrf.mxu0 }
 0x796   :  { %v5740_v8 = vadd.f32 %v5739_v26, %v5131_v61  ;;  %v9989_v26 = vunpack.i.h.bf16 %v15885_v60  ;;  %v15927_v61 = vpop.permute.xlu0 %10046  ;;  %v15929_v54 = vpop.permute.xlu1 %10071  ;;  %v17757_v1 = vld [vmem:[#allocation96_spill] sm:$0xff] }
 0x797   :  { %v5133_v55 = vpop.f32.mrf.mxu1  ;;  %v5742_v45 = vpop.f32.mrf.mxu0 }
 0x798   :  { %v5134_v2 = vadd.f32 %v5133_v55, %v17751_v31  ;;  %9699 = vmatprep.mubr.msk.f32.mxu0 %vm781_vm2, %v5740_v8  ;;  %v10034_v31 = vunpack.i.h.bf16 %v10032_v19 }
 0x799   :  { %v5135_v22 = vpop.f32.mrf.mxu1  ;;  %v5744_v16 = vpop.f32.mrf.mxu0 }
 0x79a   :  { %v5743_v35 = vadd.f32 %v5742_v45, %v5134_v2  ;;  %v10033_v2 = vunpack.i.l.bf16 %v10032_v19 }
 0x79b   :  { %v5138_v62 = vpop.f32.mrf.mxu1  ;;  %v5747_v53 = vpop.f32.mrf.mxu0 }
 0x79c   :  { %v5139_v40 = vadd.f32 %v5138_v62, %v17752_v11  ;;  %9700 = vmatmul.mubr.msk.f32.gmra.mxu0 %vm781_vm2, %v5743_v35  ;;  %v17758_v62 = vld [vmem:[#allocation99_spill] sm:$0xff]  ;;  %v15936_v11 = vpop.permute.xlu0 %10056 }
 0x79d   :  { %v5140_v56 = vpop.f32.mrf.mxu1  ;;  %v5749_v33 = vpop.f32.mrf.mxu0  ;;  %v6162_v60 = vsel %vm781_vm2, %v17758_v62, %v9989_v26  ;;  %v10049_v62 = vunpack.i.h.bf16 %v15927_v61 }
 0x79e   :  { %v5748_v10 = vadd.f32 %v5747_v53, %v5139_v40  ;;  %v9993_v53 = vunpack.i.l.bf16 %v15887_v43  ;;  %v17759_v40 = vld [vmem:[#allocation97_spill] sm:$0xff] }
 0x79f   :  { %v5141_v63 = vpop.f32.mrf.mxu1  ;;  %v5750_v49 = vpop.f32.mrf.mxu0 }
 0x7a0   :  { %v5142_v30 = vadd.f32 %v5141_v63, %v17753_v27  ;;  %9702 = vmatprep.mubr.msk.f32.mxu0 %vm781_vm2, %v5748_v10  ;;  %v17760_v10 = vld [vmem:[#allocation6_spill] sm:$0xff]  ;;  %v10038_v27 = vunpack.i.l.bf16 %v15919_v47 }
 0x7a1   :  { %v5143_v32 = vpop.f32.mrf.mxu1  ;;  %v5752_v51 = vpop.f32.mrf.mxu0  ;;  %v6212_v63 = vsel %vm781_vm2, %v17760_v10, %v9988_v13  ;;  %v10009_v10 = vunpack.i.h.bf16 %v15897_v23 }
 0x7a2   :  { %v5751_v41 = vadd.f32 %v5750_v49, %v5142_v30  ;;  %v9994_v49 = vunpack.i.h.bf16 %v15887_v43  ;;  %v9999_v43 = vunpack.i.h.bf16 %v15891_v39 }
 0x7a3   :  { %v5146_v38 = vpop.f32.mrf.mxu1  ;;  %v5755_v50 = vpop.f32.mrf.mxu0 }
 0x7a4   :  { %v5147_v20 = vadd.f32 %v5146_v38, %v17754_v14  ;;  %9703 = vmatmul.mubr.msk.f32.gmra.mxu0 %vm781_vm2, %v5751_v41  ;;  %v6179_v38 = vsel %vm6178_vm3, %v6162_v60, %v10034_v31  ;;  %v17765_v31 = vld [vmem:[#allocation21_spill] sm:$0xff]  ;;  %v10048_v60 = vunpack.i.l.bf16 %v15927_v61 }
 0x7a5   :  { %v5148_v48 = vpop.f32.mrf.mxu1  ;;  %v5757_v52 = vpop.f32.mrf.mxu0 }
 0x7a6   :  { %v5756_v12 = vadd.f32 %v5755_v50, %v5147_v20  ;;  %v10039_v50 = vunpack.i.h.bf16 %v15919_v47  ;;  %v6228_v20 = vsel %vm6178_vm3, %v6212_v63, %v10033_v2  ;;  %v10008_v63 = vunpack.i.l.bf16 %v15897_v23 }
 0x7a7   :  { %v5149_v17 = vpop.f32.mrf.mxu1  ;;  %v5758_v6 = vpop.f32.mrf.mxu0 }
 0x7a8   :  { %v5150_v58 = vadd.f32 %v5149_v17, %v17755_v3  ;;  %9705 = vmatprep.mubr.msk.f32.mxu0 %vm781_vm2, %v5756_v12  ;;  %v9998_v17 = vunpack.i.l.bf16 %v15891_v39  ;;  %v17761_v3 = vld [vmem:[#allocation98_spill] sm:$0xff] }
 0x7a9   :  { %v5151_v28 = vpop.f32.mrf.mxu1  ;;  %v5760_v21 = vpop.f32.mrf.mxu0 }
 0x7aa   :  { %v5759_v36 = vadd.f32 %v5758_v6, %v5150_v58  ;;  %v15951_v6 = vpop.permute.xlu0 %10066  ;;  %v17762_v21 = vld [vmem:[#allocation7_spill] sm:$0xff]  ;;  %v6214_v2 = vsel %vm781_vm2, %v17765_v31, %v9998_v17  ;;  %v17769_v17 = vld [vmem:[#allocation16_spill] sm:$0xff] }
 0x7ab   :  { %v5154_v44 = vpop.f32.mrf.mxu1  ;;  %v5763_v57 = vpop.f32.mrf.mxu0 }
 0x7ac   :  { %v5155_v4 = vadd.f32 %v5154_v44, %v17756_v29  ;;  %9706 = vmatmul.mubr.msk.f32.gmra.mxu0 %vm781_vm2, %v5759_v36  ;;  %v6213_v36 = vsel %vm781_vm2, %v17762_v21, %v9993_v53  ;;  %v17763_v44 = vld [vmem:[#allocation100_spill] sm:$0xff] }
 0x7ad   :  { %v5156_v5 = vpop.f32.mrf.mxu1  ;;  %v5765_v18 = vpop.f32.mrf.mxu0 }
 0x7ae   :  { %v5764_v7 = vadd.f32 %v5763_v57, %v5155_v4  ;;  %v6163_v57 = vsel %vm781_vm2, %v17763_v44, %v9994_v49  ;;  %v6229_v4 = vsel %vm6178_vm3, %v6213_v36, %v10038_v27  ;;  %v10044_v18 = vunpack.i.h.bf16 %v15911_v0  ;;  %v17766_v27 = vld [vmem:[#allocation102_spill] sm:$0xff] }
 0x7af   :  { %v5157_v37 = vpop.f32.mrf.mxu1  ;;  %v5766_v34 = vpop.f32.mrf.mxu0  ;;  %v10059_v36 = vunpack.i.h.bf16 %v15936_v11  ;;  %v10058_v44 = vunpack.i.l.bf16 %v15936_v11 }
 0x7b0   :  { %v5158_v8 = vadd.f32 %v5157_v37, %v17757_v1  ;;  %9708 = vmatprep.mubr.msk.f32.mxu0 %vm781_vm2, %v5764_v7  ;;  %v10043_v7 = vunpack.i.l.bf16 %v15911_v0  ;;  %v17764_v1 = vld [vmem:[#allocation101_spill] sm:$0xff]  ;;  %v10004_v0 = vunpack.i.h.bf16 %v15893_v25 }
 0x7b1   :  { %v5159_v55 = vpop.f32.mrf.mxu1  ;;  %v5768_v45 = vpop.f32.mrf.mxu0 }
 0x7b2   :  { %v5767_v22 = vadd.f32 %v5766_v34, %v5158_v8  ;;  %v6180_v34 = vsel %vm6178_vm3, %v6163_v57, %v10039_v50  ;;  %v6164_v8 = vsel %vm781_vm2, %v17764_v1, %v9999_v43  ;;  %v6230_v53 = vsel %vm6178_vm3, %v6214_v2, %v10043_v7  ;;  %v17770_v7 = vld [vmem:[#allocation104_spill] sm:$0xff] }
 0x7b3   :  { %v5162_v16 = vpop.f32.mrf.mxu1  ;;  %v5771_v35 = vpop.f32.mrf.mxu0  ;;  %v10053_v50 = vunpack.i.l.bf16 %v15915_v24  ;;  %v10064_v1 = vunpack.i.h.bf16 %v15921_v46 }
 0x7b4   :  { %v5163_v56 = vadd.f32 %v5162_v16, %v17759_v40  ;;  %9709 = vmatmul.mubr.msk.f32.gmra.mxu0 %vm781_vm2, %v5767_v22  ;;  %v10077_v33 = vpop.permute.xlu1 %10076  ;;  %v10003_v22 = vunpack.i.l.bf16 %v15893_v25  ;;  %v6181_v40 = vsel %vm6178_vm3, %v6164_v8, %v10044_v18  ;;  %v10063_v8 = vunpack.i.l.bf16 %v15921_v46 }
 0x7b5   :  { %v10079_v30 = vunpack.i.h.bf16 %v10077_v33  ;;  %v10078_v32 = vunpack.i.l.bf16 %v10077_v33  ;;  %v5164_v51 = vpop.f32.mrf.mxu1  ;;  %v5773_v41 = vpop.f32.mrf.mxu0  ;;  %v10024_v46 = vunpack.i.h.bf16 %v15905_v59 }
 0x7b6   :  { %v5772_v14 = vadd.f32 %v5771_v35, %v5163_v56  ;;  %v17767_v51 = vld [vmem:[#allocation5_spill] sm:$0xff] }
 0x7b7   :  { %v6196_v48 = vsel %vm6195_vm4, %v6179_v38, %v10079_v30  ;;  %v5165_v52 = vpop.f32.mrf.mxu1  ;;  %v6244_v19 = vsel %vm6195_vm4, %v6228_v20, %v10078_v32  ;;  %v5774_v12 = vpop.f32.mrf.mxu0  ;;  %v6165_v30 = vsel %vm781_vm2, %v17766_v27, %v10004_v0  ;;  %v6215_v41 = vsel %vm781_vm2, %v17767_v51, %v10003_v22  ;;  %v17772_v0 = vld [vmem:[#allocation105_spill] sm:$0xff] }
 0x7b8   :  { %v5166_v58 = vadd.f32 %v5165_v52, %v17761_v3  ;;  %9711 = vmatprep.mubr.msk.f32.mxu0 %vm781_vm2, %v5772_v14  ;;  %v10082_v28 = vpop.permute.xlu1 %10081  ;;  %6378 = vmatprep.mubr.f32.mxu1 %v6244_v19  ;;  %v10054_v38 = vunpack.i.h.bf16 %v15915_v24  ;;  %v6231_v14 = vsel %vm6178_vm3, %v6215_v41, %v10048_v60  ;;  %v6182_v23 = vsel %vm6178_vm3, %v6165_v30, %v10049_v62  ;;  %v17768_v52 = vld [vmem:[#allocation103_spill] sm:$0xff]  ;;  %v17773_v62 = vld [vmem:[#allocation34_spill] sm:$0xff] }
 0x7b9   :  { %v10084_v47 = vunpack.i.h.bf16 %v10082_v28  ;;  %v10083_v29 = vunpack.i.l.bf16 %v10082_v28  ;;  %6379 = vmatmul.mubr.f32.vlgmr.msra.gmra.mxu1 %v6196_v48  ;;  %v5167_v39 = vpop.f32.mrf.mxu1  ;;  %v5776_v5 = vpop.f32.mrf.mxu0  ;;  %v6166_v19 = vsel %vm781_vm2, %v17768_v52, %v10009_v10  ;;  %v6216_v3 = vsel %vm781_vm2, %v17769_v17, %v10008_v63  ;;  %v17774_v41 = vld [vmem:[#allocation106_spill] sm:$0xff]  ;;  %v17776_v17 = vld [vmem:[#allocation107_spill] sm:$0xff] }
 0x7ba   :  { %v5775_v37 = vadd.f32 %v5774_v12, %v5166_v58  ;;  %v10014_v24 = vunpack.i.h.bf16 %v15899_v42  ;;  %v10013_v58 = vunpack.i.l.bf16 %v15899_v42  ;;  %v6232_v57 = vsel %vm6178_vm3, %v6216_v3, %v10053_v50 }
 0x7bb   :  { %v6245_v26 = vsel %vm6195_vm4, %v6229_v4, %v10083_v29  ;;  %v6197_v13 = vsel %vm6195_vm4, %v6180_v34, %v10084_v47  ;;  %v6183_v47 = vsel %vm6178_vm3, %v6166_v19, %v10054_v38  ;;  %v10019_v39 = vunpack.i.h.bf16 %v15903_v15 }
 0x7bc   :  { %9712 = vmatmul.mubr.msk.f32.gmra.mxu0 %vm781_vm2, %v5775_v37  ;;  %v15968_v55 = vpop.permute.xlu1 %10086  ;;  %v10092_v45 = vpop.permute.xlu0 %10091  ;;  %6383 = vmatprep.mubr.f32.mxu1 %v6245_v26  ;;  %v10018_v5 = vunpack.i.l.bf16 %v15903_v15  ;;  %v6167_v37 = vsel %vm781_vm2, %v17770_v7, %v10014_v24  ;;  %v17771_v26 = vld [vmem:[#allocation33_spill] sm:$0xff]  ;;  %v10068_v10 = vunpack.i.l.bf16 %v15951_v6  ;;  %v6169_v38 = vsel %vm781_vm2, %v17774_v41, %v10024_v46 }
 0x7bd   :  { %v10094_v16 = vunpack.i.h.bf16 %v10092_v45  ;;  %v10093_v35 = vunpack.i.l.bf16 %v10092_v45  ;;  %6384 = vmatmul.mubr.f32.gmra.mxu1 %v6197_v13  ;;  %v6217_v13 = vsel %vm781_vm2, %v17771_v26, %v10013_v58  ;;  %v6184_v15 = vsel %vm6178_vm3, %v6167_v37, %v10059_v36 }
 0x7be   :  { %v6233_v45 = vsel %vm6178_vm3, %v6217_v13, %v10058_v44  ;;  %v6168_v22 = vsel %vm781_vm2, %v17772_v0, %v10019_v39  ;;  %v6218_v60 = vsel %vm781_vm2, %v17773_v62, %v10018_v5  ;;  %v10088_v36 = vunpack.i.l.bf16 %v15968_v55 }
 0x7bf   :  { %v6246_v56 = vsel %vm6195_vm4, %v6230_v53, %v10093_v35  ;;  %v6198_v33 = vsel %vm6195_vm4, %v6181_v40, %v10094_v16  ;;  %v10023_v53 = vunpack.i.l.bf16 %v15905_v59  ;;  %v6234_v63 = vsel %vm6178_vm3, %v6218_v60, %v10063_v8 }
 0x7c0   :  { %v10102_v25 = vpop.permute.xlu1 %10101  ;;  %v15982_v49 = vpop.permute.xlu0 %10096  ;;  %6388 = vmatprep.mubr.f32.mxu1 %v6246_v56 }
 0x7c1   :  { %v10104_v61 = vunpack.i.h.bf16 %v10102_v25  ;;  %v10103_v32 = vunpack.i.l.bf16 %v10102_v25  ;;  %6389 = vmatmul.mubr.f32.gmra.mxu1 %v6198_v33  ;;  %v10069_v33 = vunpack.i.h.bf16 %v15951_v6  ;;  %v6185_v25 = vsel %vm6178_vm3, %v6168_v22, %v10064_v1  ;;  %v17779_v1 = vld [vmem:[#allocation31_spill] sm:$0xff]  ;;  %v17781_v22 = vld [vmem:[#allocation32_spill] sm:$0xff] }
 0x7c2   :  { %v6221_v8 = vsel %vm781_vm2, %v17779_v1, %v10088_v36 }
 0x7c3   :  { %v6247_v20 = vsel %vm6195_vm4, %v6231_v14, %v10103_v32  ;;  %v6199_v48 = vsel %vm6195_vm4, %v6182_v23, %v10104_v61  ;;  %v10029_v61 = vunpack.i.h.bf16 %v15909_v9  ;;  %v10028_v32 = vunpack.i.l.bf16 %v15909_v9  ;;  %v17775_v14 = vld [vmem:[#allocation36_spill] sm:$0xff] }
 0x7c4   :  { %v15996_v12 = vpop.permute.xlu1 %10116  ;;  %v10107_v43 = vpop.permute.xlu0 %10106  ;;  %6393 = vmatprep.mubr.f32.mxu1 %v6247_v20  ;;  %v6219_v23 = vsel %vm781_vm2, %v17775_v14, %v10023_v53  ;;  %v10074_v20 = vunpack.i.h.bf16 %v15929_v54  ;;  %v6186_v9 = vsel %vm6178_vm3, %v6169_v38, %v10069_v33 }
 0x7c5   :  { %v10109_v28 = vunpack.i.h.bf16 %v10107_v43  ;;  %v10108_v21 = vunpack.i.l.bf16 %v10107_v43  ;;  %6394 = vmatmul.mubr.f32.gmra.mxu1 %v6199_v48  ;;  %v10073_v48 = vunpack.i.l.bf16 %v15929_v54  ;;  %v6235_v52 = vsel %vm6178_vm3, %v6219_v23, %v10068_v10 }
 0x7c6   :  { %v6170_v3 = vsel %vm781_vm2, %v17776_v17, %v10029_v61  ;;  %v10089_v54 = vunpack.i.h.bf16 %v15968_v55  ;;  %v10119_v62 = vunpack.i.h.bf16 %v15996_v12  ;;  %v10118_v60 = vunpack.i.l.bf16 %v15996_v12  ;;  %v17785_v17 = vld [vmem:[#allocation28_spill] sm:$0xff] }
 0x7c7   :  { %v6248_v29 = vsel %vm6195_vm4, %v6232_v57, %v10108_v21  ;;  %v6200_v4 = vsel %vm6195_vm4, %v6183_v47, %v10109_v28  ;;  %v17777_v28 = vld [vmem:[#allocation15_spill] sm:$0xff]  ;;  %v10099_v47 = vunpack.i.h.bf16 %v15982_v49  ;;  %v6187_v39 = vsel %vm6178_vm3, %v6170_v3, %v10074_v20 }
 0x7c8   :  { %v10122_v42 = vpop.permute.xlu1 %10121  ;;  %v16010_v18 = vpop.permute.xlu0 %10111  ;;  %6398 = vmatprep.mubr.f32.mxu1 %v6248_v29  ;;  %v6220_v21 = vsel %vm781_vm2, %v17777_v28, %v10028_v32  ;;  %v10098_v29 = vunpack.i.l.bf16 %v15982_v49 }
 0x7c9   :  { %v10124_v11 = vunpack.i.h.bf16 %v10122_v42  ;;  %v10123_v34 = vunpack.i.l.bf16 %v10122_v42  ;;  %6399 = vmatmul.mubr.f32.gmra.mxu1 %v6200_v4  ;;  %v6236_v4 = vsel %vm6178_vm3, %v6220_v21, %v10073_v48  ;;  %v10114_v5 = vunpack.i.h.bf16 %v16010_v18 }
 0x7ca   :  { %v10113_v42 = vunpack.i.l.bf16 %v16010_v18 }
 0x7cb   :  { %v6249_v31 = vsel %vm6195_vm4, %v6233_v45, %v10123_v34  ;;  %v6201_v2 = vsel %vm6195_vm4, %v6184_v15, %v10124_v11  ;;  %v17778_v34 = vld [vmem:[#allocation108_spill] sm:$0xff]  ;;  %v6237_v45 = vsel %vm6178_vm3, %v6221_v8, %v10098_v29  ;;  %v17780_v15 = vld [vmem:[#allocation109_spill] sm:$0xff] }
 0x7cc   :  { %v16024_v16 = vpop.permute.xlu1 %10126  ;;  %v10132_v35 = vpop.permute.xlu0 %10131  ;;  %6403 = vmatprep.mubr.f32.mxu1 %v6249_v31  ;;  %v6171_v26 = vsel %vm781_vm2, %v17778_v34, %v10089_v54  ;;  %v6172_v31 = vsel %vm781_vm2, %v17780_v15, %v10114_v5  ;;  %v17787_v34 = vld [vmem:[#allocation14_spill] sm:$0xff]  ;;  %v17788_v15 = vld [vmem:[#allocation113_spill] sm:$0xff] }
 0x7cd   :  { %v10134_v40 = vunpack.i.h.bf16 %v10132_v35  ;;  %v10133_v56 = vunpack.i.l.bf16 %v10132_v35  ;;  %6404 = vmatmul.mubr.f32.gmra.mxu1 %v6201_v2  ;;  %v6188_v18 = vsel %vm6178_vm3, %v6171_v26, %v10099_v47  ;;  %v6222_v35 = vsel %vm781_vm2, %v17781_v22, %v10113_v42  ;;  %v17789_v22 = vld [vmem:[#allocation23_spill] sm:$0xff] }
 0x7cf   :  { %v6250_v27 = vsel %vm6195_vm4, %v6234_v63, %v10133_v56  ;;  %v6202_v30 = vsel %vm6195_vm4, %v6185_v25, %v10134_v40  ;;  %v10129_v40 = vunpack.i.h.bf16 %v16024_v16  ;;  %v10128_v56 = vunpack.i.l.bf16 %v16024_v16  ;;  %v17782_v16 = vld [vmem:[#allocation110_spill] sm:$0xff] }
 0x7d0   :  { %v10142_v59 = vpop.permute.xlu1 %10141  ;;  %v16038_v51 = vpop.permute.xlu0 %10136  ;;  %6408 = vmatprep.mubr.f32.mxu1 %v6250_v27  ;;  %v6238_v27 = vsel %vm6178_vm3, %v6222_v35, %v10118_v60 }
 0x7d1   :  { %v10144_v6 = vunpack.i.h.bf16 %v10142_v59  ;;  %v10143_v50 = vunpack.i.l.bf16 %v10142_v59  ;;  %6409 = vmatmul.mubr.f32.gmra.mxu1 %v6202_v30  ;;  %v10139_v63 = vunpack.i.h.bf16 %v16038_v51  ;;  %v10138_v25 = vunpack.i.l.bf16 %v16038_v51  ;;  %v17783_v51 = vld [vmem:[#allocation27_spill] sm:$0xff] }
 0x7d2   :  { %v6189_v30 = vsel %vm6178_vm3, %v6172_v31, %v10119_v62  ;;  %v6223_v23 = vsel %vm781_vm2, %v17783_v51, %v10128_v56 }
 0x7d3   :  { %v6251_v19 = vsel %vm6195_vm4, %v6235_v52, %v10143_v50  ;;  %v6203_v43 = vsel %vm6195_vm4, %v6186_v9, %v10144_v6  ;;  %v6173_v6 = vsel %vm781_vm2, %v17782_v16, %v10129_v40  ;;  %v6239_v20 = vsel %vm6178_vm3, %v6223_v23, %v10138_v25  ;;  %v17784_v52 = vld [vmem:[#allocation111_spill] sm:$0xff]  ;;  %v17790_v16 = vld [vmem:[#allocation114_spill] sm:$0xff] }
 0x7d4   :  { %v16052_v24 = vpop.permute.xlu1 %10156  ;;  %v10147_v58 = vpop.permute.xlu0 %10146  ;;  %6413 = vmatprep.mubr.f32.mxu1 %v6251_v19  ;;  %v6190_v48 = vsel %vm6178_vm3, %v6173_v6, %v10139_v63 }
 0x7d5   :  { %v10149_v44 = vunpack.i.h.bf16 %v10147_v58  ;;  %v10148_v57 = vunpack.i.l.bf16 %v10147_v58  ;;  %6414 = vmatmul.mubr.f32.gmra.mxu1 %v6203_v43  ;;  %v10159_v58 = vunpack.i.h.bf16 %v16052_v24  ;;  %v10158_v28 = vunpack.i.l.bf16 %v16052_v24 }
 0x7d7   :  { %v6252_v7 = vsel %vm6195_vm4, %v6236_v4, %v10148_v57  ;;  %v6204_v37 = vsel %vm6195_vm4, %v6187_v39, %v10149_v44 }
 0x7d8   :  { %v10162_v55 = vpop.permute.xlu1 %10161  ;;  %v10152_v11 = vpop.permute.xlu0 %10151  ;;  %6418 = vmatprep.mubr.f32.mxu1 %v6252_v7 }
 0x7d9   :  { %v10164_v13 = vunpack.i.h.bf16 %v10162_v55  ;;  %v10163_v49 = vunpack.i.l.bf16 %v10162_v55  ;;  %6419 = vmatmul.mubr.f32.gmra.mxu1 %v6204_v37  ;;  %v10154_v61 = vunpack.i.h.bf16 %v10152_v11  ;;  %v10153_v12 = vunpack.i.l.bf16 %v10152_v11  ;;  %v17786_v37 = vld [vmem:[#allocation112_spill] sm:$0xff] }
 0x7db   :  { %v6253_v2 = vsel %vm6195_vm4, %v6237_v45, %v10163_v49  ;;  %v6205_v0 = vsel %vm6195_vm4, %v6188_v18, %v10164_v13  ;;  %v6174_v9 = vsel %vm781_vm2, %v17784_v52, %v10154_v61  ;;  %v6224_v3 = vsel %vm781_vm2, %v17785_v17, %v10153_v12  ;;  %v10717_v52 = vld [vmem:[%s17177_s8] sm:$0xff]  }
 0x7dc   :  { %v10167_v46 = vpop.permute.xlu1 %10166  ;;  %v10172_v53 = vpop.permute.xlu0 %10171  ;;  %6423 = vmatprep.mubr.f32.mxu1 %v6253_v2  ;;  %v6240_v39 = vsel %vm6178_vm3, %v6224_v3, %v10158_v28  ;;  %v6191_v5 = vsel %vm6178_vm3, %v6174_v9, %v10159_v58  ;;  %9730 = vmatprep.mubr.bf16.mxu0 %v10717_v52 }
 0x7dd   :  { %v10174_v33 = vunpack.i.h.bf16 %v10172_v53  ;;  %v10173_v10 = vunpack.i.l.bf16 %v10172_v53  ;;  %6424 = vmatmul.mubr.f32.gmra.mxu1 %v6205_v0  ;;  %v10169_v21 = vunpack.i.h.bf16 %v10167_v46  ;;  %v10168_v54 = vunpack.i.l.bf16 %v10167_v46 }
 0x7df   :  { %v6254_v32 = vsel %vm6195_vm4, %v6238_v27, %v10173_v10  ;;  %v6206_v59 = vsel %vm6195_vm4, %v6189_v30, %v10174_v33  ;;  %v6175_v24 = vsel %vm781_vm2, %v17786_v37, %v10169_v21  ;;  %v6225_v26 = vsel %vm781_vm2, %v17787_v34, %v10168_v54 }
 0x7e0   :  { %v10182_v41 = vpop.permute.xlu1 %10181  ;;  %v10177_v38 = vpop.permute.xlu0 %10176  ;;  %6428 = vmatprep.mubr.f32.mxu1 %v6254_v32 }
 0x7e1   :  { %v10184_v50 = vunpack.i.h.bf16 %v10182_v41  ;;  %v10183_v14 = vunpack.i.l.bf16 %v10182_v41  ;;  %6429 = vmatmul.mubr.f32.gmra.mxu1 %v6206_v59  ;;  %v10179_v29 = vunpack.i.h.bf16 %v10177_v38  ;;  %v10178_v4 = vunpack.i.l.bf16 %v10177_v38 }
 0x7e3   :  { %v6255_v19 = vsel %vm6195_vm4, %v6239_v20, %v10183_v14  ;;  %v6207_v43 = vsel %vm6195_vm4, %v6190_v48, %v10184_v50  ;;  %v6241_v45 = vsel %vm6178_vm3, %v6225_v26, %v10178_v4  ;;  %v6192_v18 = vsel %vm6178_vm3, %v6175_v24, %v10179_v29  ;;  %v17791_v50 = vld [vmem:[#allocation29_spill] sm:$0xff] }
 0x7e4   :  { %v10197_v36 = vpop.permute.xlu1 %10196  ;;  %v10187_v44 = vpop.permute.xlu0 %10186  ;;  %6433 = vmatprep.mubr.f32.mxu1 %v6255_v19  ;;  %v16136_v19 = vld [vmem:[%s17176_s7] ss:$0 sm:$0xff] }
 0x7e5   :  { %v10189_v57 = vunpack.i.h.bf16 %v10187_v44  ;;  %v10188_v47 = vunpack.i.l.bf16 %v10187_v44  ;;  %6434 = vmatmul.mubr.f32.gmra.mxu1 %v6207_v43  ;;  %v10199_v62 = vunpack.i.h.bf16 %v10197_v36  ;;  %v10198_v60 = vunpack.i.l.bf16 %v10197_v36 }
 0x7e7   :  { %v6256_v42 = vsel %vm6195_vm4, %v6240_v39, %v10188_v47  ;;  %v6208_v7 = vsel %vm6195_vm4, %v6191_v5, %v10189_v57 }
 0x7e8   :  { %v10202_v55 = vpop.permute.xlu1 %10201  ;;  %v10192_v11 = vpop.permute.xlu0 %10191  ;;  %6438 = vmatprep.mubr.f32.mxu1 %v6256_v42 }
 0x7e9   :  { %v10204_v13 = vunpack.i.h.bf16 %v10202_v55  ;;  %v10203_v49 = vunpack.i.l.bf16 %v10202_v55  ;;  %v10194_v1 = vunpack.i.h.bf16 %v10192_v11  ;;  %v10193_v8 = vunpack.i.l.bf16 %v10192_v11  ;;  %6439 = vmatmul.mubr.f32.gmra.mxu1 %v6208_v7 }
 0x7eb   :  { %v6176_v31 = vsel %vm781_vm2, %v17788_v15, %v10194_v1  ;;  %v6257_v2 = vsel %vm6195_vm4, %v6241_v45, %v10203_v49  ;;  %v6209_v0 = vsel %vm6195_vm4, %v6192_v18, %v10204_v13  ;;  %v6226_v35 = vsel %vm781_vm2, %v17789_v22, %v10193_v8 }
 0x7ec   :  { %v10207_v46 = vpop.permute.xlu1 %10206  ;;  %v10212_v53 = vpop.permute.xlu0 %10211  ;;  %6443 = vmatprep.mubr.f32.mxu1 %v6257_v2  ;;  %v6242_v63 = vsel %vm6178_vm3, %v6226_v35, %v10198_v60  ;;  %v6193_v25 = vsel %vm6178_vm3, %v6176_v31, %v10199_v62 }
 0x7ed   :  { %v10214_v40 = vunpack.i.h.bf16 %v10212_v53  ;;  %v10213_v56 = vunpack.i.l.bf16 %v10212_v53  ;;  %6444 = vmatmul.mubr.f32.gmra.mxu1 %v6209_v0  ;;  %v10209_v33 = vunpack.i.h.bf16 %v10207_v46  ;;  %v10208_v10 = vunpack.i.l.bf16 %v10207_v46 }
 0x7ef   :  { %v6258_v27 = vsel %vm6195_vm4, %v6242_v63, %v10213_v56  ;;  %v6210_v30 = vsel %vm6195_vm4, %v6193_v25, %v10214_v40  ;;  %v6177_v6 = vsel %vm781_vm2, %v17790_v16, %v10209_v33  ;;  %v6227_v14 = vsel %vm781_vm2, %v17791_v50, %v10208_v10 }
 0x7f0   :  { %v10222_v61 = vpop.permute.xlu1 %10221  ;;  %v10217_v12 = vpop.permute.xlu0 %10216  ;;  %6448 = vmatprep.mubr.f32.mxu1 %v6258_v27 }
 0x7f1   :  { %v10224_v32 = vunpack.i.h.bf16 %v10222_v61  ;;  %v10223_v59 = vunpack.i.l.bf16 %v10222_v61  ;;  %v10219_v41 = vunpack.i.h.bf16 %v10217_v12  ;;  %v10218_v38 = vunpack.i.l.bf16 %v10217_v12  ;;  %6449 = vmatmul.mubr.f32.gmra.mxu1 %v6210_v30 }
 0x7f3   :  { %v6243_v51 = vsel %vm6178_vm3, %v6227_v14, %v10218_v38  ;;  %v6194_v23 = vsel %vm6178_vm3, %v6177_v6, %v10219_v41 }
 0x7f4   :  { %v6259_v20 = vsel %vm6195_vm4, %v6243_v51, %v10223_v59  ;;  %v6211_v48 = vsel %vm6195_vm4, %v6194_v23, %v10224_v32 }
 0x7f5   :  { %6453 = vmatprep.mubr.f32.mxu1 %v6259_v20 }
 0x7f6   :  { %6454 = vmatmul.mubr.f32.gmra.mxu1 %v6211_v48 }
 0x7f7   :  { %9782 = vmatprep.mubr.bf16.mxu1 %v10717_v52 }
 0x844   :  { %v9692_v3 = vpop.f32.mrf.mxu0 }
 0x846   :  { %v6525_v36 = vpop.f32.mrf.mxu0 }
 0x84c   :  { %v9695_v5 = vpop.f32.mrf.mxu0 }
 0x84e   :  { %v6535_v26 = vpop.f32.mrf.mxu0 }
 0x854   :  { %v16160_v61 = vpop.f32.mrf.mxu0 }
 0x856   :  { %v16162_v59 = vpop.f32.mrf.mxu0 }
 0x85c   :  { %v9701_v38 = vpop.f32.mrf.mxu0 }
 0x85e   :  { %v16164_v50 = vpop.f32.mrf.mxu0 }
 0x864   :  { %v9704_v51 = vpop.f32.mrf.mxu0 }
 0x866   :  { %v6565_v48 = vpop.f32.mrf.mxu0 }
 0x879   :  { %v9174_v9 = vpop.f32.mrf.mxu1 }
 0x87b   :  { %v9175_v43 = vpop.f32.mrf.mxu1 }
 0x87c   :  { %v9176_v17 = vadd.f32 %v9175_v43, %v9174_v9  ;;  %v9707_v9 = vpop.f32.mrf.mxu0 }
 0x87d   :  { %v9177_v58 = vpop.f32.mrf.mxu1 }
 0x87e   :  { %v6381_v28 = vadd.f32 %v9176_v17, %v16136_v19 }
 0x87f   :  { %v9178_v21 = vpop.f32.mrf.mxu1 }
 0x880   :  { %v9179_v54 = vadd.f32 %v9178_v21, %v9177_v58  ;;  %v6526_v57 = vadd.f32 %v6525_v36, %v6381_v28 }
 0x881   :  { %v9180_v44 = vpop.f32.mrf.mxu1 }
 0x882   :  { %v6386_v47 = vadd.f32 %v9179_v54, %v16136_v19  ;;  %v6604_v7 = vmax.f32 %v6526_v57, 0.0 }
 0x883   :  { %v9181_v29 = vpop.f32.mrf.mxu1 }
 0x884   :  { %v6531_v4 = vadd.f32 %v9692_v3, %v6386_v47  ;;  %v9182_v39 = vadd.f32 %v9181_v29, %v9180_v44  ;;  %v6575_v3 = vpop.f32.mrf.mxu0 }
 0x885   :  { %v9183_v42 = vpop.f32.mrf.mxu1 }
 0x886   :  { %v6605_v37 = vmax.f32 %v6531_v4, 0.0  ;;  %v6391_v24 = vadd.f32 %v9182_v39, %v16136_v19  ;;  %v9710_v21 = vpop.f32.mrf.mxu0 }
 0x887   :  { %v9184_v55 = vpop.f32.mrf.mxu1 }
 0x888   :  { %v16141_v11 = vpack.c.bf16 %v6605_v37, %v6604_v7  ;;  %v9185_v34 = vadd.f32 %v9184_v55, %v9183_v42  ;;  %v6536_v49 = vadd.f32 %v6535_v26, %v6391_v24  ;;  %v6585_v39 = vpop.f32.mrf.mxu0 }
 0x889   :  { %v16143_v13 = vpop.f32.mrf.mxu1 }
 0x88a   :  { %v6396_v1 = vadd.f32 %v9185_v34, %v16136_v19  ;;  %v6737_v8 = vunpack.c.l.bf16 %v16141_v11  ;;  %v6738_v45 = vunpack.c.h.bf16 %v16141_v11  ;;  %v6606_v22 = vmax.f32 %v6536_v49, 0.0  ;;  %v9713_v24 = vpop.f32.mrf.mxu0 }
 0x88b   :  { %v16148_v18 = vpop.f32.mrf.mxu1 }
 0x88c   :  { %v6541_v15 = vadd.f32 %v9695_v5, %v6396_v1  ;;  %v6753_v31 = vsub.f32 %v6604_v7, %v6737_v8  ;;  %v6754_v2 = vsub.f32 %v6605_v37, %v6738_v45 }
 0x88d   :  { %v16150_v0 = vpop.f32.mrf.mxu1 }
 0x88e   :  { %v6607_v35 = vmax.f32 %v6541_v15, 0.0  ;;  %v16152_v62 = vpack.c.bf16 %v6754_v2, %v6753_v31 }
 0x88f   :  { %v9190_v60 = vpop.f32.mrf.mxu1 }
 0x890   :  { %v16154_v46 = vpack.c.bf16 %v6607_v35, %v6606_v22 }
 0x891   :  { %v9192_v53 = vpop.f32.mrf.mxu1 }
 0x892   :  { %v6739_v40 = vunpack.c.l.bf16 %v16154_v46  ;;  %v6740_v56 = vunpack.c.h.bf16 %v16154_v46 }
 0x893   :  { %v9193_v33 = vpop.f32.mrf.mxu1 }
 0x894   :  { %v6755_v10 = vsub.f32 %v6606_v22, %v6739_v40  ;;  %v6756_v63 = vsub.f32 %v6607_v35, %v6740_v56  ;;  %v6595_v35 = vpop.f32.mrf.mxu0  ;;  %v9194_v40 = vadd.f32 %v9193_v33, %v9192_v53 }
 0x895   :  { %v9195_v25 = vpop.f32.mrf.mxu1 }
 0x896   :  { %v16158_v27 = vpack.c.bf16 %v6756_v63, %v6755_v10  ;;  %v9191_v63 = vadd.f32 %v9190_v60, %v16150_v0  ;;  %v6411_v53 = vadd.f32 %v9194_v40, %v16136_v19 }
 0x897   :  { %v9196_v30 = vpop.f32.mrf.mxu1 }
 0x898   :  { %v9197_v8 = vadd.f32 %v9196_v30, %v9195_v25 }
 0x899   :  { %v9198_v12 = vpop.f32.mrf.mxu1 }
 0x89b   :  { %v9199_v32 = vpop.f32.mrf.mxu1 }
 0x89c   :  { %v9200_v55 = vadd.f32 %v9199_v32, %v9198_v12 }
 0x89d   :  { %v9201_v41 = vpop.f32.mrf.mxu1 }
 0x89e   :  { %v6421_v56 = vadd.f32 %v9200_v55, %v16136_v19 }
 0x89f   :  { %v9202_v16 = vpop.f32.mrf.mxu1 }
 0x8a0   :  { %v9203_v5 = vadd.f32 %v9202_v16, %v9201_v41  ;;  %v6416_v16 = vadd.f32 %v9197_v8, %v16136_v19  ;;  %v6566_v33 = vadd.f32 %v6565_v48, %v6421_v56 }
 0x8a1   :  { %v9204_v6 = vpop.f32.mrf.mxu1 }
 0x8a2   :  { %v6426_v45 = vadd.f32 %v9203_v5, %v16136_v19 }
 0x8a3   :  { %v9205_v14 = vpop.f32.mrf.mxu1 }
 0x8a4   :  { %v9206_v57 = vadd.f32 %v9205_v14, %v9204_v6  ;;  %v6571_v25 = vadd.f32 %v9704_v51, %v6426_v45 }
 0x8a5   :  { %v9207_v23 = vpop.f32.mrf.mxu1 }
 0x8a6   :  { %v6431_v34 = vadd.f32 %v9206_v57, %v16136_v19 }
 0x8a7   :  { %v9208_v20 = vpop.f32.mrf.mxu1 }
 0x8a8   :  { %v9209_v54 = vadd.f32 %v9208_v20, %v9207_v23  ;;  %v6576_v10 = vadd.f32 %v6575_v3, %v6431_v34  ;;  %v9188_v23 = vadd.f32 %v16148_v18, %v16143_v13 }
 0x8a9   :  { %v9210_v52 = vpop.f32.mrf.mxu1 }
 0x8aa   :  { %v6436_v42 = vadd.f32 %v9209_v54, %v16136_v19  ;;  %v6614_v20 = vmax.f32 %v6576_v10, 0.0  ;;  %v6612_v54 = vmax.f32 %v6566_v33, 0.0  ;;  %v10731_v33 = vld [vmem:[%s17177_s8 + $0x70] sm:$0xff]  }
 0x8ab   :  { %v9211_v43 = vpop.f32.mrf.mxu1 }
 0x8ac   :  { %v9212_v58 = vadd.f32 %v9211_v43, %v9210_v52  ;;  %v6581_v15 = vadd.f32 %v9707_v9, %v6436_v42  ;;  %v6406_v52 = vadd.f32 %v9191_v63, %v16136_v19  ;;  %v6561_v9 = vadd.f32 %v9701_v38, %v6416_v16  ;;  %v10724_v16 = vld [vmem:[%s17177_s8 + $0x38] sm:$0xff]  }
 0x8ad   :  { %v9213_v17 = vpop.f32.mrf.mxu1  ;;  %v6613_v43 = vmax.f32 %v6571_v25, 0.0  ;;  %v10725_v25 = vld [vmem:[%s17177_s8 + $0x40] sm:$0xff]  }
 0x8ae   :  { %v6441_v29 = vadd.f32 %v9212_v58, %v16136_v19  ;;  %v6615_v30 = vmax.f32 %v6581_v15, 0.0  ;;  %v6551_v13 = vadd.f32 %v16160_v61, %v6406_v52  ;;  %v10733_v52 = vld [vmem:[%s17177_s8 + $0x80] sm:$0xff]  }
 0x8af   :  { %v9214_v28 = vpop.f32.mrf.mxu1 }
 0x8b0   :  { %v9215_v36 = vadd.f32 %v9214_v28, %v9213_v17  ;;  %v6586_v49 = vadd.f32 %v6585_v39, %v6441_v29  ;;  %v6734_v17 = vpack.c.bf16 %v6615_v30, %v6614_v20  ;;  %v6401_v28 = vadd.f32 %v9188_v23, %v16136_v19  ;;  %v10729_v23 = vld [vmem:[%s17177_s8 + $0x60] sm:$0xff]  }
 0x8b1   :  { %v9216_v44 = vpop.f32.mrf.mxu1  ;;  %v6609_v42 = vmax.f32 %v6551_v13, 0.0  ;;  %v6667_v13 = vld [vmem:[%s17178_s9 + $0x58] sm:$0xff] }
 0x8b2   :  { %v6446_v47 = vadd.f32 %v9215_v36, %v16136_v19  ;;  %v6616_v12 = vmax.f32 %v6586_v49, 0.0  ;;  %v6611_v36 = vmax.f32 %v6561_v9, 0.0  ;;  %v6747_v57 = vunpack.c.l.bf16 %v6734_v17  ;;  %v6671_v9 = vld [vmem:[%s17178_s9 + $0x78] sm:$0xff] }
 0x8b3   :  { %v9217_v4 = vpop.f32.mrf.mxu1  ;;  %v6748_v38 = vunpack.c.h.bf16 %v6734_v17 }
 0x8b4   :  { %v9218_v7 = vadd.f32 %v9217_v4, %v9216_v44  ;;  %v6591_v37 = vadd.f32 %v9710_v21, %v6446_v47  ;;  %v6556_v21 = vadd.f32 %v16164_v50, %v6411_v53  ;;  %v6733_v44 = vpack.c.bf16 %v6613_v43, %v6612_v54  ;;  %v10730_v53 = vld [vmem:[%s17177_s8 + $0x68] sm:$0xff]  }
 0x8b5   :  { %v6764_v55 = vsub.f32 %v6615_v30, %v6748_v38  ;;  %v10726_v30 = vld [vmem:[%s17177_s8 + $0x48] sm:$0xff]  }
 0x8b6   :  { %v9219_v26 = vpop.f32.mrf.mxu1  ;;  %v6451_v1 = vadd.f32 %v9218_v7, %v16136_v19  ;;  %v6617_v2 = vmax.f32 %v6591_v37, 0.0  ;;  %v6610_v5 = vmax.f32 %v6556_v21, 0.0  ;;  %v6745_v61 = vunpack.c.l.bf16 %v6733_v44  ;;  %v6683_v21 = vld [vmem:[%s17178_s9 + $0xd8] sm:$0xff]  ;;  %v6681_v38 = vld [vmem:[%s17178_s9 + $0xc8] sm:$0xff] }
 0x8b7   :  { %v6746_v34 = vunpack.c.h.bf16 %v6733_v44 }
 0x8b8   :  { %v9220_v31 = vpop.f32.mrf.mxu1  ;;  %v6596_v32 = vadd.f32 %v6595_v35, %v6451_v1  ;;  %v6735_v6 = vpack.c.bf16 %v6617_v2, %v6616_v12  ;;  %v6732_v7 = vpack.c.bf16 %v6611_v36, %v6610_v5  ;;  %v6761_v8 = vsub.f32 %v6612_v54, %v6745_v61  ;;  %v6719_v54 = vld [vmem:[%s17178_s9 + $0x1f8] sm:$0xff]  ;;  %v6661_v61 = vld [vmem:[%s17178_s9 + $0x28] sm:$0xff] }
 0x8b9   :  { %v9221_v22 = vadd.f32 %v9220_v31, %v9219_v26  ;;  %v6762_v45 = vsub.f32 %v6613_v43, %v6746_v34  ;;  %v6686_v43 = vld [vmem:[%s17178_s9 + $0xf0] sm:$0xff]  ;;  %v6659_v34 = vld [vmem:[%s17178_s9 + $0x18] sm:$0xff] }
 0x8ba   :  { %v6618_v0 = vmax.f32 %v6596_v32, 0.0  ;;  %v6749_v58 = vunpack.c.l.bf16 %v6735_v6  ;;  %v6750_v51 = vunpack.c.h.bf16 %v6735_v6  ;;  %v6743_v1 = vunpack.c.l.bf16 %v6732_v7  ;;  %v10718_v32 = vld [vmem:[%s17177_s8 + $0x8] sm:$0xff]  }
 0x8bb   :  { %v6456_v41 = vadd.f32 %v9221_v22, %v16136_v19  ;;  %v6546_v19 = vadd.f32 %v16162_v59, %v6401_v28  ;;  %v6744_v15 = vunpack.c.h.bf16 %v6732_v7  ;;  %v6668_v28 = vld [vmem:[%s17178_s9 + $0x60] sm:$0xff] }
 0x8bc   :  { %v6765_v4 = vsub.f32 %v6616_v12, %v6749_v58  ;;  %v6766_v39 = vsub.f32 %v6617_v2, %v6750_v51  ;;  %v6773_v2 = vpack.c.bf16 %v6762_v45, %v6761_v8  ;;  %v6759_v22 = vsub.f32 %v6610_v5, %v6743_v1  ;;  %v6669_v58 = vld [vmem:[%s17178_s9 + $0x68] sm:$0xff]  ;;  %v6684_v51 = vld [vmem:[%s17178_s9 + $0xe0] sm:$0xff]  ;;  %v6663_v5 = vld [vmem:[%s17178_s9 + $0x38] sm:$0xff] }
 0x8bd   :  { %v6601_v14 = vadd.f32 %v9713_v24, %v6456_v41  ;;  %v6763_v24 = vsub.f32 %v6614_v20, %v6747_v57  ;;  %v6608_v26 = vmax.f32 %v6546_v19, 0.0  ;;  %v6760_v35 = vsub.f32 %v6611_v36, %v6744_v15  ;;  %v10719_v41 = vld [vmem:[%s17177_s8 + $0x10] sm:$0xff]   ;;  %v10732_v20 = vld [vmem:[%s17177_s8 + $0x78] sm:$0xff]  }
 0x8be   :  { %v6775_v37 = vpack.c.bf16 %v6766_v39, %v6765_v4  ;;  %v6718_v36 = vld [vmem:[%s17178_s9 + $0x1f0] sm:$0xff]  ;;  %v6680_v4 = vld [vmem:[%s17178_s9 + $0xc0] sm:$0xff]  ;;  %v6679_v19 = vld [vmem:[%s17178_s9 + $0xb8] sm:$0xff] }
 0x8bf   :  { %v6619_v60 = vmax.f32 %v6601_v14, 0.0  ;;  %v6731_v49 = vpack.c.bf16 %v6609_v42, %v6608_v26  ;;  %v6774_v59 = vpack.c.bf16 %v6764_v55, %v6763_v24  ;;  %v6772_v56 = vpack.c.bf16 %v6760_v35, %v6759_v22  ;;  %v10728_v14 = vld [vmem:[%s17177_s8 + $0x58] sm:$0xff]   ;;  %v6702_v57 = vld [vmem:[%s17178_s9 + $0x170] sm:$0xff]  ;;  %v6664_v39 = vld [vmem:[%s17178_s9 + $0x40] sm:$0xff] }
 0x8c0   :  { %v6660_v24 = vld [vmem:[%s17178_s9 + $0x20] sm:$0xff]  ;;  %v6675_v55 = vld [vmem:[%s17178_s9 + $0x98] sm:$0xff] }
 0x8c1   :  { %v6736_v3 = vpack.c.bf16 %v6619_v60, %v6618_v0  ;;  %v6741_v31 = vunpack.c.l.bf16 %v6731_v49  ;;  %v6742_v40 = vunpack.c.h.bf16 %v6731_v49 }
 0x8c3   :  { %9766 = vmatprep.subr.bf16.mxu1 %v6736_v3  ;;  %v6751_v18 = vunpack.c.l.bf16 %v6736_v3  ;;  %v6752_v48 = vunpack.c.h.bf16 %v6736_v3  ;;  %v6757_v10 = vsub.f32 %v6608_v26, %v6741_v31  ;;  %v6758_v63 = vsub.f32 %v6609_v42, %v6742_v40  ;;  %v6662_v42 = vld [vmem:[%s17178_s9 + $0x30] sm:$0xff] }
 0x8c4   :  { %9767 = vmatpush3.bf16.msra.mxu1 %v6736_v3  ;;  %v6685_v3 = vld [vmem:[%s17178_s9 + $0xe8] sm:$0xff]  ;;  %v6674_v26 = vld [vmem:[%s17178_s9 + $0x90] sm:$0xff] }
 0x8c5   :  { %9768 = vmatprep.subr.bf16.mxu1 %v6735_v6  ;;  %v6767_v47 = vsub.f32 %v6618_v0, %v6751_v18  ;;  %v6768_v29 = vsub.f32 %v6619_v60, %v6752_v48  ;;  %v6771_v12 = vpack.c.bf16 %v6758_v63, %v6757_v10  ;;  %v10734_v0 = vld [vmem:[%s17177_s8 + $0x88] sm:$0xff]   ;;  %v6687_v60 = vld [vmem:[%s17178_s9 + $0xf8] sm:$0xff]  ;;  %v6682_v48 = vld [vmem:[%s17178_s9 + $0xd0] sm:$0xff] }
 0x8c6   :  { %v6703_v18 = vld [vmem:[%s17178_s9 + $0x178] sm:$0xff] }
 0x8c7   :  { %v6776_v50 = vpack.c.bf16 %v6768_v29, %v6767_v47  ;;  %v6717_v47 = vld [vmem:[%s17178_s9 + $0x1e8] sm:$0xff] }
 0x8c8   :  { %9769 = vmatpush3.bf16.msra.mxu1 %v6735_v6  ;;  %v10727_v6 = vld [vmem:[%s17177_s8 + $0x50] sm:$0xff]   ;;  %v6665_v29 = vld [vmem:[%s17178_s9 + $0x48] sm:$0xff] }
 0x8c9   :  { %9714 = vmatprep.subr.bf16.mxu0 %v6776_v50  ;;  %9770 = vmatprep.subr.bf16.mxu1 %v6734_v17 }
 0x8ca   :  { %9715 = vmatpush3.bf16.msra.mxu0 %v6776_v50  ;;  %v6678_v50 = vld [vmem:[%s17178_s9 + $0xb0] sm:$0xff] }
 0x8cb   :  { %9716 = vmatprep.subr.bf16.mxu0 %v6775_v37 }
 0x8cc   :  { %9771 = vmatpush3.bf16.msra.mxu1 %v6734_v17  ;;  %v6670_v17 = vld [vmem:[%s17178_s9 + $0x70] sm:$0xff] }
 0x8cd   :  { %9772 = vmatprep.subr.bf16.mxu1 %v6733_v44 }
 0x8ce   :  { %9717 = vmatpush3.bf16.msra.mxu0 %v6775_v37  ;;  %v6676_v37 = vld [vmem:[%s17178_s9 + $0xa0] sm:$0xff] }
 0x8cf   :  { %9718 = vmatprep.subr.bf16.mxu0 %v6774_v59 }
 0x8d0   :  { %9773 = vmatpush3.bf16.msra.mxu1 %v6733_v44  ;;  %v6666_v44 = vld [vmem:[%s17178_s9 + $0x50] sm:$0xff] }
 0x8d1   :  { %9774 = vmatprep.subr.bf16.mxu1 %v6732_v7 }
 0x8d2   :  { %9719 = vmatpush3.bf16.msra.mxu0 %v6774_v59 }
 0x8d3   :  { %9720 = vmatprep.subr.bf16.mxu0 %v6773_v2 }
 0x8d4   :  { %9775 = vmatpush3.bf16.msra.mxu1 %v6732_v7  ;;  %v6677_v7 = vld [vmem:[%s17178_s9 + $0xa8] sm:$0xff] }
 0x8d5   :  { %9776 = vmatprep.subr.bf16.mxu1 %v6731_v49 }
 0x8d6   :  { %9721 = vmatpush3.bf16.msra.mxu0 %v6773_v2 }
 0x8d7   :  { %9722 = vmatprep.subr.bf16.mxu0 %v6772_v56 }
 0x8d8   :  { %9777 = vmatpush3.bf16.msra.mxu1 %v6731_v49  ;;  %v6658_v49 = vld [vmem:[%s17178_s9 + $0x10] sm:$0xff] }
 0x8d9   :  { %9778 = vmatprep.subr.bf16.mxu1 %v16154_v46 }
 0x8da   :  { %9723 = vmatpush3.bf16.msra.mxu0 %v6772_v56 }
 0x8db   :  { %9724 = vmatprep.subr.bf16.mxu0 %v6771_v12 }
 0x8dc   :  { %9779 = vmatpush3.bf16.msra.mxu1 %v16154_v46  ;;  %v10720_v46 = vld [vmem:[%s17177_s8 + $0x18] sm:$0xff]  }
 0x8dd   :  { %9780 = vmatprep.subr.bf16.mxu1 %v16141_v11 }
 0x8de   :  { %9725 = vmatpush3.bf16.msra.mxu0 %v6771_v12 }
 0x8df   :  { %9726 = vmatprep.subr.bf16.mxu0 %v16158_v27 }
 0x8e0   :  { %9781 = vmatpush3.bf16.msra.mxu1 %v16141_v11  ;;  %v10721_v11 = vld [vmem:[%s17177_s8 + $0x20] sm:$0xff]  }
 0x8e1   :  { %9338 = vmatprep.subr.mxu1 %v6719_v54  ;;  %v6700_v54 = vld [vmem:[%s17178_s9 + $0x160] sm:$0xff] }
 0x8e2   :  { %9727 = vmatpush3.bf16.msra.mxu0 %v16158_v27  ;;  %v10722_v27 = vld [vmem:[%s17177_s8 + $0x28] sm:$0xff]  }
 0x8e3   :  { %9728 = vmatprep.subr.bf16.mxu0 %v16152_v62  ;;  %9783 = vmatmul.mubr.bf16.vlgmr.msra.gmra.mxu1 %v10718_v32 }
 0x8e4   :  { %9786 = vmatprep.mubr.bf16.mxu1 %v10719_v41  ;;  %9339 = vmatpush3.msra.mxu1 %v6703_v18 }
 0x8e5   :  { %9340 = vmatprep.subr.mxu1 %v6718_v36 }
 0x8e6   :  { %9729 = vmatpush3.bf16.msra.mxu0 %v16152_v62  ;;  %v10723_v62 = vld [vmem:[%s17177_s8 + $0x30] sm:$0xff]   ;;  %9341 = vmatpush3.msra.mxu1 %v6702_v57 }
 0x8e7   :  { %9294 = vmatprep.subr.mxu0 %v6687_v60  ;;  %9342 = vmatprep.subr.mxu1 %v6717_v47  ;;  %v6673_v60 = vld [vmem:[%s17178_s9 + $0x88] sm:$0xff]  ;;  %v6714_v57 = vld [vmem:[%s17178_s9 + $0x1d0] sm:$0xff] }
 0x8e9   :  { %9731 = vmatmul.mubr.bf16.vlgmr.msra.gmra.mxu0 %v10718_v32 }
 0x8ea   :  { %9734 = vmatprep.mubr.bf16.mxu0 %v10719_v41  ;;  %9295 = vmatpush3.msra.mxu0 %v6671_v9  ;;  %v6701_v9 = vld [vmem:[%s17178_s9 + $0x168] sm:$0xff] }
 0x8eb   :  { %9787 = vmatmul.mubr.bf16.gmra.mxu1 %v10720_v46  ;;  %9296 = vmatprep.subr.mxu0 %v6686_v43  ;;  %v6657_v43 = vld [vmem:[%s17178_s9 + $0x8] sm:$0xff] }
 0x8ec   :  { %9790 = vmatprep.mubr.bf16.mxu1 %v10721_v11  ;;  %9297 = vmatpush3.msra.mxu0 %v6670_v17 }
 0x8ed   :  { %9298 = vmatprep.subr.mxu0 %v6685_v3  ;;  %9343 = vmatpush3.msra.mxu1 %v6701_v9  ;;  %v6672_v3 = vld [vmem:[%s17178_s9 + $0x80] sm:$0xff] }
 0x8ee   :  { %9299 = vmatpush3.msra.mxu0 %v6669_v58  ;;  %v6656_v58 = vld [vmem:[%s17178_s9] sm:$0xff] }
 0x8ef   :  { %9300 = vmatprep.subr.mxu0 %v6684_v51 }
 0x8f0   :  { %9301 = vmatpush3.msra.mxu0 %v6668_v28 }
 0x8f1   :  { %9735 = vmatmul.mubr.bf16.gmra.mxu0 %v10720_v46  ;;  %9302 = vmatprep.subr.mxu0 %v6683_v21  ;;  %v6716_v21 = vld [vmem:[%s17178_s9 + $0x1e0] sm:$0xff] }
 0x8f2   :  { %9738 = vmatprep.mubr.bf16.mxu0 %v10721_v11  ;;  %9303 = vmatpush3.msra.mxu0 %v6667_v13  ;;  %v6715_v13 = vld [vmem:[%s17178_s9 + $0x1d8] sm:$0xff] }
 0x8f3   :  { %9791 = vmatmul.mubr.bf16.gmra.mxu1 %v10722_v27  ;;  %9304 = vmatprep.subr.mxu0 %v6682_v48  ;;  %v6699_v48 = vld [vmem:[%s17178_s9 + $0x158] sm:$0xff] }
 0x8f4   :  { %9794 = vmatprep.mubr.bf16.mxu1 %v10723_v62  ;;  %9305 = vmatpush3.msra.mxu0 %v6666_v44 }
 0x8f5   :  { %9306 = vmatprep.subr.mxu0 %v6681_v38  ;;  %9344 = vmatprep.subr.mxu1 %v6716_v21  ;;  %v6698_v38 = vld [vmem:[%s17178_s9 + $0x150] sm:$0xff] }
 0x8f6   :  { %9307 = vmatpush3.msra.mxu0 %v6665_v29  ;;  %9345 = vmatpush3.msra.mxu1 %v6700_v54 }
 0x8f7   :  { %9308 = vmatprep.subr.mxu0 %v6680_v4  ;;  %9346 = vmatprep.subr.mxu1 %v6715_v13  ;;  %v6707_v13 = vld [vmem:[%s17178_s9 + $0x198] sm:$0xff] }
 0x8f8   :  { %9309 = vmatpush3.msra.mxu0 %v6664_v39  ;;  %9347 = vmatpush3.msra.mxu1 %v6699_v48 }
 0x8f9   :  { %9739 = vmatmul.mubr.bf16.gmra.mxu0 %v10722_v27  ;;  %9310 = vmatprep.subr.mxu0 %v6679_v19 }
 0x8fa   :  { %9742 = vmatprep.mubr.bf16.mxu0 %v10723_v62  ;;  %9311 = vmatpush3.msra.mxu0 %v6663_v5 }
 0x8fb   :  { %9795 = vmatmul.mubr.bf16.gmra.mxu1 %v10724_v16  ;;  %9312 = vmatprep.subr.mxu0 %v6678_v50 }
 0x8fc   :  { %9798 = vmatprep.mubr.bf16.mxu1 %v10725_v25  ;;  %9313 = vmatpush3.msra.mxu0 %v6662_v42 }
 0x8fd   :  { %9314 = vmatprep.subr.mxu0 %v6677_v7  ;;  %9348 = vmatprep.subr.mxu1 %v6714_v57 }
 0x8fe   :  { %9315 = vmatpush3.msra.mxu0 %v6661_v61  ;;  %9349 = vmatpush3.msra.mxu1 %v6698_v38  ;;  %v6691_v38 = vld [vmem:[%s17178_s9 + $0x118] sm:$0xff] }
 0x8ff   :  { %9316 = vmatprep.subr.mxu0 %v6676_v37 }
 0x900   :  { %9317 = vmatpush3.msra.mxu0 %v6660_v24 }
 0x901   :  { %9743 = vmatmul.mubr.bf16.gmra.mxu0 %v10724_v16  ;;  %9318 = vmatprep.subr.mxu0 %v6675_v55 }
 0x902   :  { %9746 = vmatprep.mubr.bf16.mxu0 %v10725_v25  ;;  %9319 = vmatpush3.msra.mxu0 %v6659_v34 }
 0x903   :  { %9799 = vmatmul.mubr.bf16.gmra.mxu1 %v10726_v30  ;;  %9320 = vmatprep.subr.mxu0 %v6674_v26 }
 0x904   :  { %9802 = vmatprep.mubr.bf16.mxu1 %v10727_v6  ;;  %9321 = vmatpush3.msra.mxu0 %v6658_v49 }
 0x905   :  { %9322 = vmatprep.subr.mxu0 %v6673_v60 }
 0x906   :  { %9323 = vmatpush3.msra.mxu0 %v6657_v43  ;;  %v6693_v43 = vld [vmem:[%s17178_s9 + $0x128] sm:$0xff] }
 0x907   :  { %9324 = vmatprep.subr.mxu0 %v6672_v3 }
 0x908   :  { %9325 = vmatpush3.msra.mxu0 %v6656_v58 }
 0x909   :  { %9747 = vmatmul.mubr.bf16.gmra.mxu0 %v10726_v30 }
 0x90a   :  { %9750 = vmatprep.mubr.bf16.mxu0 %v10727_v6 }
 0x90b   :  { %9803 = vmatmul.mubr.bf16.gmra.mxu1 %v10728_v14 }
 0x90c   :  { %9806 = vmatprep.mubr.bf16.mxu1 %v10729_v23 }
 0x911   :  { %9751 = vmatmul.mubr.bf16.gmra.mxu0 %v10728_v14 }
 0x912   :  { %9754 = vmatprep.mubr.bf16.mxu0 %v10729_v23 }
 0x913   :  { %9807 = vmatmul.mubr.bf16.gmra.mxu1 %v10730_v53 }
 0x914   :  { %9810 = vmatprep.mubr.bf16.mxu1 %v10731_v33 }
 0x919   :  { %9755 = vmatmul.mubr.bf16.gmra.mxu0 %v10730_v53 }
 0x91a   :  { %9758 = vmatprep.mubr.bf16.mxu0 %v10731_v33 }
 0x91b   :  { %9811 = vmatmul.mubr.bf16.gmra.mxu1 %v10732_v20 }
 0x91c   :  { %9814 = vmatprep.mubr.bf16.mxu1 %v10733_v52 }
 0x921   :  { %9759 = vmatmul.mubr.bf16.gmra.mxu0 %v10732_v20 }
 0x922   :  { %9762 = vmatprep.mubr.bf16.mxu0 %v10733_v52 }
 0x923   :  { %9815 = vmatmul.mubr.bf16.gmra.mxu1 %v10734_v0 }
 0x929   :  { %9763 = vmatmul.mubr.bf16.gmra.mxu0 %v10734_v0 }
 0x9a3   :  { %v9784_v1 = vpop.f32.mrf.mxu1 }
 0x9a5   :  { %v7096_v59 = vpop.f32.mrf.mxu1 }
 0x9a7   :  { %v9785_v8 = vpop.f32.mrf.mxu1 }
 0x9a9   :  { %v9732_v45 = vpop.f32.mrf.mxu0  ;;  %v7099_v15 = vpop.f32.mrf.mxu1 }
 0x9aa   :  { %v16342_v31 = vadd.f32 %v9784_v1, %v9732_v45  ;;  %v6712_v45 = vld [vmem:[%s17178_s9 + $0x1c0] sm:$0xff] }
 0x9ab   :  { %v6919_v2 = vpop.f32.mrf.mxu0  ;;  %v16344_v22 = vpop.f32.mrf.mxu1 }
 0x9ac   :  { %v16346_v35 = vadd.f32 %v7096_v59, %v6919_v2  ;;  %v6713_v59 = vld [vmem:[%s17178_s9 + $0x1c8] sm:$0xff]  ;;  %v6696_v2 = vld [vmem:[%s17178_s9 + $0x140] sm:$0xff] }
 0x9ad   :  { %v9733_v40 = vpop.f32.mrf.mxu0  ;;  %v7112_v56 = vpop.f32.mrf.mxu1  ;;  %9350 = vmatprep.subr.mxu1 %v6713_v59  ;;  %v6704_v59 = vld [vmem:[%s17178_s9 + $0x180] sm:$0xff] }
 0x9ae   :  { %v16348_v10 = vadd.f32 %v9785_v8, %v9733_v40  ;;  %v6697_v8 = vld [vmem:[%s17178_s9 + $0x148] sm:$0xff] }
 0x9af   :  { %v6922_v63 = vpop.f32.mrf.mxu0  ;;  %v16350_v12 = vpop.f32.mrf.mxu1  ;;  %9351 = vmatpush3.msra.mxu1 %v6697_v8 }
 0x9b0   :  { %v16352_v32 = vadd.f32 %v7099_v15, %v6922_v63  ;;  %v6711_v63 = vld [vmem:[%s17178_s9 + $0x1b8] sm:$0xff]  ;;  %9352 = vmatprep.subr.mxu1 %v6712_v45 }
 0x9b1   :  { %v16354_v41 = vpop.f32.mrf.mxu0  ;;  %v16356_v46 = vpop.f32.mrf.mxu1  ;;  %9353 = vmatpush3.msra.mxu1 %v6696_v2 }
 0x9b2   :  { %9354 = vmatprep.subr.mxu1 %v6711_v63  ;;  %v7121_v48 = vadd.f32 %v16344_v22, %v16354_v41  ;;  %v6690_v22 = vld [vmem:[%s17178_s9 + $0x110] sm:$0xff] }
 0x9b3   :  { %v6935_v11 = vpop.f32.mrf.mxu0  ;;  %v9792_v27 = vpop.f32.mrf.mxu1 }
 0x9b4   :  { %v7113_v4 = vadd.f32 %v7112_v56, %v6935_v11 }
 0x9b5   :  { %v16358_v62 = vpop.f32.mrf.mxu0  ;;  %v7128_v16 = vpop.f32.mrf.mxu1 }
 0x9b7   :  { %v16360_v25 = vpop.f32.mrf.mxu0  ;;  %v9793_v30 = vpop.f32.mrf.mxu1 }
 0x9b8   :  { %v7116_v60 = vadd.f32 %v16356_v46, %v16360_v25  ;;  %v6692_v46 = vld [vmem:[%s17178_s9 + $0x120] sm:$0xff] }
 0x9b9   :  { %v9740_v6 = vpop.f32.mrf.mxu0  ;;  %v7131_v14 = vpop.f32.mrf.mxu1 }
 0x9ba   :  { %v16362_v23 = vadd.f32 %v9792_v27, %v9740_v6  ;;  %v6695_v27 = vld [vmem:[%s17178_s9 + $0x138] sm:$0xff]  ;;  %v6710_v6 = vld [vmem:[%s17178_s9 + $0x1b0] sm:$0xff] }
 0x9bb   :  { %v6951_v53 = vpop.f32.mrf.mxu0  ;;  %v16364_v33 = vpop.f32.mrf.mxu1  ;;  %9355 = vmatpush3.msra.mxu1 %v6695_v27 }
 0x9bc   :  { %v16366_v20 = vadd.f32 %v7128_v16, %v6951_v53  ;;  %9356 = vmatprep.subr.mxu1 %v6710_v6 }
 0x9bd   :  { %v9741_v52 = vpop.f32.mrf.mxu0  ;;  %v7144_v0 = vpop.f32.mrf.mxu1 }
 0x9be   :  { %v16377_v17 = vadd.f32 %v9793_v30, %v9741_v52 }
 0x9bf   :  { %v6954_v51 = vpop.f32.mrf.mxu0  ;;  %v16385_v28 = vpop.f32.mrf.mxu1 }
 0x9c0   :  { %v16396_v18 = vadd.f32 %v7131_v14, %v6954_v51  ;;  %v6694_v14 = vld [vmem:[%s17178_s9 + $0x130] sm:$0xff]  ;;  %v6708_v51 = vld [vmem:[%s17178_s9 + $0x1a0] sm:$0xff] }
 0x9c1   :  { %v16401_v36 = vpop.f32.mrf.mxu0  ;;  %v16403_v44 = vpop.f32.mrf.mxu1  ;;  %9357 = vmatpush3.msra.mxu1 %v6694_v14 }
 0x9c3   :  { %v6967_v47 = vpop.f32.mrf.mxu0  ;;  %v9800_v29 = vpop.f32.mrf.mxu1 }
 0x9c4   :  { %v7145_v39 = vadd.f32 %v7144_v0, %v6967_v47  ;;  %v6709_v0 = vld [vmem:[%s17178_s9 + $0x1a8] sm:$0xff] }
 0x9c5   :  { %v16411_v19 = vpop.f32.mrf.mxu0  ;;  %v7160_v5 = vpop.f32.mrf.mxu1  ;;  %9358 = vmatprep.subr.mxu1 %v6709_v0 }
 0x9c6   :  { %v10225_v50 = vpack.i.bf16 %v7113_v4, %v7145_v39  ;;  %9359 = vmatpush3.msra.mxu1 %v6693_v43  ;;  %v6706_v4 = vld [vmem:[%s17178_s9 + $0x190] sm:$0xff] }
 0x9c7   :  { %v16413_v42 = vpop.f32.mrf.mxu0  ;;  %v9801_v7 = vpop.f32.mrf.mxu1  ;;  %9360 = vmatprep.subr.mxu1 %v6708_v51  ;;  %v7156_v51 = vadd.f32 %v16385_v28, %v16411_v19  ;;  %v6726_v19 = vld [vmem:[%s17178_s9 + $0x230] sm:$0xff] }
 0x9c8   :  { %10226 = vrot.lane.b32.xlu0 %v10225_v50, %s11059_s5  ;;  %9361 = vmatpush3.msra.mxu1 %v6692_v46 }
 0x9c9   :  { %v9748_v61 = vpop.f32.mrf.mxu0  ;;  %v7163_v37 = vpop.f32.mrf.mxu1  ;;  %9362 = vmatprep.subr.mxu1 %v6707_v13  ;;  %v6721_v13 = vld [vmem:[%s17178_s9 + $0x208] sm:$0xff] }
 0x9ca   :  { %v16416_v24 = vadd.f32 %v9800_v29, %v9748_v61  ;;  %9363 = vmatpush3.msra.mxu1 %v6691_v38  ;;  %v6705_v61 = vld [vmem:[%s17178_s9 + $0x188] sm:$0xff] }
 0x9cb   :  { %v6983_v55 = vpop.f32.mrf.mxu0  ;;  %v9804_v34 = vpop.f32.mrf.mxu1  ;;  %9364 = vmatprep.subr.mxu1 %v6706_v4 }
 0x9cc   :  { %v16418_v26 = vadd.f32 %v7160_v5, %v6983_v55  ;;  %v7124_v55 = vadd.f32 %v16350_v12, %v16358_v62  ;;  %9365 = vmatpush3.msra.mxu1 %v6690_v22  ;;  %v6688_v12 = vld [vmem:[%s17178_s9 + $0x100] sm:$0xff] }
 0x9cd   :  { %v9749_v49 = vpop.f32.mrf.mxu0  ;;  %v7176_v1 = vpop.f32.mrf.mxu1  ;;  %9366 = vmatprep.subr.mxu1 %v6705_v61 }
 0x9ce   :  { %v16429_v15 = vadd.f32 %v9801_v7, %v9749_v49  ;;  %v6689_v49 = vld [vmem:[%s17178_s9 + $0x108] sm:$0xff] }
 0x9cf   :  { %v6986_v40 = vpop.f32.mrf.mxu0  ;;  %v16434_v56 = vpop.f32.mrf.mxu1  ;;  %9367 = vmatpush3.msra.mxu1 %v6689_v49 }
 0x9d0   :  { %v16439_v11 = vadd.f32 %v7163_v37, %v6986_v40  ;;  %v6727_v37 = vld [vmem:[%s17178_s9 + $0x238] sm:$0xff]  ;;  %9368 = vmatprep.subr.mxu1 %v6704_v59 }
 0x9d1   :  { %v9752_v16 = vpop.f32.mrf.mxu0  ;;  %v7179_v30 = vpop.f32.mrf.mxu1  ;;  %9818 = vmatprep.subr.mxu0 %v6727_v37  ;;  %9369 = vmatpush3.msra.mxu1 %v6688_v12 }
 0x9d2   :  { %v7185_v39 = vadd.f32 %v9804_v34, %v9752_v16 }
 0x9d3   :  { %v6999_v53 = vpop.f32.mrf.mxu0  ;;  %v9808_v52 = vpop.f32.mrf.mxu1 }
 0x9d4   :  { %v7177_v9 = vadd.f32 %v7176_v1, %v6999_v53  ;;  %v10255_v8 = vpack.i.bf16 %v7185_v39, %v7124_v55 }
 0x9d5   :  { %v16458_v3 = vpop.f32.mrf.mxu0  ;;  %v7192_v58 = vpop.f32.mrf.mxu1 }
 0x9d6   :  { %v10230_v21 = vpack.i.bf16 %v7177_v9, %v7116_v60  ;;  %v7153_v60 = vadd.f32 %v16364_v33, %v16401_v36 }
 0x9d7   :  { %v7002_v25 = vpop.f32.mrf.mxu0  ;;  %v9809_v54 = vpop.f32.mrf.mxu1 }
 0x9d8   :  { %v7180_v57 = vadd.f32 %v7179_v30, %v7002_v25  ;;  %10231 = vrot.lane.b32.xlu0 %v10230_v21, %s11059_s5  ;;  %v7148_v30 = vadd.f32 %v16403_v44, %v16413_v42  ;;  %v7188_v42 = vadd.f32 %v16434_v56, %v16458_v3  ;;  %v6725_v56 = vld [vmem:[%s17178_s9 + $0x228] sm:$0xff]  ;;  %v6722_v3 = vld [vmem:[%s17178_s9 + $0x210] sm:$0xff] }
 0x9d9   :  { %v9756_v47 = vpop.f32.mrf.mxu0  ;;  %v7195_v29 = vpop.f32.mrf.mxu1 }
 0x9da   :  { %v10235_v5 = vpack.i.bf16 %v7180_v57, %v7121_v48  ;;  %v16478_v50 = vadd.f32 %v9808_v52, %v9756_v47  ;;  %v6720_v48 = vld [vmem:[%s17178_s9 + $0x200] sm:$0xff] }
 0x9db   :  { %v7015_v41 = vpop.f32.mrf.mxu0  ;;  %v9812_v7 = vpop.f32.mrf.mxu1 }
 0x9dc   :  { %v16491_v34 = vadd.f32 %v7192_v58, %v7015_v41  ;;  %10236 = vrot.lane.b32.xlu0 %v10235_v5, %s11059_s5 }
 0x9dd   :  { %v9757_v1 = vpop.f32.mrf.mxu0  ;;  %v7208_v2 = vpop.f32.mrf.mxu1 }
 0x9de   :  { %v16500_v45 = vadd.f32 %v9809_v54, %v9757_v1 }
 0x9df   :  { %v7018_v62 = vpop.f32.mrf.mxu0  ;;  %v9813_v16 = vpop.f32.mrf.mxu1 }
 0x9e0   :  { %v16505_v40 = vadd.f32 %v7195_v29, %v7018_v62  ;;  %10256 = vrot.lane.b32.xlu0 %v10255_v8, %s11059_s5 }
 0x9e1   :  { %v9760_v63 = vpop.f32.mrf.mxu0  ;;  %v7211_v0 = vpop.f32.mrf.mxu1 }
 0x9e2   :  { %v7217_v43 = vadd.f32 %v9812_v7, %v9760_v63 }
 0x9e3   :  { %v7031_v27 = vpop.f32.mrf.mxu0  ;;  %v9816_v47 = vpop.f32.mrf.mxu1 }
 0x9e4   :  { %v7209_v6 = vadd.f32 %v7208_v2, %v7031_v27  ;;  %v10250_v21 = vpack.i.bf16 %v7217_v43, %v7156_v51 }
 0x9e5   :  { %v9761_v14 = vpop.f32.mrf.mxu0 }
 0x9e6   :  { %v10240_v53 = vpack.i.bf16 %v7209_v6, %v7148_v30  ;;  %v7220_v44 = vadd.f32 %v9813_v16, %v9761_v14 }
 0x9e7   :  { %v7034_v52 = vpop.f32.mrf.mxu0 }
 0x9e8   :  { %v7212_v9 = vadd.f32 %v7211_v0, %v7034_v52  ;;  %10241 = vrot.lane.b32.xlu1 %v10240_v53, %s11059_s5  ;;  %v10260_v46 = vpack.i.bf16 %v7188_v42, %v7220_v44 }
 0x9e9   :  { %v9764_v5 = vpop.f32.mrf.mxu0 }
 0x9ea   :  { %v10245_v58 = vpack.i.bf16 %v7212_v9, %v7153_v60  ;;  %v7233_v44 = vadd.f32 %v9816_v47, %v9764_v5 }
 0x9eb   :  { %v7047_v12 = vpop.f32.mrf.mxu0 }
 0x9ec   :  { %10246 = vrot.lane.b32.xlu1 %v10245_v58, %s11059_s5 }
 0x9ed   :  { %v9765_v14 = vpop.f32.mrf.mxu0 }
 0x9ef   :  { %v7050_v43 = vpop.f32.mrf.mxu0 }
 0x9f0   :  { %10251 = vrot.lane.b32.xlu1 %v10250_v21, %s11059_s5 }
 0x9f4   :  { %10261 = vrot.lane.b32.xlu1 %v10260_v46, %s11059_s5 }
 0xa3a   :  { %v10227_v33 = vpop.permute.xlu0 %10226 }
 0xa3b   :  { %v10229_v36 = vunpack.i.h.bf16 %v10227_v33  ;;  %v10228_v25 = vunpack.i.l.bf16 %v10227_v33 }
 0xa3d   :  { %v7303_v54 = vsel %vm6178_vm3, %v16346_v35, %v10229_v36  ;;  %v7307_v28 = vsel %vm6178_vm3, %v16366_v20, %v10228_v25  ;;  %v6724_v35 = vld [vmem:[%s17178_s9 + $0x220] sm:$0xff]  ;;  %v6723_v20 = vld [vmem:[%s17178_s9 + $0x218] sm:$0xff] }
 0xa3e   :  { %7401 = vmatprep.mubr.f32.mxu0 %v7307_v28 }
 0xa3f   :  { %7402 = vmatmul.mubr.f32.vlgmr.msra.gmra.mxu0 %v7303_v54 }
 0xa40   :  { %9819 = vmatpush3.msra.mxu0 %v6727_v37  ;;  %v7224_v37 = vpop.f32.mrf.mxu1 }
 0xa41   :  { %9820 = vmatprep.subr.mxu0 %v6726_v19  ;;  %v7225_v60 = vadd.f32 %v7224_v37, %v7047_v12 }
 0xa42   :  { %9821 = vmatpush3.msra.mxu0 %v6726_v19 }
 0xa43   :  { %9822 = vmatprep.subr.mxu0 %v6725_v56 }
 0xa44   :  { %9823 = vmatpush3.msra.mxu0 %v6725_v56 }
 0xa45   :  { %9824 = vmatprep.subr.mxu0 %v6724_v35 }
 0xa46   :  { %9825 = vmatpush3.msra.mxu0 %v6724_v35 }
 0xa47   :  { %9826 = vmatprep.subr.mxu0 %v6723_v20 }
 0xa48   :  { %9827 = vmatpush3.msra.mxu0 %v6723_v20  ;;  %v9035_v20 = vld [vmem:[%s17179_s10] ss:$0 sm:$0xff] }
 0xa49   :  { %9828 = vmatprep.subr.mxu0 %v6722_v3 }
 0xa4a   :  { %9829 = vmatpush3.msra.mxu0 %v6722_v3  ;;  %v10232_v57 = vpop.permute.xlu0 %10231 }
 0xa4b   :  { %9830 = vmatprep.subr.mxu0 %v6721_v13  ;;  %v10234_v29 = vunpack.i.h.bf16 %v10232_v57  ;;  %v10233_v4 = vunpack.i.l.bf16 %v10232_v57 }
 0xa4c   :  { %9831 = vmatpush3.msra.mxu0 %v6721_v13 }
 0xa4d   :  { %9832 = vmatprep.subr.mxu0 %v6720_v48  ;;  %v7311_v55 = vsel %vm6178_vm3, %v16418_v26, %v10234_v29  ;;  %v7304_v8 = vsel %vm6178_vm3, %v16352_v32, %v10233_v4 }
 0xa4e   :  { %9833 = vmatpush3.msra.mxu0 %v6720_v48  ;;  %v10237_v38 = vpop.permute.xlu0 %10236 }
 0xa4f   :  { %v10239_v49 = vunpack.i.h.bf16 %v10237_v38  ;;  %v10238_v1 = vunpack.i.l.bf16 %v10237_v38 }
 0xa51   :  { %v7305_v32 = vsel %vm6178_vm3, %v16342_v31, %v10238_v1  ;;  %v7312_v6 = vsel %vm6178_vm3, %v16439_v11, %v10239_v49 }
 0xa52   :  { %v10257_v62 = vpop.permute.xlu0 %10256 }
 0xa53   :  { %v10259_v27 = vunpack.i.h.bf16 %v10257_v62  ;;  %v10258_v16 = vunpack.i.l.bf16 %v10257_v62 }
 0xa55   :  { %v7306_v31 = vsel %vm6178_vm3, %v16348_v10, %v10258_v16  ;;  %v7313_v11 = vsel %vm6178_vm3, %v16416_v24, %v10259_v27  ;;  %v11061_v24 = vmov 0.0  }
 0xa56   :  { %9864 = vmatprep.subr.bf16.mxu1 %v11061_v24  ;;  %9840 = vmatprep.subr.bf16.mxu0 %v11061_v24 }
 0xa5a   :  { %v10242_v39 = vpop.permute.xlu1 %10241 }
 0xa5b   :  { %v10244_v22 = vunpack.i.h.bf16 %v10242_v39  ;;  %v10243_v41 = vunpack.i.l.bf16 %v10242_v39 }
 0xa5d   :  { %v7308_v7 = vsel %vm6178_vm3, %v16396_v18, %v10243_v41  ;;  %v7315_v61 = vsel %vm6178_vm3, %v16491_v34, %v10244_v22  ;;  %v9817_v34 = vpop.f32.mrf.mxu1 }
 0xa5e   :  { %7406 = vmatprep.mubr.f32.mxu0 %v7308_v7  ;;  %7486 = vmatprep.mubr.f32.mxu1 %v7315_v61  ;;  %v10247_v59 = vpop.permute.xlu1 %10246  ;;  %v7236_v10 = vadd.f32 %v9817_v34, %v9765_v14 }
 0xa5f   :  { %v10249_v2 = vunpack.i.h.bf16 %v10247_v59  ;;  %v10248_v63 = vunpack.i.l.bf16 %v10247_v59  ;;  %7407 = vmatmul.mubr.f32.gmra.mxu0 %v7304_v8  ;;  %7487 = vmatmul.mubr.f32.vlgmr.msra.gmra.mxu1 %v7311_v55  ;;  %v7227_v0 = vpop.f32.mrf.mxu1 }
 0xa61   :  { %v7309_v18 = vsel %vm6178_vm3, %v16362_v23, %v10248_v63  ;;  %v7316_v26 = vsel %vm6178_vm3, %v16505_v40, %v10249_v2 }
 0xa62   :  { %v10252_v30 = vpop.permute.xlu1 %10251  ;;  %7411 = vmatprep.mubr.f32.mxu0 %v7309_v18  ;;  %7491 = vmatprep.mubr.f32.mxu1 %v7316_v26 }
 0xa63   :  { %v10254_v53 = vunpack.i.h.bf16 %v10252_v30  ;;  %v10253_v52 = vunpack.i.l.bf16 %v10252_v30  ;;  %7412 = vmatmul.mubr.f32.gmra.mxu0 %v7305_v32  ;;  %7492 = vmatmul.mubr.f32.gmra.mxu1 %v7312_v6 }
 0xa65   :  { %v7310_v23 = vsel %vm6178_vm3, %v16377_v17, %v10253_v52  ;;  %v7317_v40 = vsel %vm6178_vm3, %v16478_v50, %v10254_v53  ;;  %v7228_v17 = vadd.f32 %v7227_v0, %v7050_v43 }
 0xa66   :  { %v10262_v9 = vpop.permute.xlu1 %10261  ;;  %7416 = vmatprep.mubr.f32.mxu0 %v7310_v23  ;;  %7496 = vmatprep.mubr.f32.mxu1 %v7317_v40 }
 0xa67   :  { %v10264_v58 = vunpack.i.h.bf16 %v10262_v9  ;;  %v10263_v51 = vunpack.i.l.bf16 %v10262_v9  ;;  %7417 = vmatmul.mubr.f32.gmra.mxu0 %v7306_v31  ;;  %7497 = vmatmul.mubr.f32.gmra.mxu1 %v7313_v11  ;;  %v10735_v31 = vld [vmem:[%s17180_s11] sm:$0xff]  }
 0xa68   :  { %9834 = vmatprep.mubr.msk.f32.mxu0 %vm6178_vm3, %v7225_v60 }
 0xa69   :  { %v7318_v50 = vsel %vm6178_vm3, %v16500_v45, %v10263_v51  ;;  %v7314_v21 = vsel %vm6178_vm3, %v16429_v15, %v10264_v58 }
 0xa6a   :  { %7501 = vmatprep.mubr.f32.mxu1 %v7318_v50  ;;  %v10737_v50 = vld [vmem:[%s17180_s11 + $0x10] sm:$0xff]  }
 0xa6b   :  { %7502 = vmatmul.mubr.f32.gmra.mxu1 %v7314_v21  ;;  %9835 = vmatmul.mubr.msk.f32.vlgmr.msra.gmra.mxu0 %vm6178_vm3, %v7228_v17  ;;  %v10736_v17 = vld [vmem:[%s17180_s11 + $0x8] sm:$0xff]   ;;  %v10738_v21 = vld [vmem:[%s17180_s11 + $0x18] sm:$0xff]  }
 0xa6c   :  { %9837 = vmatprep.mubr.msk.f32.mxu0 %vm6178_vm3, %v7233_v44  ;;  %9868 = vmatprep.mubr.msk.bf16.mxu1 %vm11062_vm5, %v11061_v24  ;;  %v10739_v44 = vld [vmem:[%s17180_s11 + $0x20] ss:$0 sps:$4 sm:$0xff]  }
 0xa6f   :  { %9838 = vmatmul.mubr.msk.f32.gmra.mxu0 %vm6178_vm3, %v7236_v10  ;;  %v7636_v10 = vld [vmem:[%s17181_s12 + $0xf8] sm:$0xff] }
 0xa70   :  { %9844 = vmatprep.mubr.msk.bf16.mxu0 %vm11062_vm5, %v11061_v24 }
 0xaff   :  { %v9326_v15 = vpop.f32.mrf.mxu0 }
 0xb01   :  { %v9327_v45 = vpop.f32.mrf.mxu0 }
 0xb02   :  { %v9328_v56 = vadd.f32 %v9327_v45, %v9326_v15  ;;  %v7620_v15 = vld [vmem:[%s17181_s12 + $0x78] sm:$0xff]  ;;  %v7635_v45 = vld [vmem:[%s17181_s12 + $0xf0] sm:$0xff] }
 0xb04   :  { %v7404_v4 = vadd.f32 %v9328_v56, %v9035_v20  ;;  %v7616_v56 = vld [vmem:[%s17181_s12 + $0x58] sm:$0xff] }
 0xb1f   :  { %v9329_v42 = vpop.f32.mrf.mxu0  ;;  %v9370_v46 = vpop.f32.mrf.mxu1 }
 0xb21   :  { %v9330_v33 = vpop.f32.mrf.mxu0  ;;  %v9371_v36 = vpop.f32.mrf.mxu1 }
 0xb22   :  { %v9331_v35 = vadd.f32 %v9330_v33, %v9329_v42  ;;  %v9372_v48 = vadd.f32 %v9371_v36, %v9370_v46  ;;  %v7619_v42 = vld [vmem:[%s17181_s12 + $0x70] sm:$0xff]  ;;  %v7634_v46 = vld [vmem:[%s17181_s12 + $0xe8] sm:$0xff]  ;;  %v7633_v36 = vld [vmem:[%s17181_s12 + $0xe0] sm:$0xff] }
 0xb23   :  { %v9332_v25 = vpop.f32.mrf.mxu0  ;;  %v9373_v54 = vpop.f32.mrf.mxu1  ;;  %v7618_v33 = vld [vmem:[%s17181_s12 + $0x68] sm:$0xff] }
 0xb24   :  { %v7409_v39 = vadd.f32 %v9331_v35, %v9035_v20  ;;  %v7489_v37 = vadd.f32 %v9372_v48, %v7404_v4  ;;  %v7667_v35 = vld [vmem:[%s17181_s12 + $0x1f0] sm:$0xff]  ;;  %v7614_v4 = vld [vmem:[%s17181_s12 + $0x48] sm:$0xff] }
 0xb25   :  { %v9333_v28 = vpop.f32.mrf.mxu0  ;;  %v9374_v19 = vpop.f32.mrf.mxu1  ;;  %v7615_v48 = vld [vmem:[%s17181_s12 + $0x50] sm:$0xff] }
 0xb26   :  { %v9375_v57 = vadd.f32 %v9374_v19, %v9373_v54  ;;  %v9334_v38 = vadd.f32 %v9333_v28, %v9332_v25  ;;  %v7617_v25 = vld [vmem:[%s17181_s12 + $0x60] sm:$0xff]  ;;  %v7668_v54 = vld [vmem:[%s17181_s12 + $0x1f8] sm:$0xff] }
 0xb27   :  { %v9335_v3 = vpop.f32.mrf.mxu0  ;;  %v9376_v13 = vpop.f32.mrf.mxu1  ;;  %v7632_v28 = vld [vmem:[%s17181_s12 + $0xd8] sm:$0xff] }
 0xb28   :  { %v7494_v61 = vadd.f32 %v9375_v57, %v7409_v39  ;;  %v7414_v55 = vadd.f32 %v9334_v38, %v9035_v20  ;;  %v7652_v19 = vld [vmem:[%s17181_s12 + $0x178] sm:$0xff]  ;;  %v7650_v57 = vld [vmem:[%s17181_s12 + $0x168] sm:$0xff]  ;;  %v7665_v38 = vld [vmem:[%s17181_s12 + $0x1e0] sm:$0xff] }
 0xb29   :  { %v9336_v47 = vpop.f32.mrf.mxu0  ;;  %v9377_v29 = vpop.f32.mrf.mxu1  ;;  %v7664_v39 = vld [vmem:[%s17181_s12 + $0x1d8] sm:$0xff] }
 0xb2a   :  { %v9337_v5 = vadd.f32 %v9336_v47, %v9335_v3  ;;  %v9378_v7 = vadd.f32 %v9377_v29, %v9376_v13  ;;  %v7631_v3 = vld [vmem:[%s17181_s12 + $0xd0] sm:$0xff]  ;;  %v7666_v13 = vld [vmem:[%s17181_s12 + $0x1e8] sm:$0xff]  ;;  %v7649_v29 = vld [vmem:[%s17181_s12 + $0x160] sm:$0xff] }
 0xb2b   :  { %v9379_v22 = vpop.f32.mrf.mxu1  ;;  %v9836_v41 = vpop.f32.mrf.mxu0  ;;  %v7630_v47 = vld [vmem:[%s17181_s12 + $0xc8] sm:$0xff] }
 0xb2c   :  { %v7419_v59 = vadd.f32 %v9337_v5, %v9035_v20  ;;  %v7579_v8 = vadd.f32 %v9836_v41, %v7494_v61  ;;  %v7499_v26 = vadd.f32 %v9378_v7, %v7414_v55  ;;  %v7651_v20 = vld [vmem:[%s17181_s12 + $0x170] sm:$0xff]  ;;  %v7629_v5 = vld [vmem:[%s17181_s12 + $0xc0] sm:$0xff]  ;;  %v7628_v61 = vld [vmem:[%s17181_s12 + $0xb8] sm:$0xff] }
 0xb2d   :  { %v9380_v49 = vpop.f32.mrf.mxu1  ;;  %v7573_v1 = vpop.f32.mrf.mxu0  ;;  %v7613_v41 = vld [vmem:[%s17181_s12 + $0x40] sm:$0xff]  ;;  %v7663_v7 = vld [vmem:[%s17181_s12 + $0x1d0] sm:$0xff]  ;;  %v7612_v55 = vld [vmem:[%s17181_s12 + $0x38] sm:$0xff] }
 0xb2e   :  { %v9381_v12 = vadd.f32 %v9380_v49, %v9379_v22  ;;  %v7574_v62 = vadd.f32 %v7573_v1, %v7489_v37  ;;  %v7593_v27 = vmax.f32 %v7579_v8, 0.0  ;;  %v7648_v22 = vld [vmem:[%s17181_s12 + $0x158] sm:$0xff]  ;;  %v7647_v37 = vld [vmem:[%s17181_s12 + $0x150] sm:$0xff]  ;;  %v7610_v8 = vld [vmem:[%s17181_s12 + $0x28] sm:$0xff] }
 0xb2f   :  { %v9839_v2 = vpop.f32.mrf.mxu0  ;;  %v7627_v49 = vld [vmem:[%s17181_s12 + $0xb0] sm:$0xff] }
 0xb30   :  { %v7592_v63 = vmax.f32 %v7574_v62, 0.0  ;;  %v7504_v18 = vadd.f32 %v9381_v12, %v7419_v59  ;;  %v7611_v1 = vld [vmem:[%s17181_s12 + $0x30] sm:$0xff]  ;;  %v7626_v59 = vld [vmem:[%s17181_s12 + $0xa8] sm:$0xff]  ;;  %v7625_v12 = vld [vmem:[%s17181_s12 + $0xa0] sm:$0xff] }
 0xb31   :  { %v7583_v34 = vpop.f32.mrf.mxu0  ;;  %v7609_v62 = vld [vmem:[%s17181_s12 + $0x20] sm:$0xff] }
 0xb32   :  { %v7589_v16 = vadd.f32 %v9839_v2, %v7504_v18  ;;  %v7584_v30 = vadd.f32 %v7583_v34, %v7499_v26  ;;  %v7678_v32 = vpack.c.bf16 %v7593_v27, %v7592_v63  ;;  %v7624_v2 = vld [vmem:[%s17181_s12 + $0x98] sm:$0xff]  ;;  %v7623_v18 = vld [vmem:[%s17181_s12 + $0x90] sm:$0xff] }
 0xb33   :  { %v7607_v26 = vld [vmem:[%s17181_s12 + $0x10] sm:$0xff] }
 0xb34   :  { %v7595_v6 = vmax.f32 %v7589_v16, 0.0  ;;  %v7594_v14 = vmax.f32 %v7584_v30, 0.0  ;;  %v7680_v52 = vunpack.c.l.bf16 %v7678_v32  ;;  %v7681_v23 = vunpack.c.h.bf16 %v7678_v32 }
 0xb36   :  { %v7679_v53 = vpack.c.bf16 %v7595_v6, %v7594_v14  ;;  %v7684_v11 = vsub.f32 %v7592_v63, %v7680_v52  ;;  %v7685_v43 = vsub.f32 %v7593_v27, %v7681_v23  ;;  %v7608_v63 = vld [vmem:[%s17181_s12 + $0x18] sm:$0xff] }
 0xb38   :  { %v7682_v40 = vunpack.c.l.bf16 %v7679_v53  ;;  %v7683_v0 = vunpack.c.h.bf16 %v7679_v53  ;;  %9865 = vmatpush3.bf16.msra.mxu1 %v7679_v53  ;;  %v7688_v51 = vpack.c.bf16 %v7685_v43, %v7684_v11  ;;  %v7646_v11 = vld [vmem:[%s17181_s12 + $0x148] sm:$0xff]  ;;  %v7621_v43 = vld [vmem:[%s17181_s12 + $0x80] sm:$0xff] }
 0xb39   :  { %9866 = vmatprep.subr.bf16.mxu1 %v11061_v24 }
 0xb3a   :  { %v7686_v60 = vsub.f32 %v7594_v14, %v7682_v40  ;;  %v7687_v9 = vsub.f32 %v7595_v6, %v7683_v0 }
 0xb3c   :  { %v7689_v58 = vpack.c.bf16 %v7687_v9, %v7686_v60  ;;  %9867 = vmatpush3.bf16.msra.mxu1 %v7678_v32  ;;  %v7622_v60 = vld [vmem:[%s17181_s12 + $0x88] sm:$0xff] }
 0xb3d   :  { %9443 = vmatprep.subr.mxu1 %v7668_v54  ;;  %v7662_v9 = vld [vmem:[%s17181_s12 + $0x1c8] sm:$0xff] }
 0xb3e   :  { %9841 = vmatpush3.bf16.msra.mxu0 %v7689_v58  ;;  %v7661_v58 = vld [vmem:[%s17181_s12 + $0x1c0] sm:$0xff]  ;;  %v7658_v54 = vld [vmem:[%s17181_s12 + $0x1a8] sm:$0xff] }
 0xb3f   :  { %9842 = vmatprep.subr.bf16.mxu0 %v11061_v24  ;;  %9869 = vmatmul.mubr.msk.bf16.vlgmr.msra.gmra.mxu1 %vm781_vm2, %v10735_v31 }
 0xb40   :  { %9872 = vmatprep.mubr.msk.bf16.mxu1 %vm11062_vm5, %v11061_v24  ;;  %9444 = vmatpush3.msra.mxu1 %v7652_v19 }
 0xb41   :  { %9445 = vmatprep.subr.mxu1 %v7667_v35 }
 0xb42   :  { %9843 = vmatpush3.bf16.msra.mxu0 %v7688_v51  ;;  %9446 = vmatpush3.msra.mxu1 %v7651_v20 }
 0xb43   :  { %9408 = vmatprep.subr.mxu0 %v7636_v10  ;;  %9447 = vmatprep.subr.mxu1 %v7666_v13 }
 0xb44   :  { %9448 = vmatpush3.msra.mxu1 %v7650_v57 }
 0xb45   :  { %9845 = vmatmul.mubr.msk.bf16.vlgmr.msra.gmra.mxu0 %vm781_vm2, %v10735_v31  ;;  %9449 = vmatprep.subr.mxu1 %v7665_v38  ;;  %v7606_v31 = vld [vmem:[%s17181_s12 + $0x8] sm:$0xff] }
 0xb46   :  { %9848 = vmatprep.mubr.msk.bf16.mxu0 %vm11062_vm5, %v11061_v24  ;;  %9409 = vmatpush3.msra.mxu0 %v7620_v15  ;;  %v7644_v15 = vld [vmem:[%s17181_s12 + $0x138] sm:$0xff] }
 0xb47   :  { %9873 = vmatmul.mubr.msk.bf16.gmra.mxu1 %vm781_vm2, %v10736_v17  ;;  %9410 = vmatprep.subr.mxu0 %v7635_v45 }
 0xb48   :  { %9876 = vmatprep.mubr.msk.bf16.mxu1 %vm11062_vm5, %v11061_v24  ;;  %9411 = vmatpush3.msra.mxu0 %v7619_v42 }
 0xb49   :  { %9412 = vmatprep.subr.mxu0 %v7634_v46  ;;  %9450 = vmatpush3.msra.mxu1 %v7649_v29  ;;  %v7659_v46 = vld [vmem:[%s17181_s12 + $0x1b0] sm:$0xff] }
 0xb4a   :  { %9413 = vmatpush3.msra.mxu0 %v7618_v33  ;;  %9451 = vmatprep.subr.mxu1 %v7664_v39  ;;  %v7643_v33 = vld [vmem:[%s17181_s12 + $0x130] sm:$0xff] }
 0xb4b   :  { %9414 = vmatprep.subr.mxu0 %v7633_v36  ;;  %9452 = vmatpush3.msra.mxu1 %v7648_v22  ;;  %v7655_v22 = vld [vmem:[%s17181_s12 + $0x190] sm:$0xff] }
 0xb4c   :  { %9415 = vmatpush3.msra.mxu0 %v7617_v25  ;;  %9453 = vmatprep.subr.mxu1 %v7663_v7 }
 0xb4d   :  { %9849 = vmatmul.mubr.msk.bf16.gmra.mxu0 %vm781_vm2, %v10736_v17  ;;  %9416 = vmatprep.subr.mxu0 %v7632_v28 }
 0xb4e   :  { %9852 = vmatprep.mubr.msk.bf16.mxu0 %vm11062_vm5, %v11061_v24  ;;  %9417 = vmatpush3.msra.mxu0 %v7616_v56  ;;  %v7642_v56 = vld [vmem:[%s17181_s12 + $0x128] sm:$0xff] }
 0xb4f   :  { %9877 = vmatmul.mubr.msk.bf16.gmra.mxu1 %vm781_vm2, %v10737_v50  ;;  %9418 = vmatprep.subr.mxu0 %v7631_v3  ;;  %v7657_v3 = vld [vmem:[%s17181_s12 + $0x1a0] sm:$0xff] }
 0xb50   :  { %9880 = vmatprep.mubr.msk.bf16.mxu1 %vm11062_vm5, %v11061_v24  ;;  %9419 = vmatpush3.msra.mxu0 %v7615_v48  ;;  %v7641_v48 = vld [vmem:[%s17181_s12 + $0x120] sm:$0xff] }
 0xb51   :  { %9420 = vmatprep.subr.mxu0 %v7630_v47  ;;  %9454 = vmatpush3.msra.mxu1 %v7647_v37  ;;  %v7656_v47 = vld [vmem:[%s17181_s12 + $0x198] sm:$0xff] }
 0xb52   :  { %9421 = vmatpush3.msra.mxu0 %v7614_v4  ;;  %9455 = vmatprep.subr.mxu1 %v7662_v9  ;;  %v7640_v4 = vld [vmem:[%s17181_s12 + $0x118] sm:$0xff] }
 0xb53   :  { %9422 = vmatprep.subr.mxu0 %v7629_v5  ;;  %9456 = vmatpush3.msra.mxu1 %v7646_v11 }
 0xb54   :  { %9423 = vmatpush3.msra.mxu0 %v7613_v41  ;;  %9457 = vmatprep.subr.mxu1 %v7661_v58  ;;  %v7639_v41 = vld [vmem:[%s17181_s12 + $0x110] sm:$0xff] }
 0xb55   :  { %9853 = vmatmul.mubr.msk.bf16.gmra.mxu0 %vm781_vm2, %v10737_v50  ;;  %9424 = vmatprep.subr.mxu0 %v7628_v61  ;;  %v7605_v50 = vld [vmem:[%s17181_s12] sm:$0xff] }
 0xb56   :  { %9856 = vmatprep.mubr.msk.bf16.mxu0 %vm11062_vm5, %v11061_v24  ;;  %9425 = vmatpush3.msra.mxu0 %v7612_v55 }
 0xb57   :  { %9881 = vmatmul.mubr.msk.bf16.gmra.mxu1 %vm781_vm2, %v10738_v21  ;;  %9426 = vmatprep.subr.mxu0 %v7627_v49  ;;  %v7654_v49 = vld [vmem:[%s17181_s12 + $0x188] sm:$0xff] }
 0xb58   :  { %9884 = vmatprep.mubr.msk.bf16.mxu1 %vm11062_vm5, %v11061_v24  ;;  %9427 = vmatpush3.msra.mxu0 %v7611_v1  ;;  %v7638_v1 = vld [vmem:[%s17181_s12 + $0x108] sm:$0xff] }
 0xb59   :  { %9428 = vmatprep.subr.mxu0 %v7626_v59  ;;  %v7653_v59 = vld [vmem:[%s17181_s12 + $0x180] sm:$0xff] }
 0xb5a   :  { %9429 = vmatpush3.msra.mxu0 %v7610_v8  ;;  %v7637_v8 = vld [vmem:[%s17181_s12 + $0x100] sm:$0xff] }
 0xb5b   :  { %9430 = vmatprep.subr.mxu0 %v7625_v12 }
 0xb5c   :  { %9431 = vmatpush3.msra.mxu0 %v7609_v62 }
 0xb5d   :  { %9857 = vmatmul.mubr.msk.bf16.gmra.mxu0 %vm781_vm2, %v10738_v21  ;;  %9432 = vmatprep.subr.mxu0 %v7624_v2  ;;  %v7645_v21 = vld [vmem:[%s17181_s12 + $0x140] sm:$0xff] }
 0xb5e   :  { %9860 = vmatprep.mubr.msk.bf16.mxu0 %vm11062_vm5, %v11061_v24  ;;  %9433 = vmatpush3.msra.mxu0 %v7608_v63 }
 0xb5f   :  { %9885 = vmatmul.mubr.msk.bf16.gmra.mxu1 %vm781_vm2, %v10739_v44  ;;  %9434 = vmatprep.subr.mxu0 %v7623_v18 }
 0xb60   :  { %9435 = vmatpush3.msra.mxu0 %v7607_v26  ;;  %9458 = vmatpush3.msra.mxu1 %v7645_v21  ;;  %v7672_v21 = vld [vmem:[%s17181_s12 + $0x218] sm:$0xff] }
 0xb61   :  { %9436 = vmatprep.subr.mxu0 %v7622_v60 }
 0xb62   :  { %9437 = vmatpush3.msra.mxu0 %v7606_v31 }
 0xb63   :  { %9438 = vmatprep.subr.mxu0 %v7621_v43 }
 0xb64   :  { %9439 = vmatpush3.msra.mxu0 %v7605_v50  ;;  %v7673_v50 = vld [vmem:[%s17181_s12 + $0x220] sm:$0xff] }
 0xb65   :  { %9861 = vmatmul.mubr.msk.bf16.gmra.mxu0 %vm781_vm2, %v10739_v44  ;;  %v7660_v44 = vld [vmem:[%s17181_s12 + $0x1b8] sm:$0xff]  ;;  %9888 = vmatprep.subr.mxu0 %v11061_v24 }
 0xb66   :  { %9459 = vmatprep.subr.mxu1 %v7660_v44  ;;  %v7671_v44 = vld [vmem:[%s17181_s12 + $0x210] sm:$0xff] }
 0xb67   :  { %9460 = vmatpush3.msra.mxu1 %v7644_v15 }
 0xb68   :  { %9461 = vmatprep.subr.mxu1 %v7659_v46  ;;  %v7669_v46 = vld [vmem:[%s17181_s12 + $0x200] sm:$0xff] }
 0xb69   :  { %9462 = vmatpush3.msra.mxu1 %v7643_v33 }
 0xb6a   :  { %9463 = vmatprep.subr.mxu1 %v7658_v54 }
 0xb6b   :  { %9464 = vmatpush3.msra.mxu1 %v7642_v56 }
 0xb6c   :  { %9465 = vmatprep.subr.mxu1 %v7657_v3 }
 0xb6d   :  { %9466 = vmatpush3.msra.mxu1 %v7641_v48 }
 0xb6e   :  { %9467 = vmatprep.subr.mxu1 %v7656_v47 }
 0xb6f   :  { %9468 = vmatpush3.msra.mxu1 %v7640_v4 }
 0xb70   :  { %9469 = vmatprep.subr.mxu1 %v7655_v22 }
 0xb71   :  { %9470 = vmatpush3.msra.mxu1 %v7639_v41 }
 0xb72   :  { %9471 = vmatprep.subr.mxu1 %v7654_v49  ;;  %v10744_v49 = vld [vmem:[%s17183_s14 + $0x20] ss:$0 sps:$4 sm:$0xff]  }
 0xb73   :  { %9472 = vmatpush3.msra.mxu1 %v7638_v1  ;;  %v8152_v1 = vld [vmem:[%s17184_s15 + $0xf8] sm:$0xff] }
 0xb74   :  { %9473 = vmatprep.subr.mxu1 %v7653_v59  ;;  %v8136_v59 = vld [vmem:[%s17184_s15 + $0x78] sm:$0xff] }
 0xb75   :  { %9474 = vmatpush3.msra.mxu1 %v7637_v8  ;;  %v8151_v8 = vld [vmem:[%s17184_s15 + $0xf0] sm:$0xff] }
 0xb76   :  { %9929 = vmatprep.subr.bf16.mxu1 %v11061_v24 }
 0xbff   :  { %v7834_v34 = vpop.f32.mrf.mxu1 }
 0xc01   :  { %v9870_v27 = vpop.f32.mrf.mxu1 }
 0xc03   :  { %v7837_v16 = vpop.f32.mrf.mxu1 }
 0xc05   :  { %v7762_v30 = vpop.f32.mrf.mxu0  ;;  %v9871_v32 = vpop.f32.mrf.mxu1 }
 0xc06   :  { %v16749_v6 = vadd.f32 %v7834_v34, %v7762_v30 }
 0xc07   :  { %v9846_v14 = vpop.f32.mrf.mxu0  ;;  %v7842_v53 = vpop.f32.mrf.mxu1 }
 0xc09   :  { %v7765_v52 = vpop.f32.mrf.mxu0  ;;  %v9874_v23 = vpop.f32.mrf.mxu1 }
 0xc0a   :  { %v7838_v28 = vadd.f32 %v7837_v16, %v7765_v52 }
 0xc0b   :  { %v9847_v40 = vpop.f32.mrf.mxu0  ;;  %v7845_v0 = vpop.f32.mrf.mxu1 }
 0xc0d   :  { %v7770_v51 = vpop.f32.mrf.mxu0  ;;  %v9875_v17 = vpop.f32.mrf.mxu1 }
 0xc0e   :  { %v16778_v10 = vadd.f32 %v7842_v53, %v7770_v51  ;;  %v7676_v51 = vld [vmem:[%s17181_s12 + $0x238] sm:$0xff]  ;;  %v7675_v17 = vld [vmem:[%s17181_s12 + $0x230] sm:$0xff] }
 0xc0f   :  { %v9850_v45 = vpop.f32.mrf.mxu0  ;;  %v7850_v42 = vpop.f32.mrf.mxu1 }
 0xc11   :  { %v7773_v36 = vpop.f32.mrf.mxu0  ;;  %v9878_v25 = vpop.f32.mrf.mxu1 }
 0xc12   :  { %v7846_v19 = vadd.f32 %v7845_v0, %v7773_v36 }
 0xc13   :  { %v9851_v35 = vpop.f32.mrf.mxu0  ;;  %v7853_v20 = vpop.f32.mrf.mxu1 }
 0xc14   :  { %v10265_v13 = vpack.i.bf16 %v7838_v28, %v7846_v19  ;;  %v9055_v19 = vld [vmem:[%s17182_s13] ss:$0 sm:$0xff] }
 0xc15   :  { %v7778_v57 = vpop.f32.mrf.mxu0  ;;  %v9879_v38 = vpop.f32.mrf.mxu1 }
 0xc16   :  { %v16805_v29 = vadd.f32 %v7850_v42, %v7778_v57  ;;  %10266 = vrot.lane.b32.xlu0 %v10265_v13, %s11059_s5 }
 0xc17   :  { %v9854_v39 = vpop.f32.mrf.mxu0  ;;  %v7858_v5 = vpop.f32.mrf.mxu1 }
 0xc19   :  { %v7781_v7 = vpop.f32.mrf.mxu0  ;;  %v9882_v61 = vpop.f32.mrf.mxu1 }
 0xc1a   :  { %v7854_v27 = vadd.f32 %v7853_v20, %v7781_v7  ;;  %v10741_v61 = vld [vmem:[%s17183_s14 + $0x8] sm:$0xff]  }
 0xc1b   :  { %v9855_v37 = vpop.f32.mrf.mxu0  ;;  %v7861_v55 = vpop.f32.mrf.mxu1 }
 0xc1c   :  { %v10742_v37 = vld [vmem:[%s17183_s14 + $0x10] sm:$0xff]  }
 0xc1d   :  { %v7786_v12 = vpop.f32.mrf.mxu0  ;;  %v9883_v62 = vpop.f32.mrf.mxu1 }
 0xc1e   :  { %v7859_v2 = vadd.f32 %v7858_v5, %v7786_v12  ;;  %v10740_v5 = vld [vmem:[%s17183_s14] sm:$0xff]   ;;  %v8135_v12 = vld [vmem:[%s17184_s15 + $0x70] sm:$0xff]  ;;  %v8150_v62 = vld [vmem:[%s17184_s15 + $0xe8] sm:$0xff] }
 0xc1f   :  { %v9858_v63 = vpop.f32.mrf.mxu0  ;;  %v7866_v18 = vpop.f32.mrf.mxu1 }
 0xc20   :  { %v8149_v63 = vld [vmem:[%s17184_s15 + $0xe0] sm:$0xff] }
 0xc21   :  { %v7789_v26 = vpop.f32.mrf.mxu0  ;;  %v9886_v34 = vpop.f32.mrf.mxu1 }
 0xc22   :  { %v7862_v16 = vadd.f32 %v7861_v55, %v7789_v26  ;;  %v10743_v55 = vld [vmem:[%s17183_s14 + $0x18] sm:$0xff]  }
 0xc23   :  { %v9859_v30 = vpop.f32.mrf.mxu0  ;;  %v7869_v32 = vpop.f32.mrf.mxu1  ;;  %v8184_v26 = vld [vmem:[%s17184_s15 + $0x1f8] sm:$0xff] }
 0xc24   :  { %v10270_v14 = vpack.i.bf16 %v7854_v27, %v7862_v16  ;;  %v8148_v34 = vld [vmem:[%s17184_s15 + $0xd8] sm:$0xff]  ;;  %v8183_v30 = vld [vmem:[%s17184_s15 + $0x1f0] sm:$0xff] }
 0xc25   :  { %v7794_v53 = vpop.f32.mrf.mxu0  ;;  %v9887_v52 = vpop.f32.mrf.mxu1  ;;  %v8168_v27 = vld [vmem:[%s17184_s15 + $0x178] sm:$0xff]  ;;  %v8167_v32 = vld [vmem:[%s17184_s15 + $0x170] sm:$0xff] }
 0xc26   :  { %10271 = vrot.lane.b32.xlu1 %v10270_v14, %s11059_s5  ;;  %v7867_v23 = vadd.f32 %v7866_v18, %v7794_v53  ;;  %v8133_v18 = vld [vmem:[%s17184_s15 + $0x60] sm:$0xff]  ;;  %v8132_v16 = vld [vmem:[%s17184_s15 + $0x58] sm:$0xff]  ;;  %v8147_v14 = vld [vmem:[%s17184_s15 + $0xd0] sm:$0xff] }
 0xc27   :  { %v9862_v40 = vpop.f32.mrf.mxu0  ;;  %v8182_v53 = vld [vmem:[%s17184_s15 + $0x1e8] sm:$0xff]  ;;  %v8131_v52 = vld [vmem:[%s17184_s15 + $0x50] sm:$0xff] }
 0xc28   :  { %v8181_v40 = vld [vmem:[%s17184_s15 + $0x1e0] sm:$0xff] }
 0xc29   :  { %v7797_v0 = vpop.f32.mrf.mxu0 }
 0xc2a   :  { %v8146_v0 = vld [vmem:[%s17184_s15 + $0xc8] sm:$0xff] }
 0xc2b   :  { %v9863_v60 = vpop.f32.mrf.mxu0 }
 0xc2c   :  { %v8165_v60 = vld [vmem:[%s17184_s15 + $0x160] sm:$0xff] }
 0xc88   :  { %v10267_v9 = vpop.permute.xlu0 %10266 }
 0xc89   :  { %v10269_v31 = vunpack.i.h.bf16 %v10267_v9  ;;  %v10268_v11 = vunpack.i.l.bf16 %v10267_v9  ;;  %v8130_v9 = vld [vmem:[%s17184_s15 + $0x48] sm:$0xff] }
 0xc8b   :  { %v7888_v43 = vsel %vm6178_vm3, %v16749_v6, %v10269_v31  ;;  %v7889_v58 = vsel %vm6178_vm3, %v16778_v10, %v10268_v11  ;;  %v7674_v6 = vld [vmem:[%s17181_s12 + $0x228] sm:$0xff]  ;;  %v8180_v31 = vld [vmem:[%s17184_s15 + $0x1d8] sm:$0xff]  ;;  %v8145_v11 = vld [vmem:[%s17184_s15 + $0xc0] sm:$0xff] }
 0xc8c   :  { %7965 = vmatprep.mubr.f32.mxu0 %v7889_v58  ;;  %v7670_v10 = vld [vmem:[%s17181_s12 + $0x208] sm:$0xff]  ;;  %v8129_v58 = vld [vmem:[%s17184_s15 + $0x40] sm:$0xff] }
 0xc8d   :  { %7966 = vmatmul.mubr.f32.vlgmr.msra.gmra.mxu0 %v7888_v43  ;;  %v8164_v43 = vld [vmem:[%s17184_s15 + $0x158] sm:$0xff] }
 0xc8e   :  { %9889 = vmatpush3.msra.mxu0 %v7676_v51  ;;  %9904 = vmatprep.mubr.msk.f32.mxu0 %vm11062_vm5, %v11061_v24  ;;  %v8179_v51 = vld [vmem:[%s17184_s15 + $0x1d0] sm:$0xff] }
 0xc8f   :  { %9890 = vmatprep.subr.mxu0 %v11061_v24 }
 0xc90   :  { %9891 = vmatpush3.msra.mxu0 %v7675_v17  ;;  %v8144_v17 = vld [vmem:[%s17184_s15 + $0xb8] sm:$0xff] }
 0xc91   :  { %9892 = vmatprep.subr.mxu0 %v11061_v24 }
 0xc92   :  { %9893 = vmatpush3.msra.mxu0 %v7674_v6  ;;  %v8163_v6 = vld [vmem:[%s17184_s15 + $0x150] sm:$0xff] }
 0xc93   :  { %9894 = vmatprep.subr.mxu0 %v11061_v24 }
 0xc94   :  { %9895 = vmatpush3.msra.mxu0 %v7673_v50  ;;  %v8128_v50 = vld [vmem:[%s17184_s15 + $0x38] sm:$0xff] }
 0xc95   :  { %9896 = vmatprep.subr.mxu0 %v11061_v24 }
 0xc96   :  { %9897 = vmatpush3.msra.mxu0 %v7672_v21  ;;  %v8143_v21 = vld [vmem:[%s17184_s15 + $0xb0] sm:$0xff] }
 0xc97   :  { %9898 = vmatprep.subr.mxu0 %v11061_v24 }
 0xc98   :  { %v10272_v15 = vpop.permute.xlu1 %10271  ;;  %9899 = vmatpush3.msra.mxu0 %v7671_v44  ;;  %v8127_v44 = vld [vmem:[%s17184_s15 + $0x30] sm:$0xff] }
 0xc99   :  { %v10274_v45 = vunpack.i.h.bf16 %v10272_v15  ;;  %v10273_v42 = vunpack.i.l.bf16 %v10272_v15  ;;  %9900 = vmatprep.subr.mxu0 %v11061_v24  ;;  %v8126_v15 = vld [vmem:[%s17184_s15 + $0x28] sm:$0xff] }
 0xc9a   :  { %9901 = vmatpush3.msra.mxu0 %v7670_v10  ;;  %v8142_v10 = vld [vmem:[%s17184_s15 + $0xa8] sm:$0xff] }
 0xc9b   :  { %v7890_v33 = vsel %vm6178_vm3, %v16805_v29, %v10274_v45  ;;  %v7891_v36 = vsel %vm6178_vm3, %v7859_v2, %v10273_v42  ;;  %9902 = vmatprep.subr.mxu0 %v11061_v24  ;;  %v8134_v2 = vld [vmem:[%s17184_s15 + $0x68] sm:$0xff]  ;;  %v8141_v45 = vld [vmem:[%s17184_s15 + $0xa0] sm:$0xff] }
 0xc9c   :  { %8035 = vmatprep.mubr.f32.mxu1 %v7891_v36  ;;  %9903 = vmatpush3.msra.mxu0 %v7669_v46  ;;  %v8125_v42 = vld [vmem:[%s17184_s15 + $0x20] sm:$0xff]  ;;  %v8140_v46 = vld [vmem:[%s17184_s15 + $0x98] sm:$0xff]  ;;  %v8139_v36 = vld [vmem:[%s17184_s15 + $0x90] sm:$0xff] }
 0xc9d   :  { %8036 = vmatmul.mubr.f32.vlgmr.msra.gmra.mxu1 %v7890_v33  ;;  %9905 = vmatmul.mubr.msk.f32.vlgmr.msra.gmra.mxu0 %vm6178_vm3, %v7867_v23  ;;  %v8166_v23 = vld [vmem:[%s17184_s15 + $0x168] sm:$0xff]  ;;  %v8124_v33 = vld [vmem:[%s17184_s15 + $0x18] sm:$0xff] }
 0xc9e   :  { %9907 = vmatprep.subr.bf16.mxu0 %v11061_v24  ;;  %9909 = vmatprep.mubr.msk.bf16.mxu0 %vm11062_vm5, %v11061_v24 }
 0xc9f   :  { %9931 = vmatprep.mubr.msk.bf16.mxu1 %vm11062_vm5, %v11061_v24 }
 0xd4d   :  { %v9440_v25 = vpop.f32.mrf.mxu0 }
 0xd4f   :  { %v9441_v54 = vpop.f32.mrf.mxu0 }
 0xd50   :  { %v9442_v28 = vadd.f32 %v9441_v54, %v9440_v25  ;;  %v8123_v25 = vld [vmem:[%s17184_s15 + $0x10] sm:$0xff] }
 0xd52   :  { %v7968_v13 = vadd.f32 %v9442_v28, %v9055_v19 }
 0xd5d   :  { %v9475_v56 = vpop.f32.mrf.mxu1  ;;  %v8107_v35 = vpop.f32.mrf.mxu0 }
 0xd5f   :  { %v9476_v20 = vpop.f32.mrf.mxu1  ;;  %v9906_v3 = vpop.f32.mrf.mxu0 }
 0xd60   :  { %v9477_v48 = vadd.f32 %v9476_v20, %v9475_v56 }
 0xd62   :  { %v8038_v57 = vadd.f32 %v9477_v48, %v7968_v13 }
 0xd64   :  { %v8108_v38 = vadd.f32 %v8107_v35, %v8038_v57 }
 0xd66   :  { %v8111_v47 = vmax.f32 %v8108_v38, 0.0 }
 0xd68   :  { %v8194_v29 = vpack.c.bf16 %v8111_v47, %v8111_v47 }
 0xd6a   :  { %v8195_v4 = vunpack.c.l.bf16 %v8194_v29  ;;  %v8314_v39 = vsel %vm8237_vm6, %v8194_v29, 0  ;;  %v8138_v29 = vld [vmem:[%s17184_s15 + $0x88] sm:$0xff] }
 0xd6b   :  { %9930 = vmatpush3.bf16.msra.mxu1 %v8314_v39  ;;  %v8122_v39 = vld [vmem:[%s17184_s15 + $0x8] sm:$0xff] }
 0xd6c   :  { %v8196_v22 = vsub.f32 %v8111_v47, %v8195_v4  ;;  %9534 = vmatprep.subr.mxu1 %v8184_v26  ;;  %v8178_v4 = vld [vmem:[%s17184_s15 + $0x1c8] sm:$0xff] }
 0xd6d   :  { %v8174_v26 = vld [vmem:[%s17184_s15 + $0x1a8] sm:$0xff] }
 0xd6e   :  { %v8197_v41 = vpack.c.bf16 %v8196_v22, %v8196_v22  ;;  %9932 = vmatmul.mubr.msk.bf16.vlgmr.msra.gmra.mxu1 %vm8221_vm7, %v10740_v5  ;;  %v8137_v22 = vld [vmem:[%s17184_s15 + $0x80] sm:$0xff] }
 0xd6f   :  { %9935 = vmatprep.mubr.msk.bf16.mxu1 %vm11062_vm5, %v11061_v24  ;;  %9535 = vmatpush3.msra.mxu1 %v8168_v27 }
 0xd70   :  { %v8239_v7 = vsel %vm8237_vm6, %v8197_v41, 0  ;;  %9536 = vmatprep.subr.mxu1 %v8183_v30  ;;  %v8177_v41 = vld [vmem:[%s17184_s15 + $0x1c0] sm:$0xff] }
 0xd71   :  { %9908 = vmatpush3.bf16.msra.mxu0 %v8239_v7  ;;  %9537 = vmatpush3.msra.mxu1 %v8167_v32 }
 0xd72   :  { %9499 = vmatprep.subr.mxu0 %v8152_v1  ;;  %9538 = vmatprep.subr.mxu1 %v8182_v53 }
 0xd73   :  { %9539 = vmatpush3.msra.mxu1 %v8166_v23 }
 0xd74   :  { %9910 = vmatmul.mubr.msk.bf16.vlgmr.msra.gmra.mxu0 %vm8221_vm7, %v10740_v5  ;;  %9540 = vmatprep.subr.mxu1 %v8181_v40  ;;  %v8162_v5 = vld [vmem:[%s17184_s15 + $0x148] sm:$0xff] }
 0xd75   :  { %9913 = vmatprep.mubr.msk.bf16.mxu0 %vm11062_vm5, %v11061_v24  ;;  %9500 = vmatpush3.msra.mxu0 %v8136_v59  ;;  %v8160_v59 = vld [vmem:[%s17184_s15 + $0x138] sm:$0xff] }
 0xd76   :  { %9936 = vmatmul.mubr.msk.bf16.gmra.mxu1 %vm8221_vm7, %v10741_v61  ;;  %9501 = vmatprep.subr.mxu0 %v8151_v8 }
 0xd77   :  { %9939 = vmatprep.mubr.msk.bf16.mxu1 %vm11062_vm5, %v11061_v24  ;;  %9502 = vmatpush3.msra.mxu0 %v8135_v12 }
 0xd78   :  { %9503 = vmatprep.subr.mxu0 %v8150_v62  ;;  %9541 = vmatpush3.msra.mxu1 %v8165_v60  ;;  %v8175_v62 = vld [vmem:[%s17184_s15 + $0x1b0] sm:$0xff] }
 0xd79   :  { %9504 = vmatpush3.msra.mxu0 %v8134_v2  ;;  %9542 = vmatprep.subr.mxu1 %v8180_v31  ;;  %v8159_v2 = vld [vmem:[%s17184_s15 + $0x130] sm:$0xff] }
 0xd7a   :  { %9505 = vmatprep.subr.mxu0 %v8149_v63  ;;  %9543 = vmatpush3.msra.mxu1 %v8164_v43  ;;  %v8171_v43 = vld [vmem:[%s17184_s15 + $0x190] sm:$0xff] }
 0xd7b   :  { %9506 = vmatpush3.msra.mxu0 %v8133_v18  ;;  %9544 = vmatprep.subr.mxu1 %v8179_v51 }
 0xd7c   :  { %9914 = vmatmul.mubr.msk.bf16.gmra.mxu0 %vm8221_vm7, %v10741_v61  ;;  %9507 = vmatprep.subr.mxu0 %v8148_v34 }
 0xd7d   :  { %9917 = vmatprep.mubr.msk.bf16.mxu0 %vm11062_vm5, %v11061_v24  ;;  %9508 = vmatpush3.msra.mxu0 %v8132_v16  ;;  %v8158_v16 = vld [vmem:[%s17184_s15 + $0x128] sm:$0xff] }
 0xd7e   :  { %9940 = vmatmul.mubr.msk.bf16.gmra.mxu1 %vm8221_vm7, %v10742_v37  ;;  %9509 = vmatprep.subr.mxu0 %v8147_v14  ;;  %v8173_v14 = vld [vmem:[%s17184_s15 + $0x1a0] sm:$0xff] }
 0xd7f   :  { %9943 = vmatprep.mubr.msk.bf16.mxu1 %vm11062_vm5, %v11061_v24  ;;  %9510 = vmatpush3.msra.mxu0 %v8131_v52  ;;  %v8157_v52 = vld [vmem:[%s17184_s15 + $0x120] sm:$0xff] }
 0xd80   :  { %9511 = vmatprep.subr.mxu0 %v8146_v0  ;;  %9545 = vmatpush3.msra.mxu1 %v8163_v6  ;;  %v8172_v0 = vld [vmem:[%s17184_s15 + $0x198] sm:$0xff] }
 0xd81   :  { %9512 = vmatpush3.msra.mxu0 %v8130_v9  ;;  %9546 = vmatprep.subr.mxu1 %v8178_v4  ;;  %v8156_v9 = vld [vmem:[%s17184_s15 + $0x118] sm:$0xff] }
 0xd82   :  { %9513 = vmatprep.subr.mxu0 %v8145_v11  ;;  %9547 = vmatpush3.msra.mxu1 %v8162_v5 }
 0xd83   :  { %9514 = vmatpush3.msra.mxu0 %v8129_v58  ;;  %9548 = vmatprep.subr.mxu1 %v8177_v41  ;;  %v8155_v58 = vld [vmem:[%s17184_s15 + $0x110] sm:$0xff] }
 0xd84   :  { %9918 = vmatmul.mubr.msk.bf16.gmra.mxu0 %vm8221_vm7, %v10742_v37  ;;  %9515 = vmatprep.subr.mxu0 %v8144_v17  ;;  %v8121_v37 = vld [vmem:[%s17184_s15] sm:$0xff] }
 0xd85   :  { %9921 = vmatprep.mubr.msk.bf16.mxu0 %vm11062_vm5, %v11061_v24  ;;  %9516 = vmatpush3.msra.mxu0 %v8128_v50 }
 0xd86   :  { %9944 = vmatmul.mubr.msk.bf16.gmra.mxu1 %vm8221_vm7, %v10743_v55  ;;  %9517 = vmatprep.subr.mxu0 %v8143_v21  ;;  %v8170_v21 = vld [vmem:[%s17184_s15 + $0x188] sm:$0xff] }
 0xd87   :  { %9947 = vmatprep.mubr.msk.bf16.mxu1 %vm11062_vm5, %v11061_v24  ;;  %9518 = vmatpush3.msra.mxu0 %v8127_v44  ;;  %v8154_v44 = vld [vmem:[%s17184_s15 + $0x108] sm:$0xff] }
 0xd88   :  { %9519 = vmatprep.subr.mxu0 %v8142_v10  ;;  %v8169_v10 = vld [vmem:[%s17184_s15 + $0x180] sm:$0xff] }
 0xd89   :  { %9520 = vmatpush3.msra.mxu0 %v8126_v15  ;;  %v8153_v15 = vld [vmem:[%s17184_s15 + $0x100] sm:$0xff] }
 0xd8a   :  { %9521 = vmatprep.subr.mxu0 %v8141_v45 }
 0xd8b   :  { %9522 = vmatpush3.msra.mxu0 %v8125_v42 }
 0xd8c   :  { %9922 = vmatmul.mubr.msk.bf16.gmra.mxu0 %vm8221_vm7, %v10743_v55  ;;  %9523 = vmatprep.subr.mxu0 %v8140_v46  ;;  %v8161_v55 = vld [vmem:[%s17184_s15 + $0x140] sm:$0xff] }
 0xd8d   :  { %9925 = vmatprep.mubr.msk.bf16.mxu0 %vm11062_vm5, %v11061_v24  ;;  %9524 = vmatpush3.msra.mxu0 %v8124_v33 }
 0xd8e   :  { %9948 = vmatmul.mubr.msk.bf16.gmra.mxu1 %vm8221_vm7, %v10744_v49  ;;  %9525 = vmatprep.subr.mxu0 %v8139_v36 }
 0xd8f   :  { %9526 = vmatpush3.msra.mxu0 %v8123_v25  ;;  %9549 = vmatpush3.msra.mxu1 %v8161_v55  ;;  %v8188_v55 = vld [vmem:[%s17184_s15 + $0x218] sm:$0xff] }
 0xd90   :  { %9527 = vmatprep.subr.mxu0 %v8138_v29 }
 0xd91   :  { %9528 = vmatpush3.msra.mxu0 %v8122_v39 }
 0xd92   :  { %9529 = vmatprep.subr.mxu0 %v8137_v22 }
 0xd93   :  { %9530 = vmatpush3.msra.mxu0 %v8121_v37  ;;  %v8189_v37 = vld [vmem:[%s17184_s15 + $0x220] sm:$0xff] }
 0xd94   :  { %9926 = vmatmul.mubr.msk.bf16.gmra.mxu0 %vm8221_vm7, %v10744_v49  ;;  %v8176_v49 = vld [vmem:[%s17184_s15 + $0x1b8] sm:$0xff]  ;;  %9951 = vmatprep.subr.mxu0 %v11061_v24 }
 0xd95   :  { %9550 = vmatprep.subr.mxu1 %v8176_v49  ;;  %v8187_v49 = vld [vmem:[%s17184_s15 + $0x210] sm:$0xff] }
 0xd96   :  { %9551 = vmatpush3.msra.mxu1 %v8160_v59 }
 0xd97   :  { %9552 = vmatprep.subr.mxu1 %v8175_v62  ;;  %v8185_v62 = vld [vmem:[%s17184_s15 + $0x200] sm:$0xff] }
 0xd98   :  { %9553 = vmatpush3.msra.mxu1 %v8159_v2 }
 0xd99   :  { %9554 = vmatprep.subr.mxu1 %v8174_v26 }
 0xd9a   :  { %9555 = vmatpush3.msra.mxu1 %v8158_v16 }
 0xd9b   :  { %9556 = vmatprep.subr.mxu1 %v8173_v14 }
 0xd9c   :  { %9557 = vmatpush3.msra.mxu1 %v8157_v52 }
 0xd9d   :  { %9558 = vmatprep.subr.mxu1 %v8172_v0 }
 0xd9e   :  { %9559 = vmatpush3.msra.mxu1 %v8156_v9 }
 0xd9f   :  { %9560 = vmatprep.subr.mxu1 %v8171_v43 }
 0xda0   :  { %9561 = vmatpush3.msra.mxu1 %v8155_v58 }
 0xda1   :  { %9562 = vmatprep.subr.mxu1 %v8170_v21 }
 0xda2   :  { %9563 = vmatpush3.msra.mxu1 %v8154_v44 }
 0xda3   :  { %9564 = vmatprep.subr.mxu1 %v8169_v10 }
 0xda4   :  { %9565 = vmatpush3.msra.mxu1 %v8153_v15 }
 0xe2e   :  { %v8350_v54 = vpop.f32.mrf.mxu1 }
 0xe30   :  { %v9933_v28 = vpop.f32.mrf.mxu1 }
 0xe32   :  { %v8353_v19 = vpop.f32.mrf.mxu1 }
 0xe34   :  { %v8275_v56 = vpop.f32.mrf.mxu0  ;;  %v9934_v35 = vpop.f32.mrf.mxu1 }
 0xe35   :  { %v17041_v20 = vadd.f32 %v8350_v54, %v8275_v56 }
 0xe36   :  { %v9911_v3 = vpop.f32.mrf.mxu0  ;;  %v8358_v13 = vpop.f32.mrf.mxu1 }
 0xe38   :  { %v8278_v48 = vpop.f32.mrf.mxu0  ;;  %v9937_v57 = vpop.f32.mrf.mxu1 }
 0xe39   :  { %v8354_v34 = vadd.f32 %v8353_v19, %v8278_v48 }
 0xe3a   :  { %v9912_v38 = vpop.f32.mrf.mxu0  ;;  %v8361_v47 = vpop.f32.mrf.mxu1 }
 0xe3c   :  { %v8283_v7 = vpop.f32.mrf.mxu0  ;;  %v9938_v61 = vpop.f32.mrf.mxu1 }
 0xe3d   :  { %v17070_v1 = vadd.f32 %v8358_v13, %v8283_v7  ;;  %v8192_v7 = vld [vmem:[%s17184_s15 + $0x238] sm:$0xff]  ;;  %v8191_v61 = vld [vmem:[%s17184_s15 + $0x230] sm:$0xff] }
 0xe3e   :  { %v9915_v8 = vpop.f32.mrf.mxu0  ;;  %v8366_v12 = vpop.f32.mrf.mxu1 }
 0xe40   :  { %v8286_v63 = vpop.f32.mrf.mxu0  ;;  %v9941_v18 = vpop.f32.mrf.mxu1 }
 0xe41   :  { %v8362_v27 = vadd.f32 %v8361_v47, %v8286_v63 }
 0xe42   :  { %v9916_v30 = vpop.f32.mrf.mxu0  ;;  %v8369_v32 = vpop.f32.mrf.mxu1 }
 0xe43   :  { %v10275_v53 = vpack.i.bf16 %v8354_v34, %v8362_v27  ;;  %v9072_v27 = vld [vmem:[%s17185_s16] ss:$0 sm:$0xff] }
 0xe44   :  { %v8291_v23 = vpop.f32.mrf.mxu0  ;;  %v9942_v40 = vpop.f32.mrf.mxu1 }
 0xe45   :  { %v17097_v60 = vadd.f32 %v8366_v12, %v8291_v23  ;;  %10276 = vrot.lane.b32.xlu0 %v10275_v53, %s11059_s5 }
 0xe46   :  { %v9919_v31 = vpop.f32.mrf.mxu0  ;;  %v8374_v11 = vpop.f32.mrf.mxu1 }
 0xe48   :  { %v8294_v51 = vpop.f32.mrf.mxu0  ;;  %v9945_v17 = vpop.f32.mrf.mxu1 }
 0xe49   :  { %v8370_v28 = vadd.f32 %v8369_v32, %v8294_v51 }
 0xe4a   :  { %v9920_v6 = vpop.f32.mrf.mxu0  ;;  %v8377_v50 = vpop.f32.mrf.mxu1 }
 0xe4c   :  { %v8299_v45 = vpop.f32.mrf.mxu0  ;;  %v9946_v42 = vpop.f32.mrf.mxu1 }
 0xe4d   :  { %v8375_v46 = vadd.f32 %v8374_v11, %v8299_v45 }
 0xe4e   :  { %v9923_v33 = vpop.f32.mrf.mxu0  ;;  %v8382_v36 = vpop.f32.mrf.mxu1 }
 0xe50   :  { %v8302_v25 = vpop.f32.mrf.mxu0  ;;  %v9949_v54 = vpop.f32.mrf.mxu1 }
 0xe51   :  { %v8378_v19 = vadd.f32 %v8377_v50, %v8302_v25 }
 0xe52   :  { %v9924_v56 = vpop.f32.mrf.mxu0  ;;  %v8385_v35 = vpop.f32.mrf.mxu1 }
 0xe53   :  { %v10280_v3 = vpack.i.bf16 %v8370_v28, %v8378_v19 }
 0xe54   :  { %v8307_v13 = vpop.f32.mrf.mxu0  ;;  %v9950_v48 = vpop.f32.mrf.mxu1 }
 0xe55   :  { %10281 = vrot.lane.b32.xlu1 %v10280_v3, %s11059_s5  ;;  %v8383_v57 = vadd.f32 %v8382_v36, %v8307_v13 }
 0xe56   :  { %v9927_v38 = vpop.f32.mrf.mxu0 }
 0xe58   :  { %v8310_v47 = vpop.f32.mrf.mxu0 }
 0xe5a   :  { %v9928_v29 = vpop.f32.mrf.mxu0 }
 0xeb7   :  { %v10277_v4 = vpop.permute.xlu0 %10276 }
 0xeb8   :  { %v10279_v39 = vunpack.i.h.bf16 %v10277_v4  ;;  %v10278_v5 = vunpack.i.l.bf16 %v10277_v4 }
 0xeba   :  { %v8404_v22 = vsel %vm6178_vm3, %v17041_v20, %v10279_v39  ;;  %v8405_v41 = vsel %vm6178_vm3, %v17070_v1, %v10278_v5  ;;  %v8190_v20 = vld [vmem:[%s17184_s15 + $0x228] sm:$0xff] }
 0xebb   :  { %8481 = vmatprep.mubr.f32.mxu0 %v8405_v41  ;;  %v8186_v1 = vld [vmem:[%s17184_s15 + $0x208] sm:$0xff]  ;;  %s11063_s15 = smov [#allocation2]  }
 0xebc   :  { %8482 = vmatmul.mubr.f32.vlgmr.msra.gmra.mxu0 %v8404_v22  ;;  %s8636_s27 = sshll.u32 %s11063_s15, 4  ;;  %s8637_s27 = int_to_ptr.vmem [resolvable:$true] %s8636_s27 }
 0xebd   :  { %9952 = vmatpush3.msra.mxu0 %v8192_v7  ;;  %9967 = vmatprep.mubr.msk.f32.mxu0 %vm11062_vm5, %v11061_v24  ;;  %s11035_s4 = scalar_lea.vmem %s8637_s27, 32  ;;  %p11040_p1 = scmp.lt.s32.totalorder %s8637_s27, %s8637_s27 }
 0xebe   :  { %9953 = vmatprep.subr.mxu0 %v11061_v24  ;;  %p11036_p0 = scmp.ne.s32.totalorder %s8637_s27, %s11035_s4  ;;  %p11041_p2 = scmp.lt.s32.totalorder %s11035_s4, %s11035_s4 }
 0xebf   :  { %9954 = vmatpush3.msra.mxu0 %v8191_v61 }
 0xec0   :  { %9955 = vmatprep.subr.mxu0 %v11061_v24  ;;  %p11042_p3 = por %p11041_p2, %p11040_p1 }
 0xec1   :  { %9956 = vmatpush3.msra.mxu0 %v8190_v20 }
 0xec2   :  { %9957 = vmatprep.subr.mxu0 %v11061_v24  ;;  %p11043_p4 = pnand %p11042_p3, %p11036_p0 }
 0xec3   :  { %9958 = vmatpush3.msra.mxu0 %v8189_v37 }
 0xec4   :  { %9959 = vmatprep.subr.mxu0 %v11061_v24 }
 0xec5   :  { %9960 = vmatpush3.msra.mxu0 %v8188_v55 }
 0xec6   :  { %9961 = vmatprep.subr.mxu0 %v11061_v24 }
 0xec7   :  { %v10282_v59 = vpop.permute.xlu1 %10281  ;;  %9962 = vmatpush3.msra.mxu0 %v8187_v49 }
 0xec8   :  { %v10284_v8 = vunpack.i.h.bf16 %v10282_v59  ;;  %v10283_v12 = vunpack.i.l.bf16 %v10282_v59  ;;  %9963 = vmatprep.subr.mxu0 %v11061_v24 }
 0xec9   :  { %9964 = vmatpush3.msra.mxu0 %v8186_v1 }
 0xeca   :  { %v8406_v2 = vsel %vm6178_vm3, %v17097_v60, %v10284_v8  ;;  %v8407_v63 = vsel %vm6178_vm3, %v8375_v46, %v10283_v12  ;;  %9965 = vmatprep.subr.mxu0 %v11061_v24 }
 0xecb   :  { %8551 = vmatprep.mubr.f32.mxu1 %v8407_v63  ;;  %9966 = vmatpush3.msra.mxu0 %v8185_v62 }
 0xecc   :  { %8552 = vmatmul.mubr.f32.vlgmr.msra.gmra.mxu1 %v8406_v2  ;;  %9968 = vmatmul.mubr.msk.f32.vlgmr.msra.gmra.mxu0 %vm6178_vm3, %v8383_v57 }
 0xf7c   :  { %v9531_v18 = vpop.f32.mrf.mxu0 }
 0xf7e   :  { %v9532_v26 = vpop.f32.mrf.mxu0 }
 0xf7f   :  { %v9533_v34 = vadd.f32 %v9532_v26, %v9531_v18 }
 0xf81   :  { %v8484_v53 = vadd.f32 %v9533_v34, %v9072_v27 }
 0xf8c   :  { %v9566_v16 = vpop.f32.mrf.mxu1  ;;  %v8623_v30 = vpop.f32.mrf.mxu0 }
 0xf8e   :  { %v9567_v32 = vpop.f32.mrf.mxu1  ;;  %v9969_v14 = vpop.f32.mrf.mxu0 }
 0xf8f   :  { %v9568_v52 = vadd.f32 %v9567_v32, %v9566_v16 }
 0xf91   :  { %v8554_v23 = vadd.f32 %v9568_v52, %v8484_v53 }
 0xf93   :  { %v8624_v24 = vadd.f32 %v8623_v30, %v8554_v23 }
 0xf95   :  { %v8627_v40 = vmax.f32 %v8624_v24, 0.0 }
 0xf97   :  { %8629 = vst.msk [vmem:[#allocation2] sm:$0x3] %vm8628_vm8, %v8627_v40 }
 0xf98   :  { %11046 = shalt.err (!%p11043_p4)
}
 0xf99   :  { %8639 = dma.vmem_to_hbm [thread:$0]  %s8637_s27, 32, %s17186_s17, [#allocation3]  }
 0xf9a   :  { %11055 = dma.done.wait [#allocation3], 32  }
 0xf9b   :  { %11056 = vsyncadd [#allocation3], 4294967264 }
 0xf9c   :  { %8643 = vsyncpa [#allocation3], 1 }

</bundles_post_ra>
